<compile_context>
chip_gen: v5e
topology: v5e:2x2
jax: 0.10.0
libtpu: 0.0.40
codegen_flags: <defaults>
</compile_context>

<pallas_src>
import functools

import numpy as np
import jax
import jax.numpy as jnp
from jax import lax
from jax.experimental import pallas as pl
from jax.experimental.pallas import tpu as pltpu


# ---------------------------------------------------------------------------
# Helpers
# ---------------------------------------------------------------------------
def _round_up(x, m):
    return ((x + m - 1) // m) * m


def _vmem_capacity_bytes():
    """Generation-aware VMEM capacity (128 MiB v5e/v6e, 64 MiB v7x)."""
    try:
        return int(pltpu.get_tpu_info().vmem_capacity_bytes)
    except Exception:
        return 64 * 2**20          # conservative fallback (v7x per-core VMEM)


def _choose_tile_h(H, W, cin_pad, cpad, budget_bytes):
    """Largest H-tile whose per-step VMEM footprint (incl. double-buffered
    weights, halo windows, processed window, f32 accumulator and output block)
    fits the budget.  Fails loudly if nothing fits."""
    cw = _round_up(W + 2, 8)
    cands = sorted({t for t in (128, 64, 32, 16, 8, 4, 2) if H % t == 0}
                   | ({H} if 2 <= H <= 256 else set()), reverse=True)
    w_bytes = 2 * 9 * cin_pad * cpad * 2            # double-buffered bf16 weights
    for th in cands:
        m = th * cw
        wlen = (th + 4) * cw
        need = (w_bytes
                + 2 * wlen * cin_pad * 2            # double-buffered halo window
                + wlen * cin_pad * 2                # processed (BN+ReLU+mask) window
                + m * cpad * 4                      # f32 accumulator scratch
                + 2 * m * cpad * 2                  # double-buffered output block
                + wlen * 4 + 8 * cin_pad * 4)       # column mask, scale/shift, misc
        if need <= budget_bytes:
            return th, cw
    raise ValueError(
        f"No H-tile fits the VMEM budget ({budget_bytes} B) for H={H}, W={W}, "
        f"cin_pad={cin_pad}, cpad={cpad}.")


def _bilinear_matrix_align_corners(n_in, n_out):
    """Row-interp matrix matching nn.Upsample(mode='bilinear', align_corners=True)."""
    A = np.zeros((n_out, n_in), dtype=np.float32)
    for i in range(n_out):
        src = i * (n_in - 1) / (n_out - 1) if n_out > 1 else 0.0
        i0 = min(int(np.floor(src)), n_in - 1)
        i1 = min(i0 + 1, n_in - 1)
        f = src - i0
        A[i, i0] += 1.0 - f
        A[i, i1] += f
    return A


def _prep_weights(w, cin_pad, cpad):
    """(3,3,Cin,Cout) -> (9, cin_pad, cpad) bf16 with zero padding rows/cols."""
    kh, kw, cin, cout = w.shape
    w9 = w.reshape(kh * kw, cin, cout)
    w9 = jnp.pad(w9, ((0, 0), (0, cin_pad - cin), (0, cpad - cout)))
    return w9.astype(jnp.bfloat16)


def _merge_moments(stats, c_keep, tile_count):
    """Chan/Welford-style merge of per-tile [sum, sumsq] partials -> (mean, var)."""
    s = stats[..., :c_keep].astype(jnp.float32)          # (N, T, 2, C)
    sum_t = s[:, :, 0, :]
    sq_t = s[:, :, 1, :]
    cnt = jnp.float32(tile_count)                        # valid pixels per tile
    n_tiles = sum_t.shape[0] * sum_t.shape[1]
    total = cnt * n_tiles
    mean_t = sum_t / cnt
    m2_t = sq_t - sum_t * mean_t                         # per-tile M2
    mean = jnp.sum(sum_t, axis=(0, 1)) / total
    m2 = jnp.sum(m2_t, axis=(0, 1)) + cnt * jnp.sum((mean_t - mean) ** 2, axis=(0, 1))
    var = jnp.maximum(m2 / total, 0.0)
    return mean, var


# ---------------------------------------------------------------------------
# Pallas kernel: fused (producer BN + ReLU + mask) -> 3x3 conv -> BN partials
# ---------------------------------------------------------------------------
def _conv3x3_bn_kernel(x_hbm, w_ref, scale_ref, shift_ref, cmask_ref,
                       y_ref, stats_ref,
                       xbuf, sem, xproc, acc_ref,
                       *, tile_h, cw, wlen, pad_top, apply_relu):
    """One (batch, H-tile) block.

    x_hbm:     (N, HP*cw, Cin_pad) bf16  row-flattened image, memory_space=ANY.
               Halo rows / pad columns may hold garbage: the fused mask kills them.
    w_ref:     (9, Cin_pad, Cpad) bf16   per-tap weights (lane-dense).
    scale/shift: (1, Cin_pad) f32        producer layer's folded BatchNorm.
    cmask_ref: (wlen, 1) f32             static column-validity pattern (col < W).
    y_ref:     (1, m, Cpad) bf16         pre-BN conv output block.
    stats_ref: (1, 1, 2, Cpad) f32       per-tile [sum, sum_sq] partial moments.
    xbuf:      (2, wlen, Cin_pad) bf16   double-buffered halo window.
    xproc:     (wlen, Cin_pad) bf16      BN+ReLU+masked window (GEMM LHS source).
    acc_ref:   (m, Cpad) f32             MXU accumulator.
    """
    n = pl.program_id(0)
    i = pl.program_id(1)
    n_h = pl.num_programs(1)
    m = tile_h * cw

    def start_fetch(tile_idx, slot_idx):
        start = (pad_top + tile_idx * tile_h - 2) * cw
        pltpu.make_async_copy(
            x_hbm.at[n, pl.ds(start, wlen), :], xbuf.at[slot_idx], sem.at[slot_idx]
        ).start()

    slot = i % 2

    @pl.when(i == 0)
    def _():                                  # prime this batch element's chain
        start_fetch(0, 0)

    # Prefetch the NEXT tile of the same batch element BEFORE waiting on the
    # current one (keeps the scalar address math ahead of the .wait()).
    # TODO(synk): cross-batch prefetch at i == n_h-1 would hide the per-batch
    # halo latency but is unsafe if the batch axis is split across TensorCores.
    @pl.when(i + 1 < n_h)
    def _():
        start_fetch(i + 1, 1 - slot)

    pltpu.make_async_copy(
        x_hbm.at[n, pl.ds(0, wlen), :], xbuf.at[slot], sem.at[slot]
    ).wait()

    # ---- fused producer BatchNorm (+ReLU) + validity mask on the halo window --
    x_f = xbuf[slot].astype(jnp.float32)                       # (wlen, Cin_pad)
    y = x_f * scale_ref[...] + shift_ref[...]
    if apply_relu:
        y = jnp.maximum(y, 0.0)
    q = lax.broadcasted_iota(jnp.int32, (wlen, 1), 0)
    lo = jnp.where(i == 0, 2 * cw, 0)                          # rows above image
    hi = wlen - jnp.where(i == n_h - 1, 2 * cw, 0)             # rows below image
    valid = (q >= lo) & (q < hi) & (cmask_ref[...] != 0.0)
    # jnp.where (select) so garbage/NaN in never-written halo rows cannot leak.
    xproc[...] = jnp.where(valid, y, 0.0).astype(xproc.dtype)

    # ---- 3x3 conv = 9 shifted GEMMs with f32 accumulation in VMEM scratch ----
    # TODO(synk): replace the 6 sublane-misaligned slices (dx != 1) with
    # pltpu.roll of the dy-aligned slab so the shift rides the XLU slot.
    for t in range(9):
        dy, dx = divmod(t, 3)
        p0 = (dy + 1) * cw + (dx - 1)                          # static flat shift
        lhs = xproc[pl.ds(p0, m), :]                           # (m, Cin_pad) bf16
        contrib = jnp.dot(lhs, w_ref[t], preferred_element_type=jnp.float32)
        if t == 0:
            acc_ref[...] = contrib
        else:
            acc_ref[...] += contrib

    acc = acc_ref[...]

    # ---- per-tile BatchNorm partial moments via ones-vector MXU GEMMs ----
    cm = cmask_ref[pl.ds(0, m), :]                             # (m, 1) output mask
    masked = acc * cm
    ones = jnp.ones((1, m), jnp.float32)
    stats_ref[0, 0, 0:1, :] = jnp.dot(ones, masked,
                                      preferred_element_type=jnp.float32)
    stats_ref[0, 0, 1:2, :] = jnp.dot(ones, masked * acc,
                                      preferred_element_type=jnp.float32)

    y_ref[0] = acc.astype(y_ref.dtype)


# ---------------------------------------------------------------------------
# Pallas wrapper
# ---------------------------------------------------------------------------
def _conv3x3_fused(x_flat, w9, scale_in, shift_in, cmask, *, N, H, cw, th,
                   cin_pad, cpad, pad_top, out_block_off, apply_relu, vmem_limit):
    n_h = H // th
    m = th * cw
    wlen = (th + 4) * cw
    out_blocks = n_h + 2 * out_block_off    # off=1: write into padded halo layout

    kernel = functools.partial(_conv3x3_bn_kernel, tile_h=th, cw=cw, wlen=wlen,
                               pad_top=pad_top, apply_relu=apply_relu)

    grid_spec = pltpu.PrefetchScalarGridSpec(
        num_scalar_prefetch=0,
        grid=(N, n_h),
        in_specs=[
            pl.BlockSpec(memory_space=pl.ANY),                      # flat image (HBM)
            # TODO(synk): pipeline_mode=pl.Buffered(1) would drop the hidden 2x
            # weight copy; the 2x is accounted for in the VMEM budget instead.
            pl.BlockSpec((9, cin_pad, cpad), lambda n, i: (0, 0, 0)),
            pl.BlockSpec((1, cin_pad), lambda n, i: (0, 0)),        # producer scale
            pl.BlockSpec((1, cin_pad), lambda n, i: (0, 0)),        # producer shift
            pl.BlockSpec((wlen, 1), lambda n, i: (0, 0)),           # column mask
        ],
        out_specs=[
            pl.BlockSpec((1, m, cpad), lambda n, i: (n, i + out_block_off, 0)),
            pl.BlockSpec((1, 1, 2, cpad), lambda n, i: (n, i, 0, 0)),
        ],
        scratch_shapes=[
            pltpu.VMEM((2, wlen, cin_pad), jnp.bfloat16),           # halo double-buffer
            pltpu.SemaphoreType.DMA((2,)),
            pltpu.VMEM((wlen, cin_pad), jnp.bfloat16),              # processed window
            pltpu.VMEM((m, cpad), jnp.float32),                     # f32 accumulator
        ],
    )
    return pl.pallas_call(
        kernel,
        out_shape=(
            jax.ShapeDtypeStruct((N, out_blocks * m, cpad), jnp.bfloat16),
            jax.ShapeDtypeStruct((N, n_h, 2, cpad), jnp.float32),
        ),
        grid_spec=grid_spec,
        # TODO(synk): on v7x with N == 1 split the H-tile axis across the two
        # TensorCores in the wrapper so the second core does not idle.
        compiler_params=pltpu.CompilerParams(
            dimension_semantics=("parallel", "arbitrary"),
            vmem_limit_bytes=vmem_limit),
    )(x_flat, w9, scale_in, shift_in, cmask)


# ---------------------------------------------------------------------------
# Forward pass
# ---------------------------------------------------------------------------
def decoder_bottleneck_forward(params, x_nchw, x_concat_nchw=None,
                               scale_factor=2, tile_h=None, eps=1e-5):
    x = jnp.transpose(x_nchw, (0, 2, 3, 1)).astype(jnp.float32)     # NCHW -> NHWC
    N, H0, W0, _ = x.shape
    Ah = jnp.asarray(_bilinear_matrix_align_corners(H0, H0 * scale_factor))
    Aw = jnp.asarray(_bilinear_matrix_align_corners(W0, W0 * scale_factor))
    # bilinear (align_corners=True) upsample is separable: two small matmuls
    x_up = jnp.einsum('ph,qw,nhwc->npqc', Ah, Aw, x)
    parts = []
    if x_concat_nchw is not None:                     # torch.cat([x_concat, x], dim=1)
        parts.append(jnp.transpose(x_concat_nchw, (0, 2, 3, 1)).astype(jnp.bfloat16))
    parts.append(x_up.astype(jnp.bfloat16))
    x_in = parts[0] if len(parts) == 1 else jnp.concatenate(parts, axis=-1)
    # TODO(synk): fold the concat into conv1 as a K-split (two accumulating dots
    # reading skip / upsampled tensors separately) to avoid this materialization.

    N, H, W, Cin = x_in.shape
    Cout = params['w1'].shape[-1]
    cin_pad = _round_up(Cin, 128)
    cpad = _round_up(Cout, 128)

    cap = _vmem_capacity_bytes()
    vmem_limit = min(int(cap * 0.75), 100 * 2**20)
    if tile_h is None:
        th, cw = _choose_tile_h(H, W, max(cin_pad, cpad), cpad,
                                budget_bytes=int(vmem_limit * 0.85))
    else:
        th = int(tile_h)
        cw = _round_up(W + 2, 8)
    assert th >= 2 and H % th == 0, "H must be divisible by the H-tile size (>=2)"
    n_h = H // th
    wlen = (th + 4) * cw

    # Layer-1 input: zero-padded, row-flattened, lane-dense NHWC (bf16).
    PAD_IN = 4                                   # only 2 halo rows are required
    xp = jnp.pad(x_in, ((0, 0), (PAD_IN, PAD_IN), (0, cw - W), (0, cin_pad - Cin)))
    xl = xp.reshape(N, (H + 2 * PAD_IN) * cw, cin_pad)

    # Static column-validity pattern for one (row-aligned) halo window.
    colpat = (np.arange(cw) < W).astype(np.float32)
    cmask = jnp.asarray(np.tile(colpat, th + 4)[:, None])           # (wlen, 1)

    w1 = _prep_weights(params['w1'], cin_pad, cpad)
    w2 = _prep_weights(params['w2'], cpad, cpad)
    ones_in = jnp.ones((1, cin_pad), jnp.float32)
    zeros_in = jnp.zeros((1, cin_pad), jnp.float32)

    # ---- conv1: identity input transform, writes pre-BN output straight into
    #      conv2's padded flat layout (halo blocks left unwritten -> masked later).
    y1, stats1 = _conv3x3_fused(xl, w1, ones_in, zeros_in, cmask,
                                N=N, H=H, cw=cw, th=th,
                                cin_pad=cin_pad, cpad=cpad,
                                pad_top=PAD_IN, out_block_off=1,
                                apply_relu=False, vmem_limit=vmem_limit)

    # training-mode BatchNorm of layer 1, folded to per-channel scale/shift.
    # (conv bias omitted on purpose: a constant per-channel bias cancels exactly
    #  in the batch-statistics normalization and leaves the variance unchanged.)
    mean1, var1 = _merge_moments(stats1, Cout, th * W)
    scale1 = params['g1'] * lax.rsqrt(var1 + eps)
    shift1 = params['beta1'] - mean1 * scale1
    scale1p = jnp.zeros((1, cpad), jnp.float32).at[0, :Cout].set(scale1)
    shift1p = jnp.zeros((1, cpad), jnp.float32).at[0, :Cout].set(shift1)

    # ---- conv2: fuses layer-1 BN+ReLU into its halo read (no repack pass).
    y2, stats2 = _conv3x3_fused(y1, w2, scale1p, shift1p, cmask,
                                N=N, H=H, cw=cw, th=th,
                                cin_pad=cpad, cpad=cpad,
                                pad_top=th, out_block_off=0,
                                apply_relu=True, vmem_limit=vmem_limit)

    mean2, var2 = _merge_moments(stats2, Cout, th * W)
    scale2 = params['g2'] * lax.rsqrt(var2 + eps)
    shift2 = params['beta2'] - mean2 * scale2

    # final BN + ReLU + layout restore (elementwise epilogue, fused by XLA).
    y = y2.reshape(N, H, cw, cpad)[:, :, :W, :Cout].astype(jnp.float32)
    y = jnp.maximum(y * scale2 + shift2, 0.0)
    return jnp.transpose(y, (0, 3, 1, 2))                # NHWC -> NCHW


# ---------------------------------------------------------------------------
# Deterministic parameter init (shapes per DecoderBottleneck.__init__)
# ---------------------------------------------------------------------------
def init_params(key, in_channels, out_channels):
    ks = jax.random.split(key, 8)
    return {
        'w1': 0.1 * jax.random.normal(ks[0], (3, 3, in_channels, out_channels), jnp.float32),
        'b1': 0.1 * jax.random.normal(ks[1], (out_channels,), jnp.float32),   # cancels in train-mode BN
        'g1': 1.0 + 0.1 * jax.random.normal(ks[2], (out_channels,), jnp.float32),
        'beta1': 0.1 * jax.random.normal(ks[3], (out_channels,), jnp.float32),
        'w2': 0.1 * jax.random.normal(ks[4], (3, 3, out_channels, out_channels), jnp.float32),
        'b2': 0.1 * jax.random.normal(ks[5], (out_channels,), jnp.float32),   # cancels in train-mode BN
        'g2': 1.0 + 0.1 * jax.random.normal(ks[6], (out_channels,), jnp.float32),
        'beta2': 0.1 * jax.random.normal(ks[7], (out_channels,), jnp.float32),
    }


# ---------------------------------------------------------------------------
# Pure-JAX f32 reference (mirrors the PyTorch forward in train mode, with bias)
# ---------------------------------------------------------------------------
def reference_forward(params, x_nchw, x_concat_nchw=None, scale_factor=2):
    x = jnp.transpose(x_nchw, (0, 2, 3, 1)).astype(jnp.float32)
    N, H, W, C = x.shape
    Ah = jnp.asarray(_bilinear_matrix_align_corners(H, H * scale_factor))
    Aw = jnp.asarray(_bilinear_matrix_align_corners(W, W * scale_factor))
    x = jnp.einsum('ph,qw,nhwc->npqc', Ah, Aw, x)
    if x_concat_nchw is not None:
        xc = jnp.transpose(x_concat_nchw, (0, 2, 3, 1)).astype(jnp.float32)
        x = jnp.concatenate([xc, x], axis=-1)

    def cbr(x, w, b, g, be, eps=1e-5):
        y = lax.conv_general_dilated(
            x, w, (1, 1), 'SAME',
            dimension_numbers=('NHWC', 'HWIO', 'NHWC')) + b
        mean = y.mean(axis=(0, 1, 2))
        var = ((y - mean) ** 2).mean(axis=(0, 1, 2))
        y = (y - mean) * lax.rsqrt(var + eps) * g + be
        return jnp.maximum(y, 0.0)

    x = cbr(x, params['w1'], params['b1'], params['g1'], params['beta1'])
    x = cbr(x, params['w2'], params['b2'], params['g2'], params['beta2'])
    return jnp.transpose(x, (0, 3, 1, 2))


if __name__ == "__main__":
    key = jax.random.PRNGKey(0)
    k_x, k_skip, k_param = jax.random.split(key, 3)

    # Small shapes consistent with the module; tile_h=8 exercises the multi-tile
    # halo / prefetch / boundary-mask paths (upsampled spatial = 16 -> 2 H-tiles).
    N, C_low, H, W = 2, 4, 8, 8
    C_skip = 4
    scale_factor = 2
    in_channels = C_low + C_skip          # first conv sees concat(skip, upsampled)
    out_channels = 8

    x = jax.random.normal(k_x, (N, C_low, H, W), jnp.float32)
    x_concat = jax.random.normal(
        k_skip, (N, C_skip, H * scale_factor, W * scale_factor), jnp.float32)
    params = init_params(k_param, in_channels, out_channels)

    fwd = jax.jit(functools.partial(decoder_bottleneck_forward,
                                    scale_factor=scale_factor, tile_h=8))
    out = jax.block_until_ready(fwd(params, x, x_concat))

    ref = reference_forward(params, x, x_concat, scale_factor)
    # bf16 MXU operands + bf16 inter-layer activation vs f32 reference -> ~1e-2.
    np.testing.assert_allclose(np.asarray(out), np.asarray(ref), rtol=3e-2, atol=3e-2)

    print("KERNEL_OK")
</pallas_src>

<mosaic_0001>
module attributes {stable_mosaic.version = 11 : i64} {
  func.func @_conv3x3_bn_kernel(%arg0: i32, %arg1: i32, %arg2: memref<2x576x128xbf16, #tpu.memory_space<any>>, %arg3: memref<9x128x128xbf16, #tpu.memory_space<vmem>>, %arg4: memref<1x128xf32, #tpu.memory_space<vmem>>, %arg5: memref<1x128xf32, #tpu.memory_space<vmem>>, %arg6: memref<288x1xf32, #tpu.memory_space<vmem>>, %arg7: memref<1x192x128xbf16, #tpu.memory_space<vmem>>, %arg8: memref<1x1x2x128xf32, #tpu.memory_space<vmem>>, %arg9: memref<2x288x128xbf16, #tpu.memory_space<vmem>>, %arg10: memref<2x!tpu.dma_semaphore, #tpu.memory_space<semaphore_mem>>, %arg11: memref<288x128xbf16, #tpu.memory_space<vmem>>, %arg12: memref<192x128xf32, #tpu.memory_space<vmem>>) attributes {dimension_semantics = [#tpu.dimension_semantics<parallel>, #tpu.dimension_semantics<arbitrary>], iteration_bounds = array<i64: 2, 2>, scalar_prefetch = 0 : i64, scratch_operands = 4 : i64, tpu.core_type = #tpu.core_type<tc>, window_params = [{}, {pipeline_mode = #tpu.pipeline_mode<synchronous>, transform_indices = @transform_1, window_bounds = array<i64: 9, 128, 128>}, {pipeline_mode = #tpu.pipeline_mode<synchronous>, transform_indices = @transform_2, window_bounds = array<i64: 1, 128>}, {pipeline_mode = #tpu.pipeline_mode<synchronous>, transform_indices = @transform_3, window_bounds = array<i64: 1, 128>}, {pipeline_mode = #tpu.pipeline_mode<synchronous>, transform_indices = @transform_4, window_bounds = array<i64: 288, 1>}, {transform_indices = @transform_5, window_bounds = array<i64: 1, 192, 128>}, {transform_indices = @transform_6, window_bounds = array<i64: 1, 1, 2, 128>}]} {
    %c2_i32 = arith.constant 2 : i32
    %c0_i32 = arith.constant 0 : i32
    %0 = arith.cmpi eq, %c2_i32, %c0_i32 : i32
    %c1_i32 = arith.constant 1 : i32
    %1 = arith.select %0, %c1_i32, %c2_i32 : i32
    %2 = arith.remsi %arg1, %1 : i32
    %c0_i32_0 = arith.constant 0 : i32
    %3 = arith.cmpi ne, %2, %c0_i32_0 : i32
    %c0_i32_1 = arith.constant 0 : i32
    %4 = arith.cmpi slt, %2, %c0_i32_1 : i32
    %c0_i32_2 = arith.constant 0 : i32
    %5 = arith.cmpi slt, %1, %c0_i32_2 : i32
    %6 = arith.xori %4, %5 : i1
    %7 = arith.andi %6, %3 : i1
    %8 = arith.addi %2, %1 : i32
    %9 = arith.select %7, %8, %2 : i32
    %c0_i32_3 = arith.constant 0 : i32
    %10 = arith.cmpi eq, %arg1, %c0_i32_3 : i32
    %11 = arith.extui %10 : i1 to i32
    %c0_i32_4 = arith.constant 0 : i32
    %12 = arith.cmpi ne, %11, %c0_i32_4 : i32
    scf.if %12 {
      %c0_i32_116 = arith.constant 0 : i32
      %c0_i32_117 = arith.constant 0 : i32
      %c48_i32_118 = arith.constant 48 : i32
      %c0_i32_119 = arith.constant 0 : i32
      %133 = tpu.memref_slice %arg2[%arg0, %c48_i32_118, %c0_i32_119] : memref<2x576x128xbf16, #tpu.memory_space<any>> -> memref<1x288x128xbf16, #tpu.memory_space<any>>
      %134 = tpu.memref_squeeze %133 : memref<1x288x128xbf16, #tpu.memory_space<any>> -> memref<288x128xbf16, #tpu.memory_space<any>>
      %c0_i32_120 = arith.constant 0 : i32
      %c0_i32_121 = arith.constant 0 : i32
      %135 = tpu.memref_slice %arg9[%c0_i32_116, %c0_i32_120, %c0_i32_121] : memref<2x288x128xbf16, #tpu.memory_space<vmem>> -> memref<1x288x128xbf16, #tpu.memory_space<vmem>>
      %136 = tpu.memref_squeeze %135 : memref<1x288x128xbf16, #tpu.memory_space<vmem>> -> memref<288x128xbf16, #tpu.memory_space<vmem>>
      %137 = tpu.memref_slice %arg10[%c0_i32_117] : memref<2x!tpu.dma_semaphore, #tpu.memory_space<semaphore_mem>> -> memref<1x!tpu.dma_semaphore, #tpu.memory_space<semaphore_mem>>
      %138 = tpu.memref_squeeze %137 : memref<1x!tpu.dma_semaphore, #tpu.memory_space<semaphore_mem>> -> memref<!tpu.dma_semaphore, #tpu.memory_space<semaphore_mem>>
      tpu.enqueue_dma source(%134 : memref<288x128xbf16, #tpu.memory_space<any>>) target(%136 : memref<288x128xbf16, #tpu.memory_space<vmem>>) target_semaphore(%138 : memref<!tpu.dma_semaphore, #tpu.memory_space<semaphore_mem>>)
    } else {
    }
    %c1_i32_5 = arith.constant 1 : i32
    %13 = arith.addi %arg1, %c1_i32_5 : i32
    %c2_i32_6 = arith.constant 2 : i32
    %14 = arith.cmpi slt, %13, %c2_i32_6 : i32
    %15 = arith.extui %14 : i1 to i32
    %c0_i32_7 = arith.constant 0 : i32
    %16 = arith.cmpi ne, %15, %c0_i32_7 : i32
    scf.if %16 {
      %c1_i32_116 = arith.constant 1 : i32
      %133 = arith.addi %arg1, %c1_i32_116 : i32
      %c1_i32_117 = arith.constant 1 : i32
      %134 = arith.subi %c1_i32_117, %9 : i32
      %c8_i32 = arith.constant 8 : i32
      %135 = arith.muli %133, %c8_i32 : i32
      %c4_i32 = arith.constant 4 : i32
      %136 = arith.addi %c4_i32, %135 : i32
      %c2_i32_118 = arith.constant 2 : i32
      %137 = arith.subi %136, %c2_i32_118 : i32
      %c24_i32 = arith.constant 24 : i32
      %138 = arith.muli %137, %c24_i32 : i32
      %c0_i32_119 = arith.constant 0 : i32
      %139 = tpu.memref_slice %arg2[%arg0, %138, %c0_i32_119] : memref<2x576x128xbf16, #tpu.memory_space<any>> -> memref<1x288x128xbf16, #tpu.memory_space<any>>
      %140 = tpu.memref_squeeze %139 : memref<1x288x128xbf16, #tpu.memory_space<any>> -> memref<288x128xbf16, #tpu.memory_space<any>>
      %c0_i32_120 = arith.constant 0 : i32
      %c0_i32_121 = arith.constant 0 : i32
      %141 = tpu.memref_slice %arg9[%134, %c0_i32_120, %c0_i32_121] : memref<2x288x128xbf16, #tpu.memory_space<vmem>> -> memref<1x288x128xbf16, #tpu.memory_space<vmem>>
      %142 = tpu.memref_squeeze %141 : memref<1x288x128xbf16, #tpu.memory_space<vmem>> -> memref<288x128xbf16, #tpu.memory_space<vmem>>
      %143 = tpu.memref_slice %arg10[%134] : memref<2x!tpu.dma_semaphore, #tpu.memory_space<semaphore_mem>> -> memref<1x!tpu.dma_semaphore, #tpu.memory_space<semaphore_mem>>
      %144 = tpu.memref_squeeze %143 : memref<1x!tpu.dma_semaphore, #tpu.memory_space<semaphore_mem>> -> memref<!tpu.dma_semaphore, #tpu.memory_space<semaphore_mem>>
      tpu.enqueue_dma source(%140 : memref<288x128xbf16, #tpu.memory_space<any>>) target(%142 : memref<288x128xbf16, #tpu.memory_space<vmem>>) target_semaphore(%144 : memref<!tpu.dma_semaphore, #tpu.memory_space<semaphore_mem>>)
    } else {
    }
    %c0_i32_8 = arith.constant 0 : i32
    %c0_i32_9 = arith.constant 0 : i32
    %17 = tpu.memref_slice %arg2[%arg0, %c0_i32_8, %c0_i32_9] : memref<2x576x128xbf16, #tpu.memory_space<any>> -> memref<1x288x128xbf16, #tpu.memory_space<any>>
    %18 = tpu.memref_squeeze %17 : memref<1x288x128xbf16, #tpu.memory_space<any>> -> memref<288x128xbf16, #tpu.memory_space<any>>
    %c0_i32_10 = arith.constant 0 : i32
    %c0_i32_11 = arith.constant 0 : i32
    %19 = tpu.memref_slice %arg9[%9, %c0_i32_10, %c0_i32_11] : memref<2x288x128xbf16, #tpu.memory_space<vmem>> -> memref<1x288x128xbf16, #tpu.memory_space<vmem>>
    %20 = tpu.memref_squeeze %19 : memref<1x288x128xbf16, #tpu.memory_space<vmem>> -> memref<288x128xbf16, #tpu.memory_space<vmem>>
    %21 = tpu.memref_slice %arg10[%9] : memref<2x!tpu.dma_semaphore, #tpu.memory_space<semaphore_mem>> -> memref<1x!tpu.dma_semaphore, #tpu.memory_space<semaphore_mem>>
    %22 = tpu.memref_squeeze %21 : memref<1x!tpu.dma_semaphore, #tpu.memory_space<semaphore_mem>> -> memref<!tpu.dma_semaphore, #tpu.memory_space<semaphore_mem>>
    tpu.wait_dma2 semaphore(%22 : memref<!tpu.dma_semaphore, #tpu.memory_space<semaphore_mem>>) src(%18 : memref<288x128xbf16, #tpu.memory_space<any>>) dst(%20 : memref<288x128xbf16, #tpu.memory_space<vmem>>)
    %23 = arith.index_cast %9 : i32 to index
    %c0 = arith.constant 0 : index
    %c0_12 = arith.constant 0 : index
    %24 = vector.load %arg9[%23, %c0, %c0_12] : memref<2x288x128xbf16, #tpu.memory_space<vmem>>, vector<1x288x128xbf16>
    %25 = vector.shape_cast %24 : vector<1x288x128xbf16> to vector<288x128xbf16>
    %26 = arith.extf %25 : vector<288x128xbf16> to vector<288x128xf32>
    %c0_13 = arith.constant 0 : index
    %c0_14 = arith.constant 0 : index
    %27 = vector.load %arg4[%c0_13, %c0_14] : memref<1x128xf32, #tpu.memory_space<vmem>>, vector<1x128xf32>
    %28 = vector.broadcast %27 : vector<1x128xf32> to vector<288x128xf32>
    %29 = arith.mulf %26, %28 : vector<288x128xf32>
    %c0_15 = arith.constant 0 : index
    %c0_16 = arith.constant 0 : index
    %30 = vector.load %arg5[%c0_15, %c0_16] : memref<1x128xf32, #tpu.memory_space<vmem>>, vector<1x128xf32>
    %31 = vector.broadcast %30 : vector<1x128xf32> to vector<288x128xf32>
    %32 = arith.addf %29, %31 : vector<288x128xf32>
    %33 = tpu.iota {dimensions = array<i32: 0>} : vector<288x1xi32>
    %c0_i32_17 = arith.constant 0 : i32
    %34 = arith.cmpi eq, %arg1, %c0_i32_17 : i32
    %c48_i32 = arith.constant 48 : i32
    %c0_i32_18 = arith.constant 0 : i32
    %35 = arith.select %34, %c48_i32, %c0_i32_18 : i32
    %c1_i32_19 = arith.constant 1 : i32
    %36 = arith.cmpi eq, %arg1, %c1_i32_19 : i32
    %c48_i32_20 = arith.constant 48 : i32
    %c0_i32_21 = arith.constant 0 : i32
    %37 = arith.select %36, %c48_i32_20, %c0_i32_21 : i32
    %c288_i32 = arith.constant 288 : i32
    %38 = arith.subi %c288_i32, %37 : i32
    %39 = vector.broadcast %35 : i32 to vector<288x1xi32>
    %40 = arith.cmpi sge, %33, %39 : vector<288x1xi32>
    %41 = vector.broadcast %38 : i32 to vector<288x1xi32>
    %42 = arith.cmpi slt, %33, %41 : vector<288x1xi32>
    %43 = arith.andi %40, %42 : vector<288x1xi1>
    %c0_22 = arith.constant 0 : index
    %c0_23 = arith.constant 0 : index
    %44 = vector.load %arg6[%c0_22, %c0_23] : memref<288x1xf32, #tpu.memory_space<vmem>>, vector<288x1xf32>
    %cst = arith.constant 0.000000e+00 : f32
    %45 = vector.broadcast %cst : f32 to vector<288x1xf32>
    %46 = arith.cmpf one, %44, %45 : vector<288x1xf32>
    %47 = arith.andi %43, %46 : vector<288x1xi1>
    %cst_24 = arith.constant 0.000000e+00 : f32
    %48 = vector.shape_cast %47 : vector<288x1xi1> to vector<288x1xi1>
    %49 = vector.broadcast %48 : vector<288x1xi1> to vector<288x128xi1>
    %50 = vector.broadcast %cst_24 : f32 to vector<288x128xf32>
    %51 = arith.select %49, %32, %50 : vector<288x128xi1>, vector<288x128xf32>
    %52 = arith.truncf %51 : vector<288x128xf32> to vector<288x128xbf16>
    %c0_25 = arith.constant 0 : index
    %c0_26 = arith.constant 0 : index
    %53 = vector.load %arg11[%c0_25, %c0_26] : memref<288x128xbf16, #tpu.memory_space<vmem>>, vector<288x128xbf16>
    tpu.vector_store %arg11[%c0_25, %c0_26], %52 {strides = array<i32>} : memref<288x128xbf16, #tpu.memory_space<vmem>>, vector<288x128xbf16>,
    %c23 = arith.constant 23 : index
    %c0_27 = arith.constant 0 : index
    %54 = vector.load %arg11[%c23, %c0_27] : memref<288x128xbf16, #tpu.memory_space<vmem>>, vector<192x128xbf16>
    %c0_28 = arith.constant 0 : index
    %c0_29 = arith.constant 0 : index
    %c0_30 = arith.constant 0 : index
    %55 = vector.load %arg3[%c0_28, %c0_29, %c0_30] : memref<9x128x128xbf16, #tpu.memory_space<vmem>>, vector<1x128x128xbf16>
    %56 = vector.shape_cast %55 : vector<1x128x128xbf16> to vector<128x128xbf16>
    %cst_31 = arith.constant dense<0.000000e+00> : vector<192x128xf32>
    %57 = tpu.matmul %54, %56, %cst_31 {dimension_numbers = #tpu.dot_dimension_numbers<[1], [0], [0], [1], [0, 0, 1, 1], [], []>} : vector<192x128xbf16>, vector<128x128xbf16>, vector<192x128xf32> -> vector<192x128xf32>
    %c0_32 = arith.constant 0 : index
    %c0_33 = arith.constant 0 : index
    %58 = vector.load %arg12[%c0_32, %c0_33] : memref<192x128xf32, #tpu.memory_space<vmem>>, vector<192x128xf32>
    tpu.vector_store %arg12[%c0_32, %c0_33], %57 {strides = array<i32>} : memref<192x128xf32, #tpu.memory_space<vmem>>, vector<192x128xf32>,
    %c24 = arith.constant 24 : index
    %c0_34 = arith.constant 0 : index
    %59 = vector.load %arg11[%c24, %c0_34] : memref<288x128xbf16, #tpu.memory_space<vmem>>, vector<192x128xbf16>
    %c1 = arith.constant 1 : index
    %c0_35 = arith.constant 0 : index
    %c0_36 = arith.constant 0 : index
    %60 = vector.load %arg3[%c1, %c0_35, %c0_36] : memref<9x128x128xbf16, #tpu.memory_space<vmem>>, vector<1x128x128xbf16>
    %61 = vector.shape_cast %60 : vector<1x128x128xbf16> to vector<128x128xbf16>
    %cst_37 = arith.constant dense<0.000000e+00> : vector<192x128xf32>
    %62 = tpu.matmul %59, %61, %cst_37 {dimension_numbers = #tpu.dot_dimension_numbers<[1], [0], [0], [1], [0, 0, 1, 1], [], []>} : vector<192x128xbf16>, vector<128x128xbf16>, vector<192x128xf32> -> vector<192x128xf32>
    %c0_38 = arith.constant 0 : index
    %c0_39 = arith.constant 0 : index
    %63 = vector.load %arg12[%c0_38, %c0_39] : memref<192x128xf32, #tpu.memory_space<vmem>>, vector<192x128xf32>
    %64 = arith.addf %63, %62 : vector<192x128xf32>
    %c0_40 = arith.constant 0 : index
    %c0_41 = arith.constant 0 : index
    %65 = vector.load %arg12[%c0_40, %c0_41] : memref<192x128xf32, #tpu.memory_space<vmem>>, vector<192x128xf32>
    tpu.vector_store %arg12[%c0_40, %c0_41], %64 {strides = array<i32>} : memref<192x128xf32, #tpu.memory_space<vmem>>, vector<192x128xf32>,
    %c25 = arith.constant 25 : index
    %c0_42 = arith.constant 0 : index
    %66 = vector.load %arg11[%c25, %c0_42] : memref<288x128xbf16, #tpu.memory_space<vmem>>, vector<192x128xbf16>
    %c2 = arith.constant 2 : index
    %c0_43 = arith.constant 0 : index
    %c0_44 = arith.constant 0 : index
    %67 = vector.load %arg3[%c2, %c0_43, %c0_44] : memref<9x128x128xbf16, #tpu.memory_space<vmem>>, vector<1x128x128xbf16>
    %68 = vector.shape_cast %67 : vector<1x128x128xbf16> to vector<128x128xbf16>
    %cst_45 = arith.constant dense<0.000000e+00> : vector<192x128xf32>
    %69 = tpu.matmul %66, %68, %cst_45 {dimension_numbers = #tpu.dot_dimension_numbers<[1], [0], [0], [1], [0, 0, 1, 1], [], []>} : vector<192x128xbf16>, vector<128x128xbf16>, vector<192x128xf32> -> vector<192x128xf32>
    %c0_46 = arith.constant 0 : index
    %c0_47 = arith.constant 0 : index
    %70 = vector.load %arg12[%c0_46, %c0_47] : memref<192x128xf32, #tpu.memory_space<vmem>>, vector<192x128xf32>
    %71 = arith.addf %70, %69 : vector<192x128xf32>
    %c0_48 = arith.constant 0 : index
    %c0_49 = arith.constant 0 : index
    %72 = vector.load %arg12[%c0_48, %c0_49] : memref<192x128xf32, #tpu.memory_space<vmem>>, vector<192x128xf32>
    tpu.vector_store %arg12[%c0_48, %c0_49], %71 {strides = array<i32>} : memref<192x128xf32, #tpu.memory_space<vmem>>, vector<192x128xf32>,
    %c47 = arith.constant 47 : index
    %c0_50 = arith.constant 0 : index
    %73 = vector.load %arg11[%c47, %c0_50] : memref<288x128xbf16, #tpu.memory_space<vmem>>, vector<192x128xbf16>
    %c3 = arith.constant 3 : index
    %c0_51 = arith.constant 0 : index
    %c0_52 = arith.constant 0 : index
    %74 = vector.load %arg3[%c3, %c0_51, %c0_52] : memref<9x128x128xbf16, #tpu.memory_space<vmem>>, vector<1x128x128xbf16>
    %75 = vector.shape_cast %74 : vector<1x128x128xbf16> to vector<128x128xbf16>
    %cst_53 = arith.constant dense<0.000000e+00> : vector<192x128xf32>
    %76 = tpu.matmul %73, %75, %cst_53 {dimension_numbers = #tpu.dot_dimension_numbers<[1], [0], [0], [1], [0, 0, 1, 1], [], []>} : vector<192x128xbf16>, vector<128x128xbf16>, vector<192x128xf32> -> vector<192x128xf32>
    %c0_54 = arith.constant 0 : index
    %c0_55 = arith.constant 0 : index
    %77 = vector.load %arg12[%c0_54, %c0_55] : memref<192x128xf32, #tpu.memory_space<vmem>>, vector<192x128xf32>
    %78 = arith.addf %77, %76 : vector<192x128xf32>
    %c0_56 = arith.constant 0 : index
    %c0_57 = arith.constant 0 : index
    %79 = vector.load %arg12[%c0_56, %c0_57] : memref<192x128xf32, #tpu.memory_space<vmem>>, vector<192x128xf32>
    tpu.vector_store %arg12[%c0_56, %c0_57], %78 {strides = array<i32>} : memref<192x128xf32, #tpu.memory_space<vmem>>, vector<192x128xf32>,
    %c48 = arith.constant 48 : index
    %c0_58 = arith.constant 0 : index
    %80 = vector.load %arg11[%c48, %c0_58] : memref<288x128xbf16, #tpu.memory_space<vmem>>, vector<192x128xbf16>
    %c4 = arith.constant 4 : index
    %c0_59 = arith.constant 0 : index
    %c0_60 = arith.constant 0 : index
    %81 = vector.load %arg3[%c4, %c0_59, %c0_60] : memref<9x128x128xbf16, #tpu.memory_space<vmem>>, vector<1x128x128xbf16>
    %82 = vector.shape_cast %81 : vector<1x128x128xbf16> to vector<128x128xbf16>
    %cst_61 = arith.constant dense<0.000000e+00> : vector<192x128xf32>
    %83 = tpu.matmul %80, %82, %cst_61 {dimension_numbers = #tpu.dot_dimension_numbers<[1], [0], [0], [1], [0, 0, 1, 1], [], []>} : vector<192x128xbf16>, vector<128x128xbf16>, vector<192x128xf32> -> vector<192x128xf32>
    %c0_62 = arith.constant 0 : index
    %c0_63 = arith.constant 0 : index
    %84 = vector.load %arg12[%c0_62, %c0_63] : memref<192x128xf32, #tpu.memory_space<vmem>>, vector<192x128xf32>
    %85 = arith.addf %84, %83 : vector<192x128xf32>
    %c0_64 = arith.constant 0 : index
    %c0_65 = arith.constant 0 : index
    %86 = vector.load %arg12[%c0_64, %c0_65] : memref<192x128xf32, #tpu.memory_space<vmem>>, vector<192x128xf32>
    tpu.vector_store %arg12[%c0_64, %c0_65], %85 {strides = array<i32>} : memref<192x128xf32, #tpu.memory_space<vmem>>, vector<192x128xf32>,
    %c49 = arith.constant 49 : index
    %c0_66 = arith.constant 0 : index
    %87 = vector.load %arg11[%c49, %c0_66] : memref<288x128xbf16, #tpu.memory_space<vmem>>, vector<192x128xbf16>
    %c5 = arith.constant 5 : index
    %c0_67 = arith.constant 0 : index
    %c0_68 = arith.constant 0 : index
    %88 = vector.load %arg3[%c5, %c0_67, %c0_68] : memref<9x128x128xbf16, #tpu.memory_space<vmem>>, vector<1x128x128xbf16>
    %89 = vector.shape_cast %88 : vector<1x128x128xbf16> to vector<128x128xbf16>
    %cst_69 = arith.constant dense<0.000000e+00> : vector<192x128xf32>
    %90 = tpu.matmul %87, %89, %cst_69 {dimension_numbers = #tpu.dot_dimension_numbers<[1], [0], [0], [1], [0, 0, 1, 1], [], []>} : vector<192x128xbf16>, vector<128x128xbf16>, vector<192x128xf32> -> vector<192x128xf32>
    %c0_70 = arith.constant 0 : index
    %c0_71 = arith.constant 0 : index
    %91 = vector.load %arg12[%c0_70, %c0_71] : memref<192x128xf32, #tpu.memory_space<vmem>>, vector<192x128xf32>
    %92 = arith.addf %91, %90 : vector<192x128xf32>
    %c0_72 = arith.constant 0 : index
    %c0_73 = arith.constant 0 : index
    %93 = vector.load %arg12[%c0_72, %c0_73] : memref<192x128xf32, #tpu.memory_space<vmem>>, vector<192x128xf32>
    tpu.vector_store %arg12[%c0_72, %c0_73], %92 {strides = array<i32>} : memref<192x128xf32, #tpu.memory_space<vmem>>, vector<192x128xf32>,
    %c71 = arith.constant 71 : index
    %c0_74 = arith.constant 0 : index
    %94 = vector.load %arg11[%c71, %c0_74] : memref<288x128xbf16, #tpu.memory_space<vmem>>, vector<192x128xbf16>
    %c6 = arith.constant 6 : index
    %c0_75 = arith.constant 0 : index
    %c0_76 = arith.constant 0 : index
    %95 = vector.load %arg3[%c6, %c0_75, %c0_76] : memref<9x128x128xbf16, #tpu.memory_space<vmem>>, vector<1x128x128xbf16>
    %96 = vector.shape_cast %95 : vector<1x128x128xbf16> to vector<128x128xbf16>
    %cst_77 = arith.constant dense<0.000000e+00> : vector<192x128xf32>
    %97 = tpu.matmul %94, %96, %cst_77 {dimension_numbers = #tpu.dot_dimension_numbers<[1], [0], [0], [1], [0, 0, 1, 1], [], []>} : vector<192x128xbf16>, vector<128x128xbf16>, vector<192x128xf32> -> vector<192x128xf32>
    %c0_78 = arith.constant 0 : index
    %c0_79 = arith.constant 0 : index
    %98 = vector.load %arg12[%c0_78, %c0_79] : memref<192x128xf32, #tpu.memory_space<vmem>>, vector<192x128xf32>
    %99 = arith.addf %98, %97 : vector<192x128xf32>
    %c0_80 = arith.constant 0 : index
    %c0_81 = arith.constant 0 : index
    %100 = vector.load %arg12[%c0_80, %c0_81] : memref<192x128xf32, #tpu.memory_space<vmem>>, vector<192x128xf32>
    tpu.vector_store %arg12[%c0_80, %c0_81], %99 {strides = array<i32>} : memref<192x128xf32, #tpu.memory_space<vmem>>, vector<192x128xf32>,
    %c72 = arith.constant 72 : index
    %c0_82 = arith.constant 0 : index
    %101 = vector.load %arg11[%c72, %c0_82] : memref<288x128xbf16, #tpu.memory_space<vmem>>, vector<192x128xbf16>
    %c7 = arith.constant 7 : index
    %c0_83 = arith.constant 0 : index
    %c0_84 = arith.constant 0 : index
    %102 = vector.load %arg3[%c7, %c0_83, %c0_84] : memref<9x128x128xbf16, #tpu.memory_space<vmem>>, vector<1x128x128xbf16>
    %103 = vector.shape_cast %102 : vector<1x128x128xbf16> to vector<128x128xbf16>
    %cst_85 = arith.constant dense<0.000000e+00> : vector<192x128xf32>
    %104 = tpu.matmul %101, %103, %cst_85 {dimension_numbers = #tpu.dot_dimension_numbers<[1], [0], [0], [1], [0, 0, 1, 1], [], []>} : vector<192x128xbf16>, vector<128x128xbf16>, vector<192x128xf32> -> vector<192x128xf32>
    %c0_86 = arith.constant 0 : index
    %c0_87 = arith.constant 0 : index
    %105 = vector.load %arg12[%c0_86, %c0_87] : memref<192x128xf32, #tpu.memory_space<vmem>>, vector<192x128xf32>
    %106 = arith.addf %105, %104 : vector<192x128xf32>
    %c0_88 = arith.constant 0 : index
    %c0_89 = arith.constant 0 : index
    %107 = vector.load %arg12[%c0_88, %c0_89] : memref<192x128xf32, #tpu.memory_space<vmem>>, vector<192x128xf32>
    tpu.vector_store %arg12[%c0_88, %c0_89], %106 {strides = array<i32>} : memref<192x128xf32, #tpu.memory_space<vmem>>, vector<192x128xf32>,
    %c73 = arith.constant 73 : index
    %c0_90 = arith.constant 0 : index
    %108 = vector.load %arg11[%c73, %c0_90] : memref<288x128xbf16, #tpu.memory_space<vmem>>, vector<192x128xbf16>
    %c8 = arith.constant 8 : index
    %c0_91 = arith.constant 0 : index
    %c0_92 = arith.constant 0 : index
    %109 = vector.load %arg3[%c8, %c0_91, %c0_92] : memref<9x128x128xbf16, #tpu.memory_space<vmem>>, vector<1x128x128xbf16>
    %110 = vector.shape_cast %109 : vector<1x128x128xbf16> to vector<128x128xbf16>
    %cst_93 = arith.constant dense<0.000000e+00> : vector<192x128xf32>
    %111 = tpu.matmul %108, %110, %cst_93 {dimension_numbers = #tpu.dot_dimension_numbers<[1], [0], [0], [1], [0, 0, 1, 1], [], []>} : vector<192x128xbf16>, vector<128x128xbf16>, vector<192x128xf32> -> vector<192x128xf32>
    %c0_94 = arith.constant 0 : index
    %c0_95 = arith.constant 0 : index
    %112 = vector.load %arg12[%c0_94, %c0_95] : memref<192x128xf32, #tpu.memory_space<vmem>>, vector<192x128xf32>
    %113 = arith.addf %112, %111 : vector<192x128xf32>
    %c0_96 = arith.constant 0 : index
    %c0_97 = arith.constant 0 : index
    %114 = vector.load %arg12[%c0_96, %c0_97] : memref<192x128xf32, #tpu.memory_space<vmem>>, vector<192x128xf32>
    tpu.vector_store %arg12[%c0_96, %c0_97], %113 {strides = array<i32>} : memref<192x128xf32, #tpu.memory_space<vmem>>, vector<192x128xf32>,
    %c0_98 = arith.constant 0 : index
    %c0_99 = arith.constant 0 : index
    %115 = vector.load %arg12[%c0_98, %c0_99] : memref<192x128xf32, #tpu.memory_space<vmem>>, vector<192x128xf32>
    %c0_100 = arith.constant 0 : index
    %c0_101 = arith.constant 0 : index
    %116 = vector.load %arg6[%c0_100, %c0_101] : memref<288x1xf32, #tpu.memory_space<vmem>>, vector<192x1xf32>
    %117 = vector.broadcast %116 : vector<192x1xf32> to vector<192x128xf32>
    %118 = arith.mulf %115, %117 : vector<192x128xf32>
    %cst_102 = arith.constant 1.000000e+00 : f32
    %119 = vector.broadcast %cst_102 : f32 to vector<1x192xf32>
    %cst_103 = arith.constant dense<0.000000e+00> : vector<1x128xf32>
    %120 = tpu.matmul %119, %118, %cst_103 {dimension_numbers = #tpu.dot_dimension_numbers<[1], [0], [0], [1], [0, 0, 1, 1], [], []>} : vector<1x192xf32>, vector<192x128xf32>, vector<1x128xf32> -> vector<1x128xf32>
    %c0_104 = arith.constant 0 : index
    %c0_105 = arith.constant 0 : index
    %c0_106 = arith.constant 0 : index
    %c0_107 = arith.constant 0 : index
    %121 = vector.load %arg8[%c0_104, %c0_105, %c0_106, %c0_107] : memref<1x1x2x128xf32, #tpu.memory_space<vmem>>, vector<1x1x1x128xf32>
    %122 = vector.shape_cast %121 : vector<1x1x1x128xf32> to vector<1x128xf32>
    %123 = vector.shape_cast %120 : vector<1x128xf32> to vector<1x1x1x128xf32>
    tpu.vector_store %arg8[%c0_104, %c0_105, %c0_106, %c0_107], %123 {strides = array<i32>} : memref<1x1x2x128xf32, #tpu.memory_space<vmem>>, vector<1x1x1x128xf32>,
    %124 = arith.mulf %118, %115 : vector<192x128xf32>
    %cst_108 = arith.constant dense<0.000000e+00> : vector<1x128xf32>
    %125 = tpu.matmul %119, %124, %cst_108 {dimension_numbers = #tpu.dot_dimension_numbers<[1], [0], [0], [1], [0, 0, 1, 1], [], []>} : vector<1x192xf32>, vector<192x128xf32>, vector<1x128xf32> -> vector<1x128xf32>
    %c0_109 = arith.constant 0 : index
    %c0_110 = arith.constant 0 : index
    %c1_111 = arith.constant 1 : index
    %c0_112 = arith.constant 0 : index
    %126 = vector.load %arg8[%c0_109, %c0_110, %c1_111, %c0_112] : memref<1x1x2x128xf32, #tpu.memory_space<vmem>>, vector<1x1x1x128xf32>
    %127 = vector.shape_cast %126 : vector<1x1x1x128xf32> to vector<1x128xf32>
    %128 = vector.shape_cast %125 : vector<1x128xf32> to vector<1x1x1x128xf32>
    tpu.vector_store %arg8[%c0_109, %c0_110, %c1_111, %c0_112], %128 {strides = array<i32>} : memref<1x1x2x128xf32, #tpu.memory_space<vmem>>, vector<1x1x1x128xf32>,
    %129 = arith.truncf %115 : vector<192x128xf32> to vector<192x128xbf16>
    %c0_113 = arith.constant 0 : index
    %c0_114 = arith.constant 0 : index
    %c0_115 = arith.constant 0 : index
    %130 = vector.load %arg7[%c0_113, %c0_114, %c0_115] : memref<1x192x128xbf16, #tpu.memory_space<vmem>>, vector<1x192x128xbf16>
    %131 = vector.shape_cast %130 : vector<1x192x128xbf16> to vector<192x128xbf16>
    %132 = vector.shape_cast %129 : vector<192x128xbf16> to vector<1x192x128xbf16>
    tpu.vector_store %arg7[%c0_113, %c0_114, %c0_115], %132 {strides = array<i32>} : memref<1x192x128xbf16, #tpu.memory_space<vmem>>, vector<1x192x128xbf16>,
    return
  }
  func.func @transform_1(%arg0: i32, %arg1: i32) -> (i32, i32, i32) {
    %c0_i32 = arith.constant 0 : i32
    %c0_i32_0 = arith.constant 0 : i32
    %c0_i32_1 = arith.constant 0 : i32
    %c0_i32_2 = arith.constant 0 : i32
    return %c0_i32, %c0_i32_0, %c0_i32_1 : i32, i32, i32
  }
  func.func @transform_2(%arg0: i32, %arg1: i32) -> (i32, i32) {
    %c0_i32 = arith.constant 0 : i32
    %c0_i32_0 = arith.constant 0 : i32
    %c0_i32_1 = arith.constant 0 : i32
    return %c0_i32, %c0_i32_0 : i32, i32
  }
  func.func @transform_3(%arg0: i32, %arg1: i32) -> (i32, i32) {
    %c0_i32 = arith.constant 0 : i32
    %c0_i32_0 = arith.constant 0 : i32
    %c0_i32_1 = arith.constant 0 : i32
    return %c0_i32, %c0_i32_0 : i32, i32
  }
  func.func @transform_4(%arg0: i32, %arg1: i32) -> (i32, i32) {
    %c0_i32 = arith.constant 0 : i32
    %c0_i32_0 = arith.constant 0 : i32
    %c0_i32_1 = arith.constant 0 : i32
    return %c0_i32, %c0_i32_0 : i32, i32
  }
  func.func @transform_5(%arg0: i32, %arg1: i32) -> (i32, i32, i32) {
    %c1_i32 = arith.constant 1 : i32
    %0 = arith.addi %arg1, %c1_i32 : i32
    %c0_i32 = arith.constant 0 : i32
    %c0_i32_0 = arith.constant 0 : i32
    return %arg0, %0, %c0_i32 : i32, i32, i32
  }
  func.func @transform_6(%arg0: i32, %arg1: i32) -> (i32, i32, i32, i32) {
    %c0_i32 = arith.constant 0 : i32
    %c0_i32_0 = arith.constant 0 : i32
    %c0_i32_1 = arith.constant 0 : i32
    return %arg0, %arg1, %c0_i32, %c0_i32_0 : i32, i32, i32, i32
  }
}

module attributes {stable_mosaic.version = 11 : i64} {
  func.func @_conv3x3_bn_kernel(%arg0: i32, %arg1: i32, %arg2: memref<2x768x128xbf16, #tpu.memory_space<any>>, %arg3: memref<9x128x128xbf16, #tpu.memory_space<vmem>>, %arg4: memref<1x128xf32, #tpu.memory_space<vmem>>, %arg5: memref<1x128xf32, #tpu.memory_space<vmem>>, %arg6: memref<288x1xf32, #tpu.memory_space<vmem>>, %arg7: memref<1x192x128xbf16, #tpu.memory_space<vmem>>, %arg8: memref<1x1x2x128xf32, #tpu.memory_space<vmem>>, %arg9: memref<2x288x128xbf16, #tpu.memory_space<vmem>>, %arg10: memref<2x!tpu.dma_semaphore, #tpu.memory_space<semaphore_mem>>, %arg11: memref<288x128xbf16, #tpu.memory_space<vmem>>, %arg12: memref<192x128xf32, #tpu.memory_space<vmem>>) attributes {dimension_semantics = [#tpu.dimension_semantics<parallel>, #tpu.dimension_semantics<arbitrary>], iteration_bounds = array<i64: 2, 2>, scalar_prefetch = 0 : i64, scratch_operands = 4 : i64, tpu.core_type = #tpu.core_type<tc>, window_params = [{}, {pipeline_mode = #tpu.pipeline_mode<synchronous>, transform_indices = @transform_1, window_bounds = array<i64: 9, 128, 128>}, {pipeline_mode = #tpu.pipeline_mode<synchronous>, transform_indices = @transform_2, window_bounds = array<i64: 1, 128>}, {pipeline_mode = #tpu.pipeline_mode<synchronous>, transform_indices = @transform_3, window_bounds = array<i64: 1, 128>}, {pipeline_mode = #tpu.pipeline_mode<synchronous>, transform_indices = @transform_4, window_bounds = array<i64: 288, 1>}, {transform_indices = @transform_5, window_bounds = array<i64: 1, 192, 128>}, {transform_indices = @transform_6, window_bounds = array<i64: 1, 1, 2, 128>}]} {
    %c2_i32 = arith.constant 2 : i32
    %c0_i32 = arith.constant 0 : i32
    %0 = arith.cmpi eq, %c2_i32, %c0_i32 : i32
    %c1_i32 = arith.constant 1 : i32
    %1 = arith.select %0, %c1_i32, %c2_i32 : i32
    %2 = arith.remsi %arg1, %1 : i32
    %c0_i32_0 = arith.constant 0 : i32
    %3 = arith.cmpi ne, %2, %c0_i32_0 : i32
    %c0_i32_1 = arith.constant 0 : i32
    %4 = arith.cmpi slt, %2, %c0_i32_1 : i32
    %c0_i32_2 = arith.constant 0 : i32
    %5 = arith.cmpi slt, %1, %c0_i32_2 : i32
    %6 = arith.xori %4, %5 : i1
    %7 = arith.andi %6, %3 : i1
    %8 = arith.addi %2, %1 : i32
    %9 = arith.select %7, %8, %2 : i32
    %c0_i32_3 = arith.constant 0 : i32
    %10 = arith.cmpi eq, %arg1, %c0_i32_3 : i32
    %11 = arith.extui %10 : i1 to i32
    %c0_i32_4 = arith.constant 0 : i32
    %12 = arith.cmpi ne, %11, %c0_i32_4 : i32
    scf.if %12 {
      %c0_i32_117 = arith.constant 0 : i32
      %c0_i32_118 = arith.constant 0 : i32
      %c144_i32 = arith.constant 144 : i32
      %c0_i32_119 = arith.constant 0 : i32
      %135 = tpu.memref_slice %arg2[%arg0, %c144_i32, %c0_i32_119] : memref<2x768x128xbf16, #tpu.memory_space<any>> -> memref<1x288x128xbf16, #tpu.memory_space<any>>
      %136 = tpu.memref_squeeze %135 : memref<1x288x128xbf16, #tpu.memory_space<any>> -> memref<288x128xbf16, #tpu.memory_space<any>>
      %c0_i32_120 = arith.constant 0 : i32
      %c0_i32_121 = arith.constant 0 : i32
      %137 = tpu.memref_slice %arg9[%c0_i32_117, %c0_i32_120, %c0_i32_121] : memref<2x288x128xbf16, #tpu.memory_space<vmem>> -> memref<1x288x128xbf16, #tpu.memory_space<vmem>>
      %138 = tpu.memref_squeeze %137 : memref<1x288x128xbf16, #tpu.memory_space<vmem>> -> memref<288x128xbf16, #tpu.memory_space<vmem>>
      %139 = tpu.memref_slice %arg10[%c0_i32_118] : memref<2x!tpu.dma_semaphore, #tpu.memory_space<semaphore_mem>> -> memref<1x!tpu.dma_semaphore, #tpu.memory_space<semaphore_mem>>
      %140 = tpu.memref_squeeze %139 : memref<1x!tpu.dma_semaphore, #tpu.memory_space<semaphore_mem>> -> memref<!tpu.dma_semaphore, #tpu.memory_space<semaphore_mem>>
      tpu.enqueue_dma source(%136 : memref<288x128xbf16, #tpu.memory_space<any>>) target(%138 : memref<288x128xbf16, #tpu.memory_space<vmem>>) target_semaphore(%140 : memref<!tpu.dma_semaphore, #tpu.memory_space<semaphore_mem>>)
    } else {
    }
    %c1_i32_5 = arith.constant 1 : i32
    %13 = arith.addi %arg1, %c1_i32_5 : i32
    %c2_i32_6 = arith.constant 2 : i32
    %14 = arith.cmpi slt, %13, %c2_i32_6 : i32
    %15 = arith.extui %14 : i1 to i32
    %c0_i32_7 = arith.constant 0 : i32
    %16 = arith.cmpi ne, %15, %c0_i32_7 : i32
    scf.if %16 {
      %c1_i32_117 = arith.constant 1 : i32
      %135 = arith.addi %arg1, %c1_i32_117 : i32
      %c1_i32_118 = arith.constant 1 : i32
      %136 = arith.subi %c1_i32_118, %9 : i32
      %c8_i32 = arith.constant 8 : i32
      %137 = arith.muli %135, %c8_i32 : i32
      %c8_i32_119 = arith.constant 8 : i32
      %138 = arith.addi %c8_i32_119, %137 : i32
      %c2_i32_120 = arith.constant 2 : i32
      %139 = arith.subi %138, %c2_i32_120 : i32
      %c24_i32 = arith.constant 24 : i32
      %140 = arith.muli %139, %c24_i32 : i32
      %c0_i32_121 = arith.constant 0 : i32
      %141 = tpu.memref_slice %arg2[%arg0, %140, %c0_i32_121] : memref<2x768x128xbf16, #tpu.memory_space<any>> -> memref<1x288x128xbf16, #tpu.memory_space<any>>
      %142 = tpu.memref_squeeze %141 : memref<1x288x128xbf16, #tpu.memory_space<any>> -> memref<288x128xbf16, #tpu.memory_space<any>>
      %c0_i32_122 = arith.constant 0 : i32
      %c0_i32_123 = arith.constant 0 : i32
      %143 = tpu.memref_slice %arg9[%136, %c0_i32_122, %c0_i32_123] : memref<2x288x128xbf16, #tpu.memory_space<vmem>> -> memref<1x288x128xbf16, #tpu.memory_space<vmem>>
      %144 = tpu.memref_squeeze %143 : memref<1x288x128xbf16, #tpu.memory_space<vmem>> -> memref<288x128xbf16, #tpu.memory_space<vmem>>
      %145 = tpu.memref_slice %arg10[%136] : memref<2x!tpu.dma_semaphore, #tpu.memory_space<semaphore_mem>> -> memref<1x!tpu.dma_semaphore, #tpu.memory_space<semaphore_mem>>
      %146 = tpu.memref_squeeze %145 : memref<1x!tpu.dma_semaphore, #tpu.memory_space<semaphore_mem>> -> memref<!tpu.dma_semaphore, #tpu.memory_space<semaphore_mem>>
      tpu.enqueue_dma source(%142 : memref<288x128xbf16, #tpu.memory_space<any>>) target(%144 : memref<288x128xbf16, #tpu.memory_space<vmem>>) target_semaphore(%146 : memref<!tpu.dma_semaphore, #tpu.memory_space<semaphore_mem>>)
    } else {
    }
    %c0_i32_8 = arith.constant 0 : i32
    %c0_i32_9 = arith.constant 0 : i32
    %17 = tpu.memref_slice %arg2[%arg0, %c0_i32_8, %c0_i32_9] : memref<2x768x128xbf16, #tpu.memory_space<any>> -> memref<1x288x128xbf16, #tpu.memory_space<any>>
    %18 = tpu.memref_squeeze %17 : memref<1x288x128xbf16, #tpu.memory_space<any>> -> memref<288x128xbf16, #tpu.memory_space<any>>
    %c0_i32_10 = arith.constant 0 : i32
    %c0_i32_11 = arith.constant 0 : i32
    %19 = tpu.memref_slice %arg9[%9, %c0_i32_10, %c0_i32_11] : memref<2x288x128xbf16, #tpu.memory_space<vmem>> -> memref<1x288x128xbf16, #tpu.memory_space<vmem>>
    %20 = tpu.memref_squeeze %19 : memref<1x288x128xbf16, #tpu.memory_space<vmem>> -> memref<288x128xbf16, #tpu.memory_space<vmem>>
    %21 = tpu.memref_slice %arg10[%9] : memref<2x!tpu.dma_semaphore, #tpu.memory_space<semaphore_mem>> -> memref<1x!tpu.dma_semaphore, #tpu.memory_space<semaphore_mem>>
    %22 = tpu.memref_squeeze %21 : memref<1x!tpu.dma_semaphore, #tpu.memory_space<semaphore_mem>> -> memref<!tpu.dma_semaphore, #tpu.memory_space<semaphore_mem>>
    tpu.wait_dma2 semaphore(%22 : memref<!tpu.dma_semaphore, #tpu.memory_space<semaphore_mem>>) src(%18 : memref<288x128xbf16, #tpu.memory_space<any>>) dst(%20 : memref<288x128xbf16, #tpu.memory_space<vmem>>)
    %23 = arith.index_cast %9 : i32 to index
    %c0 = arith.constant 0 : index
    %c0_12 = arith.constant 0 : index
    %24 = vector.load %arg9[%23, %c0, %c0_12] : memref<2x288x128xbf16, #tpu.memory_space<vmem>>, vector<1x288x128xbf16>
    %25 = vector.shape_cast %24 : vector<1x288x128xbf16> to vector<288x128xbf16>
    %26 = arith.extf %25 : vector<288x128xbf16> to vector<288x128xf32>
    %c0_13 = arith.constant 0 : index
    %c0_14 = arith.constant 0 : index
    %27 = vector.load %arg4[%c0_13, %c0_14] : memref<1x128xf32, #tpu.memory_space<vmem>>, vector<1x128xf32>
    %28 = vector.broadcast %27 : vector<1x128xf32> to vector<288x128xf32>
    %29 = arith.mulf %26, %28 : vector<288x128xf32>
    %c0_15 = arith.constant 0 : index
    %c0_16 = arith.constant 0 : index
    %30 = vector.load %arg5[%c0_15, %c0_16] : memref<1x128xf32, #tpu.memory_space<vmem>>, vector<1x128xf32>
    %31 = vector.broadcast %30 : vector<1x128xf32> to vector<288x128xf32>
    %32 = arith.addf %29, %31 : vector<288x128xf32>
    %cst = arith.constant 0.000000e+00 : f32
    %33 = vector.broadcast %cst : f32 to vector<288x128xf32>
    %34 = arith.maximumf %32, %33 : vector<288x128xf32>
    %35 = tpu.iota {dimensions = array<i32: 0>} : vector<288x1xi32>
    %c0_i32_17 = arith.constant 0 : i32
    %36 = arith.cmpi eq, %arg1, %c0_i32_17 : i32
    %c48_i32 = arith.constant 48 : i32
    %c0_i32_18 = arith.constant 0 : i32
    %37 = arith.select %36, %c48_i32, %c0_i32_18 : i32
    %c1_i32_19 = arith.constant 1 : i32
    %38 = arith.cmpi eq, %arg1, %c1_i32_19 : i32
    %c48_i32_20 = arith.constant 48 : i32
    %c0_i32_21 = arith.constant 0 : i32
    %39 = arith.select %38, %c48_i32_20, %c0_i32_21 : i32
    %c288_i32 = arith.constant 288 : i32
    %40 = arith.subi %c288_i32, %39 : i32
    %41 = vector.broadcast %37 : i32 to vector<288x1xi32>
    %42 = arith.cmpi sge, %35, %41 : vector<288x1xi32>
    %43 = vector.broadcast %40 : i32 to vector<288x1xi32>
    %44 = arith.cmpi slt, %35, %43 : vector<288x1xi32>
    %45 = arith.andi %42, %44 : vector<288x1xi1>
    %c0_22 = arith.constant 0 : index
    %c0_23 = arith.constant 0 : index
    %46 = vector.load %arg6[%c0_22, %c0_23] : memref<288x1xf32, #tpu.memory_space<vmem>>, vector<288x1xf32>
    %cst_24 = arith.constant 0.000000e+00 : f32
    %47 = vector.broadcast %cst_24 : f32 to vector<288x1xf32>
    %48 = arith.cmpf one, %46, %47 : vector<288x1xf32>
    %49 = arith.andi %45, %48 : vector<288x1xi1>
    %cst_25 = arith.constant 0.000000e+00 : f32
    %50 = vector.shape_cast %49 : vector<288x1xi1> to vector<288x1xi1>
    %51 = vector.broadcast %50 : vector<288x1xi1> to vector<288x128xi1>
    %52 = vector.broadcast %cst_25 : f32 to vector<288x128xf32>
    %53 = arith.select %51, %34, %52 : vector<288x128xi1>, vector<288x128xf32>
    %54 = arith.truncf %53 : vector<288x128xf32> to vector<288x128xbf16>
    %c0_26 = arith.constant 0 : index
    %c0_27 = arith.constant 0 : index
    %55 = vector.load %arg11[%c0_26, %c0_27] : memref<288x128xbf16, #tpu.memory_space<vmem>>, vector<288x128xbf16>
    tpu.vector_store %arg11[%c0_26, %c0_27], %54 {strides = array<i32>} : memref<288x128xbf16, #tpu.memory_space<vmem>>, vector<288x128xbf16>,
    %c23 = arith.constant 23 : index
    %c0_28 = arith.constant 0 : index
    %56 = vector.load %arg11[%c23, %c0_28] : memref<288x128xbf16, #tpu.memory_space<vmem>>, vector<192x128xbf16>
    %c0_29 = arith.constant 0 : index
    %c0_30 = arith.constant 0 : index
    %c0_31 = arith.constant 0 : index
    %57 = vector.load %arg3[%c0_29, %c0_30, %c0_31] : memref<9x128x128xbf16, #tpu.memory_space<vmem>>, vector<1x128x128xbf16>
    %58 = vector.shape_cast %57 : vector<1x128x128xbf16> to vector<128x128xbf16>
    %cst_32 = arith.constant dense<0.000000e+00> : vector<192x128xf32>
    %59 = tpu.matmul %56, %58, %cst_32 {dimension_numbers = #tpu.dot_dimension_numbers<[1], [0], [0], [1], [0, 0, 1, 1], [], []>} : vector<192x128xbf16>, vector<128x128xbf16>, vector<192x128xf32> -> vector<192x128xf32>
    %c0_33 = arith.constant 0 : index
    %c0_34 = arith.constant 0 : index
    %60 = vector.load %arg12[%c0_33, %c0_34] : memref<192x128xf32, #tpu.memory_space<vmem>>, vector<192x128xf32>
    tpu.vector_store %arg12[%c0_33, %c0_34], %59 {strides = array<i32>} : memref<192x128xf32, #tpu.memory_space<vmem>>, vector<192x128xf32>,
    %c24 = arith.constant 24 : index
    %c0_35 = arith.constant 0 : index
    %61 = vector.load %arg11[%c24, %c0_35] : memref<288x128xbf16, #tpu.memory_space<vmem>>, vector<192x128xbf16>
    %c1 = arith.constant 1 : index
    %c0_36 = arith.constant 0 : index
    %c0_37 = arith.constant 0 : index
    %62 = vector.load %arg3[%c1, %c0_36, %c0_37] : memref<9x128x128xbf16, #tpu.memory_space<vmem>>, vector<1x128x128xbf16>
    %63 = vector.shape_cast %62 : vector<1x128x128xbf16> to vector<128x128xbf16>
    %cst_38 = arith.constant dense<0.000000e+00> : vector<192x128xf32>
    %64 = tpu.matmul %61, %63, %cst_38 {dimension_numbers = #tpu.dot_dimension_numbers<[1], [0], [0], [1], [0, 0, 1, 1], [], []>} : vector<192x128xbf16>, vector<128x128xbf16>, vector<192x128xf32> -> vector<192x128xf32>
    %c0_39 = arith.constant 0 : index
    %c0_40 = arith.constant 0 : index
    %65 = vector.load %arg12[%c0_39, %c0_40] : memref<192x128xf32, #tpu.memory_space<vmem>>, vector<192x128xf32>
    %66 = arith.addf %65, %64 : vector<192x128xf32>
    %c0_41 = arith.constant 0 : index
    %c0_42 = arith.constant 0 : index
    %67 = vector.load %arg12[%c0_41, %c0_42] : memref<192x128xf32, #tpu.memory_space<vmem>>, vector<192x128xf32>
    tpu.vector_store %arg12[%c0_41, %c0_42], %66 {strides = array<i32>} : memref<192x128xf32, #tpu.memory_space<vmem>>, vector<192x128xf32>,
    %c25 = arith.constant 25 : index
    %c0_43 = arith.constant 0 : index
    %68 = vector.load %arg11[%c25, %c0_43] : memref<288x128xbf16, #tpu.memory_space<vmem>>, vector<192x128xbf16>
    %c2 = arith.constant 2 : index
    %c0_44 = arith.constant 0 : index
    %c0_45 = arith.constant 0 : index
    %69 = vector.load %arg3[%c2, %c0_44, %c0_45] : memref<9x128x128xbf16, #tpu.memory_space<vmem>>, vector<1x128x128xbf16>
    %70 = vector.shape_cast %69 : vector<1x128x128xbf16> to vector<128x128xbf16>
    %cst_46 = arith.constant dense<0.000000e+00> : vector<192x128xf32>
    %71 = tpu.matmul %68, %70, %cst_46 {dimension_numbers = #tpu.dot_dimension_numbers<[1], [0], [0], [1], [0, 0, 1, 1], [], []>} : vector<192x128xbf16>, vector<128x128xbf16>, vector<192x128xf32> -> vector<192x128xf32>
    %c0_47 = arith.constant 0 : index
    %c0_48 = arith.constant 0 : index
    %72 = vector.load %arg12[%c0_47, %c0_48] : memref<192x128xf32, #tpu.memory_space<vmem>>, vector<192x128xf32>
    %73 = arith.addf %72, %71 : vector<192x128xf32>
    %c0_49 = arith.constant 0 : index
    %c0_50 = arith.constant 0 : index
    %74 = vector.load %arg12[%c0_49, %c0_50] : memref<192x128xf32, #tpu.memory_space<vmem>>, vector<192x128xf32>
    tpu.vector_store %arg12[%c0_49, %c0_50], %73 {strides = array<i32>} : memref<192x128xf32, #tpu.memory_space<vmem>>, vector<192x128xf32>,
    %c47 = arith.constant 47 : index
    %c0_51 = arith.constant 0 : index
    %75 = vector.load %arg11[%c47, %c0_51] : memref<288x128xbf16, #tpu.memory_space<vmem>>, vector<192x128xbf16>
    %c3 = arith.constant 3 : index
    %c0_52 = arith.constant 0 : index
    %c0_53 = arith.constant 0 : index
    %76 = vector.load %arg3[%c3, %c0_52, %c0_53] : memref<9x128x128xbf16, #tpu.memory_space<vmem>>, vector<1x128x128xbf16>
    %77 = vector.shape_cast %76 : vector<1x128x128xbf16> to vector<128x128xbf16>
    %cst_54 = arith.constant dense<0.000000e+00> : vector<192x128xf32>
    %78 = tpu.matmul %75, %77, %cst_54 {dimension_numbers = #tpu.dot_dimension_numbers<[1], [0], [0], [1], [0, 0, 1, 1], [], []>} : vector<192x128xbf16>, vector<128x128xbf16>, vector<192x128xf32> -> vector<192x128xf32>
    %c0_55 = arith.constant 0 : index
    %c0_56 = arith.constant 0 : index
    %79 = vector.load %arg12[%c0_55, %c0_56] : memref<192x128xf32, #tpu.memory_space<vmem>>, vector<192x128xf32>
    %80 = arith.addf %79, %78 : vector<192x128xf32>
    %c0_57 = arith.constant 0 : index
    %c0_58 = arith.constant 0 : index
    %81 = vector.load %arg12[%c0_57, %c0_58] : memref<192x128xf32, #tpu.memory_space<vmem>>, vector<192x128xf32>
    tpu.vector_store %arg12[%c0_57, %c0_58], %80 {strides = array<i32>} : memref<192x128xf32, #tpu.memory_space<vmem>>, vector<192x128xf32>,
    %c48 = arith.constant 48 : index
    %c0_59 = arith.constant 0 : index
    %82 = vector.load %arg11[%c48, %c0_59] : memref<288x128xbf16, #tpu.memory_space<vmem>>, vector<192x128xbf16>
    %c4 = arith.constant 4 : index
    %c0_60 = arith.constant 0 : index
    %c0_61 = arith.constant 0 : index
    %83 = vector.load %arg3[%c4, %c0_60, %c0_61] : memref<9x128x128xbf16, #tpu.memory_space<vmem>>, vector<1x128x128xbf16>
    %84 = vector.shape_cast %83 : vector<1x128x128xbf16> to vector<128x128xbf16>
    %cst_62 = arith.constant dense<0.000000e+00> : vector<192x128xf32>
    %85 = tpu.matmul %82, %84, %cst_62 {dimension_numbers = #tpu.dot_dimension_numbers<[1], [0], [0], [1], [0, 0, 1, 1], [], []>} : vector<192x128xbf16>, vector<128x128xbf16>, vector<192x128xf32> -> vector<192x128xf32>
    %c0_63 = arith.constant 0 : index
    %c0_64 = arith.constant 0 : index
    %86 = vector.load %arg12[%c0_63, %c0_64] : memref<192x128xf32, #tpu.memory_space<vmem>>, vector<192x128xf32>
    %87 = arith.addf %86, %85 : vector<192x128xf32>
    %c0_65 = arith.constant 0 : index
    %c0_66 = arith.constant 0 : index
    %88 = vector.load %arg12[%c0_65, %c0_66] : memref<192x128xf32, #tpu.memory_space<vmem>>, vector<192x128xf32>
    tpu.vector_store %arg12[%c0_65, %c0_66], %87 {strides = array<i32>} : memref<192x128xf32, #tpu.memory_space<vmem>>, vector<192x128xf32>,
    %c49 = arith.constant 49 : index
    %c0_67 = arith.constant 0 : index
    %89 = vector.load %arg11[%c49, %c0_67] : memref<288x128xbf16, #tpu.memory_space<vmem>>, vector<192x128xbf16>
    %c5 = arith.constant 5 : index
    %c0_68 = arith.constant 0 : index
    %c0_69 = arith.constant 0 : index
    %90 = vector.load %arg3[%c5, %c0_68, %c0_69] : memref<9x128x128xbf16, #tpu.memory_space<vmem>>, vector<1x128x128xbf16>
    %91 = vector.shape_cast %90 : vector<1x128x128xbf16> to vector<128x128xbf16>
    %cst_70 = arith.constant dense<0.000000e+00> : vector<192x128xf32>
    %92 = tpu.matmul %89, %91, %cst_70 {dimension_numbers = #tpu.dot_dimension_numbers<[1], [0], [0], [1], [0, 0, 1, 1], [], []>} : vector<192x128xbf16>, vector<128x128xbf16>, vector<192x128xf32> -> vector<192x128xf32>
    %c0_71 = arith.constant 0 : index
    %c0_72 = arith.constant 0 : index
    %93 = vector.load %arg12[%c0_71, %c0_72] : memref<192x128xf32, #tpu.memory_space<vmem>>, vector<192x128xf32>
    %94 = arith.addf %93, %92 : vector<192x128xf32>
    %c0_73 = arith.constant 0 : index
    %c0_74 = arith.constant 0 : index
    %95 = vector.load %arg12[%c0_73, %c0_74] : memref<192x128xf32, #tpu.memory_space<vmem>>, vector<192x128xf32>
    tpu.vector_store %arg12[%c0_73, %c0_74], %94 {strides = array<i32>} : memref<192x128xf32, #tpu.memory_space<vmem>>, vector<192x128xf32>,
    %c71 = arith.constant 71 : index
    %c0_75 = arith.constant 0 : index
    %96 = vector.load %arg11[%c71, %c0_75] : memref<288x128xbf16, #tpu.memory_space<vmem>>, vector<192x128xbf16>
    %c6 = arith.constant 6 : index
    %c0_76 = arith.constant 0 : index
    %c0_77 = arith.constant 0 : index
    %97 = vector.load %arg3[%c6, %c0_76, %c0_77] : memref<9x128x128xbf16, #tpu.memory_space<vmem>>, vector<1x128x128xbf16>
    %98 = vector.shape_cast %97 : vector<1x128x128xbf16> to vector<128x128xbf16>
    %cst_78 = arith.constant dense<0.000000e+00> : vector<192x128xf32>
    %99 = tpu.matmul %96, %98, %cst_78 {dimension_numbers = #tpu.dot_dimension_numbers<[1], [0], [0], [1], [0, 0, 1, 1], [], []>} : vector<192x128xbf16>, vector<128x128xbf16>, vector<192x128xf32> -> vector<192x128xf32>
    %c0_79 = arith.constant 0 : index
    %c0_80 = arith.constant 0 : index
    %100 = vector.load %arg12[%c0_79, %c0_80] : memref<192x128xf32, #tpu.memory_space<vmem>>, vector<192x128xf32>
    %101 = arith.addf %100, %99 : vector<192x128xf32>
    %c0_81 = arith.constant 0 : index
    %c0_82 = arith.constant 0 : index
    %102 = vector.load %arg12[%c0_81, %c0_82] : memref<192x128xf32, #tpu.memory_space<vmem>>, vector<192x128xf32>
    tpu.vector_store %arg12[%c0_81, %c0_82], %101 {strides = array<i32>} : memref<192x128xf32, #tpu.memory_space<vmem>>, vector<192x128xf32>,
    %c72 = arith.constant 72 : index
    %c0_83 = arith.constant 0 : index
    %103 = vector.load %arg11[%c72, %c0_83] : memref<288x128xbf16, #tpu.memory_space<vmem>>, vector<192x128xbf16>
    %c7 = arith.constant 7 : index
    %c0_84 = arith.constant 0 : index
    %c0_85 = arith.constant 0 : index
    %104 = vector.load %arg3[%c7, %c0_84, %c0_85] : memref<9x128x128xbf16, #tpu.memory_space<vmem>>, vector<1x128x128xbf16>
    %105 = vector.shape_cast %104 : vector<1x128x128xbf16> to vector<128x128xbf16>
    %cst_86 = arith.constant dense<0.000000e+00> : vector<192x128xf32>
    %106 = tpu.matmul %103, %105, %cst_86 {dimension_numbers = #tpu.dot_dimension_numbers<[1], [0], [0], [1], [0, 0, 1, 1], [], []>} : vector<192x128xbf16>, vector<128x128xbf16>, vector<192x128xf32> -> vector<192x128xf32>
    %c0_87 = arith.constant 0 : index
    %c0_88 = arith.constant 0 : index
    %107 = vector.load %arg12[%c0_87, %c0_88] : memref<192x128xf32, #tpu.memory_space<vmem>>, vector<192x128xf32>
    %108 = arith.addf %107, %106 : vector<192x128xf32>
    %c0_89 = arith.constant 0 : index
    %c0_90 = arith.constant 0 : index
    %109 = vector.load %arg12[%c0_89, %c0_90] : memref<192x128xf32, #tpu.memory_space<vmem>>, vector<192x128xf32>
    tpu.vector_store %arg12[%c0_89, %c0_90], %108 {strides = array<i32>} : memref<192x128xf32, #tpu.memory_space<vmem>>, vector<192x128xf32>,
    %c73 = arith.constant 73 : index
    %c0_91 = arith.constant 0 : index
    %110 = vector.load %arg11[%c73, %c0_91] : memref<288x128xbf16, #tpu.memory_space<vmem>>, vector<192x128xbf16>
    %c8 = arith.constant 8 : index
    %c0_92 = arith.constant 0 : index
    %c0_93 = arith.constant 0 : index
    %111 = vector.load %arg3[%c8, %c0_92, %c0_93] : memref<9x128x128xbf16, #tpu.memory_space<vmem>>, vector<1x128x128xbf16>
    %112 = vector.shape_cast %111 : vector<1x128x128xbf16> to vector<128x128xbf16>
    %cst_94 = arith.constant dense<0.000000e+00> : vector<192x128xf32>
    %113 = tpu.matmul %110, %112, %cst_94 {dimension_numbers = #tpu.dot_dimension_numbers<[1], [0], [0], [1], [0, 0, 1, 1], [], []>} : vector<192x128xbf16>, vector<128x128xbf16>, vector<192x128xf32> -> vector<192x128xf32>
    %c0_95 = arith.constant 0 : index
    %c0_96 = arith.constant 0 : index
    %114 = vector.load %arg12[%c0_95, %c0_96] : memref<192x128xf32, #tpu.memory_space<vmem>>, vector<192x128xf32>
    %115 = arith.addf %114, %113 : vector<192x128xf32>
    %c0_97 = arith.constant 0 : index
    %c0_98 = arith.constant 0 : index
    %116 = vector.load %arg12[%c0_97, %c0_98] : memref<192x128xf32, #tpu.memory_space<vmem>>, vector<192x128xf32>
    tpu.vector_store %arg12[%c0_97, %c0_98], %115 {strides = array<i32>} : memref<192x128xf32, #tpu.memory_space<vmem>>, vector<192x128xf32>,
    %c0_99 = arith.constant 0 : index
    %c0_100 = arith.constant 0 : index
    %117 = vector.load %arg12[%c0_99, %c0_100] : memref<192x128xf32, #tpu.memory_space<vmem>>, vector<192x128xf32>
    %c0_101 = arith.constant 0 : index
    %c0_102 = arith.constant 0 : index
    %118 = vector.load %arg6[%c0_101, %c0_102] : memref<288x1xf32, #tpu.memory_space<vmem>>, vector<192x1xf32>
    %119 = vector.broadcast %118 : vector<192x1xf32> to vector<192x128xf32>
    %120 = arith.mulf %117, %119 : vector<192x128xf32>
    %cst_103 = arith.constant 1.000000e+00 : f32
    %121 = vector.broadcast %cst_103 : f32 to vector<1x192xf32>
    %cst_104 = arith.constant dense<0.000000e+00> : vector<1x128xf32>
    %122 = tpu.matmul %121, %120, %cst_104 {dimension_numbers = #tpu.dot_dimension_numbers<[1], [0], [0], [1], [0, 0, 1, 1], [], []>} : vector<1x192xf32>, vector<192x128xf32>, vector<1x128xf32> -> vector<1x128xf32>
    %c0_105 = arith.constant 0 : index
    %c0_106 = arith.constant 0 : index
    %c0_107 = arith.constant 0 : index
    %c0_108 = arith.constant 0 : index
    %123 = vector.load %arg8[%c0_105, %c0_106, %c0_107, %c0_108] : memref<1x1x2x128xf32, #tpu.memory_space<vmem>>, vector<1x1x1x128xf32>
    %124 = vector.shape_cast %123 : vector<1x1x1x128xf32> to vector<1x128xf32>
    %125 = vector.shape_cast %122 : vector<1x128xf32> to vector<1x1x1x128xf32>
    tpu.vector_store %arg8[%c0_105, %c0_106, %c0_107, %c0_108], %125 {strides = array<i32>} : memref<1x1x2x128xf32, #tpu.memory_space<vmem>>, vector<1x1x1x128xf32>,
    %126 = arith.mulf %120, %117 : vector<192x128xf32>
    %cst_109 = arith.constant dense<0.000000e+00> : vector<1x128xf32>
    %127 = tpu.matmul %121, %126, %cst_109 {dimension_numbers = #tpu.dot_dimension_numbers<[1], [0], [0], [1], [0, 0, 1, 1], [], []>} : vector<1x192xf32>, vector<192x128xf32>, vector<1x128xf32> -> vector<1x128xf32>
    %c0_110 = arith.constant 0 : index
    %c0_111 = arith.constant 0 : index
    %c1_112 = arith.constant 1 : index
    %c0_113 = arith.constant 0 : index
    %128 = vector.load %arg8[%c0_110, %c0_111, %c1_112, %c0_113] : memref<1x1x2x128xf32, #tpu.memory_space<vmem>>, vector<1x1x1x128xf32>
    %129 = vector.shape_cast %128 : vector<1x1x1x128xf32> to vector<1x128xf32>
    %130 = vector.shape_cast %127 : vector<1x128xf32> to vector<1x1x1x128xf32>
    tpu.vector_store %arg8[%c0_110, %c0_111, %c1_112, %c0_113], %130 {strides = array<i32>} : memref<1x1x2x128xf32, #tpu.memory_space<vmem>>, vector<1x1x1x128xf32>,
    %131 = arith.truncf %117 : vector<192x128xf32> to vector<192x128xbf16>
    %c0_114 = arith.constant 0 : index
    %c0_115 = arith.constant 0 : index
    %c0_116 = arith.constant 0 : index
    %132 = vector.load %arg7[%c0_114, %c0_115, %c0_116] : memref<1x192x128xbf16, #tpu.memory_space<vmem>>, vector<1x192x128xbf16>
    %133 = vector.shape_cast %132 : vector<1x192x128xbf16> to vector<192x128xbf16>
    %134 = vector.shape_cast %131 : vector<192x128xbf16> to vector<1x192x128xbf16>
    tpu.vector_store %arg7[%c0_114, %c0_115, %c0_116], %134 {strides = array<i32>} : memref<1x192x128xbf16, #tpu.memory_space<vmem>>, vector<1x192x128xbf16>,
    return
  }
  func.func @transform_1(%arg0: i32, %arg1: i32) -> (i32, i32, i32) {
    %c0_i32 = arith.constant 0 : i32
    %c0_i32_0 = arith.constant 0 : i32
    %c0_i32_1 = arith.constant 0 : i32
    %c0_i32_2 = arith.constant 0 : i32
    return %c0_i32, %c0_i32_0, %c0_i32_1 : i32, i32, i32
  }
  func.func @transform_2(%arg0: i32, %arg1: i32) -> (i32, i32) {
    %c0_i32 = arith.constant 0 : i32
    %c0_i32_0 = arith.constant 0 : i32
    %c0_i32_1 = arith.constant 0 : i32
    return %c0_i32, %c0_i32_0 : i32, i32
  }
  func.func @transform_3(%arg0: i32, %arg1: i32) -> (i32, i32) {
    %c0_i32 = arith.constant 0 : i32
    %c0_i32_0 = arith.constant 0 : i32
    %c0_i32_1 = arith.constant 0 : i32
    return %c0_i32, %c0_i32_0 : i32, i32
  }
  func.func @transform_4(%arg0: i32, %arg1: i32) -> (i32, i32) {
    %c0_i32 = arith.constant 0 : i32
    %c0_i32_0 = arith.constant 0 : i32
    %c0_i32_1 = arith.constant 0 : i32
    return %c0_i32, %c0_i32_0 : i32, i32
  }
  func.func @transform_5(%arg0: i32, %arg1: i32) -> (i32, i32, i32) {
    %c0_i32 = arith.constant 0 : i32
    %0 = arith.addi %arg1, %c0_i32 : i32
    %c0_i32_0 = arith.constant 0 : i32
    %c0_i32_1 = arith.constant 0 : i32
    return %arg0, %0, %c0_i32_0 : i32, i32, i32
  }
  func.func @transform_6(%arg0: i32, %arg1: i32) -> (i32, i32, i32, i32) {
    %c0_i32 = arith.constant 0 : i32
    %c0_i32_0 = arith.constant 0 : i32
    %c0_i32_1 = arith.constant 0 : i32
    return %arg0, %arg1, %c0_i32, %c0_i32_0 : i32, i32, i32, i32
  }
}

</mosaic_0001>

<bundles_post_ra>
// kernel: decoder_bottleneck_forward.2
= control target key start
LH: loop header
LB: loop body
LE: loop exit
PB: predicated region body
PF: predicated region fallthrough
CT: control target
= control target key end

     0   :  { %s6448_s21 = smov 0   ;;  %s6450_s22 = smov 0   ;;  %s7873_s0 = inlined_call_operand.vmem [shape: bf16[2,576,128], index: 0, kind: input, shape index: {}]   ;;  %s7874_s1 = inlined_call_operand.vmem [shape: bf16[9,128,128], index: 1, kind: input, shape index: {}]   ;;  %s7875_s2 = inlined_call_operand.vmem [shape: f32[1,128], index: 2, kind: input, shape index: {}]   ;;  %s7876_s3 = inlined_call_operand.vmem [shape: f32[1,128], index: 3, kind: input, shape index: {}]   ;;  %s7877_s4 = inlined_call_operand.vmem [shape: f32[288,1], index: 4, kind: input, shape index: {}]   ;;  %s7878_s5 = inlined_call_operand.vmem [shape: bf16[2,768,128], index: 5, kind: output, shape index: {0}]   ;;  %s7879_s6 = inlined_call_operand.vmem [shape: f32[2,2,2,128], index: 6, kind: output, shape index: {1}]  }
   0x1   :  { %s6452_s23 = smov 0   ;;  %s6454_s24 = smov 0  }
   0x2   :  { %s6456_s25 = smov 0  }
   0x3 LB: > { %s26_s26 = sadd.s32 1, %s6401_s23  ;;  %s29_s27 = sadd.s32 1, %s6405_s24  ;;  %s6409_s25 = sphi %s6456_s25, %s17_s25   ;;  %s6405_s24 = sphi %s6454_s24, %s7935_s24   ;;  %s6401_s23 = sphi %s6452_s23, %s7934_s23   ;;  %s6397_s22 = sphi %s6450_s22, %s7933_s22   ;;  %s6393_s21 = sphi %s6448_s21, %s7932_s21  }
   0x4   : > { %p27_p0 = scmp.ge.s32.totalorder %s26_s26, 2  ;;  %p4958_p1 = scmp.ge.s32.totalorder %s6409_s25, 1 }
   0x5   : > { %p199_p2 = scmp.lt.s32.totalorder %s6409_s25, 5 }
   0x6   : > { %s7937_s26 = smov (%p27_p0, %s26_s26), 0  ;;  %s7939_s27 = smov (!%p27_p0, %s29_s27), %s6405_s24 }
   0x7   : > { %p200_p3 = pnand %p4958_p1, %p199_p2  ;;  %p31_p4 = scmp.ge.s32.totalorder %s7939_s27, 2 }
   0x9   : > { %s7941_s27 = smov (%p31_p4, %s7939_s27), 0  ;;  %203 = sbr.rel (%p200_p3) target bundleno = 986 (0x3da), region = 36 }
   0xa   : > { %7881 = sst [smem:[#allocation9_spill]] %s7941_s27 }
   0xe   : > { %s7880_s28 = sadd.s32 1, %s6393_s21  ;;  %p237_p5 = scmp.lt.s32.totalorder %s6397_s22, 1 }
   0xf   : > { %s236_s29 = smul.u32 24, %s7880_s28  ;;  %p249_p6 = scmp.lt.s32.totalorder %s6393_s21, 1 }
  0x10   : > { %s238_s30 = scalar_select %p237_p5, %s6397_s22, 1 }
  0x11   : > { %p239_p7 = scmp.lt.s32.totalorder %s236_s29, 95  ;;  %p255_p8 = scmp.lt.s32.totalorder %s6393_s21, 0 }
  0x12   : > { %s6319_s7 = smul.u32 96, %s238_s30  ;;  %s4960_s8 = sshll.u32 %s238_s30, 1 }
  0x13   : > { %s7943_s29 = smov (!%p239_p7, %s236_s29), 95  ;;  %s256_s11 = ssub.s32 0, %s6393_s21 }
  0x14   : > { %s250_s9 = scalar_select %p249_p6, %s6393_s21, 1 }
  0x15   : > { %s242_s10 = sadd.s32 %s6319_s7, %s7943_s29  ;;  %s4962_s28 = smin.u32 %s6393_s21, %s256_s11 }
  0x16   : > { %s4959_s12 = sshll.u32 %s242_s10, 2  ;;  %s252_s13 = sadd.s32 %s4960_s8, %s250_s9 }
  0x17   : > { %s6494_s16 = scalar_lea.vmem %s7878_s5, %s4959_s12  ;;  %s4961_s17 = sshll.u32 %s252_s13, 1 }
  0x18   : > { %s6499_s20 = scalar_lea.vmem %s7879_s6, %s4961_s17  ;;  %s258_s27 = sand.u32 1, %s4962_s28  }
  0x19   : > { %p267_p9 = scmp.eq.s32.totalorder %s6393_s21, 0  ;;  %s259_s30 = ssub.s32 0, %s258_s27 }
  0x1a   : > { %s7945_s30 = smov (!%p255_p8, %s259_s30), %s258_s27  ;;  %p4965_p11 = scmp.ne.s32.totalorder %s6393_s21, 0 }
  0x1b   : > { %p4964_p10 = scmp.lt.s32.totalorder %s7945_s30, 0  ;;  %s265_s29 = sadd.s32 2, %s7945_s30 }
  0x1c   : > { %270 = sbr.rel (%p4965_p11) target bundleno = 53 (0x35), region = 40 }
  0x1d   : > { %s7947_s29 = smov (!%p4964_p10, %s265_s29), %s7945_s30  ;;  %s4966_s7 = smul.u32 (!%p4965_p11), 288, %s6397_s22 }
  0x1f   : > { %s6512_s10 = scalar_lea.vmem (!%p4965_p11), %s7873_s0, %s4966_s7 }
  0x21   : > { %v4967_v0 = vld [vmem:[%s6512_s10 + $0x18] sm:$0xff]  ;;  %v4968_v1 = vld [vmem:[%s6512_s10 + $0x20] sm:$0xff]  ;;  %v4969_v2 = vld [vmem:[%s6512_s10 + $0x28] sm:$0xff] }
  0x22   : > { %286 = vst [vmem:[#allocation2] sm:$0xff] %v4967_v0  ;;  %v4970_v3 = vld [vmem:[%s6512_s10 + $0x30] sm:$0xff]  ;;  %v4971_v4 = vld [vmem:[%s6512_s10 + $0x38] sm:$0xff]  ;;  %v4972_v5 = vld [vmem:[%s6512_s10 + $0x40] sm:$0xff] }
  0x23   : > { %288 = vst [vmem:[#allocation2 + $0x8] sm:$0xff] %v4968_v1  ;;  %v4973_v6 = vld [vmem:[%s6512_s10 + $0x48] sm:$0xff]  ;;  %v4974_v7 = vld [vmem:[%s6512_s10 + $0x50] sm:$0xff]  ;;  %v4975_v8 = vld [vmem:[%s6512_s10 + $0x58] sm:$0xff] }
  0x24   : > { %290 = vst [vmem:[#allocation2 + $0x10] sm:$0xff] %v4969_v2  ;;  %v4976_v9 = vld [vmem:[%s6512_s10 + $0x60] sm:$0xff]  ;;  %v4977_v10 = vld [vmem:[%s6512_s10 + $0x68] sm:$0xff]  ;;  %v4978_v11 = vld [vmem:[%s6512_s10 + $0x70] sm:$0xff] }
  0x25   : > { %292 = vst [vmem:[#allocation2 + $0x18] sm:$0xff] %v4970_v3  ;;  %v4979_v12 = vld [vmem:[%s6512_s10 + $0x78] sm:$0xff]  ;;  %v4980_v13 = vld [vmem:[%s6512_s10 + $0x80] sm:$0xff]  ;;  %v4981_v14 = vld [vmem:[%s6512_s10 + $0x88] sm:$0xff] }
  0x26   : > { %294 = vst [vmem:[#allocation2 + $0x20] sm:$0xff] %v4971_v4  ;;  %v4982_v15 = vld [vmem:[%s6512_s10 + $0x90] sm:$0xff]  ;;  %v4983_v16 = vld [vmem:[%s6512_s10 + $0x98] sm:$0xff]  ;;  %v4984_v17 = vld [vmem:[%s6512_s10 + $0xa0] sm:$0xff] }
  0x27   : > { %296 = vst [vmem:[#allocation2 + $0x28] sm:$0xff] %v4972_v5 }
  0x28   : > { %298 = vst [vmem:[#allocation2 + $0x30] sm:$0xff] %v4973_v6 }
  0x29   : > { %300 = vst [vmem:[#allocation2 + $0x38] sm:$0xff] %v4974_v7 }
  0x2a   : > { %302 = vst [vmem:[#allocation2 + $0x40] sm:$0xff] %v4975_v8 }
  0x2b   : > { %304 = vst [vmem:[#allocation2 + $0x48] sm:$0xff] %v4976_v9 }
  0x2c   : > { %306 = vst [vmem:[#allocation2 + $0x50] sm:$0xff] %v4977_v10 }
  0x2d   : > { %308 = vst [vmem:[#allocation2 + $0x58] sm:$0xff] %v4978_v11 }
  0x2e   : > { %310 = vst [vmem:[#allocation2 + $0x60] sm:$0xff] %v4979_v12 }
  0x2f   : > { %312 = vst [vmem:[#allocation2 + $0x68] sm:$0xff] %v4980_v13 }
  0x30   : > { %314 = vst [vmem:[#allocation2 + $0x70] sm:$0xff] %v4981_v14 }
  0x31   : > { %316 = vst [vmem:[#allocation2 + $0x78] sm:$0xff] %v4982_v15 }
  0x32   : > { %318 = vst [vmem:[#allocation2 + $0x80] sm:$0xff] %v4983_v16 }
  0x33   : > { %320 = vst [vmem:[#allocation2 + $0x88] sm:$0xff] %v4984_v17 }
  0x34   : > { %326 = vsyncadd [#allocation3], 2304 }
  0x35 PF: > { %s7882_s27 = sadd.s32 1, %s6393_s21 }
  0x36   : > { %p4985_p12 = scmp.ge.s32.totalorder %s7882_s27, 2 }
  0x37   : > { %s332_s28 = ssub.s32 (!%p4985_p12), 1, %s7947_s29  ;;  %s5844_s11 = sshll.u32 (!%p4985_p12), %s6393_s21, 3 }
  0x38   : > { %331 = sbr.rel (%p4985_p12) target bundleno = 85 (0x55), region = 63  ;;  %s5845_s12 = sadd.s32 (!%p4985_p12), 8, %s5844_s11 }
  0x39   : > { %s338_s13 = smul.u32 (!%p4985_p12), 72, %s6397_s22  ;;  %s334_s14 = sadd.s32 (!%p4985_p12), 2, %s5845_s12 }
  0x3a   : > { %s5846_s15 = smul.u32 (!%p4985_p12), 144, %s332_s28  ;;  %s345_s10 = scalar_lea.sflag (!%p4985_p12), [#allocation3], %s332_s28 }
  0x3b   : > { %s335_s17 = smul.u32 (!%p4985_p12), 24, %s334_s14 }
  0x3c   : > { %s6547_s22 = scalar_lea.vmem (!%p4985_p12), [#allocation2], %s5846_s15 }
  0x3d   : > { %s336_s18 = sshra.s32 %s335_s17, 3 }
  0x3e   : > { %s339_s19 = sadd.s32 %s338_s13, %s336_s18 }
  0x3f   : > { %s4987_s30 = sshll.u32 %s339_s19, 2 }
  0x40   : > { %s6542_s9 = scalar_lea.vmem %s7873_s0, %s4987_s30 }
  0x41   : > { %v356_v18 = vld [vmem:[%s6542_s9] sm:$0xff]  ;;  %v358_v19 = vld [vmem:[%s6542_s9 + $0x8] sm:$0xff]  ;;  %v360_v20 = vld [vmem:[%s6542_s9 + $0x10] sm:$0xff] }
  0x42   : > { %357 = vst [vmem:[%s6547_s22] sm:$0xff] %v356_v18  ;;  %v362_v21 = vld [vmem:[%s6542_s9 + $0x18] sm:$0xff]  ;;  %v364_v22 = vld [vmem:[%s6542_s9 + $0x20] sm:$0xff]  ;;  %v366_v23 = vld [vmem:[%s6542_s9 + $0x28] sm:$0xff] }
  0x43   : > { %359 = vst [vmem:[%s6547_s22 + $0x8] sm:$0xff] %v358_v19  ;;  %v368_v24 = vld [vmem:[%s6542_s9 + $0x30] sm:$0xff]  ;;  %v370_v25 = vld [vmem:[%s6542_s9 + $0x38] sm:$0xff]  ;;  %v372_v26 = vld [vmem:[%s6542_s9 + $0x40] sm:$0xff] }
  0x44   : > { %361 = vst [vmem:[%s6547_s22 + $0x10] sm:$0xff] %v360_v20  ;;  %v374_v27 = vld [vmem:[%s6542_s9 + $0x48] sm:$0xff]  ;;  %v376_v28 = vld [vmem:[%s6542_s9 + $0x50] sm:$0xff]  ;;  %v378_v29 = vld [vmem:[%s6542_s9 + $0x58] sm:$0xff] }
  0x45   : > { %363 = vst [vmem:[%s6547_s22 + $0x18] sm:$0xff] %v362_v21  ;;  %v380_v30 = vld [vmem:[%s6542_s9 + $0x60] sm:$0xff]  ;;  %v382_v31 = vld [vmem:[%s6542_s9 + $0x68] sm:$0xff]  ;;  %v384_v32 = vld [vmem:[%s6542_s9 + $0x70] sm:$0xff] }
  0x46   : > { %365 = vst [vmem:[%s6547_s22 + $0x20] sm:$0xff] %v364_v22  ;;  %v386_v33 = vld [vmem:[%s6542_s9 + $0x78] sm:$0xff]  ;;  %v388_v34 = vld [vmem:[%s6542_s9 + $0x80] sm:$0xff]  ;;  %v390_v35 = vld [vmem:[%s6542_s9 + $0x88] sm:$0xff] }
  0x47   : > { %367 = vst [vmem:[%s6547_s22 + $0x28] sm:$0xff] %v366_v23 }
  0x48   : > { %369 = vst [vmem:[%s6547_s22 + $0x30] sm:$0xff] %v368_v24 }
  0x49   : > { %371 = vst [vmem:[%s6547_s22 + $0x38] sm:$0xff] %v370_v25 }
  0x4a   : > { %373 = vst [vmem:[%s6547_s22 + $0x40] sm:$0xff] %v372_v26 }
  0x4b   : > { %375 = vst [vmem:[%s6547_s22 + $0x48] sm:$0xff] %v374_v27 }
  0x4c   : > { %377 = vst [vmem:[%s6547_s22 + $0x50] sm:$0xff] %v376_v28 }
  0x4d   : > { %379 = vst [vmem:[%s6547_s22 + $0x58] sm:$0xff] %v378_v29 }
  0x4e   : > { %381 = vst [vmem:[%s6547_s22 + $0x60] sm:$0xff] %v380_v30 }
  0x4f   : > { %383 = vst [vmem:[%s6547_s22 + $0x68] sm:$0xff] %v382_v31 }
  0x50   : > { %385 = vst [vmem:[%s6547_s22 + $0x70] sm:$0xff] %v384_v32 }
  0x51   : > { %387 = vst [vmem:[%s6547_s22 + $0x78] sm:$0xff] %v386_v33 }
  0x52   : > { %389 = vst [vmem:[%s6547_s22 + $0x80] sm:$0xff] %v388_v34 }
  0x53   : > { %391 = vst [vmem:[%s6547_s22 + $0x88] sm:$0xff] %v390_v35 }
  0x54   : > { %397 = vsyncadd %s345_s10, 2304 }
  0x55 PF: > { %s5847_s27 = smul.u32 144, %s7947_s29  ;;  %s401_s12 = scalar_lea.sflag [#allocation3], %s7947_s29 }
  0x57   : > { %s6585_s11 = scalar_lea.vmem [#allocation2], %s5847_s27 }
  0x58   : > { %6389 = dma.done.wait %s401_s12, 2304 }
  0x59   : > { %6390 = vsyncadd %s401_s12, 4294964992  ;;  %v558_v36 = vlaneseq  ;;  %s595_s13 = scalar_select %p267_p9, 48, 0  ;;  %v6411_v37 = vmov 0   ;;  %v6608_v44 = vld [vmem:[%s7877_s4 + $0xa0] sm:$0xff]  ;;  %v6615_v45 = vld [vmem:[%s7877_s4 + $0x90] sm:$0xff] }
  0x5a   : > { %6364 = vset.pattern.permute.xlu2 %v6411_v37  ;;  %6363 = vset.pattern.permute.xlu1 %v6411_v37  ;;  %p596_p13 = scmp.eq.s32.totalorder %s6393_s21, 1  ;;  %v6620_v46 = vld [vmem:[%s7877_s4 + $0x10] sm:$0xff]  ;;  %vm765_vm5 = vcmp.ne.f32.partialorder %v6608_v44, 0.0  ;;  %vm763_vm6 = vcmp.ne.f32.partialorder %v6615_v45, 0.0  ;;  %v6630_v48 = vld [vmem:[%s7877_s4 + $0xa8] sm:$0xff]  ;;  %v6640_v51 = vld [vmem:[%s7877_s4 + $0x98] sm:$0xff] }
  0x5b   : > { %6362 = vset.pattern.permute.xlu0 %v6411_v37  ;;  %v6594_v38 = vshrl.u32 %v558_v36, 7  ;;  %v6596_v39 = vstv %s595_s13  ;;  %vm747_vm11 = vcmp.ne.f32.partialorder %v6620_v46, 0.0  ;;  %v6650_v54 = vld [vmem:[%s7877_s4 + $0x18] sm:$0xff]  ;;  %v6660_v57 = vld [vmem:[%s7877_s4 + $0x28] sm:$0xff]  ;;  %v6670_v60 = vld [vmem:[%s7877_s4 + $0x20] sm:$0xff] }
  0x5c   : > { %s597_s28 = scalar_select %p596_p13, 48, 0  ;;  %v6680_v63 = vld [vmem:[%s7877_s4 + $0xb0] sm:$0xff]  ;;  %v6703_v6 = vld [vmem:[%s7877_s4 + $0xb8] sm:$0xff]  ;;  %v6742_v17 = vld [vmem:[%s7877_s4 + $0x80] sm:$0xff] }
  0x5d   : > { %v579_v40 = vadd.s32 160, %v6594_v38  ;;  %v577_v41 = vadd.s32 144, %v6594_v38  ;;  %v561_v42 = vadd.s32 16, %v6594_v38  ;;  %v580_v47 = vadd.s32 168, %v6594_v38  ;;  %v6694_v3 = vld [vmem:[%s7877_s4 + $0x30] sm:$0xff]  ;;  %v6712_v8 = vld [vmem:[%s7877_s4 + $0x38] sm:$0xff] }
  0x5e   : > { %s598_s29 = ssub.s32 288, %s597_s28  ;;  %v578_v49 = vadd.s32 152, %v6594_v38  ;;  %v562_v52 = vadd.s32 24, %v6594_v38  ;;  %v564_v55 = vadd.s32 40, %v6594_v38  ;;  %v563_v58 = vadd.s32 32, %v6594_v38  ;;  %v6724_v12 = vld [vmem:[%s7877_s4 + $0x78] sm:$0xff] }
  0x5f   : > { %vm620_vm0 = vcmp.ge.s32.totalorder %v579_v40, %v6596_v39  ;;  %v6602_v43 = vstv %s598_s29  ;;  %vm618_vm2 = vcmp.ge.s32.totalorder %v577_v41, %v6596_v39  ;;  %vm602_vm8 = vcmp.ge.s32.totalorder %v561_v42, %v6596_v39  ;;  %v6733_v15 = vld [vmem:[%s7877_s4 + $0x70] sm:$0xff]  ;;  %v733_v21 = vld [vmem:[%s7877_s4 + $0xc0] sm:$0xff]  ;;  %v6761_v24 = vld [vmem:[%s7877_s4 + $0x88] sm:$0xff] }
  0x60   : > { %vm657_vm1 = vcmp.lt.s32.totalorder %v579_v40, %v6602_v43  ;;  %vm655_vm3 = vcmp.lt.s32.totalorder %v577_v41, %v6602_v43  ;;  %vm639_vm9 = vcmp.lt.s32.totalorder %v561_v42, %v6602_v43  ;;  %vm621_vm13 = vcmp.ge.s32.totalorder %v580_v47, %v6596_v39  ;;  %v734_v26 = vld [vmem:[%s7877_s4 + $0xc8] sm:$0xff]  ;;  %v6778_v30 = vld [vmem:[%s7877_s4 + $0x58] sm:$0xff]  ;;  %v6787_v33 = vld [vmem:[%s7877_s4 + $0x50] sm:$0xff] }
  0x61   : > { %vm693_vm4 = vmand %vm620_vm0, %vm657_vm1  ;;  %vm658_vm14 = vcmp.lt.s32.totalorder %v580_v47, %v6602_v43  ;;  %vm766_vm0 = vcmp.ne.f32.partialorder %v6630_v48, 0.0  ;;  %v581_v61 = vadd.s32 176, %v6594_v38  ;;  %v565_v0 = vadd.s32 48, %v6594_v38  ;;  %v6796_v35 = vld [vmem:[%s7877_s4 + $0x60] sm:$0xff] }
  0x62   : > { %vm801_vm7 = vmand %vm693_vm4, %vm765_vm5  ;;  %vm764_vm5 = vcmp.ne.f32.partialorder %v6640_v51, 0.0  ;;  %v582_v2 = vadd.s32 184, %v6594_v38  ;;  %v566_v4 = vadd.s32 56, %v6594_v38  ;;  %v574_v9 = vadd.s32 120, %v6594_v38  ;;  %v6808_v42 = vld [vmem:[%s7877_s4 + $0x40] sm:$0xff] }
  0x63   : > { %v837_v50 = vsel %vm801_vm7, 1, %v6411_v37  ;;  %vm691_vm10 = vmand %vm618_vm2, %vm655_vm3  ;;  %vm619_vm2 = vcmp.ge.s32.totalorder %v578_v49, %v6596_v39  ;;  %vm656_vm3 = vcmp.lt.s32.totalorder %v578_v49, %v6602_v43  ;;  %vm603_vm7 = vcmp.ge.s32.totalorder %v562_v52, %v6596_v39 }
  0x64   : > { %914 = vperm.xlu1 %6363, %v837_v50   ;;  %vm799_vm12 = vmand %vm691_vm10, %vm763_vm6  ;;  %vm748_vm10 = vcmp.ne.f32.partialorder %v6650_v54, 0.0  ;;  %v573_v11 = vadd.s32 112, %v6594_v38  ;;  %v575_v13 = vadd.s32 128, %v6594_v38  ;;  %v583_v18 = vadd.s32 192, %v6594_v38  ;;  %v6817_v50 = vld [vmem:[%s7877_s4 + $0x68] sm:$0xff] }
  0x65   : > { %v835_v53 = vsel %vm799_vm12, 1, %v6411_v37  ;;  %vm675_vm15 = vmand %vm602_vm8, %vm639_vm9  ;;  %vm640_vm8 = vcmp.lt.s32.totalorder %v562_v52, %v6602_v43  ;;  %vm605_vm12 = vcmp.ge.s32.totalorder %v564_v55, %v6596_v39  ;;  %v576_v20 = vadd.s32 136, %v6594_v38 }
  0x66   : > { %908 = vperm.xlu0 %6362, %v835_v53   ;;  %vm783_vm1 = vmand %vm675_vm15, %vm747_vm11  ;;  %vm750_vm15 = vcmp.ne.f32.partialorder %v6660_v57, 0.0  ;;  %v584_v22 = vadd.s32 200, %v6594_v38  ;;  %v570_v27 = vadd.s32 88, %v6594_v38  ;;  %v569_v29 = vadd.s32 80, %v6594_v38  ;;  %v6826_v53 = vld [vmem:[%s7877_s4 + $0x48] sm:$0xff] }
  0x67   : > { %v819_v56 = vsel %vm783_vm1, 1, %v6411_v37  ;;  %vm694_vm4 = vmand %vm621_vm13, %vm658_vm14  ;;  %vm642_vm13 = vcmp.lt.s32.totalorder %v564_v55, %v6602_v43  ;;  %vm604_vm1 = vcmp.ge.s32.totalorder %v563_v58, %v6596_v39  ;;  %v571_v31 = vadd.s32 96, %v6594_v38 }
  0x68   : > { %860 = vperm.xlu2 %6364, %v819_v56   ;;  %vm802_vm6 = vmand %vm694_vm4, %vm766_vm0  ;;  %vm749_vm4 = vcmp.ne.f32.partialorder %v6670_v60, 0.0  ;;  %v567_v36 = vadd.s32 64, %v6594_v38  ;;  %v572_v41 = vadd.s32 104, %v6594_v38  ;;  %v568_v47 = vadd.s32 72, %v6594_v38 }
  0x69   : > { %v838_v59 = vsel %vm802_vm6, 1, %v6411_v37  ;;  %vm692_vm9 = vmand %vm619_vm2, %vm656_vm3  ;;  %vm641_vm2 = vcmp.lt.s32.totalorder %v563_v58, %v6602_v43  ;;  %vm622_vm6 = vcmp.ge.s32.totalorder %v581_v61, %v6596_v39  ;;  %v586_v55 = vadd.s32 216, %v6594_v38 }
  0x6a   : > { %vm800_vm11 = vmand %vm692_vm9, %vm764_vm5  ;;  %vm767_vm9 = vcmp.ne.f32.partialorder %v6680_v63, 0.0  ;;  %v585_v58 = vadd.s32 208, %v6594_v38 }
  0x6b   : > { %v836_v62 = vsel %vm800_vm11, 1, %v6411_v37  ;;  %vm676_vm14 = vmand %vm603_vm7, %vm640_vm8  ;;  %vm659_vm7 = vcmp.lt.s32.totalorder %v581_v61, %v6602_v43  ;;  %vm606_vm11 = vcmp.ge.s32.totalorder %v565_v0, %v6596_v39  ;;  %v587_v61 = vadd.s32 224, %v6594_v38 }
  0x6c   : > { %917 = vperm.xlu1 %6363, %v838_v59   ;;  %vm784_vm0 = vmand %vm676_vm14, %vm748_vm10  ;;  %vm643_vm14 = vcmp.lt.s32.totalorder %v565_v0, %v6602_v43  ;;  %v736_v59 = vld [vmem:[%s7877_s4 + $0xd8] sm:$0xff]  ;;  %v735_v0 = vld [vmem:[%s7877_s4 + $0xd0] sm:$0xff] }
  0x6d   : > { %v820_v1 = vsel %vm784_vm0, 1, %v6411_v37  ;;  %vm678_vm3 = vmand %vm605_vm12, %vm642_vm13  ;;  %vm660_vm0 = vcmp.lt.s32.totalorder %v582_v2, %v6602_v43 }
  0x6e   : > { %911 = vperm.xlu0 %6362, %v836_v62   ;;  %vm786_vm5 = vmand %vm678_vm3, %vm750_vm15  ;;  %vm623_vm15 = vcmp.ge.s32.totalorder %v582_v2, %v6596_v39  ;;  %vm607_vm3 = vcmp.ge.s32.totalorder %v566_v4, %v6596_v39  ;;  %v737_v2 = vld [vmem:[%s7877_s4 + $0xe0] sm:$0xff] }
  0x6f   : > { %vm677_vm8 = vmand %vm604_vm1, %vm641_vm2  ;;  %v822_v5 = vsel %vm786_vm5, 1, %v6411_v37  ;;  %vm751_vm2 = vcmp.ne.f32.partialorder %v6694_v3, 0.0 }
  0x70   : > { %863 = vperm.xlu2 %6364, %v820_v1   ;;  %vm785_vm10 = vmand %vm677_vm8, %vm749_vm4  ;;  %vm644_vm4 = vcmp.lt.s32.totalorder %v566_v4, %v6602_v43  ;;  %v589_v4 = vadd.s32 240, %v6594_v38 }
  0x71   : > { %vm695_vm12 = vmand %vm622_vm6, %vm659_vm7  ;;  %v821_v7 = vsel %vm785_vm10, 1, %v6411_v37  ;;  %vm768_vm6 = vcmp.ne.f32.partialorder %v6703_v6, 0.0 }
  0x72   : > { %vm803_vm13 = vmand %vm695_vm12, %vm767_vm9  ;;  %vm752_vm9 = vcmp.ne.f32.partialorder %v6712_v8, 0.0 }
  0x73   : > { %vm679_vm1 = vmand %vm606_vm11, %vm643_vm14  ;;  %v839_v10 = vsel %vm803_vm13, 1, %v6411_v37  ;;  %vm615_vm11 = vcmp.ge.s32.totalorder %v574_v9, %v6596_v39  ;;  %vm652_vm14 = vcmp.lt.s32.totalorder %v574_v9, %v6602_v43  ;;  %vm614_vm13 = vcmp.ge.s32.totalorder %v573_v11, %v6596_v39  ;;  %v739_v9 = vld [vmem:[%s7877_s4 + $0xf0] sm:$0xff] }
  0x74   : > { %869 = vperm.xlu1 %6363, %v822_v5   ;;  %vm696_vm5 = vmand %vm623_vm15, %vm660_vm0  ;;  %vm651_vm15 = vcmp.lt.s32.totalorder %v573_v11, %v6602_v43 }
  0x75   : > { %vm787_vm7 = vmand %vm679_vm1, %vm751_vm2  ;;  %vm760_vm1 = vcmp.ne.f32.partialorder %v6724_v12, 0.0  ;;  %vm616_vm2 = vcmp.ge.s32.totalorder %v575_v13, %v6596_v39 }
  0x76   : > { %866 = vperm.xlu0 %6362, %v821_v7   ;;  %vm680_vm8 = vmand %vm607_vm3, %vm644_vm4  ;;  %v823_v14 = vsel %vm787_vm7, 1, %v6411_v37  ;;  %vm653_vm3 = vcmp.lt.s32.totalorder %v575_v13, %v6602_v43  ;;  %v588_v7 = vadd.s32 232, %v6594_v38  ;;  %v738_v13 = vld [vmem:[%s7877_s4 + $0xe8] sm:$0xff] }
  0x77   : > { %vm804_vm10 = vmand %vm696_vm5, %vm768_vm6  ;;  %vm759_vm5 = vcmp.ne.f32.partialorder %v6733_v15, 0.0 }
  0x78   : > { %920 = vperm.xlu2 %6364, %v839_v10   ;;  %vm788_vm12 = vmand %vm680_vm8, %vm752_vm9  ;;  %v840_v16 = vsel %vm804_vm10, 1, %v6411_v37  ;;  %vm761_vm8 = vcmp.ne.f32.partialorder %v6742_v17, 0.0  ;;  %vm624_vm10 = vcmp.ge.s32.totalorder %v583_v18, %v6596_v39  ;;  %v590_v10 = vadd.s32 248, %v6594_v38 }
  0x79   : > { %vm688_vm0 = vmand %vm615_vm11, %vm652_vm14  ;;  %v824_v19 = vsel %vm788_vm12, 1, %v6411_v37  ;;  %vm661_vm11 = vcmp.lt.s32.totalorder %v583_v18, %v6602_v43  ;;  %vm617_vm12 = vcmp.ge.s32.totalorder %v576_v20, %v6596_v39  ;;  %v592_v18 = vadd.s32 264, %v6594_v38 }
  0x7a   : > { %vm687_vm4 = vmand %vm614_vm13, %vm651_vm15  ;;  %vm654_vm13 = vcmp.lt.s32.totalorder %v576_v20, %v6602_v43  ;;  %v591_v20 = vadd.s32 256, %v6594_v38 }
  0x7b   : > { %vm796_vm6 = vmand %vm688_vm0, %vm760_vm1  ;;  %vm769_vm0 = vcmp.ne.f32.partialorder %v733_v21, 0.0  ;;  %vm625_vm1 = vcmp.ge.s32.totalorder %v584_v22, %v6596_v39  ;;  %v742_v21 = vld [vmem:[%s7877_s4 + $0x108] sm:$0xff] }
  0x7c   : > { %872 = vperm.xlu1 %6363, %v823_v14   ;;  %vm689_vm7 = vmand %vm616_vm2, %vm653_vm3  ;;  %v832_v23 = vsel %vm796_vm6, 1, %v6411_v37  ;;  %vm662_vm2 = vcmp.lt.s32.totalorder %v584_v22, %v6602_v43 }
  0x7d   : > { %vm795_vm9 = vmand %vm687_vm4, %vm759_vm5  ;;  %vm762_vm4 = vcmp.ne.f32.partialorder %v6761_v24, 0.0 }
  0x7e   : > { %923 = vperm.xlu0 %6362, %v840_v16   ;;  %vm797_vm14 = vmand %vm689_vm7, %vm761_vm8  ;;  %v831_v25 = vsel %vm795_vm9, 1, %v6411_v37  ;;  %vm770_vm7 = vcmp.ne.f32.partialorder %v734_v26, 0.0  ;;  %vm611_vm9 = vcmp.ge.s32.totalorder %v570_v27, %v6596_v39  ;;  %v740_v16 = vld [vmem:[%s7877_s4 + $0xf8] sm:$0xff] }
  0x7f   : > { %vm697_vm15 = vmand %vm624_vm10, %vm661_vm11  ;;  %v833_v28 = vsel %vm797_vm14, 1, %v6411_v37  ;;  %vm648_vm10 = vcmp.lt.s32.totalorder %v570_v27, %v6602_v43  ;;  %vm610_vm14 = vcmp.ge.s32.totalorder %v569_v29, %v6596_v39 }
  0x80   : > { %875 = vperm.xlu2 %6364, %v824_v19   ;;  %vm690_vm3 = vmand %vm617_vm12, %vm654_vm13  ;;  %vm647_vm12 = vcmp.lt.s32.totalorder %v569_v29, %v6602_v43  ;;  %v5867_v29 = vld [vmem:[%s7874_s1 + $0x38] sm:$0xff] }
  0x81   : > { %vm805_vm5 = vmand %vm697_vm15, %vm769_vm0  ;;  %vm756_vm15 = vcmp.ne.f32.partialorder %v6778_v30, 0.0  ;;  %vm612_vm0 = vcmp.ge.s32.totalorder %v571_v31, %v6596_v39  ;;  %6297 = vmatpush.bf16.msra.mxu3 %v5867_v29  ;;  %1386 = vmatpush.bf16.msra.mxu0 %v5867_v29 }
  0x82   : > { %vm698_vm6 = vmand %vm625_vm1, %vm662_vm2  ;;  %v841_v32 = vsel %vm805_vm5, 1, %v6411_v37  ;;  %vm649_vm1 = vcmp.lt.s32.totalorder %v571_v31, %v6602_v43  ;;  %6296 = vmatpush.bf16.msra.mxu2 %v5867_v29  ;;  %v5866_v31 = vld [vmem:[%s7874_s1 + $0x30] sm:$0xff]  ;;  %6295 = vmatpush.bf16.msra.mxu1 %v5867_v29 }
  0x83   : > { %vm798_vm8 = vmand %vm690_vm3, %vm762_vm4  ;;  %vm755_vm3 = vcmp.ne.f32.partialorder %v6787_v33, 0.0 }
  0x84   : > { %899 = vperm.xlu1 %6363, %v832_v23   ;;  %vm806_vm11 = vmand %vm698_vm6, %vm770_vm7  ;;  %v834_v34 = vsel %vm798_vm8, 1, %v6411_v37  ;;  %vm757_vm6 = vcmp.ne.f32.partialorder %v6796_v35, 0.0  ;;  %vm608_vm8 = vcmp.ge.s32.totalorder %v567_v36, %v6596_v39  ;;  %v741_v23 = vld [vmem:[%s7877_s4 + $0x100] sm:$0xff] }
  0x85   : > { %vm684_vm13 = vmand %vm611_vm9, %vm648_vm10  ;;  %v842_v40 = vsel %vm806_vm11, 1, %v6411_v37  ;;  %vm645_vm9 = vcmp.lt.s32.totalorder %v567_v36, %v6602_v43  ;;  %vm613_vm11 = vcmp.ge.s32.totalorder %v572_v41, %v6596_v39  ;;  %6300 = vmatpush.bf16.msra.mxu3 %v5866_v31  ;;  %1387 = vmatpush.bf16.msra.mxu0 %v5866_v31  ;;  %v6907_v36 = vld [vmem:[%s7875_s2] ss:$0 sm:$0xff] }
  0x86   : > { %896 = vperm.xlu0 %6362, %v831_v25   ;;  %vm683_vm2 = vmand %vm610_vm14, %vm647_vm12  ;;  %vm650_vm14 = vcmp.lt.s32.totalorder %v572_v41, %v6602_v43  ;;  %6299 = vmatpush.bf16.msra.mxu2 %v5866_v31 }
  0x87   : > { %vm792_vm4 = vmand %vm684_vm13, %vm756_vm15  ;;  %vm753_vm13 = vcmp.ne.f32.partialorder %v6808_v42, 0.0  ;;  %vm609_vm15 = vcmp.ge.s32.totalorder %v568_v47, %v6596_v39  ;;  %6298 = vmatpush.bf16.msra.mxu1 %v5866_v31 }
  0x88   : > { %902 = vperm.xlu2 %6364, %v833_v28   ;;  %vm685_vm5 = vmand %vm612_vm0, %vm649_vm1  ;;  %v828_v49 = vsel %vm792_vm4, 1, %v6411_v37  ;;  %vm646_vm0 = vcmp.lt.s32.totalorder %v568_v47, %v6602_v43  ;;  %v5864_v47 = vld [vmem:[%s7874_s1 + $0x20] sm:$0xff] }
  0x89   : > { %vm791_vm7 = vmand %vm683_vm2, %vm755_vm3  ;;  %vm758_vm2 = vcmp.ne.f32.partialorder %v6817_v50, 0.0 }
  0x8a   : > { %vm793_vm10 = vmand %vm685_vm5, %vm757_vm6  ;;  %v827_v52 = vsel %vm791_vm7, 1, %v6411_v37  ;;  %vm754_vm5 = vcmp.ne.f32.partialorder %v6826_v53, 0.0  ;;  %vm627_vm7 = vcmp.ge.s32.totalorder %v586_v55, %v6596_v39 }
  0x8b   : > { %vm681_vm12 = vmand %vm608_vm8, %vm645_vm9  ;;  %v829_v56 = vsel %vm793_vm10, 1, %v6411_v37  ;;  %vm664_vm8 = vcmp.lt.s32.totalorder %v586_v55, %v6602_v43  ;;  %vm626_vm10 = vcmp.ge.s32.totalorder %v585_v58, %v6596_v39 }
  0x8c   : > { %926 = vperm.xlu1 %6363, %v841_v32   ;;  %vm686_vm1 = vmand %vm613_vm11, %vm650_vm14  ;;  %vm663_vm11 = vcmp.lt.s32.totalorder %v585_v58, %v6602_v43  ;;  %v6250_v32 = vld [vmem:[%s6585_s11 + $0x8] sm:$0xff]  }
  0x8d   : > { %vm789_vm3 = vmand %vm681_vm12, %vm753_vm13  ;;  %vm772_vm12 = vcmp.ne.f32.partialorder %v736_v59, 0.0  ;;  %vm628_vm13 = vcmp.ge.s32.totalorder %v587_v61, %v6596_v39  ;;  %v5861_v59 = vld [vmem:[%s7874_s1 + $0x8] sm:$0xff] }
  0x8e   : > { %905 = vperm.xlu0 %6362, %v834_v34   ;;  %vm682_vm4 = vmand %vm609_vm15, %vm646_vm0  ;;  %v825_v62 = vsel %vm789_vm3, 1, %v6411_v37  ;;  %vm665_vm15 = vcmp.lt.s32.totalorder %v587_v61, %v6602_v43  ;;  %v6034_v34 = vunpack.c.l.bf16 %v6250_v32  ;;  %v6259_v61 = vld [vmem:[%s6585_s11 + $0x50] sm:$0xff]  }
  0x8f   : > { %vm794_vm6 = vmand %vm686_vm1, %vm758_vm2  ;;  %vm771_vm1 = vcmp.ne.f32.partialorder %v735_v0, 0.0  ;;  %v6070_v0 = vunpack.c.l.bf16 %v6259_v61 }
  0x90   : > { %929 = vperm.xlu2 %6364, %v842_v40   ;;  %vm790_vm9 = vmand %vm682_vm4, %vm754_vm5  ;;  %v830_v1 = vsel %vm794_vm6, 1, %v6411_v37  ;;  %vm773_vm4 = vcmp.ne.f32.partialorder %v737_v2, 0.0  ;;  %vm630_vm6 = vcmp.ge.s32.totalorder %v589_v4, %v6596_v39  ;;  %v6035_v40 = vunpack.c.h.bf16 %v6250_v32 }
  0x91   : > { %vm700_vm14 = vmand %vm627_vm7, %vm664_vm8  ;;  %v826_v5 = vsel %vm790_vm9, 1, %v6411_v37  ;;  %vm667_vm7 = vcmp.lt.s32.totalorder %v589_v4, %v6602_v43  ;;  %vm629_vm9 = vcmp.ge.s32.totalorder %v588_v7, %v6596_v39 }
  0x92   : > { %vm699_vm0 = vmand %vm626_vm10, %vm663_vm11  ;;  %vm666_vm10 = vcmp.lt.s32.totalorder %v588_v7, %v6602_v43 }
  0x93   : > { %vm808_vm2 = vmand %vm700_vm14, %vm772_vm12  ;;  %vm775_vm14 = vcmp.ne.f32.partialorder %v739_v9, 0.0  ;;  %vm631_vm12 = vcmp.ge.s32.totalorder %v590_v10, %v6596_v39  ;;  %v6251_v9 = vld [vmem:[%s6585_s11 + $0x10] sm:$0xff]  }
  0x94   : > { %887 = vperm.xlu1 %6363, %v828_v49   ;;  %vm701_vm3 = vmand %vm628_vm13, %vm665_vm15  ;;  %v844_v11 = vsel %vm808_vm2, 1, %v6411_v37  ;;  %vm668_vm13 = vcmp.lt.s32.totalorder %v590_v10, %v6602_v43  ;;  %v485_v49 = vmul.f32 %v6907_v36, %v6035_v40 }
  0x95   : > { %vm807_vm5 = vmand %vm699_vm0, %vm771_vm1  ;;  %vm774_vm0 = vcmp.ne.f32.partialorder %v738_v13, 0.0 }
  0x96   : > { %884 = vperm.xlu0 %6362, %v827_v52   ;;  %vm809_vm8 = vmand %vm701_vm3, %vm773_vm4  ;;  %v843_v14 = vsel %vm807_vm5, 1, %v6411_v37  ;;  %vm776_vm3 = vcmp.ne.f32.partialorder %v740_v16, 0.0  ;;  %vm633_vm5 = vcmp.ge.s32.totalorder %v592_v18, %v6596_v39  ;;  %v5863_v52 = vld [vmem:[%s7874_s1 + $0x18] sm:$0xff] }
  0x97   : > { %vm703_vm11 = vmand %vm630_vm6, %vm667_vm7  ;;  %v845_v19 = vsel %vm809_vm8, 1, %v6411_v37  ;;  %vm670_vm6 = vcmp.lt.s32.totalorder %v592_v18, %v6602_v43  ;;  %vm632_vm8 = vcmp.ge.s32.totalorder %v591_v20, %v6596_v39  ;;  %v6252_v16 = vld [vmem:[%s6585_s11 + $0x18] sm:$0xff]   ;;  %v6039_v18 = vunpack.c.h.bf16 %v6251_v9 }
  0x98   : > { %890 = vperm.xlu2 %6364, %v829_v56   ;;  %vm702_vm15 = vmand %vm629_vm9, %vm666_vm10  ;;  %vm669_vm9 = vcmp.lt.s32.totalorder %v591_v20, %v6602_v43  ;;  %v6042_v29 = vunpack.c.l.bf16 %v6252_v16 }
  0x99   : > { %vm811_vm1 = vmand %vm703_vm11, %vm775_vm14  ;;  %vm778_vm11 = vcmp.ne.f32.partialorder %v742_v21, 0.0 }
  0x9a   : > { %vm704_vm2 = vmand %vm631_vm12, %vm668_vm13  ;;  %v847_v22 = vsel %vm811_vm1, 1, %v6411_v37  ;;  %vm777_vm12 = vcmp.ne.f32.partialorder %v741_v23, 0.0  ;;  %v6038_v23 = vunpack.c.l.bf16 %v6251_v9 }
  0x9b   : > { %vm810_vm4 = vmand %vm702_vm15, %vm774_vm0 }
  0x9c   : > { %878 = vperm.xlu1 %6363, %v825_v62   ;;  %vm812_vm7 = vmand %vm704_vm2, %vm776_vm3  ;;  %v846_v25 = vsel %vm810_vm4, 1, %v6411_v37  ;;  %v5860_v62 = vld [vmem:[%s7874_s1] sm:$0xff] }
  0x9d   : > { %vm706_vm10 = vmand %vm633_vm5, %vm670_vm6  ;;  %v848_v26 = vsel %vm812_vm7, 1, %v6411_v37 }
  0x9e   : > { %893 = vperm.xlu0 %6362, %v830_v1   ;;  %vm705_vm14 = vmand %vm632_vm8, %vm669_vm9  ;;  %v6071_v1 = vunpack.c.h.bf16 %v6259_v61  ;;  %vm600_vm9 = vcmp.ge.s32.totalorder %v6594_v38, %v6596_v39 }
  0x9f   : > { %vm814_vm13 = vmand %vm706_vm10, %vm778_vm11  ;;  %vm637_vm10 = vcmp.lt.s32.totalorder %v6594_v38, %v6602_v43 }
  0xa0   : > { %881 = vperm.xlu2 %6364, %v826_v5   ;;  %vm813_vm15 = vmand %vm705_vm14, %vm777_vm12  ;;  %v850_v27 = vsel %vm814_vm13, 1, %v6411_v37  ;;  %v502_v5 = vmul.f32 %v6907_v36, %v6070_v0  ;;  %vm1209_vm14 = vsmask.f32 4352 }
  0xa1   : > { %v849_v28 = vsel %vm813_vm15, 1, %v6411_v37  ;;  %vm7017_vm15 = vmand %vm600_vm9, %vm637_vm10 }
  0xa4   : > { %935 = vperm.xlu1 %6363, %v844_v11  }
  0xa6   : > { %932 = vperm.xlu0 %6362, %v843_v14   ;;  %v6260_v14 = vld [vmem:[%s6585_s11 + $0x58] sm:$0xff]  }
  0xa7   : > { %v6075_v32 = vunpack.c.h.bf16 %v6260_v14 }
  0xa8   : > { %938 = vperm.xlu2 %6364, %v845_v19   ;;  %v6074_v19 = vunpack.c.l.bf16 %v6260_v14 }
  0xac   : > { %944 = vperm.xlu1 %6363, %v847_v22  }
  0xae   : > { %941 = vperm.xlu0 %6362, %v846_v25   ;;  %v6043_v25 = vunpack.c.h.bf16 %v6252_v16 }
  0xb0   : > { %947 = vperm.xlu2 %6364, %v848_v26  }
  0xb4   : > { %953 = vperm.xlu1 %6363, %v850_v27  }
  0xb6   : > { %950 = vperm.xlu0 %6362, %v849_v28   ;;  %v487_v28 = vmul.f32 %v6907_v36, %v6039_v18  ;;  %v594_v18 = vadd.s32 280, %v6594_v38 }
  0xb8   : > { %4573 = vperm.xlu2 %6364, %v6724_v12   ;;  %v5865_v12 = vld [vmem:[%s7874_s1 + $0x28] sm:$0xff]  ;;  %vm672_vm9 = vcmp.lt.s32.totalorder %v594_v18, %v6602_v43 }
  0xb9   : > { %6303 = vmatpush.bf16.msra.mxu3 %v5865_v12  ;;  %1388 = vmatpush.bf16.msra.mxu0 %v5865_v12 }
  0xba   : > { %6302 = vmatpush.bf16.msra.mxu2 %v5865_v12  ;;  %6301 = vmatpush.bf16.msra.mxu1 %v5865_v12 }
  0xbc   : > { %4563 = vperm.xlu1 %6363, %v6817_v50  }
  0xbd   : > { %6306 = vmatpush.bf16.msra.mxu3 %v5864_v47  ;;  %1389 = vmatpush.bf16.msra.mxu0 %v5864_v47 }
  0xbe   : > { %4568 = vperm.xlu0 %6362, %v6733_v15   ;;  %v484_v15 = vmul.f32 %v6907_v36, %v6034_v34  ;;  %6305 = vmatpush.bf16.msra.mxu2 %v5864_v47 }
  0xbf   : > { %6304 = vmatpush.bf16.msra.mxu1 %v5864_v47 }
  0xc0   : > { %4558 = vperm.xlu2 %6364, %v6796_v35   ;;  %v6916_v35 = vld [vmem:[%s7876_s3] ss:$0 sm:$0xff] }
  0xc1   : > { %v524_v50 = vadd.f32 %v6916_v35, %v484_v15  ;;  %v525_v55 = vadd.f32 %v6916_v35, %v485_v49  ;;  %6309 = vmatpush.bf16.msra.mxu3 %v5863_v52  ;;  %1390 = vmatpush.bf16.msra.mxu0 %v5863_v52  ;;  %v489_v15 = vmul.f32 %v6907_v36, %v6043_v25 }
  0xc2   : > { %v861_v41 = vpop.permute.xlu2 %860  ;;  %6308 = vmatpush.bf16.msra.mxu2 %v5863_v52  ;;  %v527_v47 = vadd.f32 %v6916_v35, %v487_v28  ;;  %v488_v49 = vmul.f32 %v6907_v36, %v6042_v29 }
  0xc3   : > { %vm963_vm0 = vcmp.eq.s32.totalorder %v861_v41, 1  ;;  %6307 = vmatpush.bf16.msra.mxu1 %v5863_v52  ;;  %v486_v41 = vmul.f32 %v6907_v36, %v6038_v23  ;;  %v505_v52 = vmul.f32 %v6907_v36, %v6075_v32 }
  0xc4   : > { %4548 = vperm.xlu1 %6363, %v6787_v33   ;;  %v999_v33 = vsel %vm963_vm0, %v524_v50, 0.0  ;;  %v6972_v50 = vld [vmem:[%s6585_s11 + $0x40] sm:$0xff]   ;;  %v528_v61 = vadd.f32 %v6916_v35, %v488_v49 }
  0xc6   : > { %4553 = vperm.xlu0 %6362, %v6778_v30   ;;  %v5862_v30 = vld [vmem:[%s7874_s1 + $0x10] sm:$0xff] }
  0xc7   : > { %6312 = vmatpush.bf16.msra.mxu3 %v5862_v30  ;;  %1391 = vmatpush.bf16.msra.mxu0 %v5862_v30 }
  0xc8   : > { %4543 = vperm.xlu2 %6364, %v6826_v53   ;;  %6311 = vmatpush.bf16.msra.mxu2 %v5862_v30 }
  0xc9   : > { %6310 = vmatpush.bf16.msra.mxu1 %v5862_v30  ;;  %v6256_v30 = vld [vmem:[%s6585_s11 + $0x38] sm:$0xff]  }
  0xca   : > { %v864_v56 = vpop.permute.xlu2 %863 }
  0xcb   : > { %vm964_vm1 = vcmp.eq.s32.totalorder %v864_v56, 1  ;;  %6315 = vmatpush.bf16.msra.mxu3 %v5861_v59  ;;  %1392 = vmatpush.bf16.msra.mxu0 %v5861_v59  ;;  %v526_v56 = vadd.f32 %v6916_v35, %v486_v41 }
  0xcc   : > { %v1000_v58 = vsel %vm964_vm1, %v525_v55, 0.0  ;;  %4533 = vperm.xlu1 %6363, %v6712_v8   ;;  %6314 = vmatpush.bf16.msra.mxu2 %v5861_v59 }
  0xcd   : > { %v6108_v53 = vpack.c.bf16 %v1000_v58, %v999_v33  ;;  %6313 = vmatpush.bf16.msra.mxu1 %v5861_v59  ;;  %v6062_v58 = vunpack.c.l.bf16 %v6972_v50 }
  0xce   : > { %4538 = vperm.xlu0 %6362, %v6808_v42   ;;  %v6258_v42 = vld [vmem:[%s6585_s11 + $0x48] sm:$0xff]  }
  0xcf   : > { %6267 = vst [vmem:[#allocation4 + $0x8] sm:$0xff] %v6108_v53   ;;  %6318 = vmatpush.bf16.msra.mxu3 %v5860_v62  ;;  %1393 = vmatpush.bf16.msra.mxu0 %v5860_v62  ;;  %v6066_v2 = vunpack.c.l.bf16 %v6258_v42  ;;  %v6067_v4 = vunpack.c.h.bf16 %v6258_v42  ;;  %v6058_v42 = vunpack.c.l.bf16 %v6256_v30 }
  0xd0   : > { %4528 = vperm.xlu2 %6364, %v6694_v3   ;;  %6317 = vmatpush.bf16.msra.mxu2 %v5860_v62 }
  0xd1   : > { %6316 = vmatpush.bf16.msra.mxu1 %v5860_v62  ;;  %v500_v10 = vmul.f32 %v6907_v36, %v6066_v2  ;;  %v501_v13 = vmul.f32 %v6907_v36, %v6067_v4  ;;  %v6059_v62 = vunpack.c.h.bf16 %v6256_v30  ;;  %v496_v16 = vmul.f32 %v6907_v36, %v6058_v42 }
  0xd2   : > { %v6937_v8 = vpop.permute.xlu2 %920 }
  0xd3   : > { %v540_v20 = vadd.f32 %v6916_v35, %v500_v10  ;;  %v541_v22 = vadd.f32 %v6916_v35, %v501_v13  ;;  %vm983_vm6 = vcmp.eq.s32.totalorder %v6937_v8, 1 }
  0xd4   : > { %4523 = vperm.xlu1 %6363, %v6660_v57   ;;  %v503_v57 = vmul.f32 %v6907_v36, %v6071_v1 }
  0xd6   : > { %4613 = vperm.xlu0 %6362, %v6703_v6   ;;  %v915_v3 = vpop.permute.xlu1 %914  ;;  %v542_v6 = vadd.f32 %v6916_v35, %v502_v5  ;;  %v4992_v0 = vld [vmem:[#allocation4 + $0x8] sm:$0x8]  ;;  %v5848_v1 = vld [vmem:[#allocation4 + $0x8] sm:$0xf0] }
  0xd7   : > { %vm981_vm2 = vcmp.eq.s32.totalorder %v915_v3, 1  ;;  %v4993_v14 = vor.u32 %v5848_v1, %v4992_v0 }
  0xd8   : > { %4608 = vperm.xlu2 %6364, %v6680_v63   ;;  %v909_v7 = vpop.permute.xlu0 %908  ;;  %v543_v63 = vadd.f32 %v6916_v35, %v503_v57  ;;  %v1017_v26 = vsel %vm981_vm2, %v542_v6, 0.0  ;;  %v593_v57 = vadd.s32 272, %v6594_v38  ;;  %v497_v6 = vmul.f32 %v6907_v36, %v6059_v62  ;;  %v5904_v62 = vld [vmem:[%s7874_s1 + $0xa0] sm:$0xff] }
  0xd9   : > { %vm979_vm3 = vcmp.eq.s32.totalorder %v909_v7, 1  ;;  %v6999_v7 = vld [vmem:[%s7877_s4 + $0x8] sm:$0xff]  ;;  %v1211_v32 = vshrl.u32 %v4993_v14, 16 }
  0xda   : > { %v6950_v11 = vpop.permute.xlu2 %875  ;;  %v1015_v34 = vsel %vm979_vm3, %v540_v20, 0.0  ;;  %vm634_vm0 = vcmp.ge.s32.totalorder %v593_v57, %v6596_v39  ;;  %vm671_vm1 = vcmp.lt.s32.totalorder %v593_v57, %v6602_v43  ;;  %v537_v49 = vadd.f32 %v6916_v35, %v497_v6 }
  0xdb   : > { %vm968_vm12 = vcmp.eq.s32.totalorder %v6950_v11, 1 }
  0xdc   : > { %4603 = vperm.xlu1 %6363, %v6630_v48  }
  0xde   : > { %4518 = vperm.xlu0 %6362, %v6670_v60   ;;  %v918_v21 = vpop.permute.xlu1 %917  ;;  %v504_v60 = vmul.f32 %v6907_v36, %v6074_v19 }
  0xdf   : > { %vm982_vm4 = vcmp.eq.s32.totalorder %v918_v21, 1 }
  0xe0   : > { %4513 = vperm.xlu2 %6364, %v6650_v54   ;;  %v1018_v48 = vsel %vm982_vm4, %v543_v63, 0.0  ;;  %v912_v27 = vpop.permute.xlu0 %911  ;;  %v544_v55 = vadd.f32 %v6916_v35, %v504_v60  ;;  %v560_v63 = vadd.s32 8, %v6594_v38  ;;  %v743_v38 = vld [vmem:[%s7877_s4 + $0x110] sm:$0xff]  ;;  %v1214_v60 = vshll.u32 %v4993_v14, 16 }
  0xe1   : > { %v6153_v31 = vpack.c.bf16 %v1018_v48, %v1017_v26  ;;  %vm980_vm5 = vcmp.eq.s32.totalorder %v912_v27, 1  ;;  %v6261_v26 = vld [vmem:[%s6585_s11 + $0x60] sm:$0xff]  }
  0xe2   : > { %v1016_v12 = vsel %vm980_vm5, %v541_v22, 0.0  ;;  %v6964_v40 = vpop.permute.xlu2 %902  ;;  %v6985_v3 = vsel %vm983_vm6, %v544_v55, 0.0  ;;  %vm601_vm4 = vcmp.ge.s32.totalorder %v560_v63, %v6596_v39  ;;  %vm638_vm5 = vcmp.lt.s32.totalorder %v560_v63, %v6602_v43  ;;  %vm7048_vm6 = vmand %vm634_vm0, %vm671_vm1 }
  0xe3   : > { %6276 = vst [vmem:[#allocation4 + $0x50] sm:$0xff] %v6153_v31   ;;  %v6148_v54 = vpack.c.bf16 %v1016_v12, %v1015_v34  ;;  %v6078_v30 = vunpack.c.l.bf16 %v6261_v26  ;;  %vm7069_vm10 = vmand %vm601_vm4, %vm638_vm5  ;;  %v1216_v42 = vrot.slane %v1214_v60, 4  ;;  %vm977_vm5 = vcmp.eq.s32.totalorder %v6964_v40, 1 }
  0xe4   : > { %4508 = vperm.xlu1 %6363, %v6620_v46   ;;  %v529_v46 = vadd.f32 %v6916_v35, %v489_v15  ;;  %v6079_v15 = vunpack.c.h.bf16 %v6261_v26 }
  0xe5   : > { %6275 = vst [vmem:[#allocation4 + $0x48] sm:$0xff] %v6148_v54  }
  0xe6   : > { %4598 = vperm.xlu0 %6362, %v6608_v44   ;;  %v870_v33 = vpop.permute.xlu1 %869  ;;  %v545_v44 = vadd.f32 %v6916_v35, %v505_v52  ;;  %v1004_v23 = vsel %vm968_vm12, %v529_v46, 0.0 }
  0xe7   : > { %vm966_vm7 = vcmp.eq.s32.totalorder %v870_v33, 1  ;;  %v744_v33 = vld [vmem:[%s7877_s4 + $0x118] sm:$0xff] }
  0xe8   : > { %4593 = vperm.xlu2 %6364, %v6640_v51   ;;  %v1002_v53 = vsel %vm966_vm7, %v527_v47, 0.0  ;;  %v867_v59 = vpop.permute.xlu0 %866  ;;  %v4472_v51 = vld [vmem:[%s7877_s4] sm:$0xff]  ;;  %vm779_vm7 = vcmp.ne.f32.partialorder %v743_v38, 0.0  ;;  %vm780_vm0 = vcmp.ne.f32.partialorder %v744_v33, 0.0 }
  0xe9   : > { %vm965_vm8 = vcmp.eq.s32.totalorder %v867_v59, 1  ;;  %vm745_vm11 = vcmp.ne.f32.partialorder %v4472_v51, 0.0  ;;  %v1213_v59 = vrot.slane %v1211_v32, 3  ;;  %vm7081_vm12 = vmand %vm7048_vm6, %vm779_vm7 }
  0xea   : > { %v1001_v8 = vsel %vm965_vm8, %v526_v56, 0.0  ;;  %v6987_v2 = vpop.permute.xlu2 %929  ;;  %v5857_v4 = vld [vmem:[#allocation4 + $0x50] sm:$0xff]  ;;  %vm7034_vm3 = vmand %vm7017_vm15, %vm745_vm11  ;;  %vm635_vm8 = vcmp.ge.s32.totalorder %v594_v18, %v6596_v39  ;;  %vm746_vm11 = vcmp.ne.f32.partialorder %v6999_v7, 0.0  ;;  %v506_v39 = vmul.f32 %v6907_v36, %v6078_v30 }
  0xeb   : > { %v6113_v5 = vpack.c.bf16 %v1002_v53, %v1001_v8  ;;  %v1291_v10 = vshrl.u32 %v5857_v4, 16  ;;  %v1294_v13 = vshll.u32 %v5857_v4, 16  ;;  %v817_v46 = vsel %vm7034_vm3, 1, %v6411_v37  ;;  %vm7091_vm15 = vmand %vm635_vm8, %vm672_vm9 }
  0xec   : > { %4588 = vperm.xlu1 %6363, %v6615_v45   ;;  %v5856_v9 = vld [vmem:[#allocation4 + $0x48] sm:$0xff]  ;;  %v507_v8 = vmul.f32 %v6907_v36, %v6079_v15  ;;  %vm7099_vm1 = vmand %vm7069_vm10, %vm746_vm11  ;;  %vm986_vm4 = vcmp.eq.s32.totalorder %v6987_v2, 1  ;;  %v5927_v2 = vld [vmem:[%s7874_s1 + $0xf8] sm:$0xff] }
  0xed   : > { %6268 = vst [vmem:[#allocation4 + $0x10] sm:$0xff] %v6113_v5   ;;  %v1282_v20 = vshrl.u32 %v5856_v9, 16  ;;  %v1285_v21 = vshll.u32 %v5856_v9, 16  ;;  %v1293_v45 = vrot.slane %v1291_v10, 3  ;;  %v1296_v22 = vrot.slane %v1294_v13, 4  ;;  %v6254_v9 = vld [vmem:[%s6585_s11 + $0x28] sm:$0xff]   ;;  %vm7116_vm3 = vmand %vm7091_vm15, %vm780_vm0  ;;  %2469 = vmatpush.bf16.msrb.mxu3 %v5927_v2 }
  0xee   : > { %4503 = vperm.xlu0 %6362, %v6999_v7   ;;  %v873_v19 = vpop.permute.xlu1 %872  ;;  %v498_v10 = vmul.f32 %v6907_v36, %v6062_v58  ;;  %v851_v7 = vsel %vm7081_vm12, 1, %v6411_v37  ;;  %v5906_v58 = vld [vmem:[%s7874_s1 + $0xb0] sm:$0xff]  ;;  %v547_v18 = vadd.f32 %v6916_v35, %v507_v8  ;;  %v5887_v5 = vld [vmem:[%s7874_s1 + $0x78] sm:$0xff] }
  0xef   : > { %vm967_vm13 = vcmp.eq.s32.totalorder %v873_v19, 1  ;;  %v1284_v27 = vrot.slane %v1282_v20, 3  ;;  %v1287_v28 = vrot.slane %v1285_v21, 4  ;;  %v7024_v29 = vor.u32 %v1296_v22, %v1293_v45  ;;  %1640 = vmatpush.bf16.msrb.mxu1 %v5887_v5 }
  0xf0   : > { %4498 = vperm.xlu2 %6364, %v4472_v51   ;;  %v1003_v48 = vsel %vm967_vm13, %v528_v61, 0.0  ;;  %v924_v11 = vpop.permute.xlu0 %923  ;;  %v5907_v61 = vld [vmem:[%s7874_s1 + $0xb8] sm:$0xff]  ;;  %v818_v20 = vsel %vm7099_vm1, 1, %v6411_v37  ;;  %v6051_v21 = vunpack.c.h.bf16 %v6254_v9  ;;  %v538_v26 = vadd.f32 %v6916_v35, %v498_v10 }
  0xf1   : > { %v6118_v31 = vpack.c.bf16 %v1004_v23, %v1003_v48  ;;  %vm984_vm2 = vcmp.eq.s32.totalorder %v924_v11, 1  ;;  %v7038_v54 = vor.u32 %v1287_v28, %v1284_v27  ;;  %2047 = vmatpush.bf16.msrb.mxu2 %v5907_v61  ;;  %v546_v23 = vadd.f32 %v6916_v35, %v506_v39  ;;  %v5905_v11 = vld [vmem:[%s7874_s1 + $0xa8] sm:$0xff]  ;;  %v7143_v27 = vld [vmem:[%s6585_s11 + $0x30] sm:$0xff]   ;;  %v6253_v28 = vld [vmem:[%s6585_s11 + $0x20] sm:$0xff]  }
  0xf2   : > { %v1020_v34 = vsel %vm984_vm2, %v545_v44, 0.0  ;;  %v7029_v12 = vpop.permute.xlu2 %890  ;;  %v852_v48 = vsel %vm7116_vm3, 1, %v6411_v37  ;;  %v1022_v41 = vsel %vm986_vm4, %v547_v18, 0.0  ;;  %v493_v37 = vmul.f32 %v6907_v36, %v6051_v21  ;;  %v5947_v10 = vld [vmem:[%s7874_s1 + $0x138] sm:$0xff] }
  0xf3   : > { %6269 = vst [vmem:[#allocation4 + $0x18] sm:$0xff] %v6118_v31   ;;  %v6158_v47 = vpack.c.bf16 %v1020_v34, %v6985_v3  ;;  %v1298_v55 = vsel %vm1209_vm14, %v7038_v54, %v7024_v29  ;;  %v6063_v3 = vunpack.c.h.bf16 %v6972_v50  ;;  %v6050_v34 = vunpack.c.l.bf16 %v6254_v9  ;;  %2771 = vmatpush.bf16.msrb.mxu0 %v5947_v10  ;;  %v5944_v10 = vld [vmem:[%s7874_s1 + $0x120] sm:$0xff] }
  0xf4   : > { %4578 = vperm.xlu1 %6363, %v6742_v17   ;;  %v5849_v56 = vld [vmem:[#allocation4 + $0x10] sm:$0xff]  ;;  %1434 = vmatmul.bf16.vlgmr.msra.gmra.mxu3 %v1298_v55  ;;  %v536_v17 = vadd.f32 %v6916_v35, %v496_v16  ;;  %v1217_v16 = vor.u32 %v1216_v42, %v1213_v59  ;;  %v6047_v30 = vunpack.c.h.bf16 %v6253_v28  ;;  %vm973_vm10 = vcmp.eq.s32.totalorder %v7029_v12, 1 }
  0xf5   : > { %6277 = vst [vmem:[#allocation4 + $0x58] sm:$0xff] %v6158_v47   ;;  %v1219_v0 = vshrl.u32 %v5849_v56, 16  ;;  %v1222_v1 = vshll.u32 %v5849_v56, 16  ;;  %v499_v50 = vmul.f32 %v6907_v36, %v6063_v3  ;;  %2048 = vmatpush.bf16.msrb.mxu2 %v5906_v58  ;;  %v6054_v56 = vunpack.c.l.bf16 %v7143_v27 }
  0xf6   : > { %4583 = vperm.xlu0 %6362, %v6761_v24   ;;  %v900_v44 = vpop.permute.xlu1 %899 }
  0xf7   : > { %vm976_vm13 = vcmp.eq.s32.totalorder %v900_v44, 1  ;;  %v1221_v43 = vrot.slane %v1219_v0, 3  ;;  %v1224_v57 = vrot.slane %v1222_v1, 4  ;;  %v539_v31 = vadd.f32 %v6916_v35, %v499_v50  ;;  %v6262_v50 = vld [vmem:[%s6585_s11 + $0x68] sm:$0xff]  }
  0xf8   : > { %854 = vperm.xlu2 %6364, %v817_v46   ;;  %v1012_v51 = vsel %vm976_vm13, %v537_v49, 0.0  ;;  %v897_v4 = vpop.permute.xlu0 %896  ;;  %v492_v44 = vmul.f32 %v6907_v36, %v6050_v34  ;;  %v6046_v0 = vunpack.c.l.bf16 %v6253_v28  ;;  %v533_v1 = vadd.f32 %v6916_v35, %v493_v37 }
  0xf9   : > { %vm975_vm2 = vcmp.eq.s32.totalorder %v897_v4, 1  ;;  %v7120_v63 = vor.u32 %v1224_v57, %v1221_v43  ;;  %2049 = vmatpush.bf16.msrb.mxu2 %v5905_v11  ;;  %v5926_v4 = vld [vmem:[%s7874_s1 + $0xf0] sm:$0xff]  ;;  %v494_v43 = vmul.f32 %v6907_v36, %v6054_v56  ;;  %v491_v57 = vmul.f32 %v6907_v36, %v6047_v30 }
  0xfa   : > { %v1011_v13 = vsel %vm975_vm2, %v536_v17, 0.0  ;;  %v7111_v14 = vpop.permute.xlu2 %881  ;;  %v5850_v45 = vld [vmem:[#allocation4 + $0x18] sm:$0xff]  ;;  %v1013_v17 = vsel %vm977_vm5, %v538_v26, 0.0  ;;  %v532_v9 = vadd.f32 %v6916_v35, %v492_v44  ;;  %2470 = vmatpush.bf16.msrb.mxu3 %v5926_v4  ;;  %v5886_v26 = vld [vmem:[%s7874_s1 + $0x70] sm:$0xff]  ;;  %v6083_v28 = vunpack.c.h.bf16 %v6262_v50 }
  0xfb   : > { %v6138_v19 = vpack.c.bf16 %v1012_v51, %v1011_v13  ;;  %v1226_v22 = vsel %vm1209_vm14, %v1217_v16, %v7120_v63  ;;  %v1228_v15 = vshrl.u32 %v5850_v45, 16  ;;  %v1231_v33 = vshll.u32 %v5850_v45, 16  ;;  %1641 = vmatpush.bf16.msrb.mxu1 %v5886_v26  ;;  %v5923_v4 = vld [vmem:[%s7874_s1 + $0xd8] sm:$0xff] }
  0xfc   : > { %956 = vperm.xlu1 %6363, %v851_v7   ;;  %v5858_v25 = vld [vmem:[#allocation4 + $0x58] sm:$0xff]  ;;  %1394 = vmatmul.bf16.vlgmr.msra.gmra.mxu0 %v1226_v22  ;;  %v6055_v51 = vunpack.c.h.bf16 %v7143_v27  ;;  %v490_v7 = vmul.f32 %v6907_v36, %v6046_v0  ;;  %v534_v21 = vadd.f32 %v6916_v35, %v494_v43  ;;  %v531_v45 = vadd.f32 %v6916_v35, %v491_v57 }
  0xfd   : > { %6273 = vst [vmem:[#allocation4 + $0x38] sm:$0xff] %v6138_v19   ;;  %v1300_v32 = vshrl.u32 %v5858_v25, 16  ;;  %v1303_v60 = vshll.u32 %v5858_v25, 16  ;;  %v1230_v3 = vrot.slane %v1228_v15, 3  ;;  %v1233_v8 = vrot.slane %v1231_v33, 4  ;;  %2050 = vmatpush.bf16.msrb.mxu2 %v5904_v62 }
  0xfe   : > { %857 = vperm.xlu0 %6362, %v818_v20   ;;  %v927_v38 = vpop.permute.xlu1 %926  ;;  %v495_v58 = vmul.f32 %v6907_v36, %v6055_v51  ;;  %v5925_v20 = vld [vmem:[%s7874_s1 + $0xe8] sm:$0xff]  ;;  %v530_v27 = vadd.f32 %v6916_v35, %v490_v7  ;;  %vm970_vm11 = vcmp.eq.s32.totalorder %v7111_v14, 1  ;;  %v509_v62 = vmul.f32 %v6907_v36, %v6083_v28  ;;  %v6265_v28 = vld [vmem:[%s6585_s11 + $0x80] sm:$0xff]  }
  0xff   : > { %vm985_vm6 = vcmp.eq.s32.totalorder %v927_v38, 1  ;;  %v1302_v52 = vrot.slane %v1300_v32, 3  ;;  %v1305_v55 = vrot.slane %v1303_v60, 4  ;;  %v7185_v16 = vor.u32 %v1233_v8, %v1230_v3  ;;  %2471 = vmatpush.bf16.msrb.mxu3 %v5925_v20  ;;  %v5946_v38 = vld [vmem:[%s7874_s1 + $0x130] sm:$0xff]  ;;  %v5883_v20 = vld [vmem:[%s7874_s1 + $0x58] sm:$0xff] }
 0x100   : > { %959 = vperm.xlu2 %6364, %v852_v48   ;;  %v1021_v47 = vsel %vm985_vm6, %v546_v23, 0.0  ;;  %v906_v49 = vpop.permute.xlu0 %905  ;;  %v5902_v48 = vld [vmem:[%s7874_s1 + $0x90] sm:$0xff]  ;;  %v535_v37 = vadd.f32 %v6916_v35, %v495_v58  ;;  %2772 = vmatpush.bf16.msrb.mxu0 %v5946_v38 }
 0x101   : > { %v6163_v46 = vpack.c.bf16 %v1022_v41, %v1021_v47  ;;  %vm978_vm7 = vcmp.eq.s32.totalorder %v906_v49, 1  ;;  %v7158_v61 = vor.u32 %v1305_v55, %v1302_v52  ;;  %v1235_v32 = vsel %vm1209_vm14, %v7120_v63, %v7185_v16  ;;  %v5924_v52 = vld [vmem:[%s7874_s1 + $0xe0] sm:$0xff]  ;;  %v5885_v63 = vld [vmem:[%s7874_s1 + $0x68] sm:$0xff] }
 0x102   : > { %v1014_v53 = vsel %vm978_vm7, %v539_v31, 0.0  ;;  %v7156_v59 = vpop.permute.xlu2 %938  ;;  %v7209_v31 = vld [vmem:[%s6585_s11 + $0x70] sm:$0xff]   ;;  %v6082_v49 = vunpack.c.l.bf16 %v6262_v50  ;;  %v5901_v55 = vld [vmem:[%s7874_s1 + $0x88] sm:$0xff]  ;;  %1642 = vmatpush.bf16.msrb.mxu1 %v5885_v63  ;;  %v549_v50 = vadd.f32 %v6916_v35, %v509_v62  ;;  %vm1886_vm7 = vsmask.f32 7424 }
 0x103   : > { %6278 = vst [vmem:[#allocation4 + $0x60] sm:$0xff] %v6163_v46   ;;  %v6143_v42 = vpack.c.bf16 %v1014_v53, %v1013_v17  ;;  %v1307_v40 = vsel %vm1209_vm14, %v7024_v29, %v7158_v61  ;;  %v5903_v29 = vld [vmem:[%s7874_s1 + $0x98] sm:$0xff]  ;;  %v5945_v17 = vld [vmem:[%s7874_s1 + $0x128] sm:$0xff]  ;;  %v1006_v53 = vsel %vm970_vm11, %v531_v45, 0.0  ;;  %v6086_v44 = vunpack.c.l.bf16 %v7209_v31  ;;  %2472 = vmatpush.bf16.msrb.mxu3 %v5924_v52 }
 0x104   : > { %v5854_v24 = vld [vmem:[#allocation4 + $0x38] sm:$0xff]  ;;  %1439 = vmatmul.bf16.gmra.mxu3 %v1307_v40  ;;  %2051 = vmatpush.bf16.msrb.mxu2 %v5903_v29  ;;  %v508_v51 = vmul.f32 %v6907_v36, %v6082_v49  ;;  %v5942_v49 = vld [vmem:[%s7874_s1 + $0x110] sm:$0xff]  ;;  %vm989_vm1 = vcmp.eq.s32.totalorder %v7156_v59, 1  ;;  %v5940_v59 = vld [vmem:[%s7874_s1 + $0x100] sm:$0xff] }
 0x105   : > { %6274 = vst [vmem:[#allocation4 + $0x40] sm:$0xff] %v6143_v42   ;;  %v1264_v18 = vshrl.u32 %v5854_v24, 16  ;;  %v1267_v19 = vshll.u32 %v5854_v24, 16  ;;  %v6264_v42 = vld [vmem:[%s6585_s11 + $0x78] sm:$0xff]   ;;  %v1009_v24 = vsel %vm973_vm10, %v534_v21, 0.0  ;;  %2773 = vmatpush.bf16.msrb.mxu0 %v5945_v17  ;;  %v510_v21 = vmul.f32 %v6907_v36, %v6086_v44 }
 0x106   : > { %v888_v39 = vpop.permute.xlu1 %887  ;;  %v6091_v7 = vunpack.c.h.bf16 %v6264_v42  ;;  %v6090_v58 = vunpack.c.l.bf16 %v6264_v42  ;;  %v5881_v17 = vld [vmem:[%s7874_s1 + $0x48] sm:$0xff]  ;;  %v6094_v42 = vunpack.c.l.bf16 %v6265_v28 }
 0x107   : > { %vm972_vm8 = vcmp.eq.s32.totalorder %v888_v39, 1  ;;  %v1266_v15 = vrot.slane %v1264_v18, 3  ;;  %v1269_v47 = vrot.slane %v1267_v19, 4  ;;  %v5884_v39 = vld [vmem:[%s7874_s1 + $0x60] sm:$0xff]  ;;  %2473 = vmatpush.bf16.msrb.mxu3 %v5923_v4  ;;  %v6087_v18 = vunpack.c.h.bf16 %v7209_v31 }
 0x108   : > { %v1008_v13 = vsel %vm972_vm8, %v533_v1, 0.0  ;;  %v885_v6 = vpop.permute.xlu0 %884  ;;  %2052 = vmatpush.bf16.msrb.mxu2 %v5902_v48  ;;  %1643 = vmatpush.bf16.msrb.mxu1 %v5884_v39  ;;  %v513_v26 = vmul.f32 %v6907_v36, %v6091_v7 }
 0x109   : > { %vm971_vm9 = vcmp.eq.s32.totalorder %v885_v6, 1  ;;  %v7242_v43 = vor.u32 %v1269_v47, %v1266_v15  ;;  %2774 = vmatpush.bf16.msrb.mxu0 %v5944_v10  ;;  %v511_v38 = vmul.f32 %v6907_v36, %v6087_v18  ;;  %v5882_v47 = vld [vmem:[%s7874_s1 + $0x50] sm:$0xff]  ;;  %v5880_v18 = vld [vmem:[%s7874_s1 + $0x40] sm:$0xff] }
 0x10a   : > { %v1007_v22 = vsel %vm971_vm9, %v532_v9, 0.0  ;;  %v7194_v23 = vpop.permute.xlu2 %947  ;;  %v5859_v25 = vld [vmem:[#allocation4 + $0x60] sm:$0xff]  ;;  %v553_v52 = vadd.f32 %v6916_v35, %v513_v26 }
 0x10b   : > { %v6128_v11 = vpack.c.bf16 %v1008_v13, %v1007_v22  ;;  %v1309_v34 = vshrl.u32 %v5859_v25, 16  ;;  %v1312_v41 = vshll.u32 %v5859_v25, 16  ;;  %v5900_v9 = vld [vmem:[%s7874_s1 + $0x80] sm:$0xff]  ;;  %v548_v22 = vadd.f32 %v6916_v35, %v508_v51  ;;  %v5943_v25 = vld [vmem:[%s7874_s1 + $0x118] sm:$0xff] }
 0x10c   : > { %v5855_v60 = vld [vmem:[#allocation4 + $0x40] sm:$0xff]  ;;  %1399 = vmatmul.bf16.gmra.mxu0 %v1235_v32  ;;  %2053 = vmatpush.bf16.msrb.mxu2 %v5901_v55  ;;  %v6095_v55 = vunpack.c.h.bf16 %v6265_v28  ;;  %vm992_vm2 = vcmp.eq.s32.totalorder %v7194_v23, 1 }
 0x10d   : > { %6271 = vst [vmem:[#allocation4 + $0x28] sm:$0xff] %v6128_v11   ;;  %v1273_v56 = vshrl.u32 %v5855_v60, 16  ;;  %v1276_v30 = vshll.u32 %v5855_v60, 16  ;;  %v1311_v46 = vrot.slane %v1309_v34, 3  ;;  %v1314_v2 = vrot.slane %v1312_v41, 4  ;;  %1644 = vmatpush.bf16.msrb.mxu1 %v5883_v20  ;;  %v5921_v60 = vld [vmem:[%s7874_s1 + $0xc8] sm:$0xff]  ;;  %2775 = vmatpush.bf16.msrb.mxu0 %v5943_v25 }
 0x10e   : > { %v879_v33 = vpop.permute.xlu1 %878  ;;  %v550_v34 = vadd.f32 %v6916_v35, %v510_v21  ;;  %v1028_v51 = vsel %vm992_vm2, %v553_v52, 0.0  ;;  %v515_v4 = vmul.f32 %v6907_v36, %v6095_v55 }
 0x10f   : > { %vm969_vm12 = vcmp.eq.s32.totalorder %v879_v33, 1  ;;  %v1275_v1 = vrot.slane %v1273_v56, 3  ;;  %v1278_v3 = vrot.slane %v1276_v30, 4  ;;  %v7232_v8 = vor.u32 %v1314_v2, %v1311_v46  ;;  %v5920_v33 = vld [vmem:[%s7874_s1 + $0xc0] sm:$0xff] }
 0x110   : > { %v1005_v0 = vsel %vm969_vm12, %v530_v27, 0.0  ;;  %v894_v40 = vpop.permute.xlu0 %893  ;;  %2054 = vmatpush.bf16.msrb.mxu2 %v5900_v9  ;;  %v512_v27 = vmul.f32 %v6907_v36, %v6090_v58  ;;  %v1025_v7 = vsel %vm989_vm1, %v550_v34, 0.0  ;;  %v555_v21 = vadd.f32 %v6916_v35, %v515_v4 }
 0x111   : > { %v6123_v14 = vpack.c.bf16 %v1006_v53, %v1005_v0  ;;  %vm974_vm13 = vcmp.eq.s32.totalorder %v894_v40, 1  ;;  %v7244_v57 = vor.u32 %v1278_v3, %v1275_v1  ;;  %v1316_v12 = vsel %vm1209_vm14, %v7158_v61, %v7232_v8  ;;  %v5922_v61 = vld [vmem:[%s7874_s1 + $0xd0] sm:$0xff]  ;;  %1645 = vmatpush.bf16.msrb.mxu1 %v5882_v47  ;;  %2776 = vmatpush.bf16.msrb.mxu0 %v5942_v49 }
 0x112   : > { %v1010_v5 = vsel %vm974_vm13, %v535_v37, 0.0  ;;  %v7240_v29 = vpop.permute.xlu2 %4573  ;;  %2474 = vmatpush.bf16.msrb.mxu3 %v5922_v61  ;;  %v552_v56 = vadd.f32 %v6916_v35, %v512_v27  ;;  %v551_v53 = vadd.f32 %v6916_v35, %v511_v38  ;;  %v514_v61 = vmul.f32 %v6907_v36, %v6094_v42  ;;  %v5889_v38 = vld [vmem:[#allocation4 + $0x14] sm:$0xff] }
 0x113   : > { %6270 = vst [vmem:[#allocation4 + $0x20] sm:$0xff] %v6123_v14   ;;  %v6133_v13 = vpack.c.bf16 %v1010_v5, %v1009_v24  ;;  %v1280_v6 = vsel %vm1209_vm14, %v7242_v43, %v7244_v57  ;;  %v5941_v14 = vld [vmem:[%s7874_s1 + $0x108] sm:$0xff] }
 0x114   : > { %1424 = vmatmul.bf16.vlgmr.msra.gmra.mxu2 %v1280_v6  ;;  %1444 = vmatmul.bf16.gmra.mxu3 %v1316_v12  ;;  %v5852_v19 = vld [vmem:[#allocation4 + $0x28] sm:$0xff]  ;;  %v554_v26 = vadd.f32 %v6916_v35, %v514_v61 }
 0x115   : > { %6272 = vst [vmem:[#allocation4 + $0x30] sm:$0xff] %v6133_v13   ;;  %v1246_v31 = vshrl.u32 %v5852_v19, 16  ;;  %v1249_v32 = vshll.u32 %v5852_v19, 16  ;;  %1646 = vmatpush.bf16.msrb.mxu1 %v5881_v17  ;;  %2777 = vmatpush.bf16.msrb.mxu0 %v5941_v14 }
 0x116   : > { %v936_v45 = vpop.permute.xlu1 %935  ;;  %2475 = vmatpush.bf16.msrb.mxu3 %v5921_v60 }
 0x117   : > { %vm988_vm15 = vcmp.eq.s32.totalorder %v936_v45, 1  ;;  %v1248_v44 = vrot.slane %v1246_v31, 3  ;;  %v1251_v62 = vrot.slane %v1249_v32, 4 }
 0x118   : > { %v1024_v48 = vsel %vm988_vm15, %v549_v50, 0.0  ;;  %v933_v11 = vpop.permute.xlu0 %932 }
 0x119   : > { %vm987_vm0 = vcmp.eq.s32.totalorder %v933_v11, 1  ;;  %v1252_v50 = vor.u32 %v1251_v62, %v1248_v44  ;;  %1647 = vmatpush.bf16.msrb.mxu1 %v5880_v18  ;;  %2778 = vmatpush.bf16.msrb.mxu0 %v5940_v59 }
 0x11a   : > { %v1023_v41 = vsel %vm987_vm0, %v548_v22, 0.0  ;;  %v7282_v37 = vpop.permute.xlu2 %4558  ;;  %v5851_v15 = vld [vmem:[#allocation4 + $0x20] sm:$0xff]  ;;  %2476 = vmatpush.bf16.msrb.mxu3 %v5920_v33 }
 0x11b   : > { %v6168_v63 = vpack.c.bf16 %v1024_v48, %v1023_v41  ;;  %v1237_v30 = vshrl.u32 %v5851_v15, 16  ;;  %v1240_v46 = vshll.u32 %v5851_v15, 16  ;;  %v5888_v48 = vld [vmem:[#allocation4 + $0xc] sm:$0xff]  ;;  %v1895_v15 = vshll.u32 %v5889_v38, 16  ;;  %v5909_v33 = vld [vmem:[#allocation4 + $0x1c] sm:$0xff]  ;;  %v5910_v61 = vld [vmem:[#allocation4 + $0x24] sm:$0xff] }
 0x11c   : > { %v5853_v2 = vld [vmem:[#allocation4 + $0x30] sm:$0xff]  ;;  %v1890_v32 = vshll.u32 %v5888_v48, 16  ;;  %v2302_v62 = vshrl.u32 %v5909_v33, 16  ;;  %v2305_v42 = vshll.u32 %v5909_v33, 16 }
 0x11d   : > { %6279 = vst [vmem:[#allocation4 + $0x68] sm:$0xff] %v6168_v63   ;;  %v1239_v40 = vrot.slane %v1237_v30, 3  ;;  %v1242_v1 = vrot.slane %v1240_v46, 4  ;;  %v1255_v3 = vshrl.u32 %v5853_v2, 16  ;;  %v1258_v24 = vshll.u32 %v5853_v2, 16 }
 0x11e   : > { %v945_v0 = vpop.permute.xlu1 %944  ;;  %v1892_v52 = vrot.slane %v1890_v32, 1  ;;  %v5908_v63 = vld [vmem:[#allocation4 + $0x14] sm:$0xf0]  ;;  %v1888_v30 = vshrl.u32 %v5888_v48, 16  ;;  %v1897_v46 = vrot.slane %v1895_v15, 1  ;;  %v2307_v14 = vrot.slane %v2305_v42, 4 }
 0x11f   : > { %vm991_vm3 = vcmp.eq.s32.totalorder %v945_v0, 1  ;;  %v1243_v39 = vor.u32 %v1242_v1, %v1239_v40  ;;  %v1257_v9 = vrot.slane %v1255_v3, 3  ;;  %v1260_v10 = vrot.slane %v1258_v24, 4  ;;  %v5280_v2 = vld [vmem:[#allocation4 + $0x14] sm:$0x8]  ;;  %v5891_v48 = vld [vmem:[#allocation4 + $0x24] sm:$0xff] }
 0x120   : > { %v1027_v5 = vsel %vm991_vm3, %v552_v56, 0.0  ;;  %v942_v12 = vpop.permute.xlu0 %941  ;;  %v5281_v17 = vor.u32 %v5908_v63, %v5280_v2  ;;  %v1893_v44 = vor.u32 %v1892_v52, %v1888_v30  ;;  %v2304_v24 = vrot.slane %v2302_v62, 3  ;;  %v5869_v15 = vld [vmem:[#allocation4 + $0x14] sm:$0xff] }
 0x121   : > { %v6178_v13 = vpack.c.bf16 %v1028_v51, %v1027_v5  ;;  %vm990_vm4 = vcmp.eq.s32.totalorder %v942_v12, 1  ;;  %v1244_v23 = vsel %vm1209_vm14, %v7185_v16, %v1243_v39  ;;  %v1261_v58 = vor.u32 %v1260_v10, %v1257_v9  ;;  %v5890_v5 = vld [vmem:[#allocation4 + $0x1c] sm:$0xff] }
 0x122   : > { %v1026_v6 = vsel %vm990_vm4, %v551_v53, 0.0  ;;  %1404 = vmatmul.bf16.gmra.mxu0 %v1244_v23  ;;  %v7318_v20 = vpop.permute.xlu2 %4543  ;;  %v1289_v16 = vsel %vm1209_vm14, %v7244_v57, %v7038_v54  ;;  %v1253_v53 = vsel %vm1209_vm14, %v1243_v39, %v1252_v50  ;;  %v2294_v40 = vshrl.u32 %v5281_v17, 16 }
 0x123   : > { %6281 = vst [vmem:[#allocation4 + $0x78] sm:$0xff] %v6178_v13   ;;  %v6173_v19 = vpack.c.bf16 %v1026_v6, %v1025_v7  ;;  %v1262_v36 = vsel %vm1209_vm14, %v1252_v50, %v1261_v58  ;;  %v1271_v0 = vsel %vm1209_vm14, %v1261_v58, %v7242_v43  ;;  %v2297_v1 = vshll.u32 %v5281_v17, 16  ;;  %v5928_v58 = vld [vmem:[#allocation4 + $0x18] sm:$0xff]  ;;  %v5892_v17 = vld [vmem:[#allocation4 + $0x2c] sm:$0xff] }
 0x124   : > { %v1129_v45 = vld [vmem:[#allocation4 + $0x68] sm:$0xf]  ;;  %1414 = vmatmul.bf16.vlgmr.msra.gmra.mxu1 %v1262_v36  ;;  %1429 = vmatmul.bf16.gmra.mxu2 %v1289_v16  ;;  %v2296_v12 = vrot.slane %v2294_v40, 3  ;;  %v2308_v9 = vor.u32 %v2307_v14, %v2304_v24  ;;  %v1903_v10 = vshll.u32 %v5890_v5, 16  ;;  %v1899_v23 = vshrl.u32 %v5889_v38, 16 }
 0x125   : > { %6280 = vst [vmem:[#allocation4 + $0x70] sm:$0xff] %v6173_v19   ;;  %v1195_v22 = vunpack.c.l.b16 %v1129_v45  ;;  %v2299_v39 = vrot.slane %v2297_v1, 4  ;;  %v5868_v19 = vld [vmem:[#allocation4 + $0xc] sm:$0xff]  ;;  %v2311_v36 = vshrl.u32 %v5910_v61, 16  ;;  %v2314_v16 = vshll.u32 %v5910_v61, 16 }
 0x126   : > { %v954_v25 = vpop.permute.xlu1 %953  ;;  %v1905_v50 = vrot.slane %v1903_v10, 1  ;;  %v1901_v59 = vor.u32 %v1899_v23, %v1897_v46  ;;  %v1907_v38 = vshrl.u32 %v5890_v5, 16  ;;  %v1915_v62 = vshrl.u32 %v5891_v48, 16  ;;  %v5930_v14 = vld [vmem:[#allocation4 + $0x28] sm:$0xff] }
 0x127   : > { %vm994_vm5 = vcmp.eq.s32.totalorder %v954_v25, 1  ;;  %v1208_v11 = vpack.c.b16 %v1195_v22, %v1195_v22  ;;  %v2300_v43 = vor.u32 %v2299_v39, %v2296_v12  ;;  %v2313_v22 = vrot.slane %v2311_v36, 3  ;;  %v5870_v12 = vld [vmem:[#allocation4 + $0x1c] sm:$0xff] }
 0x128   : > { %v1030_v27 = vsel %vm994_vm5, %v555_v21, 0.0  ;;  %v951_v28 = vpop.permute.xlu0 %950  ;;  %v1906_v21 = vsel %vm1886_vm7, %v1901_v59, %v1905_v50  ;;  %v2316_v25 = vrot.slane %v2314_v16, 4  ;;  %v1919_v42 = vshll.u32 %v5892_v17, 16 }
 0x129   : > { %vm993_vm6 = vcmp.eq.s32.totalorder %v951_v28, 1  ;;  %v1318_v54 = vshrl.u32 %v1208_v11, 16  ;;  %v1321_v57 = vshll.u32 %v1208_v11, 16  ;;  %v2309_v13 = vsel %vm1209_vm14, %v2300_v43, %v2308_v9 }
 0x12a   : > { %v1029_v31 = vsel %vm993_vm6, %v554_v26, 0.0  ;;  %v7326_v49 = vpop.permute.xlu2 %4528  ;;  %v2317_v11 = vor.u32 %v2316_v25, %v2313_v22  ;;  %v1921_v5 = vrot.slane %v1919_v42, 1  ;;  %v1923_v36 = vshrl.u32 %v5892_v17, 16  ;;  %v5932_v42 = vld [vmem:[#allocation4 + $0x38] sm:$0xff] }
 0x12b   : > { %v6183_v60 = vpack.c.bf16 %v1030_v27, %v1029_v31  ;;  %v1320_v34 = vrot.slane %v1318_v54, 3  ;;  %v1323_v41 = vrot.slane %v1321_v57, 4  ;;  %7899 = vst [vmem:[#allocation10_spill] sm:$0xff] %v7326_v49  ;;  %v1911_v54 = vshll.u32 %v5891_v48, 16  ;;  %v5911_v31 = vld [vmem:[#allocation4 + $0x2c] sm:$0xff] }
 0x12c   : > { %v2318_v57 = vsel %vm1209_vm14, %v2308_v9, %v2317_v11  ;;  %v2323_v52 = vshll.u32 %v5911_v31, 16  ;;  %v1925_v25 = vor.u32 %v1923_v36, %v1921_v5  ;;  %v5931_v48 = vld [vmem:[#allocation4 + $0x30] sm:$0xff] }
 0x12d   : > { %6282 = vst [vmem:[#allocation4 + $0x80] sm:$0xff] %v6183_v60   ;;  %v1324_v47 = vor.u32 %v1323_v41, %v1320_v34  ;;  %v1909_v60 = vor.u32 %v1907_v38, %v1905_v50  ;;  %v5929_v34 = vld [vmem:[#allocation4 + $0x20] sm:$0xff]  ;;  %v1913_v41 = vrot.slane %v1911_v54, 1 }
 0x12e   : > { %v7328_v35 = vpop.permute.xlu1 %4563  ;;  %v5871_v54 = vld [vmem:[#allocation4 + $0x24] sm:$0xff] }
 0x12f   : > { %v1325_v55 = vsel %vm1209_vm14, %v7232_v8, %v1324_v47  ;;  %v1898_v8 = vsel %vm1886_vm7, %v1893_v44, %v1897_v46  ;;  %v2320_v47 = vshrl.u32 %v5911_v31, 16  ;;  %v1914_v63 = vsel %vm1886_vm7, %v1909_v60, %v1913_v41 }
 0x130   : > { %v7332_v56 = vpop.permute.xlu0 %4568  ;;  %1449 = vmatmul.bf16.gmra.mxu3 %v1325_v55  ;;  %v2325_v46 = vrot.slane %v2323_v52, 4  ;;  %v1917_v24 = vor.u32 %v1915_v62, %v1913_v41 }
 0x131   : > { %v2322_v30 = vrot.slane %v2320_v47, 3  ;;  %v5894_v47 = vld [vmem:[#allocation4 + $0x3c] sm:$0xff] }
 0x132   : > { %1409 = vmatmul.bf16.gmra.mxu0 %v1253_v53  ;;  %v7340_v51 = vpop.permute.xlu2 %4608  ;;  %v1922_v10 = vsel %vm1886_vm7, %v1917_v24, %v1921_v5 }
 0x133   : > { %7900 = vst [vmem:[#allocation11_spill] sm:$0xff] %v7340_v51  ;;  %v2326_v53 = vor.u32 %v2325_v46, %v2322_v30  ;;  %v1935_v46 = vshll.u32 %v5894_v47, 16 }
 0x134   : > { %1419 = vmatmul.bf16.gmra.mxu1 %v1271_v0  ;;  %2055 = vmatmul.bf16.vlgmr.msrb.gmra.mxu2 %v1898_v8  ;;  %v5912_v8 = vld [vmem:[#allocation4 + $0x34] sm:$0xff] }
 0x135   : > { %v2327_v0 = vsel %vm1209_vm14, %v2317_v11, %v2326_v53  ;;  %v2329_v39 = vshrl.u32 %v5912_v8, 16  ;;  %v2332_v9 = vshll.u32 %v5912_v8, 16  ;;  %v5913_v11 = vld [vmem:[#allocation4 + $0x3c] sm:$0xff] }
 0x136   : > { %v7338_v3 = vpop.permute.xlu1 %4548  ;;  %v2338_v31 = vshrl.u32 %v5913_v11, 16  ;;  %v2341_v60 = vshll.u32 %v5913_v11, 16 }
 0x137   : > { %v2334_v61 = vrot.slane %v2332_v9, 4 }
 0x138   : > { %v7342_v4 = vpop.permute.xlu0 %4553  ;;  %v2340_v41 = vrot.slane %v2338_v31, 3 }
 0x13a   : > { %v7349_v18 = vpop.permute.xlu2 %4513 }
 0x13b   : > { %7902 = vst [vmem:[#allocation13_spill] sm:$0xff] %v7349_v18 }
 0x13e   : > { %v7344_v7 = vpop.permute.xlu1 %4533 }
 0x13f   : > { %7901 = vst [vmem:[#allocation12_spill] sm:$0xff] %v7344_v7 }
 0x140   : > { %v7347_v6 = vpop.permute.xlu0 %4538  ;;  %2477 = vmatmul.bf16.vlgmr.msrb.gmra.mxu3 %v2309_v13  ;;  %v2331_v13 = vrot.slane %v2329_v39, 3 }
 0x142   : > { %2779 = vmatmul.bf16.vlgmr.msrb.gmra.mxu0 %v5928_v58  ;;  %v7356_v27 = vpop.permute.xlu2 %4593  ;;  %v5893_v58 = vld [vmem:[#allocation4 + $0x34] sm:$0xff]  ;;  %v2335_v59 = vor.u32 %v2334_v61, %v2331_v13 }
 0x143   : > { %7905 = vst [vmem:[#allocation16_spill] sm:$0xff] %v7356_v27  ;;  %v1927_v16 = vshll.u32 %v5893_v58, 16  ;;  %v1931_v30 = vshrl.u32 %v5893_v58, 16 }
 0x144   : > { %1648 = vmatmul.bf16.vlgmr.msrb.gmra.mxu1 %v5868_v19  ;;  %2060 = vmatmul.bf16.gmra.mxu2 %v1906_v21  ;;  %v2336_v21 = vsel %vm1209_vm14, %v2326_v53, %v2335_v59  ;;  %v5914_v53 = vld [vmem:[#allocation4 + $0x44] sm:$0xff] }
 0x145   : > { %v1929_v38 = vrot.slane %v1927_v16, 1  ;;  %v2347_v24 = vshrl.u32 %v5914_v53, 16  ;;  %v5933_v16 = vld [vmem:[#allocation4 + $0x40] sm:$0xff] }
 0x146   : > { %v7352_v45 = vpop.permute.xlu1 %4523 }
 0x147   : > { %7903 = vst [vmem:[#allocation14_spill] sm:$0xff] %v7352_v45  ;;  %v1933_v62 = vor.u32 %v1931_v30, %v1929_v38  ;;  %v2349_v39 = vrot.slane %v2347_v24, 3 }
 0x148   : > { %v7354_v26 = vpop.permute.xlu0 %4613 }
 0x149   : > { %7904 = vst [vmem:[#allocation15_spill] sm:$0xff] %v7354_v26 }
 0x14a   : > { %v7364_v55 = vpop.permute.xlu2 %4498 }
 0x14b   : > { %7908 = vst [vmem:[#allocation19_spill] sm:$0xff] %v7364_v55 }
 0x14e   : > { %v7358_v28 = vpop.permute.xlu1 %4603 }
 0x14f   : > { %7906 = vst [vmem:[#allocation17_spill] sm:$0xff] %v7358_v28 }
 0x150   : > { %v7361_v32 = vpop.permute.xlu0 %4518  ;;  %2482 = vmatmul.bf16.gmra.mxu3 %v2318_v57  ;;  %v1930_v57 = vsel %vm1886_vm7, %v1925_v25, %v1929_v38  ;;  %v5873_v25 = vld [vmem:[#allocation4 + $0x34] sm:$0xff] }
 0x151   : > { %7907 = vst [vmem:[#allocation18_spill] sm:$0xff] %v7361_v32 }
 0x152   : > { %2784 = vmatmul.bf16.gmra.mxu0 %v5929_v34  ;;  %v855_v40 = vpop.permute.xlu2 %854 }
 0x153   : > { %v5872_v40 = vld [vmem:[#allocation4 + $0x2c] sm:$0xff] }
 0x154   : > { %1653 = vmatmul.bf16.gmra.mxu1 %v5869_v15  ;;  %2065 = vmatmul.bf16.gmra.mxu2 %v1914_v63  ;;  %v2343_v15 = vrot.slane %v2341_v60, 4 }
 0x156   : > { %v7366_v33 = vpop.permute.xlu1 %4508  ;;  %v2344_v63 = vor.u32 %v2343_v15, %v2340_v41  ;;  %v5896_v15 = vld [vmem:[#allocation4 + $0x4c] sm:$0xff] }
 0x157   : > { %7909 = vst [vmem:[#allocation20_spill] sm:$0xff] %v7366_v33  ;;  %v1951_v30 = vshll.u32 %v5896_v15, 16 }
 0x158   : > { %v7368_v2 = vpop.permute.xlu0 %4598  ;;  %v2345_v17 = vsel %vm1209_vm14, %v2335_v59, %v2344_v63 }
 0x159   : > { %7910 = vst [vmem:[#allocation21_spill] sm:$0xff] %v7368_v2  ;;  %v5876_v2 = vld [vmem:[#allocation4 + $0x4c] sm:$0xff] }
 0x15a   : > { %v960_v50 = vpop.permute.xlu2 %959 }
 0x15b   : > { %v1939_v50 = vshrl.u32 %v5894_v47, 16 }
 0x15e   : > { %v7370_v44 = vpop.permute.xlu1 %4588 }
 0x15f   : > { %7911 = vst [vmem:[#allocation22_spill] sm:$0xff] %v7370_v44  ;;  %v5986_v44 = vld [vmem:[%s7874_s1 + $0x1b0] sm:$0xff] }
 0x160   : > { %v7373_v1 = vpop.permute.xlu0 %4503  ;;  %2487 = vmatmul.bf16.gmra.mxu3 %v2327_v0  ;;  %v1937_v0 = vrot.slane %v1935_v46, 1 }
 0x161   : > { %7912 = vst [vmem:[#allocation23_spill] sm:$0xff] %v7373_v1 }
 0x162   : > { %2789 = vmatmul.bf16.gmra.mxu0 %v5930_v14  ;;  %v2350_v14 = vshll.u32 %v5914_v53, 16  ;;  %v1938_v5 = vsel %vm1886_vm7, %v1933_v62, %v1937_v0  ;;  %v1941_v36 = vor.u32 %v1939_v50, %v1937_v0 }
 0x164   : > { %1658 = vmatmul.bf16.gmra.mxu1 %v5870_v12  ;;  %2070 = vmatmul.bf16.gmra.mxu2 %v1922_v10  ;;  %v2352_v9 = vrot.slane %v2350_v14, 4  ;;  %v5895_v10 = vld [vmem:[#allocation4 + $0x44] sm:$0xff]  ;;  %v1953_v14 = vrot.slane %v1951_v30, 1  ;;  %v5935_v30 = vld [vmem:[#allocation4 + $0x50] sm:$0xff] }
 0x165   : > { %v1943_v58 = vshll.u32 %v5895_v10, 16 }
 0x166   : > { %v7376_v43 = vpop.permute.xlu1 %4578  ;;  %v2353_v13 = vor.u32 %v2352_v9, %v2349_v39 }
 0x167   : > { %7913 = vst [vmem:[#allocation24_spill] sm:$0xff] %v7376_v43 }
 0x168   : > { %v7378_v23 = vpop.permute.xlu0 %4583 }
 0x169   : > { %7914 = vst [vmem:[#allocation25_spill] sm:$0xff] %v7378_v23  ;;  %v5936_v23 = vld [vmem:[#allocation4 + $0x58] sm:$0xff] }
 0x16e   : > { %v957_v19 = vpop.permute.xlu1 %956 }
 0x16f   : > { %v2354_v19 = vsel %vm1209_vm14, %v2344_v63, %v2353_v13  ;;  %v1947_v63 = vshrl.u32 %v5895_v10, 16 }
 0x170   : > { %v858_v22 = vpop.permute.xlu0 %857  ;;  %2492 = vmatmul.bf16.gmra.mxu3 %v2336_v21  ;;  %v5915_v21 = vld [vmem:[#allocation4 + $0x4c] sm:$0xff] }
 0x171   : > { %v1945_v22 = vrot.slane %v1943_v58, 1  ;;  %v2356_v11 = vshrl.u32 %v5915_v21, 16  ;;  %v2359_v38 = vshll.u32 %v5915_v21, 16 }
 0x172   : > { %2794 = vmatmul.bf16.gmra.mxu0 %v5931_v48 }
 0x173   : > { %v1946_v48 = vsel %vm1886_vm7, %v1941_v36, %v1945_v22  ;;  %v2358_v60 = vrot.slane %v2356_v11, 3  ;;  %v2361_v41 = vrot.slane %v2359_v38, 4  ;;  %v1949_v62 = vor.u32 %v1947_v63, %v1945_v22  ;;  %v5917_v11 = vld [vmem:[#allocation4 + $0x5c] sm:$0xff] }
 0x174   : > { %1663 = vmatmul.bf16.gmra.mxu1 %v5871_v54  ;;  %2075 = vmatmul.bf16.gmra.mxu2 %v1930_v57 }
 0x175   : > { %v2362_v47 = vor.u32 %v2361_v41, %v2358_v60  ;;  %v1954_v10 = vsel %vm1886_vm7, %v1949_v62, %v1953_v14  ;;  %v1955_v60 = vshrl.u32 %v5896_v15, 16 }
 0x177   : > { %v7382_v34 = vpop.f32.mrf.mxu3  ;;  %v2363_v46 = vsel %vm1209_vm14, %v2353_v13, %v2362_v47 }
 0x179   : > { %v7384_v52 = vpop.f32.mrf.mxu0 }
 0x17f   : > { %v7387_v8 = vpop.f32.mrf.mxu3 }
 0x180   : > { %2497 = vmatmul.bf16.gmra.mxu3 %v2345_v17  ;;  %v5916_v17 = vld [vmem:[#allocation4 + $0x54] sm:$0xff] }
 0x181   : > { %v7390_v12 = vpop.f32.mrf.mxu0  ;;  %v2365_v39 = vshrl.u32 %v5916_v17, 16  ;;  %v2368_v9 = vshll.u32 %v5916_v17, 16  ;;  %v1957_v17 = vor.u32 %v1955_v60, %v1953_v14  ;;  %v5987_v14 = vld [vmem:[%s7874_s1 + $0x1b8] sm:$0xff] }
 0x182   : > { %2799 = vmatmul.bf16.gmra.mxu0 %v5932_v42  ;;  %3599 = vmatpush.bf16.msra.mxu2 %v5987_v14 }
 0x183   : > { %v2367_v13 = vrot.slane %v2365_v39, 3  ;;  %v2370_v50 = vrot.slane %v2368_v9, 4  ;;  %v2377_v39 = vshll.u32 %v5917_v11, 16 }
 0x184   : > { %1668 = vmatmul.bf16.gmra.mxu1 %v5872_v40  ;;  %2080 = vmatmul.bf16.gmra.mxu2 %v1938_v5  ;;  %v5934_v40 = vld [vmem:[#allocation4 + $0x48] sm:$0xff]  ;;  %v5874_v5 = vld [vmem:[#allocation4 + $0x3c] sm:$0xff] }
 0x185   : > { %v2371_v22 = vor.u32 %v2370_v50, %v2367_v13  ;;  %v7432_v13 = vld [vmem:[#allocation4 + $0x5c] sm:$0xff] }
 0x186   : > { %v1967_v60 = vshll.u32 %v7432_v13, 16  ;;  %3600 = vmatpush.bf16.msra.mxu2 %v5986_v44 }
 0x187   : > { %v7392_v61 = vpop.f32.mrf.mxu3 }
 0x189   : > { %v7394_v59 = vpop.f32.mrf.mxu0 }
 0x18f   : > { %v7398_v54 = vpop.f32.mrf.mxu3 }
 0x190   : > { %2502 = vmatmul.bf16.gmra.mxu3 %v2354_v19  ;;  %v5897_v19 = vld [vmem:[#allocation4 + $0x54] sm:$0xff] }
 0x191   : > { %v7402_v31 = vpop.f32.mrf.mxu0 }
 0x192   : > { %2804 = vmatmul.bf16.gmra.mxu0 %v5933_v16 }
 0x194   : > { %1673 = vmatmul.bf16.gmra.mxu1 %v5873_v25  ;;  %2085 = vmatmul.bf16.gmra.mxu2 %v1946_v48  ;;  %v1959_v25 = vshll.u32 %v5897_v19, 16  ;;  %v2372_v48 = vsel %vm1209_vm14, %v2362_v47, %v2371_v22 }
 0x196   : > { %v1961_v41 = vrot.slane %v1959_v25, 1 }
 0x197   : > { %v7400_v57 = vpop.f32.mrf.mxu2  ;;  %v7407_v42 = vpop.f32.mrf.mxu3 }
 0x198   : > { %v1962_v47 = vsel %vm1886_vm7, %v1957_v17, %v1961_v41  ;;  %v5918_v17 = vld [vmem:[#allocation4 + $0x64] sm:$0xff] }
 0x19f   : > { %v7405_v53 = vpop.f32.mrf.mxu2  ;;  %v7409_v0 = vpop.f32.mrf.mxu0 }
 0x1a0   : > { %2507 = vmatmul.bf16.gmra.mxu3 %v2363_v46  ;;  %v7420_v21 = vpop.f32.mrf.mxu3 }
 0x1a1   : > { %v7411_v24 = vpop.f32.mrf.mxu1 }
 0x1a2   : > { %2809 = vmatmul.bf16.gmra.mxu0 %v5934_v40  ;;  %v5875_v40 = vld [vmem:[#allocation4 + $0x44] sm:$0xff] }
 0x1a4   : > { %1678 = vmatmul.bf16.gmra.mxu1 %v5874_v5  ;;  %2090 = vmatmul.bf16.gmra.mxu2 %v1954_v10  ;;  %v2374_v5 = vshrl.u32 %v5917_v11, 16  ;;  %v2379_v10 = vrot.slane %v2377_v39, 4  ;;  %v1969_v39 = vrot.slane %v1967_v60, 1  ;;  %v5985_v60 = vld [vmem:[%s7874_s1 + $0x1a8] sm:$0xff] }
 0x1a5   : > { %3601 = vmatpush.bf16.msra.mxu2 %v5985_v60  ;;  %v5919_v60 = vld [vmem:[#allocation4 + $0x6c] sm:$0xff] }
 0x1a6   : > { %v2376_v9 = vrot.slane %v2374_v5, 3  ;;  %v1963_v5 = vshrl.u32 %v5897_v19, 16  ;;  %v2386_v19 = vshll.u32 %v5918_v17, 16 }
 0x1a7   : > { %v7414_v58 = vpop.f32.mrf.mxu2  ;;  %v7416_v36 = vpop.f32.mrf.mxu0 }
 0x1a8   : > { %v2380_v11 = vor.u32 %v2379_v10, %v2376_v9  ;;  %v6007_v9 = vld [vmem:[%s7874_s1 + $0x1f8] sm:$0xff]  ;;  %v1965_v14 = vor.u32 %v1963_v5, %v1961_v41  ;;  %v2388_v5 = vrot.slane %v2386_v19, 4 }
 0x1a9   : > { %v7418_v16 = vpop.f32.mrf.mxu1  ;;  %3901 = vmatpush.bf16.msra.mxu3 %v6007_v9  ;;  %v5983_v9 = vld [vmem:[%s7874_s1 + $0x198] sm:$0xff] }
 0x1aa   : > { %v1970_v28 = vsel %vm1886_vm7, %v1965_v14, %v1969_v39  ;;  %v6005_v14 = vld [vmem:[%s7874_s1 + $0x1e8] sm:$0xff] }
 0x1af   : > { %v7423_v38 = vpop.f32.mrf.mxu2  ;;  %v7425_v63 = vpop.f32.mrf.mxu0 }
 0x1b0   : > { %2512 = vmatmul.bf16.gmra.mxu3 %v2372_v48 }
 0x1b1   : > { %v7427_v46 = vpop.f32.mrf.mxu1 }
 0x1b2   : > { %2814 = vmatmul.bf16.gmra.mxu0 %v5935_v30  ;;  %v2381_v30 = vsel %vm1209_vm14, %v2371_v22, %v2380_v11 }
 0x1b3   : > { %v7429_v62 = vpop.f32.mrf.mxu3 }
 0x1b4   : > { %1683 = vmatmul.bf16.gmra.mxu1 %v5875_v40  ;;  %2095 = vmatmul.bf16.gmra.mxu2 %v1962_v47 }
 0x1b7   : > { %v2056_v15 = vpop.f32.mrf.mxu2  ;;  %v7434_v50 = vpop.f32.mrf.mxu0 }
 0x1b9   : > { %v7439_v25 = vpop.f32.mrf.mxu1 }
 0x1bb   : > { %v7441_v48 = vpop.f32.mrf.mxu3 }
 0x1bf   : > { %v2058_v40 = vpop.f32.mrf.mxu2  ;;  %v2780_v47 = vpop.f32.mrf.mxu0 }
 0x1c0   : > { %2517 = vmatmul.bf16.gmra.mxu3 %v2381_v30  ;;  %v2383_v30 = vshrl.u32 %v5918_v17, 16  ;;  %v5984_v17 = vld [vmem:[%s7874_s1 + $0x1a0] sm:$0xff] }
 0x1c1   : > { %v1649_v10 = vpop.f32.mrf.mxu1  ;;  %3602 = vmatpush.bf16.msra.mxu2 %v5984_v17 }
 0x1c2   : > { %v1733_v27 = vadd.f32 %v1649_v10, %v7384_v52  ;;  %2819 = vmatmul.bf16.gmra.mxu0 %v5936_v23  ;;  %v2385_v41 = vrot.slane %v2383_v30, 3  ;;  %v7456_v10 = vld [vmem:[#allocation4 + $0x64] sm:$0xff] }
 0x1c3   : > { %v2478_v22 = vpop.f32.mrf.mxu3 }
 0x1c4   : > { %v2140_v51 = vadd.f32 %v2056_v15, %v1733_v27  ;;  %1688 = vmatmul.bf16.gmra.mxu1 %v5876_v2  ;;  %2100 = vmatmul.bf16.gmra.mxu2 %v1970_v28  ;;  %v6006_v27 = vld [vmem:[%s7874_s1 + $0x1f0] sm:$0xff]  ;;  %v6027_v2 = vld [vmem:[%s7874_s1 + $0x238] sm:$0xff] }
 0x1c5   : > { %3902 = vmatpush.bf16.msra.mxu3 %v6006_v27  ;;  %4307 = vmatpush.bf16.msra.mxu0 %v6027_v2  ;;  %v5937_v27 = vld [vmem:[#allocation4 + $0x60] sm:$0xff]  ;;  %v6026_v2 = vld [vmem:[%s7874_s1 + $0x230] sm:$0xff] }
 0x1c6   : > { %v2562_v26 = vadd.f32 %v2478_v22, %v2140_v51  ;;  %v5967_v51 = vld [vmem:[%s7874_s1 + $0x178] sm:$0xff]  ;;  %v1975_v22 = vshll.u32 %v7456_v10, 16  ;;  %3603 = vmatpush.bf16.msra.mxu2 %v5983_v9 }
 0x1c7   : > { %v2061_v52 = vpop.f32.mrf.mxu2  ;;  %v2782_v44 = vpop.f32.mrf.mxu0  ;;  %3177 = vmatpush.bf16.msra.mxu1 %v5967_v51 }
 0x1c8   : > { %v7458_v23 = vadd.f32 %v2780_v47, %v2562_v26  ;;  %v7473_v47 = vor.u32 %v2388_v5, %v2385_v41  ;;  %v1971_v5 = vshrl.u32 %v7432_v13, 16  ;;  %v7485_v17 = vrot.slane %v1975_v22, 1 }
 0x1c9   : > { %v1651_v28 = vpop.f32.mrf.mxu1  ;;  %3903 = vmatpush.bf16.msra.mxu3 %v6005_v14  ;;  %v5877_v14 = vld [vmem:[#allocation4 + $0x54] sm:$0xff]  ;;  %v2392_v22 = vshrl.u32 %v5919_v60, 16  ;;  %4308 = vmatpush.bf16.msra.mxu0 %v6026_v2 }
 0x1ca   : > { %v1734_v26 = vadd.f32 %v1651_v28, %v7390_v12  ;;  %v2390_v12 = vsel %vm1209_vm14, %v2380_v11, %v7473_v47  ;;  %v1805_v28 = vld [vmem:[#allocation4 + $0x6c] sm:$0x1]  ;;  %v5982_v11 = vld [vmem:[%s7874_s1 + $0x190] sm:$0xff] }
 0x1cb   : > { %v2480_v15 = vpop.f32.mrf.mxu3  ;;  %3604 = vmatpush.bf16.msra.mxu2 %v5982_v11 }
 0x1cc   : > { %v2141_v30 = vadd.f32 %v2058_v40, %v1734_v26  ;;  %v5966_v40 = vld [vmem:[%s7874_s1 + $0x170] sm:$0xff]  ;;  %v1973_v26 = vor.u32 %v1971_v5, %v1969_v39  ;;  %v1872_v39 = vunpack.c.l.b16 %v1805_v28  ;;  %v6025_v5 = vld [vmem:[%s7874_s1 + $0x228] sm:$0xff]  ;;  %v2394_v28 = vrot.slane %v2392_v22, 3 }
 0x1cd   : > { %3178 = vmatpush.bf16.msra.mxu1 %v5966_v40  ;;  %4309 = vmatpush.bf16.msra.mxu0 %v6025_v5 }
 0x1ce   : > { %v2563_v19 = vadd.f32 %v2480_v15, %v2141_v30  ;;  %v2395_v30 = vshll.u32 %v5919_v60, 16 }
 0x1cf   : > { %v2063_v41 = vpop.f32.mrf.mxu2  ;;  %v2785_v51 = vpop.f32.mrf.mxu0 }
 0x1d0   : > { %2522 = vmatmul.bf16.gmra.mxu3 %v2390_v12  ;;  %v7487_v43 = vadd.f32 %v2782_v44, %v2563_v19  ;;  %v6004_v44 = vld [vmem:[%s7874_s1 + $0x1e0] sm:$0xff]  ;;  %v5965_v19 = vld [vmem:[%s7874_s1 + $0x168] sm:$0xff]  ;;  %v1978_v12 = vsel %vm1886_vm7, %v1973_v26, %v7485_v17  ;;  %v2397_v11 = vrot.slane %v2395_v30, 4  ;;  %v2212_v26 = vld [vmem:[#allocation4 + $0x74] sm:$0xf] }
 0x1d1   : > { %v1654_v13 = vpop.f32.mrf.mxu1  ;;  %3904 = vmatpush.bf16.msra.mxu3 %v6004_v44  ;;  %3179 = vmatpush.bf16.msra.mxu1 %v5965_v19  ;;  %v5980_v44 = vld [vmem:[%s7874_s1 + $0x180] sm:$0xff]  ;;  %v2279_v19 = vunpack.c.l.b16 %v2212_v26 }
 0x1d2   : > { %v1735_v15 = vadd.f32 %v1654_v13, %v7394_v59  ;;  %2824 = vmatmul.bf16.gmra.mxu0 %v5937_v27  ;;  %v5981_v59 = vld [vmem:[%s7874_s1 + $0x188] sm:$0xff]  ;;  %v6003_v27 = vld [vmem:[%s7874_s1 + $0x1d8] sm:$0xff]  ;;  %v1885_v13 = vpack.c.b16 %v1872_v39, %v1872_v39  ;;  %v7531_v30 = vor.u32 %v2397_v11, %v2394_v28 }
 0x1d3   : > { %v2483_v9 = vpop.f32.mrf.mxu3  ;;  %3605 = vmatpush.bf16.msra.mxu2 %v5981_v59  ;;  %v6023_v59 = vld [vmem:[%s7874_s1 + $0x218] sm:$0xff]  ;;  %v2292_v28 = vpack.c.b16 %v2279_v19, %v2279_v19 }
 0x1d4   : > { %v2142_v60 = vadd.f32 %v2061_v52, %v1735_v15  ;;  %1693 = vmatmul.bf16.gmra.mxu1 %v5877_v14  ;;  %2105 = vmatmul.bf16.gmra.mxu2 %v1978_v12  ;;  %v5964_v52 = vld [vmem:[%s7874_s1 + $0x160] sm:$0xff]  ;;  %v5963_v12 = vld [vmem:[%s7874_s1 + $0x158] sm:$0xff]  ;;  %v1983_v39 = vshll.u32 %v1885_v13, 16 }
 0x1d5   : > { %v6024_v15 = vld [vmem:[%s7874_s1 + $0x220] sm:$0xff]  ;;  %3905 = vmatpush.bf16.msra.mxu3 %v6003_v27  ;;  %3180 = vmatpush.bf16.msra.mxu1 %v5964_v52  ;;  %v2401_v19 = vshrl.u32 %v2292_v28, 16 }
 0x1d6   : > { %v2564_v40 = vadd.f32 %v2483_v9, %v2142_v60  ;;  %4310 = vmatpush.bf16.msra.mxu0 %v6024_v15  ;;  %v1979_v60 = vshrl.u32 %v7456_v10, 16  ;;  %v1985_v26 = vrot.slane %v1983_v39, 1  ;;  %v5968_v52 = vld [vmem:[#allocation4 + $0x20] sm:$0xf0]  ;;  %v5938_v15 = vld [vmem:[#allocation4 + $0x68] sm:$0xff] }
 0x1d7   : > { %v2066_v2 = vpop.f32.mrf.mxu2  ;;  %v2787_v1 = vpop.f32.mrf.mxu0  ;;  %3606 = vmatpush.bf16.msra.mxu2 %v5980_v44  ;;  %v5961_v39 = vld [vmem:[%s7874_s1 + $0x148] sm:$0xff] }
 0x1d8   : > { %v7516_v55 = vadd.f32 %v2785_v51, %v2564_v40  ;;  %v6002_v51 = vld [vmem:[%s7874_s1 + $0x1d0] sm:$0xff]  ;;  %v2399_v40 = vsel %vm1209_vm14, %v7473_v47, %v7531_v30  ;;  %v1981_v13 = vor.u32 %v1979_v60, %v7485_v17  ;;  %v6000_v17 = vld [vmem:[%s7874_s1 + $0x1c0] sm:$0xff]  ;;  %v6021_v60 = vld [vmem:[%s7874_s1 + $0x208] sm:$0xff] }
 0x1d9   : > { %v1656_v9 = vpop.f32.mrf.mxu1  ;;  %3906 = vmatpush.bf16.msra.mxu3 %v6002_v51  ;;  %3181 = vmatpush.bf16.msra.mxu1 %v5963_v12  ;;  %v6022_v47 = vld [vmem:[%s7874_s1 + $0x210] sm:$0xff]  ;;  %v2404_v12 = vshll.u32 %v2292_v28, 16 }
 0x1da   : > { %v1736_v14 = vadd.f32 %v1656_v9, %v7402_v31  ;;  %v6001_v31 = vld [vmem:[%s7874_s1 + $0x1c8] sm:$0xff]  ;;  %4311 = vmatpush.bf16.msra.mxu0 %v6023_v59  ;;  %v5962_v9 = vld [vmem:[%s7874_s1 + $0x150] sm:$0xff]  ;;  %v1986_v59 = vsel %vm1886_vm7, %v1981_v13, %v1985_v26 }
 0x1db   : > { %v2485_v22 = vpop.f32.mrf.mxu3  ;;  %v2406_v28 = vrot.slane %v2404_v12, 4 }
 0x1dc   : > { %v2143_v5 = vadd.f32 %v2063_v41, %v1736_v14  ;;  %v5568_v41 = vld [vmem:[#allocation4 + $0x20] sm:$0x8] }
 0x1dd   : > { %3907 = vmatpush.bf16.msra.mxu3 %v6001_v31  ;;  %3182 = vmatpush.bf16.msra.mxu1 %v5962_v9 }
 0x1de   : > { %v2565_v27 = vadd.f32 %v2485_v22, %v2143_v5  ;;  %v5878_v22 = vld [vmem:[#allocation4 + $0x5c] sm:$0xff]  ;;  %v5569_v5 = vor.u32 %v5968_v52, %v5568_v41  ;;  %4312 = vmatpush.bf16.msra.mxu0 %v6022_v47 }
 0x1df   : > { %v2068_v11 = vpop.f32.mrf.mxu2  ;;  %v2790_v44 = vpop.f32.mrf.mxu0  ;;  %v5960_v41 = vld [vmem:[%s7874_s1 + $0x140] sm:$0xff] }
 0x1e0   : > { %2527 = vmatmul.bf16.gmra.mxu3 %v2399_v40  ;;  %v7547_v10 = vadd.f32 %v2787_v1, %v2565_v27  ;;  %v2403_v40 = vrot.slane %v2401_v19, 3  ;;  %v3424_v9 = vshrl.u32 %v5569_v5, 16 }
 0x1e1   : > { %v1659_v51 = vpop.f32.mrf.mxu1  ;;  %3908 = vmatpush.bf16.msra.mxu3 %v6000_v17  ;;  %3183 = vmatpush.bf16.msra.mxu1 %v5961_v39 }
 0x1e2   : > { %v1737_v14 = vadd.f32 %v1659_v51, %v7409_v0  ;;  %2829 = vmatmul.bf16.gmra.mxu0 %v5938_v15  ;;  %v5969_v0 = vld [vmem:[#allocation4 + $0x28] sm:$0xff]  ;;  %v3427_v51 = vshll.u32 %v5569_v5, 16  ;;  %v3426_v19 = vrot.slane %v3424_v9, 3 }
 0x1e3   : > { %v2488_v1 = vpop.f32.mrf.mxu3  ;;  %4313 = vmatpush.bf16.msra.mxu0 %v6021_v60  ;;  %v3432_v47 = vshrl.u32 %v5969_v0, 16  ;;  %v3435_v17 = vshll.u32 %v5969_v0, 16 }
 0x1e4   : > { %v2144_v31 = vadd.f32 %v2066_v2, %v1737_v14  ;;  %1698 = vmatmul.bf16.gmra.mxu1 %v5878_v22  ;;  %2110 = vmatmul.bf16.gmra.mxu2 %v1986_v59  ;;  %v6020_v2 = vld [vmem:[%s7874_s1 + $0x200] sm:$0xff]  ;;  %v2407_v22 = vor.u32 %v2406_v28, %v2403_v40 }
 0x1e5   : > { %3184 = vmatpush.bf16.msra.mxu1 %v5960_v41  ;;  %v3434_v39 = vrot.slane %v3432_v47, 3  ;;  %v3437_v59 = vrot.slane %v3435_v17, 4  ;;  %v6008_v28 = vld [vmem:[#allocation4 + $0x24] sm:$0xff] }
 0x1e6   : > { %v2566_v27 = vadd.f32 %v2488_v1, %v2144_v31  ;;  %v2408_v60 = vsel %vm1209_vm14, %v7531_v30, %v2407_v22  ;;  %v5948_v30 = vld [vmem:[#allocation4 + $0x18] sm:$0xff]  ;;  %v4150_v17 = vshll.u32 %v6008_v28, 16 }
 0x1e7   : > { %v2071_v15 = vpop.f32.mrf.mxu2  ;;  %v2792_v26 = vpop.f32.mrf.mxu0  ;;  %4314 = vmatpush.bf16.msra.mxu0 %v6020_v2  ;;  %v3438_v40 = vor.u32 %v3437_v59, %v3434_v39  ;;  %v5970_v2 = vld [vmem:[#allocation4 + $0x30] sm:$0xff]  ;;  %v3020_v59 = vshll.u32 %v5948_v30, 16 }
 0x1e8   : > { %v7566_v13 = vadd.f32 %v2790_v44, %v2566_v27  ;;  %v3429_v44 = vrot.slane %v3427_v51, 4  ;;  %v3441_v22 = vshrl.u32 %v5970_v2, 16 }
 0x1e9   : > { %v1661_v52 = vpop.f32.mrf.mxu1 }
 0x1ea   : > { %v1738_v14 = vadd.f32 %v1661_v52, %v7416_v36  ;;  %v3430_v27 = vor.u32 %v3429_v44, %v3426_v19  ;;  %v5939_v36 = vld [vmem:[#allocation4 + $0x70] sm:$0xff]  ;;  %v3444_v19 = vshll.u32 %v5970_v2, 16 }
 0x1eb   : > { %v2490_v1 = vpop.f32.mrf.mxu3  ;;  %v6009_v44 = vld [vmem:[#allocation4 + $0x2c] sm:$0xff] }
 0x1ec   : > { %v2145_v12 = vadd.f32 %v2068_v11, %v1738_v14  ;;  %v5879_v11 = vld [vmem:[#allocation4 + $0x64] sm:$0xff]  ;;  %v3439_v41 = vsel %vm1209_vm14, %v3430_v27, %v3438_v40 }
 0x1ed   : > { %v7581_v14 = vld [vmem:[#allocation4 + $0x20] sm:$0xff] }
 0x1ee   : > { %v2567_v5 = vadd.f32 %v2490_v1, %v2145_v12  ;;  %v3025_v27 = vshll.u32 %v7581_v14, 16 }
 0x1ef   : > { %v2073_v31 = vpop.f32.mrf.mxu2  ;;  %v2795_v0 = vpop.f32.mrf.mxu0 }
 0x1f0   : > { %2532 = vmatmul.bf16.gmra.mxu3 %v2408_v60  ;;  %v7577_v33 = vadd.f32 %v2792_v26, %v2567_v5  ;;  %v4152_v5 = vrot.slane %v4150_v17, 1  ;;  %v3027_v32 = vrot.slane %v3025_v27, 1 }
 0x1f1   : > { %v1664_v52 = vpop.f32.mrf.mxu1 }
 0x1f2   : > { %v1739_v9 = vadd.f32 %v1664_v52, %v7425_v63  ;;  %2834 = vmatmul.bf16.gmra.mxu0 %v5939_v36  ;;  %v3443_v36 = vrot.slane %v3441_v22, 3  ;;  %v3446_v52 = vrot.slane %v3444_v19, 4 }
 0x1f3   : > { %v2493_v51 = vpop.f32.mrf.mxu3 }
 0x1f4   : > { %v2146_v47 = vadd.f32 %v2071_v15, %v1739_v9  ;;  %1703 = vmatmul.bf16.gmra.mxu1 %v5879_v11  ;;  %3607 = vmatmul.bf16.vlgmr.msra.gmra.mxu2 %v3439_v41  ;;  %v4148_v9 = vshrl.u32 %v6008_v28, 16  ;;  %v5988_v41 = vld [vmem:[#allocation4 + $0x24] sm:$0xff]  ;;  %v3447_v45 = vor.u32 %v3446_v52, %v3443_v36 }
 0x1f5   : > { %v7595_v52 = vld [vmem:[#allocation4 + $0x28] sm:$0xff] }
 0x1f6   : > { %v2568_v26 = vadd.f32 %v2493_v51, %v2146_v47  ;;  %v4155_v51 = vshll.u32 %v6009_v44, 16  ;;  %v3022_v47 = vrot.slane %v3020_v59, 1  ;;  %v4153_v2 = vor.u32 %v4152_v5, %v4148_v9 }
 0x1f7   : > { %v2076_v1 = vpop.f32.mrf.mxu2  ;;  %v2797_v63 = vpop.f32.mrf.mxu0  ;;  %v3448_v59 = vsel %vm1209_vm14, %v3438_v40, %v3447_v45 }
 0x1f8   : > { %v7583_v12 = vadd.f32 %v2795_v0, %v2568_v26  ;;  %v3018_v26 = vshrl.u32 %v5948_v30, 16  ;;  %v4157_v17 = vrot.slane %v4155_v51, 1  ;;  %v5971_v30 = vld [vmem:[#allocation4 + $0x38] sm:$0xff] }
 0x1f9   : > { %v1666_v39 = vpop.f32.mrf.mxu1  ;;  %v3453_v9 = vshll.u32 %v5971_v30, 16 }
 0x1fa   : > { %v1740_v60 = vadd.f32 %v1666_v39, %v7434_v50  ;;  %v3023_v7 = vor.u32 %v3022_v47, %v3018_v26  ;;  %v4158_v22 = vsel %vm1886_vm7, %v4153_v2, %v4157_v17  ;;  %v5989_v47 = vld [vmem:[#allocation4 + $0x2c] sm:$0xff]  ;;  %v3033_v2 = vshll.u32 %v7595_v52, 16 }
 0x1fb   : > { %v2495_v15 = vpop.f32.mrf.mxu3 }
 0x1fc   : > { %v2147_v11 = vadd.f32 %v2073_v31, %v1740_v60  ;;  %v3028_v19 = vsel %vm1886_vm7, %v3023_v7, %v3027_v32 }
 0x1fe   : > { %v2569_v18 = vadd.f32 %v2495_v15, %v2147_v11  ;;  %v4159_v11 = vshrl.u32 %v6009_v44, 16  ;;  %v3035_v44 = vrot.slane %v3033_v2, 1 }
 0x1ff   : > { %v2078_v0 = vpop.f32.mrf.mxu2  ;;  %v2800_v50 = vpop.f32.mrf.mxu0 }
 0x200   : > { %3909 = vmatmul.bf16.vlgmr.msra.gmra.mxu3 %v5988_v41  ;;  %v7587_v49 = vadd.f32 %v2797_v63, %v2569_v18  ;;  %v6010_v63 = vld [vmem:[#allocation4 + $0x34] sm:$0xff]  ;;  %v3029_v41 = vshrl.u32 %v7581_v14, 16 }
 0x201   : > { %v1669_v39 = vpop.f32.mrf.mxu1  ;;  %v4163_v40 = vshll.u32 %v6010_v63, 16 }
 0x202   : > { %v1741_v28 = vadd.f32 %v1669_v39, %v7411_v24  ;;  %4315 = vmatmul.bf16.vlgmr.msra.gmra.mxu0 %v4158_v22  ;;  %v3450_v24 = vshrl.u32 %v5971_v30, 16  ;;  %v4161_v39 = vor.u32 %v4159_v11, %v4157_v17 }
 0x203   : > { %v2498_v31 = vpop.f32.mrf.mxu3 }
 0x204   : > { %v2148_v5 = vadd.f32 %v2076_v1, %v1741_v28  ;;  %3185 = vmatmul.bf16.vlgmr.msra.gmra.mxu1 %v3028_v19  ;;  %3612 = vmatmul.bf16.gmra.mxu2 %v3448_v59  ;;  %v3452_v26 = vrot.slane %v3450_v24, 3  ;;  %v4165_v19 = vrot.slane %v4163_v40, 1  ;;  %v5972_v24 = vld [vmem:[#allocation4 + $0x40] sm:$0xff] }
 0x205   : > { %v3462_v11 = vshll.u32 %v5972_v24, 16  ;;  %v6011_v40 = vld [vmem:[#allocation4 + $0x3c] sm:$0xff] }
 0x206   : > { %v2570_v60 = vadd.f32 %v2498_v31, %v2148_v5  ;;  %v3031_v31 = vor.u32 %v3029_v41, %v3027_v32 }
 0x207   : > { %v2081_v18 = vpop.f32.mrf.mxu2  ;;  %v2802_v27 = vpop.f32.mrf.mxu0 }
 0x208   : > { %v7593_v15 = vadd.f32 %v2800_v50, %v2570_v60  ;;  %v3455_v50 = vrot.slane %v3453_v9, 4 }
 0x209   : > { %v1671_v36 = vpop.f32.mrf.mxu1 }
 0x20a   : > { %v1742_v51 = vadd.f32 %v1671_v36, %v7418_v16  ;;  %v3456_v30 = vor.u32 %v3455_v50, %v3452_v26  ;;  %v3036_v36 = vsel %vm1886_vm7, %v3031_v31, %v3035_v44  ;;  %v4167_v50 = vshrl.u32 %v6010_v63, 16  ;;  %v5990_v31 = vld [vmem:[#allocation4 + $0x34] sm:$0xff] }
 0x20b   : > { %v2500_v7 = vpop.f32.mrf.mxu3 }
 0x20c   : > { %v2149_v1 = vadd.f32 %v2078_v0, %v1742_v51  ;;  %v4166_v0 = vsel %vm1886_vm7, %v4161_v39, %v4165_v19  ;;  %v3457_v17 = vsel %vm1209_vm14, %v3447_v45, %v3456_v30  ;;  %v4171_v39 = vshll.u32 %v6011_v40, 16 }
 0x20e   : > { %v2571_v22 = vadd.f32 %v2500_v7, %v2149_v1  ;;  %v3459_v7 = vshrl.u32 %v5972_v24, 16 }
 0x20f   : > { %v2083_v28 = vpop.f32.mrf.mxu2  ;;  %v2805_v16 = vpop.f32.mrf.mxu0 }
 0x210   : > { %3914 = vmatmul.bf16.gmra.mxu3 %v5989_v47  ;;  %v7600_v59 = vadd.f32 %v2802_v27, %v2571_v22  ;;  %v7606_v27 = vld [vmem:[#allocation4 + $0x30] sm:$0xff]  ;;  %v3461_v26 = vrot.slane %v3459_v7, 3 }
 0x211   : > { %v1674_v5 = vpop.f32.mrf.mxu1  ;;  %v3041_v45 = vshll.u32 %v7606_v27, 16 }
 0x212   : > { %v1743_v14 = vadd.f32 %v1674_v5, %v7427_v46  ;;  %4320 = vmatmul.bf16.gmra.mxu0 %v4166_v0  ;;  %v4169_v5 = vor.u32 %v4167_v50, %v4165_v19 }
 0x213   : > { %v2503_v60 = vpop.f32.mrf.mxu3 }
 0x214   : > { %v2150_v9 = vadd.f32 %v2081_v18, %v1743_v14  ;;  %3190 = vmatmul.bf16.gmra.mxu1 %v3036_v36  ;;  %3617 = vmatmul.bf16.gmra.mxu2 %v3457_v17  ;;  %v3464_v18 = vrot.slane %v3462_v11, 4  ;;  %v4173_v17 = vrot.slane %v4171_v39, 1 }
 0x216   : > { %v2572_v32 = vadd.f32 %v2503_v60, %v2150_v9  ;;  %v3043_v60 = vrot.slane %v3041_v45, 1  ;;  %v3465_v36 = vor.u32 %v3464_v18, %v3461_v26  ;;  %v4174_v7 = vsel %vm1886_vm7, %v4169_v5, %v4173_v17  ;;  %v7621_v18 = vld [vmem:[#allocation4 + $0x38] sm:$0xff] }
 0x217   : > { %v2086_v51 = vpop.f32.mrf.mxu2  ;;  %v2807_v46 = vpop.f32.mrf.mxu0  ;;  %v3045_v5 = vshrl.u32 %v7606_v27, 16 }
 0x218   : > { %v7608_v1 = vadd.f32 %v2805_v16, %v2572_v32  ;;  %v3037_v16 = vshrl.u32 %v7595_v52, 16  ;;  %v3466_v11 = vsel %vm1209_vm14, %v3456_v30, %v3465_v36  ;;  %v5973_v52 = vld [vmem:[#allocation4 + $0x48] sm:$0xff] }
 0x219   : > { %v1676_v41 = vpop.f32.mrf.mxu1  ;;  %v3471_v50 = vshll.u32 %v5973_v52, 16 }
 0x21a   : > { %v1744_v47 = vadd.f32 %v1676_v41, %v7439_v25  ;;  %v3039_v32 = vor.u32 %v3037_v16, %v3035_v44  ;;  %v3049_v16 = vshll.u32 %v7621_v18, 16 }
 0x21b   : > { %v2505_v2 = vpop.f32.mrf.mxu3 }
 0x21c   : > { %v2151_v22 = vadd.f32 %v2083_v28, %v1744_v47  ;;  %v3044_v19 = vsel %vm1886_vm7, %v3039_v32, %v3043_v60 }
 0x21e   : > { %v2573_v0 = vadd.f32 %v2505_v2, %v2151_v22  ;;  %v6012_v2 = vld [vmem:[#allocation4 + $0x44] sm:$0xff] }
 0x21f   : > { %v2088_v14 = vpop.f32.mrf.mxu2  ;;  %v2810_v25 = vpop.f32.mrf.mxu0  ;;  %v4179_v30 = vshll.u32 %v6012_v2, 16 }
 0x220   : > { %3919 = vmatmul.bf16.gmra.mxu3 %v5990_v31  ;;  %v7613_v24 = vadd.f32 %v2807_v46, %v2573_v0  ;;  %v4175_v31 = vshrl.u32 %v6011_v40, 16  ;;  %v5991_v0 = vld [vmem:[#allocation4 + $0x3c] sm:$0xff]  ;;  %v3051_v40 = vrot.slane %v3049_v16, 1 }
 0x221   : > { %v1679_v9 = vpop.f32.mrf.mxu1 }
 0x222   : > { %v1745_v63 = vadd.f32 %v1679_v9, %v7400_v57  ;;  %4325 = vmatmul.bf16.gmra.mxu0 %v4174_v7  ;;  %v3468_v57 = vshrl.u32 %v5973_v52, 16  ;;  %v4177_v32 = vor.u32 %v4175_v31, %v4173_v17 }
 0x223   : > { %v2508_v28 = vpop.f32.mrf.mxu3 }
 0x224   : > { %v2152_v41 = vadd.f32 %v2086_v51, %v1745_v63  ;;  %3195 = vmatmul.bf16.gmra.mxu1 %v3044_v19  ;;  %3622 = vmatmul.bf16.gmra.mxu2 %v3466_v11  ;;  %v3470_v9 = vrot.slane %v3468_v57, 3  ;;  %v4181_v19 = vrot.slane %v4179_v30, 1  ;;  %v5974_v57 = vld [vmem:[#allocation4 + $0x50] sm:$0xff] }
 0x225   : > { %v3480_v31 = vshll.u32 %v5974_v57, 16  ;;  %v6013_v30 = vld [vmem:[#allocation4 + $0x4c] sm:$0xff] }
 0x226   : > { %v2574_v47 = vadd.f32 %v2508_v28, %v2152_v41  ;;  %v3047_v28 = vor.u32 %v3045_v5, %v3043_v60 }
 0x227   : > { %v2091_v46 = vpop.f32.mrf.mxu2  ;;  %v2812_v44 = vpop.f32.mrf.mxu0 }
 0x228   : > { %v7619_v45 = vadd.f32 %v2810_v25, %v2574_v47  ;;  %v3473_v25 = vrot.slane %v3471_v50, 4 }
 0x229   : > { %v1681_v26 = vpop.f32.mrf.mxu1 }
 0x22a   : > { %v1746_v39 = vadd.f32 %v1681_v26, %v7405_v53  ;;  %v3474_v52 = vor.u32 %v3473_v25, %v3470_v9  ;;  %v3052_v26 = vsel %vm1886_vm7, %v3047_v28, %v3051_v40  ;;  %v4183_v25 = vshrl.u32 %v6012_v2, 16  ;;  %v5992_v28 = vld [vmem:[#allocation4 + $0x44] sm:$0xff] }
 0x22b   : > { %v2510_v22 = vpop.f32.mrf.mxu3 }
 0x22c   : > { %v2153_v51 = vadd.f32 %v2088_v14, %v1746_v39  ;;  %v4182_v14 = vsel %vm1886_vm7, %v4177_v32, %v4181_v19  ;;  %v3475_v17 = vsel %vm1209_vm14, %v3465_v36, %v3474_v52  ;;  %v4187_v32 = vshll.u32 %v6013_v30, 16 }
 0x22e   : > { %v2575_v7 = vadd.f32 %v2510_v22, %v2153_v51  ;;  %v3477_v22 = vshrl.u32 %v5974_v57, 16 }
 0x22f   : > { %v2093_v63 = vpop.f32.mrf.mxu2  ;;  %v2815_v53 = vpop.f32.mrf.mxu0 }
 0x230   : > { %3924 = vmatmul.bf16.gmra.mxu3 %v5991_v0  ;;  %v7626_v11 = vadd.f32 %v2812_v44, %v2575_v7  ;;  %v7632_v44 = vld [vmem:[#allocation4 + $0x40] sm:$0xff]  ;;  %v3479_v9 = vrot.slane %v3477_v22, 3 }
 0x231   : > { %v1684_v41 = vpop.f32.mrf.mxu1  ;;  %v3057_v36 = vshll.u32 %v7632_v44, 16 }
 0x232   : > { %v1747_v27 = vadd.f32 %v1684_v41, %v7414_v58  ;;  %4330 = vmatmul.bf16.gmra.mxu0 %v4182_v14  ;;  %v4185_v41 = vor.u32 %v4183_v25, %v4181_v19  ;;  %v5954_v25 = vld [vmem:[#allocation4 + $0x48] sm:$0xff] }
 0x233   : > { %v2513_v47 = vpop.f32.mrf.mxu3 }
 0x234   : > { %v2154_v50 = vadd.f32 %v2091_v46, %v1747_v27  ;;  %3200 = vmatmul.bf16.gmra.mxu1 %v3052_v26  ;;  %3627 = vmatmul.bf16.gmra.mxu2 %v3475_v17  ;;  %v3482_v46 = vrot.slane %v3480_v31, 4  ;;  %v4189_v17 = vrot.slane %v4187_v32, 1 }
 0x236   : > { %v2576_v60 = vadd.f32 %v2513_v47, %v2154_v50  ;;  %v3059_v47 = vrot.slane %v3057_v36, 1  ;;  %v3483_v26 = vor.u32 %v3482_v46, %v3479_v9  ;;  %v4190_v22 = vsel %vm1886_vm7, %v4185_v41, %v4189_v17 }
 0x237   : > { %v2096_v39 = vpop.f32.mrf.mxu2  ;;  %v2817_v58 = vpop.f32.mrf.mxu0 }
 0x238   : > { %v7634_v51 = vadd.f32 %v2815_v53, %v2576_v60  ;;  %v3053_v53 = vshrl.u32 %v7621_v18, 16  ;;  %v3484_v31 = vsel %vm1209_vm14, %v3474_v52, %v3483_v26 }
 0x239   : > { %v1686_v5 = vpop.f32.mrf.mxu1 }
 0x23a   : > { %v1748_v0 = vadd.f32 %v1686_v5, %v7423_v38  ;;  %v3055_v60 = vor.u32 %v3053_v53, %v3051_v40  ;;  %v5975_v5 = vld [vmem:[#allocation4 + $0x58] sm:$0xff]  ;;  %v3061_v53 = vshrl.u32 %v7632_v44, 16 }
 0x23b   : > { %v2515_v16 = vpop.f32.mrf.mxu3  ;;  %v3486_v36 = vshrl.u32 %v5975_v5, 16  ;;  %v3489_v40 = vshll.u32 %v5975_v5, 16 }
 0x23c   : > { %v2155_v7 = vadd.f32 %v2093_v63, %v1748_v0  ;;  %v3060_v19 = vsel %vm1886_vm7, %v3055_v60, %v3059_v47  ;;  %v7645_v0 = vld [vmem:[#allocation4 + $0x54] sm:$0xff]  ;;  %v4191_v60 = vshrl.u32 %v6013_v30, 16 }
 0x23d   : > { %v4195_v32 = vshll.u32 %v7645_v0, 16 }
 0x23e   : > { %v2577_v14 = vadd.f32 %v2515_v16, %v2155_v7 }
 0x23f   : > { %v2098_v27 = vpop.f32.mrf.mxu2  ;;  %v2820_v38 = vpop.f32.mrf.mxu0 }
 0x240   : > { %3929 = vmatmul.bf16.gmra.mxu3 %v5992_v28  ;;  %v7639_v57 = vadd.f32 %v2817_v58, %v2577_v14  ;;  %v3488_v28 = vrot.slane %v3486_v36, 3  ;;  %v5993_v14 = vld [vmem:[#allocation4 + $0x4c] sm:$0xff] }
 0x241   : > { %v1689_v50 = vpop.f32.mrf.mxu1 }
 0x242   : > { %v1749_v2 = vadd.f32 %v1689_v50, %v7382_v34  ;;  %4335 = vmatmul.bf16.gmra.mxu0 %v4190_v22  ;;  %v3065_v50 = vshll.u32 %v5954_v25, 16  ;;  %v4197_v22 = vrot.slane %v4195_v32, 1 }
 0x243   : > { %v2518_v63 = vpop.f32.mrf.mxu3 }
 0x244   : > { %v2156_v18 = vadd.f32 %v2096_v39, %v1749_v2  ;;  %3205 = vmatmul.bf16.gmra.mxu1 %v3060_v19  ;;  %3632 = vmatmul.bf16.gmra.mxu2 %v3484_v31  ;;  %v3491_v39 = vrot.slane %v3489_v40, 4  ;;  %v4193_v31 = vor.u32 %v4191_v60, %v4189_v17 }
 0x246   : > { %v2578_v58 = vadd.f32 %v2518_v63, %v2156_v18  ;;  %v3063_v63 = vor.u32 %v3061_v53, %v3059_v47  ;;  %v3492_v19 = vor.u32 %v3491_v39, %v3488_v28  ;;  %v4198_v36 = vsel %vm1886_vm7, %v4193_v31, %v4197_v22  ;;  %v7658_v47 = vld [vmem:[#allocation4 + $0x5c] sm:$0xff] }
 0x247   : > { %v2101_v16 = vpop.f32.mrf.mxu2  ;;  %v2822_v46 = vpop.f32.mrf.mxu0 }
 0x248   : > { %v7647_v9 = vadd.f32 %v2820_v38, %v2578_v58  ;;  %v3067_v58 = vrot.slane %v3065_v50, 1  ;;  %v3493_v30 = vsel %vm1209_vm14, %v3483_v26, %v3492_v19 }
 0x249   : > { %v1691_v34 = vpop.f32.mrf.mxu1 }
 0x24a   : > { %v1750_v7 = vadd.f32 %v1691_v34, %v7387_v8  ;;  %v3068_v44 = vsel %vm1886_vm7, %v3063_v63, %v3067_v58  ;;  %v5976_v34 = vld [vmem:[#allocation4 + $0x60] sm:$0xff]  ;;  %v3069_v63 = vshrl.u32 %v5954_v25, 16 }
 0x24b   : > { %v2520_v52 = vpop.f32.mrf.mxu3 }
 0x24c   : > { %v2157_v41 = vadd.f32 %v2098_v27, %v1750_v7  ;;  %v3495_v7 = vshrl.u32 %v5976_v34, 16 }
 0x24e   : > { %v2579_v2 = vadd.f32 %v2520_v52, %v2157_v41  ;;  %v3498_v52 = vshll.u32 %v5976_v34, 16  ;;  %v5955_v41 = vld [vmem:[#allocation4 + $0x50] sm:$0xff]  ;;  %v3497_v50 = vrot.slane %v3495_v7, 3 }
 0x24f   : > { %v2103_v38 = vpop.f32.mrf.mxu2  ;;  %v2825_v18 = vpop.f32.mrf.mxu0  ;;  %v3073_v31 = vshll.u32 %v5955_v41, 16 }
 0x250   : > { %3934 = vmatmul.bf16.gmra.mxu3 %v5993_v14  ;;  %v7652_v5 = vadd.f32 %v2822_v46, %v2579_v2  ;;  %v4203_v14 = vshll.u32 %v7658_v47, 16  ;;  %v5994_v2 = vld [vmem:[#allocation4 + $0x54] sm:$0xff] }
 0x251   : > { %v1694_v8 = vpop.f32.mrf.mxu1 }
 0x252   : > { %v1751_v27 = vadd.f32 %v1694_v8, %v7392_v61  ;;  %4340 = vmatmul.bf16.gmra.mxu0 %v4198_v36  ;;  %v4199_v8 = vshrl.u32 %v7645_v0, 16  ;;  %v4205_v36 = vrot.slane %v4203_v14, 1 }
 0x253   : > { %v2523_v40 = vpop.f32.mrf.mxu3 }
 0x254   : > { %v2158_v32 = vadd.f32 %v2101_v16, %v1751_v27  ;;  %3210 = vmatmul.bf16.gmra.mxu1 %v3068_v44  ;;  %3637 = vmatmul.bf16.gmra.mxu2 %v3493_v30  ;;  %v3500_v16 = vrot.slane %v3498_v52, 4  ;;  %v4201_v30 = vor.u32 %v4199_v8, %v4197_v22  ;;  %v7671_v22 = vld [vmem:[#allocation4 + $0x64] sm:$0xff] }
 0x256   : > { %v2580_v17 = vadd.f32 %v2523_v40, %v2158_v32  ;;  %v3071_v40 = vor.u32 %v3069_v63, %v3067_v58  ;;  %v3501_v44 = vor.u32 %v3500_v16, %v3497_v50  ;;  %v4206_v7 = vsel %vm1886_vm7, %v4201_v30, %v4205_v36 }
 0x257   : > { %v2106_v46 = vpop.f32.mrf.mxu2  ;;  %v2827_v39 = vpop.f32.mrf.mxu0  ;;  %v4207_v30 = vshrl.u32 %v7658_v47, 16 }
 0x258   : > { %v7660_v28 = vadd.f32 %v2825_v18, %v2580_v17  ;;  %v3075_v17 = vrot.slane %v3073_v31, 1  ;;  %v3502_v52 = vsel %vm1209_vm14, %v3492_v19, %v3501_v44 }
 0x259   : > { %v1696_v61 = vpop.f32.mrf.mxu1 }
 0x25a   : > { %v1752_v53 = vadd.f32 %v1696_v61, %v7398_v54  ;;  %v3076_v0 = vsel %vm1886_vm7, %v3071_v40, %v3075_v17  ;;  %v5977_v61 = vld [vmem:[#allocation4 + $0x68] sm:$0xff]  ;;  %v5995_v40 = vld [vmem:[#allocation4 + $0x5c] sm:$0xff] }
 0x25b   : > { %v2525_v26 = vpop.f32.mrf.mxu3  ;;  %v3507_v50 = vshll.u32 %v5977_v61, 16 }
 0x25c   : > { %v2159_v60 = vadd.f32 %v2103_v38, %v1752_v53  ;;  %v7673_v53 = vld [vmem:[#allocation4 + $0x58] sm:$0xff] }
 0x25d   : > { %v3509_v8 = vrot.slane %v3507_v50, 4 }
 0x25e   : > { %v2581_v27 = vadd.f32 %v2525_v26, %v2159_v60  ;;  %v3504_v26 = vshrl.u32 %v5977_v61, 16 }
 0x25f   : > { %v2108_v18 = vpop.f32.mrf.mxu2  ;;  %v2830_v32 = vpop.f32.mrf.mxu0 }
 0x260   : > { %3939 = vmatmul.bf16.gmra.mxu3 %v5994_v2  ;;  %v7665_v34 = vadd.f32 %v2827_v39, %v2581_v27  ;;  %v4211_v2 = vshll.u32 %v7671_v22, 16  ;;  %v3506_v31 = vrot.slane %v3504_v26, 3 }
 0x261   : > { %v1699_v54 = vpop.f32.mrf.mxu1 }
 0x262   : > { %v1753_v38 = vadd.f32 %v1699_v54, %v7407_v42  ;;  %4345 = vmatmul.bf16.gmra.mxu0 %v4206_v7  ;;  %v4213_v54 = vrot.slane %v4211_v2, 1  ;;  %v5978_v2 = vld [vmem:[#allocation4 + $0x70] sm:$0xff] }
 0x263   : > { %v2528_v25 = vpop.f32.mrf.mxu3 }
 0x264   : > { %v2160_v14 = vadd.f32 %v2106_v46, %v1753_v38  ;;  %3215 = vmatmul.bf16.gmra.mxu1 %v3076_v0  ;;  %3642 = vmatmul.bf16.gmra.mxu2 %v3502_v52  ;;  %v3081_v46 = vshll.u32 %v7673_v53, 16  ;;  %v3077_v38 = vshrl.u32 %v5955_v41, 16  ;;  %v3510_v0 = vor.u32 %v3509_v8, %v3506_v31 }
 0x265   : > { %v4209_v52 = vor.u32 %v4207_v30, %v4205_v36  ;;  %v6017_v36 = vld [vmem:[#allocation4 + $0x6c] sm:$0xff] }
 0x266   : > { %v2582_v58 = vadd.f32 %v2528_v25, %v2160_v14  ;;  %v3083_v25 = vrot.slane %v3081_v46, 1  ;;  %v3516_v46 = vshll.u32 %v5978_v2, 16 }
 0x267   : > { %v2111_v39 = vpop.f32.mrf.mxu2  ;;  %v2832_v42 = vpop.f32.mrf.mxu0  ;;  %v4214_v26 = vsel %vm1886_vm7, %v4209_v52, %v4213_v54  ;;  %v5996_v52 = vld [vmem:[#allocation4 + $0x64] sm:$0xff] }
 0x268   : > { %v7675_v16 = vadd.f32 %v2830_v32, %v2582_v58  ;;  %v3079_v58 = vor.u32 %v3077_v38, %v3075_v17  ;;  %v3513_v17 = vshrl.u32 %v5978_v2, 16 }
 0x269   : > { %v1701_v60 = vpop.f32.mrf.mxu1 }
 0x26a   : > { %v1754_v19 = vadd.f32 %v1701_v60, %v7420_v21  ;;  %v3084_v47 = vsel %vm1886_vm7, %v3079_v58, %v3083_v25  ;;  %v3511_v60 = vsel %vm1209_vm14, %v3501_v44, %v3510_v0 }
 0x26b   : > { %v2530_v63 = vpop.f32.mrf.mxu3 }
 0x26c   : > { %v2161_v27 = vadd.f32 %v2108_v18, %v1754_v19 }
 0x26e   : > { %v2583_v7 = vadd.f32 %v2530_v63, %v2161_v27  ;;  %v7687_v63 = vld [vmem:[#allocation4 + $0x60] sm:$0xff]  ;;  %v4219_v27 = vshll.u32 %v6017_v36, 16 }
 0x26f   : > { %v2113_v32 = vpop.f32.mrf.mxu2  ;;  %v2835_v21 = vpop.f32.mrf.mxu0  ;;  %v3089_v44 = vshll.u32 %v7687_v63, 16 }
 0x270   : > { %3944 = vmatmul.bf16.gmra.mxu3 %v5995_v40  ;;  %v7681_v61 = vadd.f32 %v2832_v42, %v2583_v7  ;;  %v3518_v7 = vrot.slane %v3516_v46, 4  ;;  %v4221_v58 = vrot.slane %v4219_v27, 1 }
 0x271   : > { %v1704_v14 = vpop.f32.mrf.mxu1 }
 0x272   : > { %v1755_v18 = vadd.f32 %v1704_v14, %v7429_v62  ;;  %4350 = vmatmul.bf16.gmra.mxu0 %v4214_v26  ;;  %v4215_v14 = vshrl.u32 %v7671_v22, 16 }
 0x273   : > { %v2533_v50 = vpop.f32.mrf.mxu3 }
 0x274   : > { %v2162_v41 = vadd.f32 %v2111_v39, %v1755_v18  ;;  %3220 = vmatmul.bf16.gmra.mxu1 %v3084_v47  ;;  %3647 = vmatmul.bf16.gmra.mxu2 %v3511_v60  ;;  %v3515_v39 = vrot.slane %v3513_v17, 3  ;;  %v4217_v60 = vor.u32 %v4215_v14, %v4213_v54 }
 0x276   : > { %v2584_v42 = vadd.f32 %v2533_v50, %v2162_v41  ;;  %v3091_v50 = vrot.slane %v3089_v44, 1  ;;  %v3519_v47 = vor.u32 %v3518_v7, %v3515_v39  ;;  %v4222_v17 = vsel %vm1886_vm7, %v4217_v60, %v4221_v58 }
 0x277   : > { %v3608_v19 = vpop.f32.mrf.mxu2  ;;  %v2837_v62 = vpop.f32.mrf.mxu0 }
 0x278   : > { %v7689_v31 = vadd.f32 %v2835_v21, %v2584_v42  ;;  %v3085_v21 = vshrl.u32 %v7673_v53, 16  ;;  %v3520_v46 = vsel %vm1209_vm14, %v3510_v0, %v3519_v47  ;;  %v7701_v53 = vld [vmem:[#allocation4 + $0x68] sm:$0xff] }
 0x279   : > { %v1706_v8 = vpop.f32.mrf.mxu1  ;;  %v3097_v0 = vshll.u32 %v7701_v53, 16 }
 0x27a   : > { %v1756_v40 = vadd.f32 %v1706_v8, %v7441_v48  ;;  %v3087_v42 = vor.u32 %v3085_v21, %v3083_v25  ;;  %v5979_v8 = vld [vmem:[#allocation4 + $0x78] sm:$0xff] }
 0x27b   : > { %v2535_v30 = vpop.f32.mrf.mxu3 }
 0x27c   : > { %v2163_v38 = vadd.f32 %v2113_v32, %v1756_v40  ;;  %v3092_v22 = vsel %vm1886_vm7, %v3087_v42, %v3091_v50  ;;  %v3525_v40 = vshll.u32 %v5979_v8, 16  ;;  %v5997_v42 = vld [vmem:[#allocation4 + $0x6c] sm:$0xff] }
 0x27e   : > { %v2585_v26 = vadd.f32 %v2535_v30, %v2163_v38  ;;  %v7703_v30 = vld [vmem:[#allocation4 + $0x74] sm:$0xff]  ;;  %v3527_v14 = vrot.slane %v3525_v40, 4 }
 0x27f   : > { %v3610_v18 = vpop.f32.mrf.mxu2  ;;  %v4316_v48 = vpop.f32.mrf.mxu0 }
 0x280   : > { %3949 = vmatmul.bf16.gmra.mxu3 %v5996_v52  ;;  %v7695_v2 = vadd.f32 %v2837_v62, %v2585_v26  ;;  %v3522_v62 = vshrl.u32 %v5979_v8, 16  ;;  %v4227_v26 = vshll.u32 %v7703_v30, 16  ;;  %v3099_v8 = vrot.slane %v3097_v0, 1 }
 0x281   : > { %v3186_v41 = vpop.f32.mrf.mxu1 }
 0x282   : > { %4355 = vmatmul.bf16.gmra.mxu0 %v4222_v17  ;;  %v3270_v27 = vadd.f32 %v3186_v41, %v7458_v23  ;;  %v3524_v52 = vrot.slane %v3522_v62, 3  ;;  %v4223_v23 = vshrl.u32 %v6017_v36, 16  ;;  %v3342_v41 = vld [vmem:[#allocation4 + $0x80] sm:$0xf] }
 0x283   : > { %v3910_v32 = vpop.f32.mrf.mxu3 }
 0x284   : > { %3225 = vmatmul.bf16.gmra.mxu1 %v3092_v22  ;;  %3652 = vmatmul.bf16.gmra.mxu2 %v3520_v46  ;;  %v3692_v25 = vadd.f32 %v3608_v19, %v3270_v27  ;;  %v4225_v17 = vor.u32 %v4223_v23, %v4221_v58  ;;  %v3093_v19 = vshrl.u32 %v7687_v63, 16  ;;  %v4229_v27 = vrot.slane %v4227_v26, 1 }
 0x286   : > { %v3994_v21 = vadd.f32 %v3910_v32, %v3692_v25  ;;  %v4230_v25 = vsel %vm1886_vm7, %v4225_v17, %v4229_v27 }
 0x287   : > { %v3613_v54 = vpop.f32.mrf.mxu2  ;;  %v4318_v44 = vpop.f32.mrf.mxu0 }
 0x288   : > { %v7709_v62 = vadd.f32 %v4316_v48, %v3994_v21 }
 0x289   : > { %v3188_v39 = vpop.f32.mrf.mxu1 }
 0x28a   : > { %v3271_v7 = vadd.f32 %v3188_v39, %v7487_v43  ;;  %v3528_v43 = vor.u32 %v3527_v14, %v3524_v52  ;;  %v3409_v39 = vunpack.c.l.b16 %v3342_v41 }
 0x28b   : > { %v3912_v38 = vpop.f32.mrf.mxu3 }
 0x28c   : > { %v3693_v60 = vadd.f32 %v3610_v18, %v3271_v7  ;;  %v3095_v18 = vor.u32 %v3093_v19, %v3091_v50  ;;  %v3422_v0 = vpack.c.b16 %v3409_v39, %v3409_v39  ;;  %v7720_v50 = vld [vmem:[#allocation4 + $0x70] sm:$0xff] }
 0x28e   : > { %v3995_v22 = vadd.f32 %v3912_v38, %v3693_v60  ;;  %v3100_v7 = vsel %vm1886_vm7, %v3095_v18, %v3099_v8  ;;  %v3529_v38 = vsel %vm1209_vm14, %v3519_v47, %v3528_v43  ;;  %v3531_v14 = vshrl.u32 %v3422_v0, 16 }
 0x28f   : > { %v3615_v46 = vpop.f32.mrf.mxu2  ;;  %v4321_v40 = vpop.f32.mrf.mxu0  ;;  %v3534_v23 = vshll.u32 %v3422_v0, 16  ;;  %v3105_v47 = vshll.u32 %v7720_v50, 16  ;;  %v4231_v18 = vshrl.u32 %v7703_v30, 16 }
 0x290   : > { %3954 = vmatmul.bf16.gmra.mxu3 %v5997_v42  ;;  %v7711_v36 = vadd.f32 %v4318_v44, %v3995_v22  ;;  %v6019_v44 = vld [vmem:[#allocation4 + $0x7c] sm:$0xff]  ;;  %v3533_v22 = vrot.slane %v3531_v14, 3 }
 0x291   : > { %v3191_v32 = vpop.f32.mrf.mxu1  ;;  %v4235_v41 = vshll.u32 %v6019_v44, 16  ;;  %v3536_v19 = vrot.slane %v3534_v23, 4  ;;  %v3107_v0 = vrot.slane %v3105_v47, 1 }
 0x292   : > { %v6193_v58 = vpack.c.bf16 %v7711_v36, %v7709_v62  ;;  %4360 = vmatmul.bf16.gmra.mxu0 %v4230_v25  ;;  %v3272_v48 = vadd.f32 %v3191_v32, %v7516_v55  ;;  %v5998_v32 = vld [vmem:[#allocation4 + $0x74] sm:$0xff] }
 0x293   : > { %v3915_v63 = vpop.f32.mrf.mxu3  ;;  %v4237_v25 = vrot.slane %v4235_v41, 1 }
 0x294   : > { %6194 = vst [vmem:[%s6494_s16] sm:$0xff] %v6193_v58   ;;  %3230 = vmatmul.bf16.gmra.mxu1 %v3100_v7  ;;  %3657 = vmatmul.bf16.gmra.mxu2 %v3529_v38  ;;  %v3694_v26 = vadd.f32 %v3613_v54, %v3272_v48  ;;  %v4066_v7 = vld [vmem:[#allocation4 + $0x84] sm:$0x1]  ;;  %v3101_v38 = vshrl.u32 %v7701_v53, 16  ;;  %v3537_v48 = vor.u32 %v3536_v19, %v3533_v22 }
 0x295   : > { %v4133_v41 = vunpack.c.l.b16 %v4066_v7 }
 0x296   : > { %v3996_v55 = vadd.f32 %v3915_v63, %v3694_v26  ;;  %v3103_v26 = vor.u32 %v3101_v38, %v3099_v8  ;;  %v4239_v38 = vshrl.u32 %v6019_v44, 16 }
 0x297   : > { %v3618_v52 = vpop.f32.mrf.mxu2  ;;  %v4323_v21 = vpop.f32.mrf.mxu0  ;;  %v4146_v47 = vpack.c.b16 %v4133_v41, %v4133_v41 }
 0x298   : > { %v3108_v53 = vsel %vm1886_vm7, %v3103_v26, %v3107_v0 }
 0x299   : > { %v3193_v60 = vpop.f32.mrf.mxu1 }
 0x29a   : > { %v3273_v42 = vadd.f32 %v3193_v60, %v7547_v10  ;;  %v4233_v10 = vor.u32 %v4231_v18, %v4229_v27  ;;  %v7726_v60 = vadd.f32 %v4321_v40, %v3996_v55  ;;  %v3538_v27 = vsel %vm1209_vm14, %v3528_v43, %v3537_v48  ;;  %v5999_v48 = vld [vmem:[#allocation4 + $0x7c] sm:$0xff] }
 0x29b   : > { %v3917_v17 = vpop.f32.mrf.mxu3  ;;  %vm4640_vm14 = vcmask 523264  }
 0x29c   : > { %v3695_v39 = vadd.f32 %v3615_v46, %v3273_v42  ;;  %v2936_v46 = vld [vmem:[#allocation4 + $0x78] sm:$0x1]  ;;  %v4238_v30 = vsel %vm1886_vm7, %v4233_v10, %v4237_v25 }
 0x29d   : > { %v3003_v40 = vunpack.c.l.b16 %v2936_v46  ;;  %v3109_v46 = vshrl.u32 %v7720_v50, 16 }
 0x29e   : > { %v3997_v58 = vadd.f32 %v3917_v17, %v3695_v39 }
 0x29f   : > { %v3620_v54 = vpop.f32.mrf.mxu2  ;;  %v4326_v63 = vpop.f32.mrf.mxu0  ;;  %v3016_v22 = vpack.c.b16 %v3003_v40, %v3003_v40 }
 0x2a0   : > { %3959 = vmatmul.bf16.gmra.mxu3 %v5998_v32  ;;  %v7728_v14 = vadd.f32 %v4323_v21, %v3997_v58  ;;  %v4243_v32 = vshll.u32 %v4146_v47, 16 }
 0x2a1   : > { %v3196_v23 = vpop.f32.mrf.mxu1  ;;  %v3113_v7 = vshll.u32 %v3016_v22, 16 }
 0x2a2   : > { %v6198_v42 = vpack.c.bf16 %v7728_v14, %v7726_v60  ;;  %4365 = vmatmul.bf16.gmra.mxu0 %v4238_v30  ;;  %v3274_v21 = vadd.f32 %v3196_v23, %v7566_v13  ;;  %v4241_v13 = vor.u32 %v4239_v38, %v4237_v25  ;;  %v4245_v23 = vrot.slane %v4243_v32, 1 }
 0x2a3   : > { %v3920_v17 = vpop.f32.mrf.mxu3  ;;  %v3115_v41 = vrot.slane %v3113_v7, 1 }
 0x2a4   : > { %6284 = vst [vmem:[%s6494_s16 + $0x8] sm:$0xff] %v6198_v42   ;;  %3235 = vmatmul.bf16.gmra.mxu1 %v3108_v53  ;;  %3662 = vmatmul.bf16.gmra.mxu2 %v3538_v27  ;;  %v3696_v19 = vadd.f32 %v3618_v52, %v3274_v21  ;;  %v3111_v52 = vor.u32 %v3109_v46, %v3107_v0 }
 0x2a5   : > { %v4246_v44 = vsel %vm1886_vm7, %v4241_v13, %v4245_v23 }
 0x2a6   : > { %v3998_v10 = vadd.f32 %v3920_v17, %v3696_v19  ;;  %v3116_v25 = vsel %vm1886_vm7, %v3111_v52, %v3115_v41 }
 0x2a7   : > { %v3623_v8 = vpop.f32.mrf.mxu2  ;;  %v4328_v55 = vpop.f32.mrf.mxu0 }
 0x2a8   : > { %v7739_v42 = vadd.f32 %v4326_v63, %v3998_v10 }
 0x2a9   : > { %v3198_v39 = vpop.f32.mrf.mxu1 }
 0x2aa   : > { %v3275_v18 = vadd.f32 %v3198_v39, %v7577_v33 }
 0x2ab   : > { %v3922_v58 = vpop.f32.mrf.mxu3 }
 0x2ac   : > { %v3697_v43 = vadd.f32 %v3620_v54, %v3275_v18 }
 0x2ae   : > { %v3999_v26 = vadd.f32 %v3922_v58, %v3697_v43 }
 0x2af   : > { %v3625_v30 = vpop.f32.mrf.mxu2  ;;  %v4331_v33 = vpop.f32.mrf.mxu0 }
 0x2b0   : > { %3964 = vmatmul.bf16.gmra.mxu3 %v5999_v48  ;;  %v7741_v53 = vadd.f32 %v4328_v55, %v3999_v26 }
 0x2b1   : > { %v3201_v27 = vpop.f32.mrf.mxu1 }
 0x2b2   : > { %v6203_v54 = vpack.c.bf16 %v7741_v53, %v7739_v42  ;;  %4370 = vmatmul.bf16.gmra.mxu0 %v4246_v44  ;;  %v3276_v17 = vadd.f32 %v3201_v27, %v7583_v12 }
 0x2b3   : > { %v3925_v50 = vpop.f32.mrf.mxu3 }
 0x2b4   : > { %6285 = vst [vmem:[%s6494_s16 + $0x10] sm:$0xff] %v6203_v54   ;;  %3240 = vmatmul.bf16.gmra.mxu1 %v3116_v25  ;;  %v3698_v63 = vadd.f32 %v3623_v8, %v3276_v17 }
 0x2b6   : > { %v4000_v19 = vadd.f32 %v3925_v50, %v3698_v63 }
 0x2b7   : > { %v3628_v0 = vpop.f32.mrf.mxu2  ;;  %v4333_v40 = vpop.f32.mrf.mxu0 }
 0x2b8   : > { %v7750_v18 = vadd.f32 %v4331_v33, %v4000_v19 }
 0x2b9   : > { %v3203_v21 = vpop.f32.mrf.mxu1 }
 0x2ba   : > { %v3277_v47 = vadd.f32 %v3203_v21, %v7587_v49 }
 0x2bb   : > { %v3927_v22 = vpop.f32.mrf.mxu3 }
 0x2bc   : > { %v3699_v55 = vadd.f32 %v3625_v30, %v3277_v47 }
 0x2be   : > { %v4001_v39 = vadd.f32 %v3927_v22, %v3699_v55 }
 0x2bf   : > { %v3630_v32 = vpop.f32.mrf.mxu2  ;;  %v4336_v7 = vpop.f32.mrf.mxu0 }
 0x2c0   : > { %v7752_v58 = vadd.f32 %v4333_v40, %v4001_v39 }
 0x2c1   : > { %v3206_v38 = vpop.f32.mrf.mxu1 }
 0x2c2   : > { %v6208_v12 = vpack.c.bf16 %v7752_v58, %v7750_v18  ;;  %v3278_v8 = vadd.f32 %v3206_v38, %v7593_v15 }
 0x2c3   : > { %v3930_v10 = vpop.f32.mrf.mxu3 }
 0x2c4   : > { %6286 = vst [vmem:[%s6494_s16 + $0x18] sm:$0xff] %v6208_v12   ;;  %v3700_v49 = vadd.f32 %v3628_v0, %v3278_v8 }
 0x2c6   : > { %v4002_v26 = vadd.f32 %v3930_v10, %v3700_v49 }
 0x2c7   : > { %v3633_v43 = vpop.f32.mrf.mxu2  ;;  %v4338_v48 = vpop.f32.mrf.mxu0 }
 0x2c8   : > { %v4408_v33 = vadd.f32 %v4336_v7, %v4002_v26 }
 0x2c9   : > { %v3208_v46 = vpop.f32.mrf.mxu1 }
 0x2ca   : > { %v3279_v13 = vadd.f32 %v3208_v46, %v7600_v59 }
 0x2cb   : > { %v3932_v23 = vpop.f32.mrf.mxu3 }
 0x2cc   : > { %v3701_v30 = vadd.f32 %v3630_v32, %v3279_v13 }
 0x2ce   : > { %v4003_v52 = vadd.f32 %v3932_v23, %v3701_v30 }
 0x2cf   : > { %v3635_v41 = vpop.f32.mrf.mxu2  ;;  %v4341_v44 = vpop.f32.mrf.mxu0 }
 0x2d0   : > { %v7759_v27 = vadd.f32 %v4338_v48, %v4003_v52 }
 0x2d1   : > { %v3211_v54 = vpop.f32.mrf.mxu1 }
 0x2d2   : > { %v6213_v50 = vpack.c.bf16 %v7759_v27, %v4408_v33  ;;  %v3280_v25 = vadd.f32 %v3211_v54, %v7608_v1 }
 0x2d3   : > { %v3935_v15 = vpop.f32.mrf.mxu3 }
 0x2d4   : > { %6287 = vst [vmem:[%s6494_s16 + $0x20] sm:$0xff] %v6213_v50   ;;  %v3702_v0 = vadd.f32 %v3633_v43, %v3280_v25 }
 0x2d6   : > { %v4004_v47 = vadd.f32 %v3935_v15, %v3702_v0 }
 0x2d7   : > { %v3638_v17 = vpop.f32.mrf.mxu2  ;;  %v4343_v59 = vpop.f32.mrf.mxu0 }
 0x2d8   : > { %v7765_v39 = vadd.f32 %v4341_v44, %v4004_v47 }
 0x2d9   : > { %v3213_v63 = vpop.f32.mrf.mxu1 }
 0x2da   : > { %v3281_v40 = vadd.f32 %v3213_v63, %v7613_v24 }
 0x2db   : > { %v3937_v21 = vpop.f32.mrf.mxu3 }
 0x2dc   : > { %v3703_v22 = vadd.f32 %v3635_v41, %v3281_v40 }
 0x2de   : > { %v4005_v19 = vadd.f32 %v3937_v21, %v3703_v22 }
 0x2df   : > { %v3640_v55 = vpop.f32.mrf.mxu2  ;;  %v4346_v7 = vpop.f32.mrf.mxu0 }
 0x2e0   : > { %v7767_v32 = vadd.f32 %v4343_v59, %v4005_v19  ;;  %v4624_v59 = vmul.f32 %v7347_v6, %v4408_v33 }
 0x2e1   : > { %v3216_v38 = vpop.f32.mrf.mxu1 }
 0x2e2   : > { %v6218_v1 = vpack.c.bf16 %v7767_v32, %v7765_v39  ;;  %v3282_v10 = vadd.f32 %v3216_v38, %v7619_v45  ;;  %v4693_v47 = vmul.f32 %v4624_v59, %v4408_v33 }
 0x2e3   : > { %v3940_v12 = vpop.f32.mrf.mxu3 }
 0x2e4   : > { %6288 = vst [vmem:[%s6494_s16 + $0x28] sm:$0xff] %v6218_v1   ;;  %v3704_v24 = vadd.f32 %v3638_v17, %v3282_v10 }
 0x2e6   : > { %v4006_v13 = vadd.f32 %v3940_v12, %v3704_v24 }
 0x2e7   : > { %v3643_v8 = vpop.f32.mrf.mxu2  ;;  %v4348_v43 = vpop.f32.mrf.mxu0 }
 0x2e8   : > { %v4412_v52 = vadd.f32 %v4346_v7, %v4006_v13 }
 0x2e9   : > { %v3218_v49 = vpop.f32.mrf.mxu1 }
 0x2ea   : > { %v3283_v48 = vadd.f32 %v3218_v49, %v7626_v11  ;;  %v4628_v49 = vmul.f32 %v7282_v37, %v4412_v52  ;;  %v4625_v37 = vmul.f32 %v7318_v20, %v7759_v27 }
 0x2eb   : > { %v3942_v46 = vpop.f32.mrf.mxu3 }
 0x2ec   : > { %v3705_v23 = vadd.f32 %v3640_v55, %v3283_v48 }
 0x2ee   : > { %v4007_v26 = vadd.f32 %v3942_v46, %v3705_v23 }
 0x2ef   : > { %v3645_v30 = vpop.f32.mrf.mxu2  ;;  %v4351_v44 = vpop.f32.mrf.mxu0 }
 0x2f0   : > { %v4413_v41 = vadd.f32 %v4348_v43, %v4007_v26 }
 0x2f1   : > { %v3221_v54 = vpop.f32.mrf.mxu1 }
 0x2f2   : > { %v6223_v50 = vpack.c.bf16 %v4413_v41, %v4412_v52  ;;  %v3284_v15 = vadd.f32 %v3221_v54, %v7634_v51 }
 0x2f3   : > { %v3945_v45 = vpop.f32.mrf.mxu3 }
 0x2f4   : > { %6289 = vst [vmem:[%s6494_s16 + $0x30] sm:$0xff] %v6223_v50   ;;  %v3706_v25 = vadd.f32 %v3643_v8, %v3284_v15  ;;  %v7915_v15 = vld [vmem:[#allocation12_spill] sm:$0xff] }
 0x2f6   : > { %v4008_v63 = vadd.f32 %v3945_v45, %v3706_v25  ;;  %v4623_v45 = vmul.f32 %v7915_v15, %v7752_v58 }
 0x2f7   : > { %v3648_v17 = vpop.f32.mrf.mxu2  ;;  %v4353_v0 = vpop.f32.mrf.mxu0 }
 0x2f8   : > { %v4414_v19 = vadd.f32 %v4351_v44, %v4008_v63  ;;  %v4692_v63 = vmul.f32 %v4623_v45, %v7752_v58 }
 0x2f9   : > { %v3223_v11 = vpop.f32.mrf.mxu1 }
 0x2fa   : > { %v3285_v40 = vadd.f32 %v3223_v11, %v7639_v57  ;;  %v4630_v6 = vmul.f32 %v7332_v56, %v4414_v19  ;;  %v4629_v57 = vmul.f32 %v7328_v35, %v4413_v41  ;;  %v4627_v56 = vmul.f32 %v7342_v4, %v7767_v32 }
 0x2fb   : > { %v3947_v21 = vpop.f32.mrf.mxu3  ;;  %v4697_v35 = vmul.f32 %v4628_v49, %v4412_v52  ;;  %v4694_v52 = vmul.f32 %v4625_v37, %v7759_v27 }
 0x2fc   : > { %v3707_v22 = vadd.f32 %v3645_v30, %v3285_v40  ;;  %v4699_v33 = vmul.f32 %v4630_v6, %v4414_v19  ;;  %v4698_v46 = vmul.f32 %v4629_v57, %v4413_v41  ;;  %v4626_v30 = vmul.f32 %v7338_v3, %v7765_v39  ;;  %v7917_v40 = vld [vmem:[#allocation14_spill] sm:$0xff] }
 0x2fd   : > { %v4696_v4 = vmul.f32 %v4627_v56, %v7767_v32 }
 0x2fe   : > { %v4009_v55 = vadd.f32 %v3947_v21, %v3707_v22  ;;  %v4621_v21 = vmul.f32 %v7917_v40, %v7741_v53 }
 0x2ff   : > { %v3650_v7 = vpop.f32.mrf.mxu2  ;;  %v4356_v51 = vpop.f32.mrf.mxu0 }
 0x300   : > { %v4415_v38 = vadd.f32 %v4353_v0, %v4009_v55 }
 0x301   : > { %v3226_v1 = vpop.f32.mrf.mxu1 }
 0x302   : > { %v4631_v12 = vmul.f32 %v7240_v29, %v4415_v38  ;;  %v6228_v10 = vpack.c.bf16 %v4415_v38, %v4414_v19  ;;  %v3286_v43 = vadd.f32 %v3226_v1, %v7647_v9 }
 0x303   : > { %v3950_v8 = vpop.f32.mrf.mxu3 }
 0x304   : > { %v4700_v24 = vmul.f32 %v4631_v12, %v4415_v38  ;;  %6290 = vst [vmem:[%s6494_s16 + $0x38] sm:$0xff] %v6228_v10   ;;  %4644 = vmatpush.msrb.mxu1 %v4631_v12  ;;  %v3708_v48 = vadd.f32 %v3648_v17, %v3286_v43  ;;  %v7920_v12 = vld [vmem:[#allocation20_spill] sm:$0xff] }
 0x305   : > { %v4618_v10 = vmul.f32 %v7920_v12, %v7726_v60 }
 0x306   : > { %4645 = vmatpush.msrb.mxu1 %v4630_v6  ;;  %4709 = vmatpush.msrb.mxu3 %v4700_v24  ;;  %v4010_v44 = vadd.f32 %v3950_v8, %v3708_v48  ;;  %v7921_v8 = vld [vmem:[#allocation23_spill] sm:$0xff] }
 0x307   : > { %v4358_v29 = vpop.f32.mrf.mxu0  ;;  %v3653_v13 = vpop.f32.mrf.mxu2  ;;  %v4617_v6 = vmul.f32 %v7921_v8, %v7711_v36  ;;  %v7928_v8 = vld [vmem:[#allocation16_spill] sm:$0xff] }
 0x308   : > { %4646 = vmatpush.msrb.mxu1 %v4629_v57  ;;  %4710 = vmatpush.msrb.mxu3 %v4699_v33  ;;  %v7794_v50 = vadd.f32 %v4356_v51, %v4010_v44 }
 0x309   : > { %v3228_v23 = vpop.f32.mrf.mxu1 }
 0x30a   : > { %v3287_v9 = vadd.f32 %v3228_v23, %v7652_v5  ;;  %4647 = vmatpush.msrb.mxu1 %v4628_v49  ;;  %4711 = vmatpush.msrb.mxu3 %v4698_v46  ;;  %v4695_v5 = vmul.f32 %v4626_v30, %v7765_v39  ;;  %v7916_v39 = vld [vmem:[#allocation10_spill] sm:$0xff]  ;;  %v4686_v46 = vmul.f32 %v4617_v6, %v7711_v36 }
 0x30b   : > { %v3952_v26 = vpop.f32.mrf.mxu3  ;;  %v4622_v27 = vmul.f32 %v7916_v39, %v7750_v18  ;;  %v6412_v39 = vmov 1.0  }
 0x30c   : > { %v3709_v54 = vadd.f32 %v3650_v7, %v3287_v9  ;;  %4648 = vmatpush.msrb.mxu1 %v4627_v56  ;;  %4712 = vmatpush.msrb.mxu3 %v4697_v35 }
 0x30d   : > { %v4691_v22 = vmul.f32 %v4622_v27, %v7750_v18 }
 0x30e   : > { %v4011_v41 = vadd.f32 %v3952_v26, %v3709_v54  ;;  %4649 = vmatpush.msrb.mxu1 %v4626_v30  ;;  %4713 = vmatpush.msrb.mxu3 %v4696_v4 }
 0x30f   : > { %v4361_v20 = vpop.f32.mrf.mxu0  ;;  %v3655_v0 = vpop.f32.mrf.mxu2 }
 0x310   : > { %v7796_v3 = vadd.f32 %v4358_v29, %v4011_v41  ;;  %4650 = vmatpush.msrb.mxu1 %v4625_v37  ;;  %4714 = vmatpush.msrb.mxu3 %v4695_v5 }
 0x311   : > { %v3231_v25 = vpop.f32.mrf.mxu1 }
 0x312   : > { %v6233_v32 = vpack.c.bf16 %v7796_v3, %v7794_v50  ;;  %4651 = vmatpush.msrb.mxu1 %v4624_v59  ;;  %4715 = vmatpush.msrb.mxu3 %v4694_v52  ;;  %v3288_v11 = vadd.f32 %v3231_v25, %v7660_v28  ;;  %v7918_v59 = vld [vmem:[#allocation18_spill] sm:$0xff]  ;;  %v4690_v28 = vmul.f32 %v4621_v21, %v7741_v53 }
 0x313   : > { %v3955_v17 = vpop.f32.mrf.mxu3  ;;  %v4620_v19 = vmul.f32 %v7918_v59, %v7739_v42 }
 0x314   : > { %6291 = vst [vmem:[%s6494_s16 + $0x40] sm:$0xff] %v6233_v32   ;;  %4652 = vmatpush.msrb.mxu1 %v4623_v45  ;;  %4716 = vmatpush.msrb.mxu3 %v4693_v47  ;;  %v3710_v55 = vadd.f32 %v3653_v13, %v3288_v11  ;;  %v7919_v47 = vld [vmem:[#allocation13_spill] sm:$0xff] }
 0x315   : > { %v4619_v38 = vmul.f32 %v7919_v47, %v7728_v14  ;;  %v4689_v18 = vmul.f32 %v4620_v19, %v7739_v42  ;;  %v7922_v42 = vld [vmem:[#allocation19_spill] sm:$0xff] }
 0x316   : > { %4653 = vmatpush.msrb.mxu1 %v4622_v27  ;;  %4717 = vmatpush.msrb.mxu3 %v4692_v63  ;;  %v4012_v24 = vadd.f32 %v3955_v17, %v3710_v55  ;;  %v4616_v49 = vmul.f32 %v7922_v42, %v7709_v62  ;;  %v7925_v47 = vld [vmem:[#allocation11_spill] sm:$0xff] }
 0x317   : > { %v4363_v7 = vpop.f32.mrf.mxu0  ;;  %v4688_v53 = vmul.f32 %v4619_v38, %v7728_v14  ;;  %v3658_v57 = vpop.f32.mrf.mxu2 }
 0x318   : > { %4654 = vmatpush.msrb.mxu1 %v4621_v21  ;;  %4718 = vmatpush.msrb.mxu3 %v4691_v22  ;;  %v7825_v48 = vadd.f32 %v4361_v20, %v4012_v24  ;;  %v7923_v20 = vld [vmem:[#allocation24_spill] sm:$0xff] }
 0x319   : > { %v3233_v58 = vpop.f32.mrf.mxu1 }
 0x31a   : > { %v3289_v51 = vadd.f32 %v3233_v58, %v7665_v34  ;;  %4655 = vmatpush.msrb.mxu1 %v4620_v19  ;;  %4719 = vmatpush.msrb.mxu3 %v4690_v28  ;;  %v4687_v34 = vmul.f32 %v4618_v10, %v7726_v60  ;;  %v4685_v60 = vmul.f32 %v4616_v49, %v7709_v62 }
 0x31b   : > { %v3957_v1 = vpop.f32.mrf.mxu3  ;;  %v4632_v62 = vmul.f32 %v7923_v20, %v7794_v50 }
 0x31c   : > { %v3711_v43 = vadd.f32 %v3655_v0, %v3289_v51  ;;  %4656 = vmatpush.msrb.mxu1 %v4619_v38  ;;  %4720 = vmatpush.msrb.mxu3 %v4689_v18  ;;  %v7926_v51 = vld [vmem:[#allocation17_spill] sm:$0xff] }
 0x31d   : > { %v4701_v17 = vmul.f32 %v4632_v62, %v7794_v50  ;;  %v7927_v18 = vld [vmem:[#allocation21_spill] sm:$0xff] }
 0x31e   : > { %v4013_v33 = vadd.f32 %v3957_v1, %v3711_v43  ;;  %4657 = vmatpush.msrb.mxu1 %v4618_v10  ;;  %4721 = vmatpush.msrb.mxu3 %v4688_v53  ;;  %v7929_v43 = vld [vmem:[#allocation22_spill] sm:$0xff] }
 0x31f   : > { %v4366_v14 = vpop.f32.mrf.mxu0  ;;  %v3660_v26 = vpop.f32.mrf.mxu2  ;;  %v4634_v53 = vmul.f32 %v7929_v43, %v7825_v48 }
 0x320   : > { %v7827_v29 = vadd.f32 %v4363_v7, %v4013_v33  ;;  %4658 = vmatpush.msrb.mxu1 %v4617_v6  ;;  %4722 = vmatpush.msrb.mxu3 %v4687_v34  ;;  %v7924_v7 = vld [vmem:[#allocation15_spill] sm:$0xff]  ;;  %v7930_v33 = vld [vmem:[#allocation25_spill] sm:$0xff] }
 0x321   : > { %v3236_v56 = vpop.f32.mrf.mxu1  ;;  %v4633_v34 = vmul.f32 %v7930_v33, %v7796_v3  ;;  %v4703_v42 = vmul.f32 %v4634_v53, %v7825_v48 }
 0x322   : > { %v6238_v13 = vpack.c.bf16 %v7827_v29, %v7825_v48  ;;  %4659 = vmatpush.msrb.mxu1 %v4616_v49  ;;  %4723 = vmatpush.msrb.mxu3 %v4686_v46  ;;  %v3290_v9 = vadd.f32 %v3236_v56, %v7675_v16  ;;  %v4635_v6 = vmul.f32 %v7928_v8, %v7827_v29 }
 0x323   : > { %v3960_v23 = vpop.f32.mrf.mxu3  ;;  %4660 = vmatmul.f32.vlgmr.msrb.gmra.mxu1 %v6412_v39  ;;  %v4702_v49 = vmul.f32 %v4633_v34, %v7796_v3 }
 0x324   : > { %6292 = vst [vmem:[%s6494_s16 + $0x48] sm:$0xff] %v6238_v13   ;;  %4724 = vmatpush.msrb.mxu3 %v4685_v60  ;;  %v3712_v35 = vadd.f32 %v3658_v57, %v3290_v9  ;;  %v4704_v57 = vmul.f32 %v4635_v6, %v7827_v29 }
 0x325   : > { %4725 = vmatmul.f32.vlgmr.msrb.gmra.mxu3 %v6412_v39 }
 0x326   : > { %v4014_v54 = vadd.f32 %v3960_v23, %v3712_v35 }
 0x327   : > { %v4368_v44 = vpop.f32.mrf.mxu0  ;;  %v3663_v15 = vpop.f32.mrf.mxu2 }
 0x328   : > { %v4420_v5 = vadd.f32 %v4366_v14, %v4014_v54 }
 0x329   : > { %v3238_v30 = vpop.f32.mrf.mxu1 }
 0x32a   : > { %v3291_v36 = vadd.f32 %v3238_v30, %v7681_v61  ;;  %v4636_v12 = vmul.f32 %v7927_v18, %v4420_v5 }
 0x32b   : > { %v3962_v37 = vpop.f32.mrf.mxu3 }
 0x32c   : > { %v3713_v4 = vadd.f32 %v3660_v26, %v3291_v36  ;;  %v4705_v24 = vmul.f32 %v4636_v12, %v4420_v5 }
 0x32e   : > { %v4015_v41 = vadd.f32 %v3962_v37, %v3713_v4 }
 0x32f   : > { %v4371_v61 = vpop.f32.mrf.mxu0  ;;  %v3665_v40 = vpop.f32.mrf.mxu2 }
 0x330   : > { %v4421_v52 = vadd.f32 %v4368_v44, %v4015_v41 }
 0x331   : > { %v3241_v45 = vpop.f32.mrf.mxu1 }
 0x332   : > { %v6243_v16 = vpack.c.bf16 %v4421_v52, %v4420_v5  ;;  %v3292_v25 = vadd.f32 %v3241_v45, %v7689_v31  ;;  %v4637_v1 = vmul.f32 %v7926_v51, %v4421_v52 }
 0x333   : > { %v3965_v32 = vpop.f32.mrf.mxu3 }
 0x334   : > { %6293 = vst [vmem:[%s6494_s16 + $0x50] sm:$0xff] %v6243_v16   ;;  %v3714_v27 = vadd.f32 %v3663_v15, %v3292_v25  ;;  %v4706_v10 = vmul.f32 %v4637_v1, %v4421_v52 }
 0x336   : > { %v4016_v11 = vadd.f32 %v3965_v32, %v3714_v27 }
 0x337   : > { %v4373_v31 = vpop.f32.mrf.mxu0 }
 0x338   : > { %v4422_v59 = vadd.f32 %v4371_v61, %v4016_v11 }
 0x339   : > { %v3243_v0 = vpop.f32.mrf.mxu1 }
 0x33a   : > { %v3293_v63 = vadd.f32 %v3243_v0, %v7695_v2  ;;  %v4638_v38 = vmul.f32 %v7925_v47, %v4422_v59 }
 0x33b   : > { %v3967_v22 = vpop.f32.mrf.mxu3 }
 0x33c   : > { %v3715_v21 = vadd.f32 %v3665_v40, %v3293_v63  ;;  %v4707_v2 = vmul.f32 %v4638_v38, %v4422_v59 }
 0x33e   : > { %v4017_v19 = vadd.f32 %v3967_v22, %v3715_v21 }
 0x340   : > { %v4423_v55 = vadd.f32 %v4373_v31, %v4017_v19 }
 0x342   : > { %v4639_v50 = vmul.f32 %v7924_v7, %v4423_v55  ;;  %v6248_v28 = vpack.c.bf16 %v4423_v55, %v4422_v59 }
 0x344   : > { %v4708_v58 = vmul.f32 %v4639_v50, %v4423_v55  ;;  %6294 = vst [vmem:[%s6494_s16 + $0x58] sm:$0xff] %v6248_v28   ;;  %4672 = vmatpush.msrb.mxu2 %v4639_v50 }
 0x346   : > { %4673 = vmatpush.msrb.mxu2 %v4638_v38  ;;  %4737 = vmatpush.msra.mxu1 %v4708_v58 }
 0x348   : > { %4674 = vmatpush.msrb.mxu2 %v4637_v1  ;;  %4738 = vmatpush.msra.mxu1 %v4707_v2 }
 0x34a   : > { %4675 = vmatpush.msrb.mxu2 %v4636_v12  ;;  %4739 = vmatpush.msra.mxu1 %v4706_v10 }
 0x34c   : > { %4676 = vmatpush.msrb.mxu2 %v4635_v6  ;;  %4740 = vmatpush.msra.mxu1 %v4705_v24 }
 0x34e   : > { %4677 = vmatpush.msrb.mxu2 %v4634_v53  ;;  %4741 = vmatpush.msra.mxu1 %v4704_v57 }
 0x350   : > { %4678 = vmatpush.msrb.mxu2 %v4633_v34  ;;  %4742 = vmatpush.msra.mxu1 %v4703_v42 }
 0x352   : > { %4679 = vmatpush.msrb.mxu2 %v4632_v62  ;;  %4743 = vmatpush.msra.mxu1 %v4702_v49 }
 0x353   : > { %5838 = vmatmul.msk.f32.vlgmr.msrb.gmra.mxu2 %vm4640_vm14, %v6412_v39 }
 0x354   : > { %4744 = vmatpush.msra.mxu1 %v4701_v17 }
 0x355   : > { %5839 = vmatmul.msk.f32.vlgmr.msra.gmra.mxu1 %vm4640_vm14, %v6412_v39 }
 0x3a0   : > { %v4661_v29 = vpop.f32.mrf.mxu1 }
 0x3a8   : > { %v4726_v46 = vpop.f32.mrf.mxu3 }
 0x3d2   : > { %v4746_v56 = vpop.f32.mrf.mxu1 }
 0x3d3   : > { %v4747_v14 = vadd.f32 %v4746_v56, %v4726_v46 }
 0x3d5   : > { %4749 = vst [vmem:[%s6499_s20 + $0x1] sm:$0x1] %v4747_v14 }
 0x3d6   : > { %v4681_v13 = vpop.f32.mrf.mxu2 }
 0x3d7   : > { %v4682_v23 = vadd.f32 %v4681_v13, %v4661_v29 }
 0x3d9   : > { %4684 = vst [vmem:[%s6499_s20] sm:$0x1] %v4682_v23 }
 0x3da PF: > { %s17_s25 = sadd.s32 1, %s6409_s25   ;;  %s7931_s16 = sld [smem:[#allocation9_spill]] }
 0x3db   : > { %p14_p0 = scmp.ge.s32.totalorder %s17_s25, 6   ;;  %s7932_s21 = smov %s6401_s23 }
 0x3dc   : > { %s7933_s22 = smov %s6405_s24  ;;  %s7934_s23 = smov %s7937_s26 }
 0x3dd   :  { %16 = sbr.rel (!%p14_p0) target bundleno = 3 (0x3), region = 144 }
 0x3e0   : > { %s7935_s24 = smov %s7931_s16 }
 0x3e2   :  { %4853 = vsyncmov [#allocation3] }
 0x3e5   :  { %s4854_s20 = vpop.sfrf %4853 }
 0x3e6   :  { %p5842_p1 = scmp.ne.s32.totalorder %s4854_s20, 0 }
 0x3e8   :  { %4858 = shalt.err (%p5842_p1)  }
 0x3e9   :  { %4860 = vsyncmov [#allocation3 + $0x1] }
 0x3ec   :  { %s4861_s10 = vpop.sfrf %4860 }
 0x3ed   :  { %p5843_p2 = scmp.ne.s32.totalorder %s4861_s10, 0 }
 0x3ef   :  { %4865 = shalt.err (%p5843_p2)  }

// kernel: decoder_bottleneck_forward.3
= control target key start
LH: loop header
LB: loop body
LE: loop exit
PB: predicated region body
PF: predicated region fallthrough
CT: control target
= control target key end

     0   :  { %s6476_s21 = smov 0   ;;  %s6478_s22 = smov 0   ;;  %s7946_s0 = inlined_call_operand.vmem [shape: bf16[2,768,128], index: 0, kind: input, shape index: {}]   ;;  %s7947_s1 = inlined_call_operand.vmem [shape: bf16[9,128,128], index: 1, kind: input, shape index: {}]   ;;  %s7948_s2 = inlined_call_operand.vmem [shape: f32[1,128], index: 2, kind: input, shape index: {}]   ;;  %s7949_s3 = inlined_call_operand.vmem [shape: f32[1,128], index: 3, kind: input, shape index: {}]   ;;  %s7950_s4 = inlined_call_operand.vmem [shape: f32[288,1], index: 4, kind: input, shape index: {}]   ;;  %s7951_s5 = inlined_call_operand.vmem [shape: bf16[2,384,128], index: 5, kind: output, shape index: {0}]   ;;  %s7952_s6 = inlined_call_operand.vmem [shape: f32[2,2,2,128], index: 6, kind: output, shape index: {1}]  }
   0x1   :  { %s6480_s23 = smov 0   ;;  %s6482_s24 = smov 0  }
   0x2   :  { %s6484_s25 = smov 0  }
   0x3 LB: > { %s26_s26 = sadd.s32 1, %s6429_s23  ;;  %s29_s27 = sadd.s32 1, %s6433_s24  ;;  %s6437_s25 = sphi %s6484_s25, %s17_s25   ;;  %s6433_s24 = sphi %s6482_s24, %s8008_s24   ;;  %s6429_s23 = sphi %s6480_s23, %s8007_s23   ;;  %s6425_s22 = sphi %s6478_s22, %s8006_s22   ;;  %s6421_s21 = sphi %s6476_s21, %s8005_s21  }
   0x4   : > { %p27_p0 = scmp.ge.s32.totalorder %s26_s26, 2  ;;  %p4986_p1 = scmp.ge.s32.totalorder %s6437_s25, 1 }
   0x5   : > { %p197_p2 = scmp.lt.s32.totalorder %s6437_s25, 5 }
   0x6   : > { %s8010_s26 = smov (%p27_p0, %s26_s26), 0  ;;  %s8012_s27 = smov (!%p27_p0, %s29_s27), %s6433_s24 }
   0x7   : > { %7953 = sst [smem:[#allocation9_spill]] %s8010_s26  ;;  %p198_p3 = pnand %p4986_p1, %p197_p2 }
   0x8   : > { %p31_p4 = scmp.ge.s32.totalorder %s8012_s27, 2 }
   0x9   : > { %201 = sbr.rel (%p198_p3) target bundleno = 987 (0x3db), region = 36 }
   0xa   : > { %s8014_s27 = smov (%p31_p4, %s8012_s27), 0 }
   0xb   : > { %7954 = sst [smem:[#allocation10_spill]] %s8014_s27 }
   0xe   : > { %s232_s28 = smul.u32 24, %s6421_s21  ;;  %p233_p5 = scmp.lt.s32.totalorder %s6425_s22, 1 }
   0xf   : > { %p244_p6 = scmp.lt.s32.totalorder %s6421_s21, 1  ;;  %p250_p7 = scmp.lt.s32.totalorder %s6421_s21, 0 }
  0x10   : > { %s234_s29 = scalar_select %p233_p5, %s6425_s22, 1 }
  0x11   : > { %p235_p8 = scmp.lt.s32.totalorder %s232_s28, 47  ;;  %s251_s30 = ssub.s32 0, %s6421_s21 }
  0x12   : > { %s6347_s7 = smul.u32 48, %s234_s29  ;;  %s4988_s8 = sshll.u32 %s234_s29, 1 }
  0x13   : > { %s8016_s28 = smov (!%p235_p8, %s232_s28), 47  ;;  %s4990_s11 = smin.u32 %s6421_s21, %s251_s30 }
  0x14   : > { %s245_s9 = scalar_select %p244_p6, %s6421_s21, 1 }
  0x15   : > { %s238_s10 = sadd.s32 %s6347_s7, %s8016_s28  ;;  %s253_s27 = sand.u32 1, %s4990_s11  }
  0x16   : > { %s4987_s12 = sshll.u32 %s238_s10, 2  ;;  %s247_s13 = sadd.s32 %s4988_s8, %s245_s9 }
  0x17   : > { %s6521_s16 = scalar_lea.vmem %s7951_s5, %s4987_s12  ;;  %s4989_s17 = sshll.u32 %s247_s13, 1 }
  0x18   : > { %s6526_s20 = scalar_lea.vmem %s7952_s6, %s4989_s17  ;;  %s254_s26 = ssub.s32 0, %s253_s27 }
  0x19   : > { %p262_p9 = scmp.eq.s32.totalorder %s6421_s21, 0  ;;  %s8018_s26 = smov (!%p250_p7, %s254_s26), %s253_s27 }
  0x1a   : > { %p4992_p10 = scmp.lt.s32.totalorder %s8018_s26, 0  ;;  %s260_s28 = sadd.s32 2, %s8018_s26 }
  0x1b   : > { %p4993_p11 = scmp.ne.s32.totalorder %s6421_s21, 0 }
  0x1c   : > { %s8020_s28 = smov (!%p4992_p10, %s260_s28), %s8018_s26  ;;  %s4994_s29 = smul.u32 (!%p4993_p11), 384, %s6425_s22 }
  0x1d   : > { %265 = sbr.rel (%p4993_p11) target bundleno = 54 (0x36), region = 40 }
  0x1e   : > { %s6538_s8 = scalar_lea.vmem (!%p4993_p11), %s7946_s0, %s4994_s29 }
  0x22   : > { %v4995_v0 = vld [vmem:[%s6538_s8 + $0x48] sm:$0xff]  ;;  %v4996_v1 = vld [vmem:[%s6538_s8 + $0x50] sm:$0xff]  ;;  %v4997_v2 = vld [vmem:[%s6538_s8 + $0x58] sm:$0xff] }
  0x23   : > { %281 = vst [vmem:[#allocation2] sm:$0xff] %v4995_v0  ;;  %v4998_v3 = vld [vmem:[%s6538_s8 + $0x60] sm:$0xff]  ;;  %v4999_v4 = vld [vmem:[%s6538_s8 + $0x68] sm:$0xff]  ;;  %v5000_v5 = vld [vmem:[%s6538_s8 + $0x70] sm:$0xff] }
  0x24   : > { %283 = vst [vmem:[#allocation2 + $0x8] sm:$0xff] %v4996_v1  ;;  %v5001_v6 = vld [vmem:[%s6538_s8 + $0x78] sm:$0xff]  ;;  %v5002_v7 = vld [vmem:[%s6538_s8 + $0x80] sm:$0xff]  ;;  %v5003_v8 = vld [vmem:[%s6538_s8 + $0x88] sm:$0xff] }
  0x25   : > { %285 = vst [vmem:[#allocation2 + $0x10] sm:$0xff] %v4997_v2  ;;  %v5004_v9 = vld [vmem:[%s6538_s8 + $0x90] sm:$0xff]  ;;  %v5005_v10 = vld [vmem:[%s6538_s8 + $0x98] sm:$0xff]  ;;  %v5006_v11 = vld [vmem:[%s6538_s8 + $0xa0] sm:$0xff] }
  0x26   : > { %287 = vst [vmem:[#allocation2 + $0x18] sm:$0xff] %v4998_v3  ;;  %v5007_v12 = vld [vmem:[%s6538_s8 + $0xa8] sm:$0xff]  ;;  %v5008_v13 = vld [vmem:[%s6538_s8 + $0xb0] sm:$0xff]  ;;  %v5009_v14 = vld [vmem:[%s6538_s8 + $0xb8] sm:$0xff] }
  0x27   : > { %289 = vst [vmem:[#allocation2 + $0x20] sm:$0xff] %v4999_v4  ;;  %v5010_v15 = vld [vmem:[%s6538_s8 + $0xc0] sm:$0xff]  ;;  %v5011_v16 = vld [vmem:[%s6538_s8 + $0xc8] sm:$0xff]  ;;  %v5012_v17 = vld [vmem:[%s6538_s8 + $0xd0] sm:$0xff] }
  0x28   : > { %291 = vst [vmem:[#allocation2 + $0x28] sm:$0xff] %v5000_v5 }
  0x29   : > { %293 = vst [vmem:[#allocation2 + $0x30] sm:$0xff] %v5001_v6 }
  0x2a   : > { %295 = vst [vmem:[#allocation2 + $0x38] sm:$0xff] %v5002_v7 }
  0x2b   : > { %297 = vst [vmem:[#allocation2 + $0x40] sm:$0xff] %v5003_v8 }
  0x2c   : > { %299 = vst [vmem:[#allocation2 + $0x48] sm:$0xff] %v5004_v9 }
  0x2d   : > { %301 = vst [vmem:[#allocation2 + $0x50] sm:$0xff] %v5005_v10 }
  0x2e   : > { %303 = vst [vmem:[#allocation2 + $0x58] sm:$0xff] %v5006_v11 }
  0x2f   : > { %305 = vst [vmem:[#allocation2 + $0x60] sm:$0xff] %v5007_v12 }
  0x30   : > { %307 = vst [vmem:[#allocation2 + $0x68] sm:$0xff] %v5008_v13 }
  0x31   : > { %309 = vst [vmem:[#allocation2 + $0x70] sm:$0xff] %v5009_v14 }
  0x32   : > { %311 = vst [vmem:[#allocation2 + $0x78] sm:$0xff] %v5010_v15 }
  0x33   : > { %313 = vst [vmem:[#allocation2 + $0x80] sm:$0xff] %v5011_v16 }
  0x34   : > { %315 = vst [vmem:[#allocation2 + $0x88] sm:$0xff] %v5012_v17 }
  0x35   : > { %321 = vsyncadd [#allocation3], 2304 }
  0x36 PF: > { %s322_s26 = sadd.s32 1, %s6421_s21 }
  0x37   : > { %p5013_p12 = scmp.ge.s32.totalorder %s322_s26, 2 }
  0x38   : > { %s327_s27 = ssub.s32 (!%p5013_p12), 1, %s8020_s28  ;;  %s5872_s9 = sshll.u32 (!%p5013_p12), %s6421_s21, 3 }
  0x39   : > { %326 = sbr.rel (%p5013_p12) target bundleno = 86 (0x56), region = 63  ;;  %s5873_s10 = sadd.s32 (!%p5013_p12), 8, %s5872_s9 }
  0x3a   : > { %s333_s11 = smul.u32 (!%p5013_p12), 96, %s6425_s22  ;;  %s329_s12 = sadd.s32 (!%p5013_p12), 6, %s5873_s10 }
  0x3b   : > { %s5874_s13 = smul.u32 (!%p5013_p12), 144, %s327_s27  ;;  %s340_s7 = scalar_lea.sflag (!%p5013_p12), [#allocation3], %s327_s27 }
  0x3c   : > { %s330_s14 = smul.u32 (!%p5013_p12), 24, %s329_s12 }
  0x3d   : > { %s6572_s22 = scalar_lea.vmem (!%p5013_p12), [#allocation2], %s5874_s13 }
  0x3e   : > { %s331_s15 = sshra.s32 %s330_s14, 3 }
  0x3f   : > { %s334_s17 = sadd.s32 %s333_s11, %s331_s15 }
  0x40   : > { %s5015_s18 = sshll.u32 %s334_s17, 2 }
  0x41   : > { %s6567_s30 = scalar_lea.vmem %s7946_s0, %s5015_s18 }
  0x42   : > { %v351_v18 = vld [vmem:[%s6567_s30] sm:$0xff]  ;;  %v353_v19 = vld [vmem:[%s6567_s30 + $0x8] sm:$0xff]  ;;  %v355_v20 = vld [vmem:[%s6567_s30 + $0x10] sm:$0xff] }
  0x43   : > { %352 = vst [vmem:[%s6572_s22] sm:$0xff] %v351_v18  ;;  %v357_v21 = vld [vmem:[%s6567_s30 + $0x18] sm:$0xff]  ;;  %v359_v22 = vld [vmem:[%s6567_s30 + $0x20] sm:$0xff]  ;;  %v361_v23 = vld [vmem:[%s6567_s30 + $0x28] sm:$0xff] }
  0x44   : > { %354 = vst [vmem:[%s6572_s22 + $0x8] sm:$0xff] %v353_v19  ;;  %v363_v24 = vld [vmem:[%s6567_s30 + $0x30] sm:$0xff]  ;;  %v365_v25 = vld [vmem:[%s6567_s30 + $0x38] sm:$0xff]  ;;  %v367_v26 = vld [vmem:[%s6567_s30 + $0x40] sm:$0xff] }
  0x45   : > { %356 = vst [vmem:[%s6572_s22 + $0x10] sm:$0xff] %v355_v20  ;;  %v369_v27 = vld [vmem:[%s6567_s30 + $0x48] sm:$0xff]  ;;  %v371_v28 = vld [vmem:[%s6567_s30 + $0x50] sm:$0xff]  ;;  %v373_v29 = vld [vmem:[%s6567_s30 + $0x58] sm:$0xff] }
  0x46   : > { %358 = vst [vmem:[%s6572_s22 + $0x18] sm:$0xff] %v357_v21  ;;  %v375_v30 = vld [vmem:[%s6567_s30 + $0x60] sm:$0xff]  ;;  %v377_v31 = vld [vmem:[%s6567_s30 + $0x68] sm:$0xff]  ;;  %v379_v32 = vld [vmem:[%s6567_s30 + $0x70] sm:$0xff] }
  0x47   : > { %360 = vst [vmem:[%s6572_s22 + $0x20] sm:$0xff] %v359_v22  ;;  %v381_v33 = vld [vmem:[%s6567_s30 + $0x78] sm:$0xff]  ;;  %v383_v34 = vld [vmem:[%s6567_s30 + $0x80] sm:$0xff]  ;;  %v385_v35 = vld [vmem:[%s6567_s30 + $0x88] sm:$0xff] }
  0x48   : > { %362 = vst [vmem:[%s6572_s22 + $0x28] sm:$0xff] %v361_v23 }
  0x49   : > { %364 = vst [vmem:[%s6572_s22 + $0x30] sm:$0xff] %v363_v24 }
  0x4a   : > { %366 = vst [vmem:[%s6572_s22 + $0x38] sm:$0xff] %v365_v25 }
  0x4b   : > { %368 = vst [vmem:[%s6572_s22 + $0x40] sm:$0xff] %v367_v26 }
  0x4c   : > { %370 = vst [vmem:[%s6572_s22 + $0x48] sm:$0xff] %v369_v27 }
  0x4d   : > { %372 = vst [vmem:[%s6572_s22 + $0x50] sm:$0xff] %v371_v28 }
  0x4e   : > { %374 = vst [vmem:[%s6572_s22 + $0x58] sm:$0xff] %v373_v29 }
  0x4f   : > { %376 = vst [vmem:[%s6572_s22 + $0x60] sm:$0xff] %v375_v30 }
  0x50   : > { %378 = vst [vmem:[%s6572_s22 + $0x68] sm:$0xff] %v377_v31 }
  0x51   : > { %380 = vst [vmem:[%s6572_s22 + $0x70] sm:$0xff] %v379_v32 }
  0x52   : > { %382 = vst [vmem:[%s6572_s22 + $0x78] sm:$0xff] %v381_v33 }
  0x53   : > { %384 = vst [vmem:[%s6572_s22 + $0x80] sm:$0xff] %v383_v34 }
  0x54   : > { %386 = vst [vmem:[%s6572_s22 + $0x88] sm:$0xff] %v385_v35 }
  0x55   : > { %392 = vsyncadd %s340_s7, 2304 }
  0x56 PF: > { %s5875_s8 = smul.u32 144, %s8020_s28  ;;  %s396_s9 = scalar_lea.sflag [#allocation3], %s8020_s28 }
  0x58   : > { %s6610_s26 = scalar_lea.vmem [#allocation2], %s5875_s8 }
  0x59   : > { %6417 = dma.done.wait %s396_s9, 2304 }
  0x5a   : > { %6418 = vsyncadd %s396_s9, 4294964992  ;;  %v589_v36 = vlaneseq  ;;  %s626_s10 = scalar_select %p262_p9, 48, 0  ;;  %v6439_v37 = vmov 0   ;;  %v6633_v44 = vld [vmem:[%s7950_s4 + $0xa0] sm:$0xff]  ;;  %v6640_v45 = vld [vmem:[%s7950_s4 + $0x90] sm:$0xff] }
  0x5b   : > { %6392 = vset.pattern.permute.xlu2 %v6439_v37  ;;  %6391 = vset.pattern.permute.xlu1 %v6439_v37  ;;  %p627_p13 = scmp.eq.s32.totalorder %s6421_s21, 1  ;;  %v6645_v46 = vld [vmem:[%s7950_s4 + $0x10] sm:$0xff]  ;;  %vm796_vm5 = vcmp.ne.f32.partialorder %v6633_v44, 0.0  ;;  %vm794_vm6 = vcmp.ne.f32.partialorder %v6640_v45, 0.0  ;;  %v6655_v48 = vld [vmem:[%s7950_s4 + $0xa8] sm:$0xff]  ;;  %v6665_v51 = vld [vmem:[%s7950_s4 + $0x98] sm:$0xff] }
  0x5c   : > { %6390 = vset.pattern.permute.xlu0 %v6439_v37  ;;  %v6619_v38 = vshrl.u32 %v589_v36, 7  ;;  %v6621_v39 = vstv %s626_s10  ;;  %vm778_vm11 = vcmp.ne.f32.partialorder %v6645_v46, 0.0  ;;  %v6675_v54 = vld [vmem:[%s7950_s4 + $0x18] sm:$0xff]  ;;  %v6685_v57 = vld [vmem:[%s7950_s4 + $0x28] sm:$0xff]  ;;  %v6695_v60 = vld [vmem:[%s7950_s4 + $0x20] sm:$0xff] }
  0x5d   : > { %s628_s27 = scalar_select %p627_p13, 48, 0  ;;  %v6705_v63 = vld [vmem:[%s7950_s4 + $0xb0] sm:$0xff]  ;;  %v6728_v6 = vld [vmem:[%s7950_s4 + $0xb8] sm:$0xff]  ;;  %v6767_v17 = vld [vmem:[%s7950_s4 + $0x80] sm:$0xff] }
  0x5e   : > { %v610_v40 = vadd.s32 160, %v6619_v38  ;;  %v608_v41 = vadd.s32 144, %v6619_v38  ;;  %v592_v42 = vadd.s32 16, %v6619_v38  ;;  %v611_v47 = vadd.s32 168, %v6619_v38  ;;  %v6719_v3 = vld [vmem:[%s7950_s4 + $0x30] sm:$0xff]  ;;  %v6737_v8 = vld [vmem:[%s7950_s4 + $0x38] sm:$0xff] }
  0x5f   : > { %s629_s28 = ssub.s32 288, %s628_s27  ;;  %v609_v49 = vadd.s32 152, %v6619_v38  ;;  %v593_v52 = vadd.s32 24, %v6619_v38  ;;  %v595_v55 = vadd.s32 40, %v6619_v38  ;;  %v594_v58 = vadd.s32 32, %v6619_v38  ;;  %v6749_v12 = vld [vmem:[%s7950_s4 + $0x78] sm:$0xff] }
  0x60   : > { %vm651_vm0 = vcmp.ge.s32.totalorder %v610_v40, %v6621_v39  ;;  %v6627_v43 = vstv %s629_s28  ;;  %vm649_vm2 = vcmp.ge.s32.totalorder %v608_v41, %v6621_v39  ;;  %vm633_vm8 = vcmp.ge.s32.totalorder %v592_v42, %v6621_v39  ;;  %v6758_v15 = vld [vmem:[%s7950_s4 + $0x70] sm:$0xff]  ;;  %v764_v21 = vld [vmem:[%s7950_s4 + $0xc0] sm:$0xff]  ;;  %v6786_v24 = vld [vmem:[%s7950_s4 + $0x88] sm:$0xff] }
  0x61   : > { %vm688_vm1 = vcmp.lt.s32.totalorder %v610_v40, %v6627_v43  ;;  %vm686_vm3 = vcmp.lt.s32.totalorder %v608_v41, %v6627_v43  ;;  %vm670_vm9 = vcmp.lt.s32.totalorder %v592_v42, %v6627_v43  ;;  %vm652_vm13 = vcmp.ge.s32.totalorder %v611_v47, %v6621_v39  ;;  %v765_v26 = vld [vmem:[%s7950_s4 + $0xc8] sm:$0xff]  ;;  %v6803_v30 = vld [vmem:[%s7950_s4 + $0x58] sm:$0xff]  ;;  %v6812_v33 = vld [vmem:[%s7950_s4 + $0x50] sm:$0xff] }
  0x62   : > { %vm724_vm4 = vmand %vm651_vm0, %vm688_vm1  ;;  %vm689_vm14 = vcmp.lt.s32.totalorder %v611_v47, %v6627_v43  ;;  %vm797_vm0 = vcmp.ne.f32.partialorder %v6655_v48, 0.0  ;;  %v612_v61 = vadd.s32 176, %v6619_v38  ;;  %v596_v0 = vadd.s32 48, %v6619_v38  ;;  %v6821_v35 = vld [vmem:[%s7950_s4 + $0x60] sm:$0xff] }
  0x63   : > { %vm832_vm7 = vmand %vm724_vm4, %vm796_vm5  ;;  %vm795_vm5 = vcmp.ne.f32.partialorder %v6665_v51, 0.0  ;;  %v613_v2 = vadd.s32 184, %v6619_v38  ;;  %v597_v4 = vadd.s32 56, %v6619_v38  ;;  %v605_v9 = vadd.s32 120, %v6619_v38  ;;  %v6833_v42 = vld [vmem:[%s7950_s4 + $0x40] sm:$0xff] }
  0x64   : > { %v868_v50 = vsel %vm832_vm7, 1, %v6439_v37  ;;  %vm722_vm10 = vmand %vm649_vm2, %vm686_vm3  ;;  %vm650_vm2 = vcmp.ge.s32.totalorder %v609_v49, %v6621_v39  ;;  %vm687_vm3 = vcmp.lt.s32.totalorder %v609_v49, %v6627_v43  ;;  %vm634_vm7 = vcmp.ge.s32.totalorder %v593_v52, %v6621_v39 }
  0x65   : > { %945 = vperm.xlu1 %6391, %v868_v50   ;;  %vm830_vm12 = vmand %vm722_vm10, %vm794_vm6  ;;  %vm779_vm10 = vcmp.ne.f32.partialorder %v6675_v54, 0.0  ;;  %v604_v11 = vadd.s32 112, %v6619_v38  ;;  %v606_v13 = vadd.s32 128, %v6619_v38  ;;  %v614_v18 = vadd.s32 192, %v6619_v38  ;;  %v6842_v50 = vld [vmem:[%s7950_s4 + $0x68] sm:$0xff] }
  0x66   : > { %v866_v53 = vsel %vm830_vm12, 1, %v6439_v37  ;;  %vm706_vm15 = vmand %vm633_vm8, %vm670_vm9  ;;  %vm671_vm8 = vcmp.lt.s32.totalorder %v593_v52, %v6627_v43  ;;  %vm636_vm12 = vcmp.ge.s32.totalorder %v595_v55, %v6621_v39  ;;  %v607_v20 = vadd.s32 136, %v6619_v38 }
  0x67   : > { %939 = vperm.xlu0 %6390, %v866_v53   ;;  %vm814_vm1 = vmand %vm706_vm15, %vm778_vm11  ;;  %vm781_vm15 = vcmp.ne.f32.partialorder %v6685_v57, 0.0  ;;  %v615_v22 = vadd.s32 200, %v6619_v38  ;;  %v601_v27 = vadd.s32 88, %v6619_v38  ;;  %v600_v29 = vadd.s32 80, %v6619_v38  ;;  %v6851_v53 = vld [vmem:[%s7950_s4 + $0x48] sm:$0xff] }
  0x68   : > { %v850_v56 = vsel %vm814_vm1, 1, %v6439_v37  ;;  %vm725_vm4 = vmand %vm652_vm13, %vm689_vm14  ;;  %vm673_vm13 = vcmp.lt.s32.totalorder %v595_v55, %v6627_v43  ;;  %vm635_vm1 = vcmp.ge.s32.totalorder %v594_v58, %v6621_v39  ;;  %v602_v31 = vadd.s32 96, %v6619_v38 }
  0x69   : > { %891 = vperm.xlu2 %6392, %v850_v56   ;;  %vm833_vm6 = vmand %vm725_vm4, %vm797_vm0  ;;  %vm780_vm4 = vcmp.ne.f32.partialorder %v6695_v60, 0.0  ;;  %v598_v36 = vadd.s32 64, %v6619_v38  ;;  %v603_v41 = vadd.s32 104, %v6619_v38  ;;  %v599_v47 = vadd.s32 72, %v6619_v38 }
  0x6a   : > { %v869_v59 = vsel %vm833_vm6, 1, %v6439_v37  ;;  %vm723_vm9 = vmand %vm650_vm2, %vm687_vm3  ;;  %vm672_vm2 = vcmp.lt.s32.totalorder %v594_v58, %v6627_v43  ;;  %vm653_vm6 = vcmp.ge.s32.totalorder %v612_v61, %v6621_v39  ;;  %v617_v55 = vadd.s32 216, %v6619_v38 }
  0x6b   : > { %vm831_vm11 = vmand %vm723_vm9, %vm795_vm5  ;;  %vm798_vm9 = vcmp.ne.f32.partialorder %v6705_v63, 0.0  ;;  %v616_v58 = vadd.s32 208, %v6619_v38 }
  0x6c   : > { %v867_v62 = vsel %vm831_vm11, 1, %v6439_v37  ;;  %vm707_vm14 = vmand %vm634_vm7, %vm671_vm8  ;;  %vm690_vm7 = vcmp.lt.s32.totalorder %v612_v61, %v6627_v43  ;;  %vm637_vm11 = vcmp.ge.s32.totalorder %v596_v0, %v6621_v39  ;;  %v618_v61 = vadd.s32 224, %v6619_v38 }
  0x6d   : > { %948 = vperm.xlu1 %6391, %v869_v59   ;;  %vm815_vm0 = vmand %vm707_vm14, %vm779_vm10  ;;  %vm674_vm14 = vcmp.lt.s32.totalorder %v596_v0, %v6627_v43  ;;  %v767_v59 = vld [vmem:[%s7950_s4 + $0xd8] sm:$0xff]  ;;  %v766_v0 = vld [vmem:[%s7950_s4 + $0xd0] sm:$0xff] }
  0x6e   : > { %v851_v1 = vsel %vm815_vm0, 1, %v6439_v37  ;;  %vm709_vm3 = vmand %vm636_vm12, %vm673_vm13  ;;  %vm691_vm0 = vcmp.lt.s32.totalorder %v613_v2, %v6627_v43 }
  0x6f   : > { %942 = vperm.xlu0 %6390, %v867_v62   ;;  %vm817_vm5 = vmand %vm709_vm3, %vm781_vm15  ;;  %vm654_vm15 = vcmp.ge.s32.totalorder %v613_v2, %v6621_v39  ;;  %vm638_vm3 = vcmp.ge.s32.totalorder %v597_v4, %v6621_v39  ;;  %v768_v2 = vld [vmem:[%s7950_s4 + $0xe0] sm:$0xff] }
  0x70   : > { %vm708_vm8 = vmand %vm635_vm1, %vm672_vm2  ;;  %v853_v5 = vsel %vm817_vm5, 1, %v6439_v37  ;;  %vm782_vm2 = vcmp.ne.f32.partialorder %v6719_v3, 0.0 }
  0x71   : > { %894 = vperm.xlu2 %6392, %v851_v1   ;;  %vm816_vm10 = vmand %vm708_vm8, %vm780_vm4  ;;  %vm675_vm4 = vcmp.lt.s32.totalorder %v597_v4, %v6627_v43  ;;  %v620_v4 = vadd.s32 240, %v6619_v38 }
  0x72   : > { %vm726_vm12 = vmand %vm653_vm6, %vm690_vm7  ;;  %v852_v7 = vsel %vm816_vm10, 1, %v6439_v37  ;;  %vm799_vm6 = vcmp.ne.f32.partialorder %v6728_v6, 0.0 }
  0x73   : > { %vm834_vm13 = vmand %vm726_vm12, %vm798_vm9  ;;  %vm783_vm9 = vcmp.ne.f32.partialorder %v6737_v8, 0.0 }
  0x74   : > { %vm710_vm1 = vmand %vm637_vm11, %vm674_vm14  ;;  %v870_v10 = vsel %vm834_vm13, 1, %v6439_v37  ;;  %vm646_vm11 = vcmp.ge.s32.totalorder %v605_v9, %v6621_v39  ;;  %vm683_vm14 = vcmp.lt.s32.totalorder %v605_v9, %v6627_v43  ;;  %vm645_vm13 = vcmp.ge.s32.totalorder %v604_v11, %v6621_v39  ;;  %v770_v9 = vld [vmem:[%s7950_s4 + $0xf0] sm:$0xff] }
  0x75   : > { %900 = vperm.xlu1 %6391, %v853_v5   ;;  %vm727_vm5 = vmand %vm654_vm15, %vm691_vm0  ;;  %vm682_vm15 = vcmp.lt.s32.totalorder %v604_v11, %v6627_v43 }
  0x76   : > { %vm818_vm7 = vmand %vm710_vm1, %vm782_vm2  ;;  %vm791_vm1 = vcmp.ne.f32.partialorder %v6749_v12, 0.0  ;;  %vm647_vm2 = vcmp.ge.s32.totalorder %v606_v13, %v6621_v39 }
  0x77   : > { %897 = vperm.xlu0 %6390, %v852_v7   ;;  %vm711_vm8 = vmand %vm638_vm3, %vm675_vm4  ;;  %v854_v14 = vsel %vm818_vm7, 1, %v6439_v37  ;;  %vm684_vm3 = vcmp.lt.s32.totalorder %v606_v13, %v6627_v43  ;;  %v619_v7 = vadd.s32 232, %v6619_v38  ;;  %v769_v13 = vld [vmem:[%s7950_s4 + $0xe8] sm:$0xff] }
  0x78   : > { %vm835_vm10 = vmand %vm727_vm5, %vm799_vm6  ;;  %vm790_vm5 = vcmp.ne.f32.partialorder %v6758_v15, 0.0 }
  0x79   : > { %951 = vperm.xlu2 %6392, %v870_v10   ;;  %vm819_vm12 = vmand %vm711_vm8, %vm783_vm9  ;;  %v871_v16 = vsel %vm835_vm10, 1, %v6439_v37  ;;  %vm792_vm8 = vcmp.ne.f32.partialorder %v6767_v17, 0.0  ;;  %vm655_vm10 = vcmp.ge.s32.totalorder %v614_v18, %v6621_v39  ;;  %v621_v10 = vadd.s32 248, %v6619_v38 }
  0x7a   : > { %vm719_vm0 = vmand %vm646_vm11, %vm683_vm14  ;;  %v855_v19 = vsel %vm819_vm12, 1, %v6439_v37  ;;  %vm692_vm11 = vcmp.lt.s32.totalorder %v614_v18, %v6627_v43  ;;  %vm648_vm12 = vcmp.ge.s32.totalorder %v607_v20, %v6621_v39  ;;  %v623_v18 = vadd.s32 264, %v6619_v38 }
  0x7b   : > { %vm718_vm4 = vmand %vm645_vm13, %vm682_vm15  ;;  %vm685_vm13 = vcmp.lt.s32.totalorder %v607_v20, %v6627_v43  ;;  %v622_v20 = vadd.s32 256, %v6619_v38 }
  0x7c   : > { %vm827_vm6 = vmand %vm719_vm0, %vm791_vm1  ;;  %vm800_vm0 = vcmp.ne.f32.partialorder %v764_v21, 0.0  ;;  %vm656_vm1 = vcmp.ge.s32.totalorder %v615_v22, %v6621_v39  ;;  %v773_v21 = vld [vmem:[%s7950_s4 + $0x108] sm:$0xff] }
  0x7d   : > { %903 = vperm.xlu1 %6391, %v854_v14   ;;  %vm720_vm7 = vmand %vm647_vm2, %vm684_vm3  ;;  %v863_v23 = vsel %vm827_vm6, 1, %v6439_v37  ;;  %vm693_vm2 = vcmp.lt.s32.totalorder %v615_v22, %v6627_v43 }
  0x7e   : > { %vm826_vm9 = vmand %vm718_vm4, %vm790_vm5  ;;  %vm793_vm4 = vcmp.ne.f32.partialorder %v6786_v24, 0.0 }
  0x7f   : > { %954 = vperm.xlu0 %6390, %v871_v16   ;;  %vm828_vm14 = vmand %vm720_vm7, %vm792_vm8  ;;  %v862_v25 = vsel %vm826_vm9, 1, %v6439_v37  ;;  %vm801_vm7 = vcmp.ne.f32.partialorder %v765_v26, 0.0  ;;  %vm642_vm9 = vcmp.ge.s32.totalorder %v601_v27, %v6621_v39  ;;  %v771_v16 = vld [vmem:[%s7950_s4 + $0xf8] sm:$0xff] }
  0x80   : > { %vm728_vm15 = vmand %vm655_vm10, %vm692_vm11  ;;  %v864_v28 = vsel %vm828_vm14, 1, %v6439_v37  ;;  %vm679_vm10 = vcmp.lt.s32.totalorder %v601_v27, %v6627_v43  ;;  %vm641_vm14 = vcmp.ge.s32.totalorder %v600_v29, %v6621_v39 }
  0x81   : > { %906 = vperm.xlu2 %6392, %v855_v19   ;;  %vm721_vm3 = vmand %vm648_vm12, %vm685_vm13  ;;  %vm678_vm12 = vcmp.lt.s32.totalorder %v600_v29, %v6627_v43  ;;  %v5895_v29 = vld [vmem:[%s7947_s1 + $0x38] sm:$0xff] }
  0x82   : > { %vm836_vm5 = vmand %vm728_vm15, %vm800_vm0  ;;  %vm787_vm15 = vcmp.ne.f32.partialorder %v6803_v30, 0.0  ;;  %vm643_vm0 = vcmp.ge.s32.totalorder %v602_v31, %v6621_v39  ;;  %6325 = vmatpush.bf16.msra.mxu3 %v5895_v29  ;;  %1417 = vmatpush.bf16.msra.mxu0 %v5895_v29 }
  0x83   : > { %vm729_vm6 = vmand %vm656_vm1, %vm693_vm2  ;;  %v872_v32 = vsel %vm836_vm5, 1, %v6439_v37  ;;  %vm680_vm1 = vcmp.lt.s32.totalorder %v602_v31, %v6627_v43  ;;  %v6278_v31 = vld [vmem:[%s6610_s26 + $0x8] sm:$0xff]   ;;  %6324 = vmatpush.bf16.msra.mxu2 %v5895_v29  ;;  %6323 = vmatpush.bf16.msra.mxu1 %v5895_v29 }
  0x84   : > { %vm829_vm8 = vmand %vm721_vm3, %vm793_vm4  ;;  %vm786_vm3 = vcmp.ne.f32.partialorder %v6812_v33, 0.0 }
  0x85   : > { %930 = vperm.xlu1 %6391, %v863_v23   ;;  %vm837_vm11 = vmand %vm729_vm6, %vm801_vm7  ;;  %v865_v34 = vsel %vm829_vm8, 1, %v6439_v37  ;;  %vm788_vm6 = vcmp.ne.f32.partialorder %v6821_v35, 0.0  ;;  %vm639_vm8 = vcmp.ge.s32.totalorder %v598_v36, %v6621_v39  ;;  %v772_v23 = vld [vmem:[%s7950_s4 + $0x100] sm:$0xff] }
  0x86   : > { %vm715_vm13 = vmand %vm642_vm9, %vm679_vm10  ;;  %v873_v40 = vsel %vm837_vm11, 1, %v6439_v37  ;;  %vm676_vm9 = vcmp.lt.s32.totalorder %v598_v36, %v6627_v43  ;;  %vm644_vm11 = vcmp.ge.s32.totalorder %v603_v41, %v6621_v39  ;;  %v6927_v36 = vld [vmem:[%s7948_s2] ss:$0 sm:$0xff] }
  0x87   : > { %927 = vperm.xlu0 %6390, %v862_v25   ;;  %vm714_vm2 = vmand %vm641_vm14, %vm678_vm12  ;;  %vm681_vm14 = vcmp.lt.s32.totalorder %v603_v41, %v6627_v43  ;;  %v5893_v41 = vld [vmem:[%s7947_s1 + $0x28] sm:$0xff] }
  0x88   : > { %vm823_vm4 = vmand %vm715_vm13, %vm787_vm15  ;;  %vm784_vm13 = vcmp.ne.f32.partialorder %v6833_v42, 0.0  ;;  %vm640_vm15 = vcmp.ge.s32.totalorder %v599_v47, %v6621_v39 }
  0x89   : > { %933 = vperm.xlu2 %6392, %v864_v28   ;;  %vm716_vm5 = vmand %vm643_vm0, %vm680_vm1  ;;  %v859_v49 = vsel %vm823_vm4, 1, %v6439_v37  ;;  %vm677_vm0 = vcmp.lt.s32.totalorder %v599_v47, %v6627_v43  ;;  %v6938_v47 = vld [vmem:[%s7949_s3] ss:$0 sm:$0xff] }
  0x8a   : > { %vm822_vm7 = vmand %vm714_vm2, %vm786_vm3  ;;  %vm789_vm2 = vcmp.ne.f32.partialorder %v6842_v50, 0.0 }
  0x8b   : > { %vm824_vm10 = vmand %vm716_vm5, %vm788_vm6  ;;  %v858_v52 = vsel %vm822_vm7, 1, %v6439_v37  ;;  %vm785_vm5 = vcmp.ne.f32.partialorder %v6851_v53, 0.0  ;;  %vm658_vm7 = vcmp.ge.s32.totalorder %v617_v55, %v6621_v39 }
  0x8c   : > { %vm712_vm12 = vmand %vm639_vm8, %vm676_vm9  ;;  %v860_v56 = vsel %vm824_vm10, 1, %v6439_v37  ;;  %vm695_vm8 = vcmp.lt.s32.totalorder %v617_v55, %v6627_v43  ;;  %vm657_vm10 = vcmp.ge.s32.totalorder %v616_v58, %v6621_v39 }
  0x8d   : > { %957 = vperm.xlu1 %6391, %v872_v32   ;;  %vm717_vm1 = vmand %vm644_vm11, %vm681_vm14  ;;  %vm694_vm11 = vcmp.lt.s32.totalorder %v616_v58, %v6627_v43  ;;  %v6062_v32 = vunpack.c.l.bf16 %v6278_v31 }
  0x8e   : > { %vm820_vm3 = vmand %vm712_vm12, %vm784_vm13  ;;  %vm803_vm12 = vcmp.ne.f32.partialorder %v767_v59, 0.0  ;;  %vm659_vm13 = vcmp.ge.s32.totalorder %v618_v61, %v6621_v39 }
  0x8f   : > { %936 = vperm.xlu0 %6390, %v865_v34   ;;  %vm713_vm4 = vmand %vm640_vm15, %vm677_vm0  ;;  %v856_v62 = vsel %vm820_vm3, 1, %v6439_v37  ;;  %vm696_vm15 = vcmp.lt.s32.totalorder %v618_v61, %v6627_v43  ;;  %v5894_v34 = vld [vmem:[%s7947_s1 + $0x30] sm:$0xff] }
  0x90   : > { %vm825_vm6 = vmand %vm717_vm1, %vm789_vm2  ;;  %vm802_vm1 = vcmp.ne.f32.partialorder %v766_v0, 0.0  ;;  %6328 = vmatpush.bf16.msra.mxu3 %v5894_v34  ;;  %1418 = vmatpush.bf16.msra.mxu0 %v5894_v34  ;;  %v5889_v0 = vld [vmem:[%s7947_s1 + $0x8] sm:$0xff] }
  0x91   : > { %960 = vperm.xlu2 %6392, %v873_v40   ;;  %vm821_vm9 = vmand %vm713_vm4, %vm785_vm5  ;;  %v861_v1 = vsel %vm825_vm6, 1, %v6439_v37  ;;  %vm804_vm4 = vcmp.ne.f32.partialorder %v768_v2, 0.0  ;;  %vm661_vm6 = vcmp.ge.s32.totalorder %v620_v4, %v6621_v39  ;;  %v6063_v40 = vunpack.c.h.bf16 %v6278_v31  ;;  %6327 = vmatpush.bf16.msra.mxu2 %v5894_v34 }
  0x92   : > { %vm731_vm14 = vmand %vm658_vm7, %vm695_vm8  ;;  %v857_v5 = vsel %vm821_vm9, 1, %v6439_v37  ;;  %vm698_vm7 = vcmp.lt.s32.totalorder %v620_v4, %v6627_v43  ;;  %vm660_vm9 = vcmp.ge.s32.totalorder %v619_v7, %v6621_v39  ;;  %6326 = vmatpush.bf16.msra.mxu1 %v5894_v34 }
  0x93   : > { %vm730_vm0 = vmand %vm657_vm10, %vm694_vm11  ;;  %vm697_vm10 = vcmp.lt.s32.totalorder %v619_v7, %v6627_v43 }
  0x94   : > { %vm839_vm2 = vmand %vm731_vm14, %vm803_vm12  ;;  %vm806_vm14 = vcmp.ne.f32.partialorder %v770_v9, 0.0  ;;  %vm662_vm12 = vcmp.ge.s32.totalorder %v621_v10, %v6621_v39  ;;  %6331 = vmatpush.bf16.msra.mxu3 %v5893_v41  ;;  %1419 = vmatpush.bf16.msra.mxu0 %v5893_v41  ;;  %v5888_v9 = vld [vmem:[%s7947_s1] sm:$0xff] }
  0x95   : > { %918 = vperm.xlu1 %6391, %v859_v49   ;;  %vm732_vm3 = vmand %vm659_vm13, %vm696_vm15  ;;  %v875_v11 = vsel %vm839_vm2, 1, %v6439_v37  ;;  %vm699_vm13 = vcmp.lt.s32.totalorder %v621_v10, %v6627_v43  ;;  %v480_v49 = vmul.f32 %v6927_v36, %v6063_v40  ;;  %6330 = vmatpush.bf16.msra.mxu2 %v5893_v41 }
  0x96   : > { %vm838_vm5 = vmand %vm730_vm0, %vm802_vm1  ;;  %vm805_vm0 = vcmp.ne.f32.partialorder %v769_v13, 0.0  ;;  %6329 = vmatpush.bf16.msra.mxu1 %v5893_v41  ;;  %v6279_v13 = vld [vmem:[%s6610_s26 + $0x10] sm:$0xff]  }
  0x97   : > { %915 = vperm.xlu0 %6390, %v858_v52   ;;  %vm840_vm8 = vmand %vm732_vm3, %vm804_vm4  ;;  %v874_v14 = vsel %vm838_vm5, 1, %v6439_v37  ;;  %vm807_vm3 = vcmp.ne.f32.partialorder %v771_v16, 0.0  ;;  %vm664_vm5 = vcmp.ge.s32.totalorder %v623_v18, %v6621_v39  ;;  %v5892_v52 = vld [vmem:[%s7947_s1 + $0x20] sm:$0xff] }
  0x98   : > { %vm734_vm11 = vmand %vm661_vm6, %vm698_vm7  ;;  %v876_v19 = vsel %vm840_vm8, 1, %v6439_v37  ;;  %vm701_vm6 = vcmp.lt.s32.totalorder %v623_v18, %v6627_v43  ;;  %vm663_vm8 = vcmp.ge.s32.totalorder %v622_v20, %v6621_v39  ;;  %6334 = vmatpush.bf16.msra.mxu3 %v5892_v52  ;;  %1420 = vmatpush.bf16.msra.mxu0 %v5892_v52 }
  0x99   : > { %921 = vperm.xlu2 %6392, %v860_v56   ;;  %vm733_vm15 = vmand %vm660_vm9, %vm697_vm10  ;;  %vm700_vm9 = vcmp.lt.s32.totalorder %v622_v20, %v6627_v43  ;;  %6333 = vmatpush.bf16.msra.mxu2 %v5892_v52  ;;  %v5891_v56 = vld [vmem:[%s7947_s1 + $0x18] sm:$0xff] }
  0x9a   : > { %vm842_vm1 = vmand %vm734_vm11, %vm806_vm14  ;;  %vm809_vm11 = vcmp.ne.f32.partialorder %v773_v21, 0.0  ;;  %6332 = vmatpush.bf16.msra.mxu1 %v5892_v52 }
  0x9b   : > { %vm735_vm2 = vmand %vm662_vm12, %vm699_vm13  ;;  %v878_v22 = vsel %vm842_vm1, 1, %v6439_v37  ;;  %vm808_vm12 = vcmp.ne.f32.partialorder %v772_v23, 0.0 }
  0x9c   : > { %vm841_vm4 = vmand %vm733_vm15, %vm805_vm0  ;;  %6337 = vmatpush.bf16.msra.mxu3 %v5891_v56  ;;  %1421 = vmatpush.bf16.msra.mxu0 %v5891_v56 }
  0x9d   : > { %909 = vperm.xlu1 %6391, %v856_v62   ;;  %vm843_vm7 = vmand %vm735_vm2, %vm807_vm3  ;;  %v877_v25 = vsel %vm841_vm4, 1, %v6439_v37  ;;  %6336 = vmatpush.bf16.msra.mxu2 %v5891_v56 }
  0x9e   : > { %vm737_vm10 = vmand %vm664_vm5, %vm701_vm6  ;;  %v879_v26 = vsel %vm843_vm7, 1, %v6439_v37  ;;  %6335 = vmatpush.bf16.msra.mxu1 %v5891_v56 }
  0x9f   : > { %924 = vperm.xlu0 %6390, %v861_v1   ;;  %vm736_vm14 = vmand %vm663_vm8, %vm700_vm9  ;;  %v6286_v1 = vld [vmem:[%s6610_s26 + $0x48] sm:$0xff]  }
  0xa0   : > { %vm845_vm13 = vmand %vm737_vm10, %vm809_vm11  ;;  %v6094_v7 = vunpack.c.l.bf16 %v6286_v1  ;;  %vm631_vm10 = vcmp.ge.s32.totalorder %v6619_v38, %v6621_v39  ;;  %vm668_vm11 = vcmp.lt.s32.totalorder %v6619_v38, %v6627_v43 }
  0xa1   : > { %912 = vperm.xlu2 %6392, %v857_v5   ;;  %vm844_vm15 = vmand %vm736_vm14, %vm808_vm12  ;;  %v881_v27 = vsel %vm845_vm13, 1, %v6439_v37  ;;  %v6288_v5 = vld [vmem:[%s6610_s26 + $0x58] sm:$0xff]   ;;  %vm1240_vm12 = vsmask.f32 4352 }
  0xa2   : > { %v880_v28 = vsel %vm844_vm15, 1, %v6439_v37  ;;  %v495_v16 = vmul.f32 %v6927_v36, %v6094_v7  ;;  %v6103_v40 = vunpack.c.h.bf16 %v6288_v5  ;;  %vm7061_vm13 = vmand %vm631_vm10, %vm668_vm11 }
  0xa5   : > { %966 = vperm.xlu1 %6391, %v875_v11   ;;  %v6102_v11 = vunpack.c.l.bf16 %v6288_v5 }
  0xa7   : > { %963 = vperm.xlu0 %6390, %v874_v14   ;;  %v499_v23 = vmul.f32 %v6927_v36, %v6102_v11 }
  0xa9   : > { %969 = vperm.xlu2 %6392, %v876_v19   ;;  %v6280_v19 = vld [vmem:[%s6610_s26 + $0x18] sm:$0xff]  }
  0xaa   : > { %v6070_v29 = vunpack.c.l.bf16 %v6280_v19 }
  0xad   : > { %975 = vperm.xlu1 %6391, %v878_v22   ;;  %v6067_v22 = vunpack.c.h.bf16 %v6279_v13 }
  0xaf   : > { %972 = vperm.xlu0 %6390, %v877_v25   ;;  %v482_v34 = vmul.f32 %v6927_v36, %v6067_v22 }
  0xb1   : > { %978 = vperm.xlu2 %6392, %v879_v26   ;;  %v6071_v26 = vunpack.c.h.bf16 %v6280_v19 }
  0xb5   : > { %984 = vperm.xlu1 %6391, %v881_v27  }
  0xb7   : > { %981 = vperm.xlu0 %6390, %v880_v28   ;;  %v6066_v28 = vunpack.c.l.bf16 %v6279_v13 }
  0xb9   : > { %4604 = vperm.xlu2 %6392, %v6749_v12   ;;  %v479_v12 = vmul.f32 %v6927_v36, %v6062_v32  ;;  %v6987_v32 = vld [vmem:[%s6610_s26 + $0x40] sm:$0xff]   ;;  %v481_v52 = vmul.f32 %v6927_v36, %v6066_v28 }
  0xbd   : > { %4594 = vperm.xlu1 %6391, %v6842_v50   ;;  %v519_v50 = vadd.f32 %v6938_v47, %v479_v12  ;;  %v539_v12 = vadd.f32 %v6938_v47, %v499_v23 }
  0xbf   : > { %4599 = vperm.xlu0 %6390, %v6758_v15   ;;  %v555_v55 = vmax.f32 %v519_v50, 0.0 }
  0xc1   : > { %4589 = vperm.xlu2 %6392, %v6821_v35   ;;  %v520_v35 = vadd.f32 %v6938_v47, %v480_v49  ;;  %v484_v49 = vmul.f32 %v6927_v36, %v6071_v26 }
  0xc3   : > { %v892_v15 = vpop.permute.xlu2 %891  ;;  %v556_v58 = vmax.f32 %v520_v35, 0.0  ;;  %v6090_v35 = vunpack.c.l.bf16 %v6987_v32 }
  0xc4   : > { %vm994_vm0 = vcmp.eq.s32.totalorder %v892_v15, 1 }
  0xc5   : > { %4579 = vperm.xlu1 %6391, %v6812_v33   ;;  %v1030_v33 = vsel %vm994_vm0, %v555_v55, 0.0  ;;  %v483_v55 = vmul.f32 %v6927_v36, %v6070_v29  ;;  %v493_v5 = vmul.f32 %v6927_v36, %v6090_v35  ;;  %v4503_v29 = vld [vmem:[%s7950_s4] sm:$0xff] }
  0xc6   : > { %vm776_vm14 = vcmp.ne.f32.partialorder %v4503_v29, 0.0 }
  0xc7   : > { %4584 = vperm.xlu0 %6390, %v6803_v30   ;;  %v5890_v30 = vld [vmem:[%s7947_s1 + $0x10] sm:$0xff]  ;;  %v7010_v7 = vadd.f32 %v6938_v47, %v483_v55  ;;  %v7020_v19 = vadd.f32 %v6938_v47, %v493_v5  ;;  %v625_v55 = vadd.s32 280, %v6619_v38 }
  0xc8   : > { %6340 = vmatpush.bf16.msra.mxu3 %v5890_v30  ;;  %1422 = vmatpush.bf16.msra.mxu0 %v5890_v30 }
  0xc9   : > { %4574 = vperm.xlu2 %6392, %v6851_v53   ;;  %v6287_v53 = vld [vmem:[%s6610_s26 + $0x50] sm:$0xff]   ;;  %6339 = vmatpush.bf16.msra.mxu2 %v5890_v30 }
  0xca   : > { %6338 = vmatpush.bf16.msra.mxu1 %v5890_v30  ;;  %v6098_v2 = vunpack.c.l.bf16 %v6287_v53 }
  0xcb   : > { %v895_v59 = vpop.permute.xlu2 %894 }
  0xcc   : > { %vm995_vm1 = vcmp.eq.s32.totalorder %v895_v59, 1  ;;  %6343 = vmatpush.bf16.msra.mxu3 %v5889_v0  ;;  %1423 = vmatpush.bf16.msra.mxu0 %v5889_v0  ;;  %v500_v59 = vmul.f32 %v6927_v36, %v6103_v40  ;;  %v591_v40 = vadd.s32 8, %v6619_v38 }
  0xcd   : > { %v1031_v61 = vsel %vm995_vm1, %v556_v58, 0.0  ;;  %4564 = vperm.xlu1 %6391, %v6737_v8   ;;  %v6099_v8 = vunpack.c.h.bf16 %v6287_v53  ;;  %6342 = vmatpush.bf16.msra.mxu2 %v5889_v0 }
  0xce   : > { %v6136_v62 = vpack.c.bf16 %v1031_v61, %v1030_v33  ;;  %6341 = vmatpush.bf16.msra.mxu1 %v5889_v0 }
  0xcf   : > { %4569 = vperm.xlu0 %6390, %v6833_v42   ;;  %v6095_v42 = vunpack.c.h.bf16 %v6286_v1  ;;  %v498_v10 = vmul.f32 %v6927_v36, %v6099_v8  ;;  %v524_v8 = vadd.f32 %v6938_v47, %v484_v49 }
  0xd0   : > { %6295 = vst [vmem:[#allocation4 + $0x8] sm:$0xff] %v6136_v62   ;;  %6346 = vmatpush.bf16.msra.mxu3 %v5888_v9  ;;  %1424 = vmatpush.bf16.msra.mxu0 %v5888_v9  ;;  %v6284_v62 = vld [vmem:[%s6610_s26 + $0x38] sm:$0xff]  }
  0xd1   : > { %4559 = vperm.xlu2 %6392, %v6719_v3   ;;  %v497_v3 = vmul.f32 %v6927_v36, %v6098_v2  ;;  %6345 = vmatpush.bf16.msra.mxu2 %v5888_v9  ;;  %v496_v18 = vmul.f32 %v6927_v36, %v6095_v42  ;;  %v538_v21 = vadd.f32 %v6938_v47, %v498_v10  ;;  %v575_v42 = vmax.f32 %v539_v12, 0.0 }
  0xd2   : > { %6344 = vmatpush.bf16.msra.mxu1 %v5888_v9  ;;  %v521_v2 = vadd.f32 %v6938_v47, %v481_v52  ;;  %v6087_v10 = vunpack.c.h.bf16 %v6284_v62  ;;  %v6086_v13 = vunpack.c.l.bf16 %v6284_v62 }
  0xd3   : > { %v6963_v4 = vpop.permute.xlu2 %951  ;;  %v536_v27 = vadd.f32 %v6938_v47, %v496_v18  ;;  %v560_v18 = vmax.f32 %v524_v8, 0.0 }
  0xd4   : > { %vm1014_vm6 = vcmp.eq.s32.totalorder %v6963_v4, 1  ;;  %v492_v22 = vmul.f32 %v6927_v36, %v6087_v10  ;;  %v491_v23 = vmul.f32 %v6927_v36, %v6086_v13  ;;  %v7106_v13 = vld [vmem:[%s6610_s26 + $0x28] sm:$0xff]  }
  0xd5   : > { %4554 = vperm.xlu1 %6391, %v6685_v57   ;;  %v537_v57 = vadd.f32 %v6938_v47, %v497_v3  ;;  %v572_v50 = vmax.f32 %v536_v27, 0.0  ;;  %v7014_v3 = vadd.f32 %v6938_v47, %v500_v59 }
  0xd7   : > { %4644 = vperm.xlu0 %6390, %v6728_v6   ;;  %v946_v14 = vpop.permute.xlu1 %945  ;;  %v535_v6 = vadd.f32 %v6938_v47, %v495_v16  ;;  %v573_v31 = vmax.f32 %v537_v57, 0.0  ;;  %v557_v16 = vmax.f32 %v521_v2, 0.0  ;;  %v7023_v57 = vsel %vm1014_vm6, %v575_v42, 0.0  ;;  %v5020_v26 = vld [vmem:[#allocation4 + $0x8] sm:$0x8]  ;;  %v774_v2 = vld [vmem:[%s7950_s4 + $0x110] sm:$0xff] }
  0xd8   : > { %vm1012_vm2 = vcmp.eq.s32.totalorder %v946_v14, 1  ;;  %v5876_v27 = vld [vmem:[#allocation4 + $0x8] sm:$0xf0] }
  0xd9   : > { %4639 = vperm.xlu2 %6392, %v6705_v63   ;;  %v940_v20 = vpop.permute.xlu0 %939  ;;  %v574_v63 = vmax.f32 %v538_v21, 0.0  ;;  %v571_v41 = vmax.f32 %v535_v6, 0.0  ;;  %v1048_v56 = vsel %vm1012_vm2, %v573_v31, 0.0  ;;  %v576_v21 = vmax.f32 %v7014_v3, 0.0 }
  0xda   : > { %vm1010_vm3 = vcmp.eq.s32.totalorder %v940_v20, 1  ;;  %v624_v6 = vadd.s32 272, %v6619_v38  ;;  %vm632_vm2 = vcmp.ge.s32.totalorder %v591_v40, %v6621_v39 }
  0xdb   : > { %v6982_v25 = vpop.permute.xlu2 %906  ;;  %v1046_v53 = vsel %vm1010_vm3, %v571_v41, 0.0  ;;  %vm7077_vm3 = vmand %vm7061_vm13, %vm776_vm14 }
  0xdc   : > { %vm999_vm9 = vcmp.eq.s32.totalorder %v6982_v25, 1  ;;  %vm665_vm15 = vcmp.ge.s32.totalorder %v624_v6, %v6621_v39  ;;  %vm702_vm1 = vcmp.lt.s32.totalorder %v624_v6, %v6627_v43  ;;  %v848_v10 = vsel %vm7077_vm3, 1, %v6439_v37 }
  0xdd   : > { %4634 = vperm.xlu1 %6391, %v6655_v48   ;;  %v6995_v48 = vld [vmem:[%s6610_s26 + $0x60] sm:$0xff]   ;;  %v1035_v52 = vsel %vm999_vm9, %v560_v18, 0.0  ;;  %vm7101_vm6 = vmand %vm665_vm15, %vm702_vm1  ;;  %vm703_vm9 = vcmp.lt.s32.totalorder %v625_v55, %v6627_v43  ;;  %v775_v18 = vld [vmem:[%s7950_s4 + $0x118] sm:$0xff] }
  0xde   : > { %v6107_v61 = vunpack.c.h.bf16 %v6995_v48  ;;  %v6106_v59 = vunpack.c.l.bf16 %v6995_v48 }
  0xdf   : > { %4549 = vperm.xlu0 %6390, %v6695_v60   ;;  %v949_v15 = vpop.permute.xlu1 %948  ;;  %v522_v60 = vadd.f32 %v6938_v47, %v482_v34  ;;  %v7046_v34 = vld [vmem:[%s7950_s4 + $0x8] sm:$0xff] }
  0xe0   : > { %vm1013_vm4 = vcmp.eq.s32.totalorder %v949_v15, 1  ;;  %v502_v11 = vmul.f32 %v6927_v36, %v6107_v61  ;;  %v7051_v15 = vadd.f32 %v6938_v47, %v492_v22  ;;  %vm777_vm11 = vcmp.ne.f32.partialorder %v7046_v34, 0.0  ;;  %v5935_v22 = vld [vmem:[%s7947_s1 + $0xb8] sm:$0xff] }
  0xe1   : > { %4544 = vperm.xlu2 %6392, %v6675_v54   ;;  %v1049_v58 = vsel %vm1013_vm4, %v574_v63, 0.0  ;;  %v943_v33 = vpop.permute.xlu0 %942  ;;  %v558_v9 = vmax.f32 %v522_v60, 0.0  ;;  %2078 = vmatpush.bf16.msrb.mxu2 %v5935_v22 }
  0xe2   : > { %v6181_v30 = vpack.c.bf16 %v1049_v58, %v1048_v56  ;;  %vm1011_vm5 = vcmp.eq.s32.totalorder %v943_v33, 1 }
  0xe3   : > { %v1047_v0 = vsel %vm1011_vm5, %v572_v50, 0.0  ;;  %v7004_v1 = vpop.permute.xlu2 %933  ;;  %v5021_v50 = vor.u32 %v5876_v27, %v5020_v26  ;;  %vm669_vm5 = vcmp.lt.s32.totalorder %v591_v40, %v6627_v43 }
  0xe4   : > { %6304 = vst [vmem:[#allocation4 + $0x50] sm:$0xff] %v6181_v30   ;;  %v6176_v54 = vpack.c.bf16 %v1047_v0, %v1046_v53  ;;  %vm7126_vm10 = vmand %vm632_vm2, %vm669_vm5  ;;  %vm1008_vm5 = vcmp.eq.s32.totalorder %v7004_v1, 1 }
  0xe5   : > { %4539 = vperm.xlu1 %6391, %v6645_v46   ;;  %v559_v46 = vmax.f32 %v7010_v7, 0.0  ;;  %v1242_v8 = vshrl.u32 %v5021_v50, 16  ;;  %vm7158_vm1 = vmand %vm7126_vm10, %vm777_vm11 }
  0xe6   : > { %6303 = vst [vmem:[#allocation4 + $0x48] sm:$0xff] %v6176_v54   ;;  %v6091_v54 = vunpack.c.h.bf16 %v6987_v32 }
  0xe7   : > { %4629 = vperm.xlu0 %6390, %v6633_v44   ;;  %v901_v14 = vpop.permute.xlu1 %900  ;;  %v7029_v44 = vadd.f32 %v6938_v47, %v502_v11  ;;  %v568_v11 = vmax.f32 %v7051_v15, 0.0 }
  0xe8   : > { %vm997_vm7 = vcmp.eq.s32.totalorder %v901_v14, 1  ;;  %v7109_v14 = vld [vmem:[%s6610_s26 + $0x30] sm:$0xff]  }
  0xe9   : > { %4624 = vperm.xlu2 %6392, %v6665_v51   ;;  %v1033_v4 = vsel %vm997_vm7, %v558_v9, 0.0  ;;  %v898_v20 = vpop.permute.xlu0 %897  ;;  %v1245_v9 = vshll.u32 %v5021_v50, 16  ;;  %vm810_vm7 = vcmp.ne.f32.partialorder %v774_v2, 0.0 }
  0xea   : > { %vm996_vm8 = vcmp.eq.s32.totalorder %v898_v20, 1  ;;  %v1244_v20 = vrot.slane %v1242_v8, 3  ;;  %vm7139_vm14 = vmand %vm7101_vm6, %vm810_vm7 }
  0xeb   : > { %v1032_v28 = vsel %vm996_vm8, %v557_v16, 0.0  ;;  %v7034_v51 = vpop.permute.xlu2 %960  ;;  %v5885_v31 = vld [vmem:[#allocation4 + $0x50] sm:$0xff]  ;;  %vm666_vm8 = vcmp.ge.s32.totalorder %v625_v55, %v6621_v39  ;;  %v1247_v26 = vrot.slane %v1245_v9, 4  ;;  %v882_v15 = vsel %vm7139_vm14, 1, %v6439_v37 }
  0xec   : > { %v6141_v63 = vpack.c.bf16 %v1033_v4, %v1032_v28  ;;  %v1322_v41 = vshrl.u32 %v5885_v31, 16  ;;  %v1325_v49 = vshll.u32 %v5885_v31, 16  ;;  %v578_v31 = vmax.f32 %v7029_v44, 0.0  ;;  %vm7150_vm15 = vmand %vm666_vm8, %vm703_vm9 }
  0xed   : > { %4619 = vperm.xlu1 %6391, %v6640_v45   ;;  %v5884_v12 = vld [vmem:[#allocation4 + $0x48] sm:$0xff]  ;;  %v7066_v45 = vadd.f32 %v6938_v47, %v491_v23  ;;  %v1248_v55 = vor.u32 %v1247_v26, %v1244_v20 }
  0xee   : > { %6296 = vst [vmem:[#allocation4 + $0x10] sm:$0xff] %v6141_v63   ;;  %v1313_v56 = vshrl.u32 %v5884_v12, 16  ;;  %v1316_v58 = vshll.u32 %v5884_v12, 16  ;;  %v1324_v33 = vrot.slane %v1322_v41, 3  ;;  %v1327_v60 = vrot.slane %v1325_v49, 4  ;;  %v7164_v49 = vld [vmem:[%s6610_s26 + $0x20] sm:$0xff]  }
  0xef   : > { %4534 = vperm.xlu0 %6390, %v7046_v34   ;;  %v904_v25 = vpop.permute.xlu1 %903  ;;  %v567_v4 = vmax.f32 %v7066_v45, 0.0  ;;  %v6082_v63 = vunpack.c.l.bf16 %v7109_v14  ;;  %v6078_v34 = vunpack.c.l.bf16 %v7106_v13  ;;  %v6075_v38 = vunpack.c.h.bf16 %v7164_v49  ;;  %v5975_v45 = vld [vmem:[%s7947_s1 + $0x138] sm:$0xff] }
  0xf0   : > { %vm998_vm0 = vcmp.eq.s32.totalorder %v904_v25, 1  ;;  %v1315_v62 = vrot.slane %v1313_v56, 3  ;;  %v1318_v53 = vrot.slane %v1316_v58, 4  ;;  %v7081_v0 = vor.u32 %v1327_v60, %v1324_v33  ;;  %v5934_v58 = vld [vmem:[%s7947_s1 + $0xb0] sm:$0xff]  ;;  %2802 = vmatpush.bf16.msrb.mxu0 %v5975_v45  ;;  %v5912_v45 = vld [vmem:[%s7947_s1 + $0x60] sm:$0xff] }
  0xf1   : > { %4529 = vperm.xlu2 %6392, %v4503_v29   ;;  %v1034_v30 = vsel %vm998_vm0, %v559_v46, 0.0  ;;  %v955_v61 = vpop.permute.xlu0 %954  ;;  %v6079_v29 = vunpack.c.h.bf16 %v7106_v13  ;;  %vm811_vm0 = vcmp.ne.f32.partialorder %v775_v18, 0.0  ;;  %v569_v33 = vmax.f32 %v7020_v19, 0.0  ;;  %2079 = vmatpush.bf16.msrb.mxu2 %v5934_v58 }
  0xf2   : > { %v6146_v48 = vpack.c.bf16 %v1035_v52, %v1034_v30  ;;  %vm1015_vm4 = vcmp.eq.s32.totalorder %v955_v61, 1  ;;  %v7089_v42 = vor.u32 %v1318_v53, %v1315_v62  ;;  %vm7176_vm3 = vmand %vm7150_vm15, %vm811_vm0  ;;  %v489_v61 = vmul.f32 %v6927_v36, %v6082_v63 }
  0xf3   : > { %v1051_v5 = vsel %vm1015_vm4, %v576_v21, 0.0  ;;  %v7087_v7 = vpop.permute.xlu2 %921  ;;  %v494_v21 = vmul.f32 %v6927_v36, %v6091_v54  ;;  %v488_v56 = vmul.f32 %v6927_v36, %v6079_v29  ;;  %vm1017_vm4 = vcmp.eq.s32.totalorder %v7034_v51, 1  ;;  %v5933_v54 = vld [vmem:[%s7947_s1 + $0xa8] sm:$0xff] }
  0xf4   : > { %6297 = vst [vmem:[#allocation4 + $0x18] sm:$0xff] %v6146_v48   ;;  %v6186_v3 = vpack.c.bf16 %v1051_v5, %v7023_v57  ;;  %v1329_v16 = vsel %vm1240_vm12, %v7089_v42, %v7081_v0  ;;  %v501_v57 = vmul.f32 %v6927_v36, %v6106_v59  ;;  %v849_v59 = vsel %vm7158_vm1, 1, %v6439_v37 }
  0xf5   : > { %4609 = vperm.xlu1 %6391, %v6767_v17   ;;  %v5877_v46 = vld [vmem:[#allocation4 + $0x10] sm:$0xff]  ;;  %1465 = vmatmul.bf16.vlgmr.msra.gmra.mxu3 %v1329_v16  ;;  %v534_v50 = vadd.f32 %v6938_v47, %v494_v21  ;;  %v883_v19 = vsel %vm7176_vm3, 1, %v6439_v37  ;;  %v487_v8 = vmul.f32 %v6927_v36, %v6078_v34  ;;  %v1053_v5 = vsel %vm1017_vm4, %v578_v31, 0.0 }
  0xf6   : > { %6305 = vst [vmem:[#allocation4 + $0x58] sm:$0xff] %v6186_v3   ;;  %v1250_v27 = vshrl.u32 %v5877_v46, 16  ;;  %v1253_v28 = vshll.u32 %v5877_v46, 16  ;;  %v541_v39 = vadd.f32 %v6938_v47, %v501_v57  ;;  %v6074_v37 = vunpack.c.l.bf16 %v7164_v49  ;;  %2080 = vmatpush.bf16.msrb.mxu2 %v5933_v54  ;;  %v7229_v31 = vld [vmem:[%s6610_s26 + $0x70] sm:$0xff]   ;;  %v5915_v49 = vld [vmem:[%s7947_s1 + $0x78] sm:$0xff] }
  0xf7   : > { %4614 = vperm.xlu0 %6390, %v6786_v24   ;;  %v931_v23 = vpop.permute.xlu1 %930  ;;  %v570_v48 = vmax.f32 %v534_v50, 0.0  ;;  %v6083_v13 = vunpack.c.h.bf16 %v7109_v14  ;;  %v486_v17 = vmul.f32 %v6927_v36, %v6075_v38  ;;  %v5955_v14 = vld [vmem:[%s7947_s1 + $0xf8] sm:$0xff]  ;;  %v1044_v21 = vsel %vm1008_vm5, %v569_v33, 0.0  ;;  %1671 = vmatpush.bf16.msrb.mxu1 %v5915_v49 }
  0xf8   : > { %vm1007_vm13 = vcmp.eq.s32.totalorder %v931_v23, 1  ;;  %v1252_v43 = vrot.slane %v1250_v27, 3  ;;  %v1255_v41 = vrot.slane %v1253_v28, 4  ;;  %v577_v53 = vmax.f32 %v541_v39, 0.0  ;;  %v7223_v27 = vld [vmem:[%s6610_s26 + $0x68] sm:$0xff]   ;;  %v5932_v28 = vld [vmem:[%s7947_s1 + $0xa0] sm:$0xff]  ;;  %2500 = vmatpush.bf16.msrb.mxu3 %v5955_v14 }
  0xf9   : > { %885 = vperm.xlu2 %6392, %v848_v10   ;;  %v1043_v40 = vsel %vm1007_vm13, %v568_v11, 0.0  ;;  %v928_v12 = vpop.permute.xlu0 %927  ;;  %v528_v11 = vadd.f32 %v6938_v47, %v488_v56  ;;  %v527_v26 = vadd.f32 %v6938_v47, %v487_v8  ;;  %v485_v1 = vmul.f32 %v6927_v36, %v6074_v37  ;;  %v5954_v39 = vld [vmem:[%s7947_s1 + $0xf0] sm:$0xff]  ;;  %v5952_v14 = vld [vmem:[%s7947_s1 + $0xe0] sm:$0xff] }
  0xfa   : > { %vm1006_vm2 = vcmp.eq.s32.totalorder %v928_v12, 1  ;;  %v7180_v25 = vor.u32 %v1255_v41, %v1252_v43  ;;  %v490_v63 = vmul.f32 %v6927_v36, %v6083_v13  ;;  %2081 = vmatpush.bf16.msrb.mxu2 %v5932_v28  ;;  %v6111_v41 = vunpack.c.h.bf16 %v7223_v27  ;;  %v5974_v13 = vld [vmem:[%s7947_s1 + $0x130] sm:$0xff] }
  0xfb   : > { %v1042_v52 = vsel %vm1006_vm2, %v567_v4, 0.0  ;;  %v7171_v35 = vpop.permute.xlu2 %912  ;;  %v5878_v30 = vld [vmem:[#allocation4 + $0x18] sm:$0xff]  ;;  %v7209_v4 = vadd.f32 %v6938_v47, %v489_v61  ;;  %v6114_v50 = vunpack.c.l.bf16 %v7229_v31  ;;  %v525_v56 = vadd.f32 %v6938_v47, %v485_v1  ;;  %2803 = vmatpush.bf16.msrb.mxu0 %v5974_v13  ;;  %v5973_v1 = vld [vmem:[%s7947_s1 + $0x128] sm:$0xff] }
  0xfc   : > { %v6166_v60 = vpack.c.bf16 %v1043_v40, %v1042_v52  ;;  %v1257_v62 = vsel %vm1240_vm12, %v1248_v55, %v7180_v25  ;;  %v1259_v32 = vshrl.u32 %v5878_v30, 16  ;;  %v1262_v51 = vshll.u32 %v5878_v30, 16  ;;  %v7252_v55 = vld [vmem:[%s6610_s26 + $0x78] sm:$0xff]   ;;  %2501 = vmatpush.bf16.msrb.mxu3 %v5954_v39 }
  0xfd   : > { %987 = vperm.xlu1 %6391, %v882_v15   ;;  %v5886_v2 = vld [vmem:[#allocation4 + $0x58] sm:$0xff]  ;;  %1425 = vmatmul.bf16.vlgmr.msra.gmra.mxu0 %v1257_v62  ;;  %v564_v40 = vmax.f32 %v528_v11, 0.0  ;;  %v526_v15 = vadd.f32 %v6938_v47, %v486_v17  ;;  %v563_v52 = vmax.f32 %v527_v26, 0.0  ;;  %v7256_v58 = vadd.f32 %v6938_v47, %v490_v63 }
  0xfe   : > { %6301 = vst [vmem:[#allocation4 + $0x38] sm:$0xff] %v6166_v60   ;;  %v1331_v3 = vshrl.u32 %v5886_v2, 16  ;;  %v1334_v10 = vshll.u32 %v5886_v2, 16  ;;  %v1261_v12 = vrot.slane %v1259_v32, 3  ;;  %v1264_v44 = vrot.slane %v1262_v51, 4  ;;  %v5953_v2 = vld [vmem:[%s7947_s1 + $0xe8] sm:$0xff] }
  0xff   : > { %888 = vperm.xlu0 %6390, %v849_v59   ;;  %v958_v9 = vpop.permute.xlu1 %957  ;;  %v565_v33 = vmax.f32 %v7209_v4, 0.0  ;;  %v6110_v61 = vunpack.c.l.bf16 %v7223_v27  ;;  %vm1004_vm10 = vcmp.eq.s32.totalorder %v7087_v7, 1  ;;  %v561_v32 = vmax.f32 %v525_v56, 0.0  ;;  %2804 = vmatpush.bf16.msrb.mxu0 %v5973_v1  ;;  %v5972_v56 = vld [vmem:[%s7947_s1 + $0x120] sm:$0xff] }
 0x100   : > { %vm1016_vm6 = vcmp.eq.s32.totalorder %v958_v9, 1  ;;  %v1333_v46 = vrot.slane %v1331_v3, 3  ;;  %v1336_v57 = vrot.slane %v1334_v10, 4  ;;  %v7259_v30 = vor.u32 %v1264_v44, %v1261_v12  ;;  %v5914_v3 = vld [vmem:[%s7947_s1 + $0x70] sm:$0xff]  ;;  %2502 = vmatpush.bf16.msrb.mxu3 %v5953_v2  ;;  %v5911_v2 = vld [vmem:[%s7947_s1 + $0x58] sm:$0xff] }
 0x101   : > { %990 = vperm.xlu2 %6392, %v883_v19   ;;  %v1052_v16 = vsel %vm1016_vm6, %v577_v53, 0.0  ;;  %v937_v18 = vpop.permute.xlu0 %936  ;;  %v504_v53 = vmul.f32 %v6927_v36, %v6111_v41  ;;  %v562_v19 = vmax.f32 %v526_v15, 0.0  ;;  %v5930_v10 = vld [vmem:[%s7947_s1 + $0x90] sm:$0xff]  ;;  %v566_v37 = vmax.f32 %v7256_v58, 0.0  ;;  %1672 = vmatpush.bf16.msrb.mxu1 %v5914_v3 }
 0x102   : > { %v6191_v20 = vpack.c.bf16 %v1053_v5, %v1052_v16  ;;  %vm1009_vm7 = vcmp.eq.s32.totalorder %v937_v18, 1  ;;  %v7219_v6 = vor.u32 %v1336_v57, %v1333_v46  ;;  %v6119_v5 = vunpack.c.h.bf16 %v7252_v55 }
 0x103   : > { %v1045_v22 = vsel %vm1009_vm7, %v570_v48, 0.0  ;;  %v7217_v23 = vpop.permute.xlu2 %969  ;;  %v7267_v48 = vmul.f32 %v6927_v36, %v6114_v50  ;;  %vm1001_vm11 = vcmp.eq.s32.totalorder %v7171_v35, 1  ;;  %v1266_v16 = vsel %vm1240_vm12, %v7180_v25, %v7259_v30  ;;  %v5913_v25 = vld [vmem:[%s7947_s1 + $0x68] sm:$0xff]  ;;  %2805 = vmatpush.bf16.msrb.mxu0 %v5972_v56 }
 0x104   : > { %6306 = vst [vmem:[#allocation4 + $0x60] sm:$0xff] %v6191_v20   ;;  %v6171_v29 = vpack.c.bf16 %v1045_v22, %v1044_v21  ;;  %v1338_v24 = vsel %vm1240_vm12, %v7081_v0, %v7219_v6  ;;  %v5931_v0 = vld [vmem:[%s7947_s1 + $0x98] sm:$0xff]  ;;  %v7288_v17 = vadd.f32 %v6938_v47, %v504_v53  ;;  %v503_v20 = vmul.f32 %v6927_v36, %v6110_v61  ;;  %v5929_v21 = vld [vmem:[%s7947_s1 + $0x88] sm:$0xff] }
 0x105   : > { %v5882_v43 = vld [vmem:[#allocation4 + $0x38] sm:$0xff]  ;;  %1470 = vmatmul.bf16.gmra.mxu3 %v1338_v24  ;;  %2082 = vmatpush.bf16.msrb.mxu2 %v5931_v0  ;;  %v1037_v63 = vsel %vm1001_vm11, %v562_v19, 0.0  ;;  %v6118_v24 = vunpack.c.l.bf16 %v7252_v55  ;;  %v1040_v49 = vsel %vm1004_vm10, %v565_v33, 0.0  ;;  %v5928_v55 = vld [vmem:[%s7947_s1 + $0x80] sm:$0xff]  ;;  %v508_v58 = vmul.f32 %v6927_v36, %v6119_v5 }
 0x106   : > { %6302 = vst [vmem:[#allocation4 + $0x40] sm:$0xff] %v6171_v29   ;;  %v1295_v38 = vshrl.u32 %v5882_v43, 16  ;;  %v1298_v62 = vshll.u32 %v5882_v43, 16  ;;  %2503 = vmatpush.bf16.msrb.mxu3 %v5952_v14  ;;  %1673 = vmatpush.bf16.msrb.mxu1 %v5913_v25  ;;  %v543_v35 = vadd.f32 %v6938_v47, %v503_v20  ;;  %v545_v19 = vadd.f32 %v6938_v47, %v7267_v48  ;;  %v5910_v20 = vld [vmem:[%s7947_s1 + $0x50] sm:$0xff] }
 0x107   : > { %v919_v34 = vpop.permute.xlu1 %918  ;;  %v507_v61 = vmul.f32 %v6927_v36, %v6118_v24  ;;  %v548_v3 = vadd.f32 %v6938_v47, %v508_v58  ;;  %v5970_v14 = vld [vmem:[%s7947_s1 + $0x110] sm:$0xff]  ;;  %vm1020_vm1 = vcmp.eq.s32.totalorder %v7217_v23, 1  ;;  %v5968_v23 = vld [vmem:[%s7947_s1 + $0x100] sm:$0xff]  ;;  %vm1917_vm7 = vsmask.f32 7424 }
 0x108   : > { %vm1003_vm8 = vcmp.eq.s32.totalorder %v919_v34, 1  ;;  %v1297_v51 = vrot.slane %v1295_v38, 3  ;;  %v1300_v4 = vrot.slane %v1298_v62, 4  ;;  %v6293_v62 = vld [vmem:[%s6610_s26 + $0x80] sm:$0xff]   ;;  %v579_v5 = vmax.f32 %v543_v35, 0.0 }
 0x109   : > { %v1039_v60 = vsel %vm1003_vm8, %v564_v40, 0.0  ;;  %v916_v59 = vpop.permute.xlu0 %915  ;;  %2083 = vmatpush.bf16.msrb.mxu2 %v5930_v10  ;;  %v6115_v40 = vunpack.c.h.bf16 %v7229_v31  ;;  %v5951_v31 = vld [vmem:[%s7947_s1 + $0xd8] sm:$0xff]  ;;  %v6123_v10 = vunpack.c.h.bf16 %v6293_v62  ;;  %v584_v25 = vmax.f32 %v548_v3, 0.0 }
 0x10a   : > { %vm1002_vm9 = vcmp.eq.s32.totalorder %v916_v59, 1  ;;  %v7317_v34 = vor.u32 %v1300_v4, %v1297_v51  ;;  %2504 = vmatpush.bf16.msrb.mxu3 %v5951_v31  ;;  %v580_v59 = vmax.f32 %v7288_v17, 0.0  ;;  %1674 = vmatpush.bf16.msrb.mxu1 %v5912_v45  ;;  %v5969_v31 = vld [vmem:[%s7947_s1 + $0x108] sm:$0xff] }
 0x10b   : > { %v1038_v8 = vsel %vm1002_vm9, %v563_v52, 0.0  ;;  %v7269_v54 = vpop.permute.xlu2 %978  ;;  %v5887_v9 = vld [vmem:[#allocation4 + $0x60] sm:$0xff]  ;;  %v506_v38 = vmul.f32 %v6927_v36, %v6115_v40 }
 0x10c   : > { %v6156_v11 = vpack.c.bf16 %v1039_v60, %v1038_v8  ;;  %v1340_v46 = vshrl.u32 %v5887_v9, 16  ;;  %v1343_v57 = vshll.u32 %v5887_v9, 16  ;;  %v5971_v9 = vld [vmem:[%s7947_s1 + $0x118] sm:$0xff]  ;;  %vm1023_vm2 = vcmp.eq.s32.totalorder %v7269_v54, 1 }
 0x10d   : > { %v5883_v18 = vld [vmem:[#allocation4 + $0x40] sm:$0xff]  ;;  %1430 = vmatmul.bf16.gmra.mxu0 %v1266_v16  ;;  %2084 = vmatpush.bf16.msrb.mxu2 %v5929_v21  ;;  %v546_v13 = vadd.f32 %v6938_v47, %v506_v38 }
 0x10e   : > { %6299 = vst [vmem:[#allocation4 + $0x28] sm:$0xff] %v6156_v11   ;;  %v1304_v26 = vshrl.u32 %v5883_v18, 16  ;;  %v1307_v27 = vshll.u32 %v5883_v18, 16  ;;  %v1342_v28 = vrot.slane %v1340_v46, 3  ;;  %v1345_v29 = vrot.slane %v1343_v57, 4  ;;  %1675 = vmatpush.bf16.msrb.mxu1 %v5911_v2  ;;  %v5949_v46 = vld [vmem:[%s7947_s1 + $0xc8] sm:$0xff]  ;;  %2806 = vmatpush.bf16.msrb.mxu0 %v5971_v9 }
 0x10f   : > { %v910_v22 = vpop.permute.xlu1 %909  ;;  %v6122_v18 = vunpack.c.l.bf16 %v6293_v62  ;;  %v581_v57 = vmax.f32 %v545_v19, 0.0  ;;  %v582_v24 = vmax.f32 %v546_v13, 0.0  ;;  %v5908_v62 = vld [vmem:[%s7947_s1 + $0x40] sm:$0xff]  ;;  %v5917_v13 = vld [vmem:[#allocation4 + $0x14] sm:$0xff] }
 0x110   : > { %vm1000_vm14 = vcmp.eq.s32.totalorder %v910_v22, 1  ;;  %v1306_v43 = vrot.slane %v1304_v26, 3  ;;  %v1309_v41 = vrot.slane %v1307_v27, 4  ;;  %v7307_v39 = vor.u32 %v1345_v29, %v1342_v28  ;;  %v5948_v26 = vld [vmem:[%s7947_s1 + $0xc0] sm:$0xff] }
 0x111   : > { %v1036_v12 = vsel %vm1000_vm14, %v561_v32, 0.0  ;;  %v925_v44 = vpop.permute.xlu0 %924  ;;  %2085 = vmatpush.bf16.msrb.mxu2 %v5928_v55  ;;  %v510_v22 = vmul.f32 %v6927_v36, %v6123_v10  ;;  %v5916_v10 = vld [vmem:[#allocation4 + $0xc] sm:$0xff] }
 0x112   : > { %v6151_v0 = vpack.c.bf16 %v1037_v63, %v1036_v12  ;;  %vm1005_vm13 = vcmp.eq.s32.totalorder %v925_v44, 1  ;;  %v7319_v52 = vor.u32 %v1309_v41, %v1306_v43  ;;  %v1347_v7 = vsel %vm1240_vm12, %v7219_v6, %v7307_v39  ;;  %v5950_v6 = vld [vmem:[%s7947_s1 + $0xd0] sm:$0xff]  ;;  %1676 = vmatpush.bf16.msrb.mxu1 %v5910_v20  ;;  %v5909_v63 = vld [vmem:[%s7947_s1 + $0x48] sm:$0xff]  ;;  %2807 = vmatpush.bf16.msrb.mxu0 %v5970_v14 }
 0x113   : > { %v1041_v15 = vsel %vm1005_vm13, %v566_v37, 0.0  ;;  %v7315_v50 = vpop.permute.xlu2 %4604  ;;  %2505 = vmatpush.bf16.msrb.mxu3 %v5950_v6  ;;  %v547_v37 = vadd.f32 %v6938_v47, %v507_v61  ;;  %v509_v44 = vmul.f32 %v6927_v36, %v6122_v18 }
 0x114   : > { %6298 = vst [vmem:[#allocation4 + $0x20] sm:$0xff] %v6151_v0   ;;  %v6161_v33 = vpack.c.bf16 %v1041_v15, %v1040_v49  ;;  %v1311_v60 = vsel %vm1240_vm12, %v7317_v34, %v7319_v52  ;;  %v1059_v15 = vsel %vm1023_vm2, %v584_v25, 0.0 }
 0x115   : > { %1455 = vmatmul.bf16.vlgmr.msra.gmra.mxu2 %v1311_v60  ;;  %1475 = vmatmul.bf16.gmra.mxu3 %v1347_v7  ;;  %v5880_v53 = vld [vmem:[#allocation4 + $0x28] sm:$0xff]  ;;  %v583_v27 = vmax.f32 %v547_v37, 0.0  ;;  %v550_v7 = vadd.f32 %v6938_v47, %v510_v22  ;;  %v549_v60 = vadd.f32 %v6938_v47, %v509_v44 }
 0x116   : > { %6300 = vst [vmem:[#allocation4 + $0x30] sm:$0xff] %v6161_v33   ;;  %v1277_v48 = vshrl.u32 %v5880_v53, 16  ;;  %v1280_v16 = vshll.u32 %v5880_v53, 16  ;;  %1677 = vmatpush.bf16.msrb.mxu1 %v5909_v63  ;;  %v1056_v33 = vsel %vm1020_vm1, %v581_v57, 0.0  ;;  %2808 = vmatpush.bf16.msrb.mxu0 %v5969_v31 }
 0x117   : > { %v967_v8 = vpop.permute.xlu1 %966  ;;  %2506 = vmatpush.bf16.msrb.mxu3 %v5949_v46  ;;  %v586_v19 = vmax.f32 %v550_v7, 0.0  ;;  %v585_v3 = vmax.f32 %v549_v60, 0.0 }
 0x118   : > { %vm1019_vm15 = vcmp.eq.s32.totalorder %v967_v8, 1  ;;  %v1279_v40 = vrot.slane %v1277_v48, 3  ;;  %v1282_v12 = vrot.slane %v1280_v16, 4 }
 0x119   : > { %v1055_v11 = vsel %vm1019_vm15, %v580_v59, 0.0  ;;  %v964_v32 = vpop.permute.xlu0 %963 }
 0x11a   : > { %vm1018_vm0 = vcmp.eq.s32.totalorder %v964_v32, 1  ;;  %v1283_v61 = vor.u32 %v1282_v12, %v1279_v40  ;;  %1678 = vmatpush.bf16.msrb.mxu1 %v5908_v62  ;;  %2809 = vmatpush.bf16.msrb.mxu0 %v5968_v23 }
 0x11b   : > { %v1054_v51 = vsel %vm1018_vm0, %v579_v5, 0.0  ;;  %v7358_v4 = vpop.permute.xlu2 %4589  ;;  %v5879_v17 = vld [vmem:[#allocation4 + $0x20] sm:$0xff]  ;;  %2507 = vmatpush.bf16.msrb.mxu3 %v5948_v26 }
 0x11c   : > { %v6196_v21 = vpack.c.bf16 %v1055_v11, %v1054_v51  ;;  %v1268_v28 = vshrl.u32 %v5879_v17, 16  ;;  %v1271_v29 = vshll.u32 %v5879_v17, 16  ;;  %v1926_v51 = vshll.u32 %v5917_v13, 16  ;;  %v5937_v26 = vld [vmem:[#allocation4 + $0x1c] sm:$0xff]  ;;  %v5938_v60 = vld [vmem:[#allocation4 + $0x24] sm:$0xff] }
 0x11d   : > { %v5881_v1 = vld [vmem:[#allocation4 + $0x30] sm:$0xff]  ;;  %v2333_v12 = vshrl.u32 %v5937_v26, 16  ;;  %v2336_v44 = vshll.u32 %v5937_v26, 16 }
 0x11e   : > { %6307 = vst [vmem:[#allocation4 + $0x68] sm:$0xff] %v6196_v21   ;;  %v1270_v41 = vrot.slane %v1268_v28, 3  ;;  %v1273_v49 = vrot.slane %v1271_v29, 4  ;;  %v1286_v0 = vshrl.u32 %v5881_v1, 16  ;;  %v1289_v35 = vshll.u32 %v5881_v1, 16 }
 0x11f   : > { %v976_v43 = vpop.permute.xlu1 %975  ;;  %v5936_v21 = vld [vmem:[#allocation4 + $0x14] sm:$0xf0]  ;;  %v1919_v28 = vshrl.u32 %v5916_v10, 16  ;;  %v1928_v29 = vrot.slane %v1926_v51, 1  ;;  %v5308_v1 = vld [vmem:[#allocation4 + $0x14] sm:$0x8] }
 0x120   : > { %vm1022_vm3 = vcmp.eq.s32.totalorder %v976_v43, 1  ;;  %v1274_v36 = vor.u32 %v1273_v49, %v1270_v41  ;;  %v1288_v56 = vrot.slane %v1286_v0, 3  ;;  %v1291_v58 = vrot.slane %v1289_v35, 4  ;;  %v5897_v51 = vld [vmem:[#allocation4 + $0x14] sm:$0xff] }
 0x121   : > { %v1058_v45 = vsel %vm1022_vm3, %v583_v27, 0.0  ;;  %v973_v55 = vpop.permute.xlu0 %972  ;;  %v5309_v63 = vor.u32 %v5936_v21, %v5308_v1  ;;  %v2335_v35 = vrot.slane %v2333_v12, 3  ;;  %v2338_v31 = vrot.slane %v2336_v44, 4 }
 0x122   : > { %v6206_v6 = vpack.c.bf16 %v1059_v15, %v1058_v45  ;;  %vm1021_vm4 = vcmp.eq.s32.totalorder %v973_v55, 1  ;;  %v1275_v54 = vsel %vm1240_vm12, %v7259_v30, %v1274_v36  ;;  %v1292_v38 = vor.u32 %v1291_v58, %v1288_v56  ;;  %v5918_v45 = vld [vmem:[#allocation4 + $0x1c] sm:$0xff] }
 0x123   : > { %v1057_v59 = vsel %vm1021_vm4, %v582_v24, 0.0  ;;  %1435 = vmatmul.bf16.gmra.mxu0 %v1275_v54  ;;  %v7393_v2 = vpop.permute.xlu2 %4574  ;;  %v1320_v30 = vsel %vm1240_vm12, %v7319_v52, %v7089_v42  ;;  %v1921_v52 = vshll.u32 %v5916_v10, 16  ;;  %v1284_v24 = vsel %vm1240_vm12, %v1274_v36, %v1283_v61  ;;  %v5919_v10 = vld [vmem:[#allocation4 + $0x24] sm:$0xff] }
 0x124   : > { %6309 = vst [vmem:[#allocation4 + $0x78] sm:$0xff] %v6206_v6   ;;  %v6201_v53 = vpack.c.bf16 %v1057_v59, %v1056_v33  ;;  %v1293_v47 = vsel %vm1240_vm12, %v1283_v61, %v1292_v38  ;;  %v1302_v43 = vsel %vm1240_vm12, %v1292_v38, %v7317_v34  ;;  %v2325_v41 = vshrl.u32 %v5309_v63, 16  ;;  %v5956_v38 = vld [vmem:[#allocation4 + $0x18] sm:$0xff] }
 0x125   : > { %v1160_v8 = vld [vmem:[#allocation4 + $0x68] sm:$0xf]  ;;  %1445 = vmatmul.bf16.vlgmr.msra.gmra.mxu1 %v1293_v47  ;;  %1460 = vmatmul.bf16.gmra.mxu2 %v1320_v30  ;;  %v1923_v25 = vrot.slane %v1921_v52, 1  ;;  %v2328_v49 = vshll.u32 %v5309_v63, 16  ;;  %v2339_v56 = vor.u32 %v2338_v31, %v2335_v35  ;;  %v1934_v58 = vshll.u32 %v5918_v45, 16  ;;  %v5920_v63 = vld [vmem:[#allocation4 + $0x2c] sm:$0xff] }
 0x126   : > { %6308 = vst [vmem:[#allocation4 + $0x70] sm:$0xff] %v6201_v53   ;;  %v1226_v5 = vunpack.c.l.b16 %v1160_v8  ;;  %v2327_v55 = vrot.slane %v2325_v41, 3  ;;  %v1930_v54 = vshrl.u32 %v5917_v13, 16  ;;  %v5896_v53 = vld [vmem:[#allocation4 + $0xc] sm:$0xff]  ;;  %v2342_v47 = vshrl.u32 %v5938_v60, 16 }
 0x127   : > { %v985_v9 = vpop.permute.xlu1 %984  ;;  %v1924_v40 = vor.u32 %v1923_v25, %v1919_v28  ;;  %v2330_v36 = vrot.slane %v2328_v49, 4  ;;  %v1936_v61 = vrot.slane %v1934_v58, 1  ;;  %v2345_v30 = vshll.u32 %v5938_v60, 16  ;;  %v5958_v31 = vld [vmem:[#allocation4 + $0x28] sm:$0xff] }
 0x128   : > { %vm1025_vm5 = vcmp.eq.s32.totalorder %v985_v9, 1  ;;  %v1239_v11 = vpack.c.b16 %v1226_v5, %v1226_v5  ;;  %v1932_v23 = vor.u32 %v1930_v54, %v1928_v29  ;;  %v2344_v5 = vrot.slane %v2342_v47, 3 }
 0x129   : > { %v1061_v32 = vsel %vm1025_vm5, %v586_v19, 0.0  ;;  %v982_v37 = vpop.permute.xlu0 %981  ;;  %v2331_v34 = vor.u32 %v2330_v36, %v2327_v55  ;;  %v2347_v9 = vrot.slane %v2345_v30, 4  ;;  %v1938_v13 = vshrl.u32 %v5918_v45, 16  ;;  %v5898_v55 = vld [vmem:[#allocation4 + $0x1c] sm:$0xff] }
 0x12a   : > { %vm1024_vm6 = vcmp.eq.s32.totalorder %v982_v37, 1  ;;  %v1349_v48 = vshrl.u32 %v1239_v11, 16  ;;  %v1352_v16 = vshll.u32 %v1239_v11, 16  ;;  %v1937_v19 = vsel %vm1917_vm7, %v1932_v23, %v1936_v61 }
 0x12b   : > { %v1060_v42 = vsel %vm1024_vm6, %v585_v3, 0.0  ;;  %v7399_v20 = vpop.permute.xlu2 %4559  ;;  %v2340_v6 = vsel %vm1240_vm12, %v2331_v34, %v2339_v56  ;;  %v2348_v11 = vor.u32 %v2347_v9, %v2344_v5  ;;  %v1946_v12 = vshrl.u32 %v5919_v10, 16 }
 0x12c   : > { %v6211_v18 = vpack.c.bf16 %v1061_v32, %v1060_v42  ;;  %v1351_v46 = vrot.slane %v1349_v48, 3  ;;  %v1354_v57 = vrot.slane %v1352_v16, 4  ;;  %7971 = vst [vmem:[#allocation11_spill] sm:$0xff] %v7399_v20  ;;  %v1942_v48 = vshll.u32 %v5919_v10, 16  ;;  %v5939_v42 = vld [vmem:[#allocation4 + $0x2c] sm:$0xff] }
 0x12d   : > { %v2349_v16 = vsel %vm1240_vm12, %v2339_v56, %v2348_v11  ;;  %v2354_v25 = vshll.u32 %v5939_v42, 16  ;;  %v1950_v44 = vshll.u32 %v5920_v63, 16  ;;  %v1954_v47 = vshrl.u32 %v5920_v63, 16  ;;  %v5959_v10 = vld [vmem:[#allocation4 + $0x30] sm:$0xff] }
 0x12e   : > { %6310 = vst [vmem:[#allocation4 + $0x80] sm:$0xff] %v6211_v18   ;;  %v1355_v17 = vor.u32 %v1354_v57, %v1351_v46  ;;  %v1940_v18 = vor.u32 %v1938_v13, %v1936_v61  ;;  %v5957_v46 = vld [vmem:[#allocation4 + $0x20] sm:$0xff]  ;;  %v1944_v57 = vrot.slane %v1942_v48, 1 }
 0x12f   : > { %v7401_v14 = vpop.permute.xlu1 %4594  ;;  %v1952_v45 = vrot.slane %v1950_v44, 1  ;;  %v5899_v48 = vld [vmem:[#allocation4 + $0x24] sm:$0xff]  ;;  %v5960_v44 = vld [vmem:[#allocation4 + $0x38] sm:$0xff] }
 0x130   : > { %v1356_v22 = vsel %vm1240_vm12, %v7307_v39, %v1355_v17  ;;  %v1929_v39 = vsel %vm1917_vm7, %v1924_v40, %v1928_v29  ;;  %v2351_v17 = vshrl.u32 %v5939_v42, 16  ;;  %v1945_v21 = vsel %vm1917_vm7, %v1940_v18, %v1944_v57 }
 0x131   : > { %v7405_v27 = vpop.permute.xlu0 %4599  ;;  %1480 = vmatmul.bf16.gmra.mxu3 %v1356_v22  ;;  %v2356_v29 = vrot.slane %v2354_v25, 4  ;;  %v1948_v35 = vor.u32 %v1946_v12, %v1944_v57  ;;  %v1956_v9 = vor.u32 %v1954_v47, %v1952_v45 }
 0x132   : > { %v2353_v28 = vrot.slane %v2351_v17, 3  ;;  %v5922_v17 = vld [vmem:[#allocation4 + $0x3c] sm:$0xff] }
 0x133   : > { %1440 = vmatmul.bf16.gmra.mxu0 %v1284_v24  ;;  %v7413_v15 = vpop.permute.xlu2 %4639  ;;  %v1953_v58 = vsel %vm1917_vm7, %v1948_v35, %v1952_v45 }
 0x134   : > { %7972 = vst [vmem:[#allocation12_spill] sm:$0xff] %v7413_v15  ;;  %v2357_v24 = vor.u32 %v2356_v29, %v2353_v28  ;;  %v1966_v29 = vshll.u32 %v5922_v17, 16 }
 0x135   : > { %1450 = vmatmul.bf16.gmra.mxu1 %v1302_v43  ;;  %2086 = vmatmul.bf16.vlgmr.msrb.gmra.mxu2 %v1929_v39  ;;  %v5940_v39 = vld [vmem:[#allocation4 + $0x34] sm:$0xff] }
 0x136   : > { %v2358_v43 = vsel %vm1240_vm12, %v2348_v11, %v2357_v24  ;;  %v2360_v36 = vshrl.u32 %v5940_v39, 16  ;;  %v2363_v56 = vshll.u32 %v5940_v39, 16  ;;  %v5941_v11 = vld [vmem:[#allocation4 + $0x3c] sm:$0xff] }
 0x137   : > { %v7411_v0 = vpop.permute.xlu1 %4579  ;;  %v2369_v42 = vshrl.u32 %v5941_v11, 16  ;;  %v2372_v18 = vshll.u32 %v5941_v11, 16 }
 0x138   : > { %v2365_v60 = vrot.slane %v2363_v56, 4 }
 0x139   : > { %v7415_v7 = vpop.permute.xlu0 %4584  ;;  %v2371_v57 = vrot.slane %v2369_v42, 3 }
 0x13b   : > { %v7422_v62 = vpop.permute.xlu2 %4544 }
 0x13c   : > { %7974 = vst [vmem:[#allocation14_spill] sm:$0xff] %v7422_v62 }
 0x13f   : > { %v7417_v33 = vpop.permute.xlu1 %4564 }
 0x140   : > { %7973 = vst [vmem:[#allocation13_spill] sm:$0xff] %v7417_v33 }
 0x141   : > { %v7420_v59 = vpop.permute.xlu0 %4569  ;;  %2508 = vmatmul.bf16.vlgmr.msrb.gmra.mxu3 %v2340_v6  ;;  %v2362_v6 = vrot.slane %v2360_v36, 3 }
 0x143   : > { %2810 = vmatmul.bf16.vlgmr.msrb.gmra.mxu0 %v5956_v38  ;;  %v7429_v32 = vpop.permute.xlu2 %4624  ;;  %v5921_v38 = vld [vmem:[#allocation4 + $0x34] sm:$0xff]  ;;  %v2366_v23 = vor.u32 %v2365_v60, %v2362_v6 }
 0x144   : > { %7977 = vst [vmem:[#allocation17_spill] sm:$0xff] %v7429_v32  ;;  %v1958_v30 = vshll.u32 %v5921_v38, 16  ;;  %v1962_v28 = vshrl.u32 %v5921_v38, 16 }
 0x145   : > { %1679 = vmatmul.bf16.vlgmr.msrb.gmra.mxu1 %v5896_v53  ;;  %2091 = vmatmul.bf16.gmra.mxu2 %v1937_v19  ;;  %v2367_v19 = vsel %vm1240_vm12, %v2357_v24, %v2366_v23  ;;  %v5942_v24 = vld [vmem:[#allocation4 + $0x44] sm:$0xff] }
 0x146   : > { %v1960_v13 = vrot.slane %v1958_v30, 1  ;;  %v2378_v35 = vshrl.u32 %v5942_v24, 16  ;;  %v5961_v30 = vld [vmem:[#allocation4 + $0x40] sm:$0xff] }
 0x147   : > { %v7425_v8 = vpop.permute.xlu1 %4554 }
 0x148   : > { %7975 = vst [vmem:[#allocation15_spill] sm:$0xff] %v7425_v8  ;;  %v1964_v12 = vor.u32 %v1962_v28, %v1960_v13  ;;  %v2380_v36 = vrot.slane %v2378_v35, 3 }
 0x149   : > { %v7427_v3 = vpop.permute.xlu0 %4644 }
 0x14a   : > { %7976 = vst [vmem:[#allocation16_spill] sm:$0xff] %v7427_v3 }
 0x14b   : > { %v7437_v22 = vpop.permute.xlu2 %4529 }
 0x14c   : > { %7980 = vst [vmem:[#allocation20_spill] sm:$0xff] %v7437_v22 }
 0x14f   : > { %v7431_v37 = vpop.permute.xlu1 %4634 }
 0x150   : > { %7978 = vst [vmem:[#allocation18_spill] sm:$0xff] %v7431_v37 }
 0x151   : > { %v7434_v52 = vpop.permute.xlu0 %4549  ;;  %2513 = vmatmul.bf16.gmra.mxu3 %v2349_v16  ;;  %v1961_v16 = vsel %vm1917_vm7, %v1956_v9, %v1960_v13  ;;  %v5901_v9 = vld [vmem:[#allocation4 + $0x34] sm:$0xff] }
 0x152   : > { %7979 = vst [vmem:[#allocation19_spill] sm:$0xff] %v7434_v52 }
 0x153   : > { %2815 = vmatmul.bf16.gmra.mxu0 %v5957_v46  ;;  %v886_v41 = vpop.permute.xlu2 %885 }
 0x154   : > { %v5900_v41 = vld [vmem:[#allocation4 + $0x2c] sm:$0xff] }
 0x155   : > { %1684 = vmatmul.bf16.gmra.mxu1 %v5897_v51  ;;  %2096 = vmatmul.bf16.gmra.mxu2 %v1945_v21  ;;  %v2374_v51 = vrot.slane %v2372_v18, 4 }
 0x157   : > { %v7439_v26 = vpop.permute.xlu1 %4539  ;;  %v2375_v21 = vor.u32 %v2374_v51, %v2371_v57  ;;  %v5924_v51 = vld [vmem:[#allocation4 + $0x4c] sm:$0xff] }
 0x158   : > { %7981 = vst [vmem:[#allocation21_spill] sm:$0xff] %v7439_v26  ;;  %v1982_v28 = vshll.u32 %v5924_v51, 16 }
 0x159   : > { %v7441_v1 = vpop.permute.xlu0 %4629  ;;  %v2376_v63 = vsel %vm1240_vm12, %v2366_v23, %v2375_v21 }
 0x15a   : > { %7982 = vst [vmem:[#allocation22_spill] sm:$0xff] %v7441_v1  ;;  %v5904_v1 = vld [vmem:[#allocation4 + $0x4c] sm:$0xff] }
 0x15b   : > { %v991_v61 = vpop.permute.xlu2 %990 }
 0x15c   : > { %v1970_v61 = vshrl.u32 %v5922_v17, 16 }
 0x15f   : > { %v7443_v40 = vpop.permute.xlu1 %4619 }
 0x160   : > { %7983 = vst [vmem:[#allocation23_spill] sm:$0xff] %v7443_v40  ;;  %v6014_v40 = vld [vmem:[%s7947_s1 + $0x1b0] sm:$0xff] }
 0x161   : > { %v7446_v49 = vpop.permute.xlu0 %4534  ;;  %2518 = vmatmul.bf16.gmra.mxu3 %v2358_v43  ;;  %v1968_v43 = vrot.slane %v1966_v29, 1 }
 0x162   : > { %7984 = vst [vmem:[#allocation24_spill] sm:$0xff] %v7446_v49 }
 0x163   : > { %2820 = vmatmul.bf16.gmra.mxu0 %v5958_v31  ;;  %v2381_v31 = vshll.u32 %v5942_v24, 16  ;;  %v1969_v45 = vsel %vm1917_vm7, %v1964_v12, %v1968_v43  ;;  %v1972_v47 = vor.u32 %v1970_v61, %v1968_v43 }
 0x165   : > { %1689 = vmatmul.bf16.gmra.mxu1 %v5898_v55  ;;  %2101 = vmatmul.bf16.gmra.mxu2 %v1953_v58  ;;  %v2383_v56 = vrot.slane %v2381_v31, 4  ;;  %v5923_v58 = vld [vmem:[#allocation4 + $0x44] sm:$0xff]  ;;  %v1984_v31 = vrot.slane %v1982_v28, 1  ;;  %v5963_v28 = vld [vmem:[#allocation4 + $0x50] sm:$0xff] }
 0x166   : > { %v1974_v38 = vshll.u32 %v5923_v58, 16 }
 0x167   : > { %v7449_v34 = vpop.permute.xlu1 %4609  ;;  %v2384_v6 = vor.u32 %v2383_v56, %v2380_v36 }
 0x168   : > { %7985 = vst [vmem:[#allocation25_spill] sm:$0xff] %v7449_v34 }
 0x169   : > { %v7451_v54 = vpop.permute.xlu0 %4614 }
 0x16a   : > { %7986 = vst [vmem:[#allocation26_spill] sm:$0xff] %v7451_v54  ;;  %v5964_v54 = vld [vmem:[#allocation4 + $0x58] sm:$0xff] }
 0x16f   : > { %v988_v53 = vpop.permute.xlu1 %987 }
 0x170   : > { %v2385_v53 = vsel %vm1240_vm12, %v2375_v21, %v2384_v6  ;;  %v1978_v21 = vshrl.u32 %v5923_v58, 16 }
 0x171   : > { %v889_v5 = vpop.permute.xlu0 %888  ;;  %2523 = vmatmul.bf16.gmra.mxu3 %v2367_v19  ;;  %v5943_v19 = vld [vmem:[#allocation4 + $0x4c] sm:$0xff] }
 0x172   : > { %v1976_v5 = vrot.slane %v1974_v38, 1  ;;  %v2387_v11 = vshrl.u32 %v5943_v19, 16  ;;  %v2390_v13 = vshll.u32 %v5943_v19, 16 }
 0x173   : > { %2825 = vmatmul.bf16.gmra.mxu0 %v5959_v10 }
 0x174   : > { %v1977_v10 = vsel %vm1917_vm7, %v1972_v47, %v1976_v5  ;;  %v2389_v18 = vrot.slane %v2387_v11, 3  ;;  %v2392_v57 = vrot.slane %v2390_v13, 4  ;;  %v1980_v12 = vor.u32 %v1978_v21, %v1976_v5  ;;  %v5945_v11 = vld [vmem:[#allocation4 + $0x5c] sm:$0xff] }
 0x175   : > { %1694 = vmatmul.bf16.gmra.mxu1 %v5899_v48  ;;  %2106 = vmatmul.bf16.gmra.mxu2 %v1961_v16 }
 0x176   : > { %v2393_v17 = vor.u32 %v2392_v57, %v2389_v18  ;;  %v1985_v58 = vsel %vm1917_vm7, %v1980_v12, %v1984_v31  ;;  %v1986_v18 = vshrl.u32 %v5924_v51, 16 }
 0x178   : > { %v7455_v46 = vpop.f32.mrf.mxu3  ;;  %v2394_v29 = vsel %vm1240_vm12, %v2384_v6, %v2393_v17 }
 0x17a   : > { %v7457_v25 = vpop.f32.mrf.mxu0 }
 0x180   : > { %v7460_v39 = vpop.f32.mrf.mxu3 }
 0x181   : > { %2528 = vmatmul.bf16.gmra.mxu3 %v2376_v63  ;;  %v5944_v63 = vld [vmem:[#allocation4 + $0x54] sm:$0xff] }
 0x182   : > { %v7463_v55 = vpop.f32.mrf.mxu0  ;;  %v2396_v36 = vshrl.u32 %v5944_v63, 16  ;;  %v2399_v56 = vshll.u32 %v5944_v63, 16  ;;  %v1988_v63 = vor.u32 %v1986_v18, %v1984_v31  ;;  %v6015_v31 = vld [vmem:[%s7947_s1 + $0x1b8] sm:$0xff] }
 0x183   : > { %2830 = vmatmul.bf16.gmra.mxu0 %v5960_v44  ;;  %3630 = vmatpush.bf16.msra.mxu2 %v6015_v31 }
 0x184   : > { %v2398_v6 = vrot.slane %v2396_v36, 3  ;;  %v2401_v61 = vrot.slane %v2399_v56, 4  ;;  %v2408_v36 = vshll.u32 %v5945_v11, 16 }
 0x185   : > { %1699 = vmatmul.bf16.gmra.mxu1 %v5900_v41  ;;  %2111 = vmatmul.bf16.gmra.mxu2 %v1969_v45  ;;  %v5962_v41 = vld [vmem:[#allocation4 + $0x48] sm:$0xff]  ;;  %v5902_v45 = vld [vmem:[#allocation4 + $0x3c] sm:$0xff] }
 0x186   : > { %v2402_v5 = vor.u32 %v2401_v61, %v2398_v6  ;;  %v7505_v6 = vld [vmem:[#allocation4 + $0x5c] sm:$0xff] }
 0x187   : > { %v1998_v18 = vshll.u32 %v7505_v6, 16  ;;  %3631 = vmatpush.bf16.msra.mxu2 %v6014_v40 }
 0x188   : > { %v7465_v60 = vpop.f32.mrf.mxu3 }
 0x18a   : > { %v7467_v23 = vpop.f32.mrf.mxu0 }
 0x190   : > { %v7471_v48 = vpop.f32.mrf.mxu3 }
 0x191   : > { %2533 = vmatmul.bf16.gmra.mxu3 %v2385_v53  ;;  %v5925_v53 = vld [vmem:[#allocation4 + $0x54] sm:$0xff] }
 0x192   : > { %v7475_v42 = vpop.f32.mrf.mxu0 }
 0x193   : > { %2835 = vmatmul.bf16.gmra.mxu0 %v5961_v30 }
 0x195   : > { %1704 = vmatmul.bf16.gmra.mxu1 %v5901_v9  ;;  %2116 = vmatmul.bf16.gmra.mxu2 %v1977_v10  ;;  %v1990_v9 = vshll.u32 %v5925_v53, 16  ;;  %v2403_v10 = vsel %vm1240_vm12, %v2393_v17, %v2402_v5 }
 0x197   : > { %v1992_v57 = vrot.slane %v1990_v9, 1 }
 0x198   : > { %v7473_v16 = vpop.f32.mrf.mxu2  ;;  %v7480_v44 = vpop.f32.mrf.mxu3 }
 0x199   : > { %v1993_v17 = vsel %vm1917_vm7, %v1988_v63, %v1992_v57  ;;  %v5946_v63 = vld [vmem:[#allocation4 + $0x64] sm:$0xff] }
 0x1a0   : > { %v7478_v24 = vpop.f32.mrf.mxu2  ;;  %v7482_v43 = vpop.f32.mrf.mxu0 }
 0x1a1   : > { %2538 = vmatmul.bf16.gmra.mxu3 %v2394_v29  ;;  %v7493_v19 = vpop.f32.mrf.mxu3 }
 0x1a2   : > { %v7484_v35 = vpop.f32.mrf.mxu1 }
 0x1a3   : > { %2840 = vmatmul.bf16.gmra.mxu0 %v5962_v41  ;;  %v5903_v41 = vld [vmem:[#allocation4 + $0x44] sm:$0xff] }
 0x1a5   : > { %1709 = vmatmul.bf16.gmra.mxu1 %v5902_v45  ;;  %2121 = vmatmul.bf16.gmra.mxu2 %v1985_v58  ;;  %v2405_v45 = vshrl.u32 %v5945_v11, 16  ;;  %v2410_v58 = vrot.slane %v2408_v36, 4  ;;  %v2000_v36 = vrot.slane %v1998_v18, 1  ;;  %v6013_v18 = vld [vmem:[%s7947_s1 + $0x1a8] sm:$0xff] }
 0x1a6   : > { %3632 = vmatpush.bf16.msra.mxu2 %v6013_v18  ;;  %v5947_v18 = vld [vmem:[#allocation4 + $0x6c] sm:$0xff] }
 0x1a7   : > { %v2407_v56 = vrot.slane %v2405_v45, 3  ;;  %v1994_v45 = vshrl.u32 %v5925_v53, 16  ;;  %v2417_v53 = vshll.u32 %v5946_v63, 16 }
 0x1a8   : > { %v7487_v38 = vpop.f32.mrf.mxu2  ;;  %v7489_v47 = vpop.f32.mrf.mxu0 }
 0x1a9   : > { %v2411_v11 = vor.u32 %v2410_v58, %v2407_v56  ;;  %v6035_v56 = vld [vmem:[%s7947_s1 + $0x1f8] sm:$0xff]  ;;  %v1996_v31 = vor.u32 %v1994_v45, %v1992_v57  ;;  %v2419_v45 = vrot.slane %v2417_v53, 4 }
 0x1aa   : > { %v7491_v30 = vpop.f32.mrf.mxu1  ;;  %3932 = vmatpush.bf16.msra.mxu3 %v6035_v56  ;;  %v6011_v56 = vld [vmem:[%s7947_s1 + $0x198] sm:$0xff] }
 0x1ab   : > { %v2001_v37 = vsel %vm1917_vm7, %v1996_v31, %v2000_v36  ;;  %v6033_v31 = vld [vmem:[%s7947_s1 + $0x1e8] sm:$0xff] }
 0x1b0   : > { %v7496_v13 = vpop.f32.mrf.mxu2  ;;  %v7498_v21 = vpop.f32.mrf.mxu0 }
 0x1b1   : > { %2543 = vmatmul.bf16.gmra.mxu3 %v2403_v10 }
 0x1b2   : > { %v7500_v29 = vpop.f32.mrf.mxu1 }
 0x1b3   : > { %2845 = vmatmul.bf16.gmra.mxu0 %v5963_v28  ;;  %v2412_v28 = vsel %vm1240_vm12, %v2402_v5, %v2411_v11 }
 0x1b4   : > { %v7502_v12 = vpop.f32.mrf.mxu3 }
 0x1b5   : > { %1714 = vmatmul.bf16.gmra.mxu1 %v5903_v41  ;;  %2126 = vmatmul.bf16.gmra.mxu2 %v1993_v17 }
 0x1b8   : > { %v2087_v51 = vpop.f32.mrf.mxu2  ;;  %v7507_v61 = vpop.f32.mrf.mxu0 }
 0x1ba   : > { %v7512_v9 = vpop.f32.mrf.mxu1 }
 0x1bc   : > { %v7514_v10 = vpop.f32.mrf.mxu3 }
 0x1c0   : > { %v2089_v41 = vpop.f32.mrf.mxu2  ;;  %v2811_v17 = vpop.f32.mrf.mxu0 }
 0x1c1   : > { %2548 = vmatmul.bf16.gmra.mxu3 %v2412_v28  ;;  %v2414_v28 = vshrl.u32 %v5946_v63, 16  ;;  %v6012_v63 = vld [vmem:[%s7947_s1 + $0x1a0] sm:$0xff] }
 0x1c2   : > { %v1680_v58 = vpop.f32.mrf.mxu1  ;;  %3633 = vmatpush.bf16.msra.mxu2 %v6012_v63 }
 0x1c3   : > { %v1764_v32 = vadd.f32 %v1680_v58, %v7457_v25  ;;  %2850 = vmatmul.bf16.gmra.mxu0 %v5964_v54  ;;  %v2416_v57 = vrot.slane %v2414_v28, 3  ;;  %v7529_v58 = vld [vmem:[#allocation4 + $0x64] sm:$0xff] }
 0x1c4   : > { %v2509_v5 = vpop.f32.mrf.mxu3 }
 0x1c5   : > { %v2171_v15 = vadd.f32 %v2087_v51, %v1764_v32  ;;  %1719 = vmatmul.bf16.gmra.mxu1 %v5904_v1  ;;  %2131 = vmatmul.bf16.gmra.mxu2 %v2001_v37  ;;  %v6034_v32 = vld [vmem:[%s7947_s1 + $0x1f0] sm:$0xff]  ;;  %v6055_v1 = vld [vmem:[%s7947_s1 + $0x238] sm:$0xff] }
 0x1c6   : > { %3933 = vmatpush.bf16.msra.mxu3 %v6034_v32  ;;  %4338 = vmatpush.bf16.msra.mxu0 %v6055_v1  ;;  %v5965_v32 = vld [vmem:[#allocation4 + $0x60] sm:$0xff]  ;;  %v6054_v1 = vld [vmem:[%s7947_s1 + $0x230] sm:$0xff] }
 0x1c7   : > { %v2593_v3 = vadd.f32 %v2509_v5, %v2171_v15  ;;  %v5995_v15 = vld [vmem:[%s7947_s1 + $0x178] sm:$0xff]  ;;  %v2006_v5 = vshll.u32 %v7529_v58, 16  ;;  %3634 = vmatpush.bf16.msra.mxu2 %v6011_v56 }
 0x1c8   : > { %v2092_v25 = vpop.f32.mrf.mxu2  ;;  %v2813_v40 = vpop.f32.mrf.mxu0  ;;  %3208 = vmatpush.bf16.msra.mxu1 %v5995_v15 }
 0x1c9   : > { %v7531_v54 = vadd.f32 %v2811_v17, %v2593_v3  ;;  %v7546_v17 = vor.u32 %v2419_v45, %v2416_v57  ;;  %v2002_v45 = vshrl.u32 %v7505_v6, 16  ;;  %v7558_v63 = vrot.slane %v2006_v5, 1 }
 0x1ca   : > { %v1682_v37 = vpop.f32.mrf.mxu1  ;;  %3934 = vmatpush.bf16.msra.mxu3 %v6033_v31  ;;  %v5905_v31 = vld [vmem:[#allocation4 + $0x54] sm:$0xff]  ;;  %v2423_v5 = vshrl.u32 %v5947_v18, 16  ;;  %4339 = vmatpush.bf16.msra.mxu0 %v6054_v1 }
 0x1cb   : > { %v1765_v3 = vadd.f32 %v1682_v37, %v7463_v55  ;;  %v2421_v55 = vsel %vm1240_vm12, %v2411_v11, %v7546_v17  ;;  %v1836_v37 = vld [vmem:[#allocation4 + $0x6c] sm:$0x1]  ;;  %v6010_v11 = vld [vmem:[%s7947_s1 + $0x190] sm:$0xff] }
 0x1cc   : > { %v2511_v51 = vpop.f32.mrf.mxu3  ;;  %3635 = vmatpush.bf16.msra.mxu2 %v6010_v11 }
 0x1cd   : > { %v2172_v28 = vadd.f32 %v2089_v41, %v1765_v3  ;;  %v5994_v41 = vld [vmem:[%s7947_s1 + $0x170] sm:$0xff]  ;;  %v2004_v3 = vor.u32 %v2002_v45, %v2000_v36  ;;  %v1903_v36 = vunpack.c.l.b16 %v1836_v37  ;;  %v6053_v45 = vld [vmem:[%s7947_s1 + $0x228] sm:$0xff]  ;;  %v2425_v37 = vrot.slane %v2423_v5, 3 }
 0x1ce   : > { %3209 = vmatpush.bf16.msra.mxu1 %v5994_v41  ;;  %4340 = vmatpush.bf16.msra.mxu0 %v6053_v45 }
 0x1cf   : > { %v2594_v53 = vadd.f32 %v2511_v51, %v2172_v28  ;;  %v2426_v28 = vshll.u32 %v5947_v18, 16 }
 0x1d0   : > { %v2094_v57 = vpop.f32.mrf.mxu2  ;;  %v2816_v15 = vpop.f32.mrf.mxu0 }
 0x1d1   : > { %2553 = vmatmul.bf16.gmra.mxu3 %v2421_v55  ;;  %v7560_v34 = vadd.f32 %v2813_v40, %v2594_v53  ;;  %v6032_v40 = vld [vmem:[%s7947_s1 + $0x1e0] sm:$0xff]  ;;  %v5993_v53 = vld [vmem:[%s7947_s1 + $0x168] sm:$0xff]  ;;  %v2009_v55 = vsel %vm1917_vm7, %v2004_v3, %v7558_v63  ;;  %v2428_v11 = vrot.slane %v2426_v28, 4  ;;  %v2243_v3 = vld [vmem:[#allocation4 + $0x74] sm:$0xf] }
 0x1d2   : > { %v1685_v6 = vpop.f32.mrf.mxu1  ;;  %3935 = vmatpush.bf16.msra.mxu3 %v6032_v40  ;;  %3210 = vmatpush.bf16.msra.mxu1 %v5993_v53  ;;  %v6008_v40 = vld [vmem:[%s7947_s1 + $0x180] sm:$0xff]  ;;  %v2310_v53 = vunpack.c.l.b16 %v2243_v3 }
 0x1d3   : > { %v1766_v51 = vadd.f32 %v1685_v6, %v7467_v23  ;;  %2855 = vmatmul.bf16.gmra.mxu0 %v5965_v32  ;;  %v6009_v23 = vld [vmem:[%s7947_s1 + $0x188] sm:$0xff]  ;;  %v6031_v32 = vld [vmem:[%s7947_s1 + $0x1d8] sm:$0xff]  ;;  %v1916_v6 = vpack.c.b16 %v1903_v36, %v1903_v36  ;;  %v7604_v28 = vor.u32 %v2428_v11, %v2425_v37 }
 0x1d4   : > { %v2514_v56 = vpop.f32.mrf.mxu3  ;;  %3636 = vmatpush.bf16.msra.mxu2 %v6009_v23  ;;  %v6051_v23 = vld [vmem:[%s7947_s1 + $0x218] sm:$0xff]  ;;  %v2323_v37 = vpack.c.b16 %v2310_v53, %v2310_v53 }
 0x1d5   : > { %v2173_v18 = vadd.f32 %v2092_v25, %v1766_v51  ;;  %1724 = vmatmul.bf16.gmra.mxu1 %v5905_v31  ;;  %2136 = vmatmul.bf16.gmra.mxu2 %v2009_v55  ;;  %v5992_v25 = vld [vmem:[%s7947_s1 + $0x160] sm:$0xff]  ;;  %v5991_v55 = vld [vmem:[%s7947_s1 + $0x158] sm:$0xff]  ;;  %v2014_v36 = vshll.u32 %v1916_v6, 16 }
 0x1d6   : > { %v6052_v51 = vld [vmem:[%s7947_s1 + $0x220] sm:$0xff]  ;;  %3936 = vmatpush.bf16.msra.mxu3 %v6031_v32  ;;  %3211 = vmatpush.bf16.msra.mxu1 %v5992_v25  ;;  %v2432_v53 = vshrl.u32 %v2323_v37, 16 }
 0x1d7   : > { %v2595_v41 = vadd.f32 %v2514_v56, %v2173_v18  ;;  %4341 = vmatpush.bf16.msra.mxu0 %v6052_v51  ;;  %v2010_v18 = vshrl.u32 %v7529_v58, 16  ;;  %v2016_v3 = vrot.slane %v2014_v36, 1  ;;  %v5996_v25 = vld [vmem:[#allocation4 + $0x20] sm:$0xf0]  ;;  %v5966_v51 = vld [vmem:[#allocation4 + $0x68] sm:$0xff] }
 0x1d8   : > { %v2097_v1 = vpop.f32.mrf.mxu2  ;;  %v2818_v49 = vpop.f32.mrf.mxu0  ;;  %3637 = vmatpush.bf16.msra.mxu2 %v6008_v40  ;;  %v5989_v36 = vld [vmem:[%s7947_s1 + $0x148] sm:$0xff] }
 0x1d9   : > { %v7589_v22 = vadd.f32 %v2816_v15, %v2595_v41  ;;  %v6030_v15 = vld [vmem:[%s7947_s1 + $0x1d0] sm:$0xff]  ;;  %v2430_v41 = vsel %vm1240_vm12, %v7546_v17, %v7604_v28  ;;  %v2012_v6 = vor.u32 %v2010_v18, %v7558_v63  ;;  %v6028_v63 = vld [vmem:[%s7947_s1 + $0x1c0] sm:$0xff]  ;;  %v6049_v18 = vld [vmem:[%s7947_s1 + $0x208] sm:$0xff] }
 0x1da   : > { %v1687_v56 = vpop.f32.mrf.mxu1  ;;  %3937 = vmatpush.bf16.msra.mxu3 %v6030_v15  ;;  %3212 = vmatpush.bf16.msra.mxu1 %v5991_v55  ;;  %v6050_v17 = vld [vmem:[%s7947_s1 + $0x210] sm:$0xff]  ;;  %v2435_v55 = vshll.u32 %v2323_v37, 16 }
 0x1db   : > { %v1767_v31 = vadd.f32 %v1687_v56, %v7475_v42  ;;  %v6029_v42 = vld [vmem:[%s7947_s1 + $0x1c8] sm:$0xff]  ;;  %4342 = vmatpush.bf16.msra.mxu0 %v6051_v23  ;;  %v5990_v56 = vld [vmem:[%s7947_s1 + $0x150] sm:$0xff]  ;;  %v2017_v23 = vsel %vm1917_vm7, %v2012_v6, %v2016_v3 }
 0x1dc   : > { %v2516_v5 = vpop.f32.mrf.mxu3  ;;  %v2437_v37 = vrot.slane %v2435_v55, 4 }
 0x1dd   : > { %v2174_v45 = vadd.f32 %v2094_v57, %v1767_v31  ;;  %v5596_v57 = vld [vmem:[#allocation4 + $0x20] sm:$0x8] }
 0x1de   : > { %3938 = vmatpush.bf16.msra.mxu3 %v6029_v42  ;;  %3213 = vmatpush.bf16.msra.mxu1 %v5990_v56 }
 0x1df   : > { %v2596_v32 = vadd.f32 %v2516_v5, %v2174_v45  ;;  %v5906_v5 = vld [vmem:[#allocation4 + $0x5c] sm:$0xff]  ;;  %v5597_v45 = vor.u32 %v5996_v25, %v5596_v57  ;;  %4343 = vmatpush.bf16.msra.mxu0 %v6050_v17 }
 0x1e0   : > { %v2099_v11 = vpop.f32.mrf.mxu2  ;;  %v2821_v40 = vpop.f32.mrf.mxu0  ;;  %v5988_v57 = vld [vmem:[%s7947_s1 + $0x140] sm:$0xff] }
 0x1e1   : > { %2558 = vmatmul.bf16.gmra.mxu3 %v2430_v41  ;;  %v7620_v58 = vadd.f32 %v2818_v49, %v2596_v32  ;;  %v2434_v41 = vrot.slane %v2432_v53, 3  ;;  %v3455_v56 = vshrl.u32 %v5597_v45, 16 }
 0x1e2   : > { %v1690_v15 = vpop.f32.mrf.mxu1  ;;  %3939 = vmatpush.bf16.msra.mxu3 %v6028_v63  ;;  %3214 = vmatpush.bf16.msra.mxu1 %v5989_v36 }
 0x1e3   : > { %v1768_v31 = vadd.f32 %v1690_v15, %v7482_v43  ;;  %2860 = vmatmul.bf16.gmra.mxu0 %v5966_v51  ;;  %v5997_v43 = vld [vmem:[#allocation4 + $0x28] sm:$0xff]  ;;  %v3458_v15 = vshll.u32 %v5597_v45, 16  ;;  %v3457_v53 = vrot.slane %v3455_v56, 3 }
 0x1e4   : > { %v2519_v49 = vpop.f32.mrf.mxu3  ;;  %4344 = vmatpush.bf16.msra.mxu0 %v6049_v18  ;;  %v3463_v17 = vshrl.u32 %v5997_v43, 16  ;;  %v3466_v63 = vshll.u32 %v5997_v43, 16 }
 0x1e5   : > { %v2175_v42 = vadd.f32 %v2097_v1, %v1768_v31  ;;  %1729 = vmatmul.bf16.gmra.mxu1 %v5906_v5  ;;  %2141 = vmatmul.bf16.gmra.mxu2 %v2017_v23  ;;  %v6048_v1 = vld [vmem:[%s7947_s1 + $0x200] sm:$0xff]  ;;  %v2438_v5 = vor.u32 %v2437_v37, %v2434_v41 }
 0x1e6   : > { %3215 = vmatpush.bf16.msra.mxu1 %v5988_v57  ;;  %v3465_v36 = vrot.slane %v3463_v17, 3  ;;  %v3468_v23 = vrot.slane %v3466_v63, 4  ;;  %v6036_v37 = vld [vmem:[#allocation4 + $0x24] sm:$0xff] }
 0x1e7   : > { %v2597_v32 = vadd.f32 %v2519_v49, %v2175_v42  ;;  %v2439_v18 = vsel %vm1240_vm12, %v7604_v28, %v2438_v5  ;;  %v5976_v28 = vld [vmem:[#allocation4 + $0x18] sm:$0xff]  ;;  %v4181_v63 = vshll.u32 %v6036_v37, 16 }
 0x1e8   : > { %v2102_v51 = vpop.f32.mrf.mxu2  ;;  %v2823_v3 = vpop.f32.mrf.mxu0  ;;  %4345 = vmatpush.bf16.msra.mxu0 %v6048_v1  ;;  %v3469_v41 = vor.u32 %v3468_v23, %v3465_v36  ;;  %v5998_v1 = vld [vmem:[#allocation4 + $0x30] sm:$0xff]  ;;  %v3051_v23 = vshll.u32 %v5976_v28, 16 }
 0x1e9   : > { %v7639_v6 = vadd.f32 %v2821_v40, %v2597_v32  ;;  %v3460_v40 = vrot.slane %v3458_v15, 4  ;;  %v3472_v5 = vshrl.u32 %v5998_v1, 16 }
 0x1ea   : > { %v1692_v25 = vpop.f32.mrf.mxu1 }
 0x1eb   : > { %v1769_v31 = vadd.f32 %v1692_v25, %v7489_v47  ;;  %v3461_v32 = vor.u32 %v3460_v40, %v3457_v53  ;;  %v5967_v47 = vld [vmem:[#allocation4 + $0x70] sm:$0xff]  ;;  %v3475_v53 = vshll.u32 %v5998_v1, 16 }
 0x1ec   : > { %v2521_v49 = vpop.f32.mrf.mxu3  ;;  %v6037_v40 = vld [vmem:[#allocation4 + $0x2c] sm:$0xff] }
 0x1ed   : > { %v2176_v55 = vadd.f32 %v2099_v11, %v1769_v31  ;;  %v5907_v11 = vld [vmem:[#allocation4 + $0x64] sm:$0xff]  ;;  %v3470_v57 = vsel %vm1240_vm12, %v3461_v32, %v3469_v41 }
 0x1ee   : > { %v7654_v31 = vld [vmem:[#allocation4 + $0x20] sm:$0xff] }
 0x1ef   : > { %v2598_v45 = vadd.f32 %v2521_v49, %v2176_v55  ;;  %v3056_v32 = vshll.u32 %v7654_v31, 16 }
 0x1f0   : > { %v2104_v42 = vpop.f32.mrf.mxu2  ;;  %v2826_v43 = vpop.f32.mrf.mxu0 }
 0x1f1   : > { %2563 = vmatmul.bf16.gmra.mxu3 %v2439_v18  ;;  %v7650_v26 = vadd.f32 %v2823_v3, %v2598_v45  ;;  %v4183_v45 = vrot.slane %v4181_v63, 1  ;;  %v3058_v52 = vrot.slane %v3056_v32, 1 }
 0x1f2   : > { %v1695_v25 = vpop.f32.mrf.mxu1 }
 0x1f3   : > { %v1770_v56 = vadd.f32 %v1695_v25, %v7498_v21  ;;  %2865 = vmatmul.bf16.gmra.mxu0 %v5967_v47  ;;  %v3474_v47 = vrot.slane %v3472_v5, 3  ;;  %v3477_v25 = vrot.slane %v3475_v53, 4 }
 0x1f4   : > { %v2524_v15 = vpop.f32.mrf.mxu3 }
 0x1f5   : > { %v2177_v17 = vadd.f32 %v2102_v51, %v1770_v56  ;;  %1734 = vmatmul.bf16.gmra.mxu1 %v5907_v11  ;;  %3638 = vmatmul.bf16.vlgmr.msra.gmra.mxu2 %v3470_v57  ;;  %v4179_v56 = vshrl.u32 %v6036_v37, 16  ;;  %v6016_v57 = vld [vmem:[#allocation4 + $0x24] sm:$0xff]  ;;  %v3478_v8 = vor.u32 %v3477_v25, %v3474_v47 }
 0x1f6   : > { %v7668_v25 = vld [vmem:[#allocation4 + $0x28] sm:$0xff] }
 0x1f7   : > { %v2599_v3 = vadd.f32 %v2524_v15, %v2177_v17  ;;  %v4186_v15 = vshll.u32 %v6037_v40, 16  ;;  %v3053_v17 = vrot.slane %v3051_v23, 1  ;;  %v4184_v1 = vor.u32 %v4183_v45, %v4179_v56 }
 0x1f8   : > { %v2107_v49 = vpop.f32.mrf.mxu2  ;;  %v2828_v21 = vpop.f32.mrf.mxu0  ;;  %v3479_v23 = vsel %vm1240_vm12, %v3469_v41, %v3478_v8 }
 0x1f9   : > { %v7656_v55 = vadd.f32 %v2826_v43, %v2599_v3  ;;  %v3049_v3 = vshrl.u32 %v5976_v28, 16  ;;  %v4188_v63 = vrot.slane %v4186_v15, 1  ;;  %v5999_v28 = vld [vmem:[#allocation4 + $0x38] sm:$0xff] }
 0x1fa   : > { %v1697_v36 = vpop.f32.mrf.mxu1  ;;  %v3484_v56 = vshll.u32 %v5999_v28, 16 }
 0x1fb   : > { %v1771_v18 = vadd.f32 %v1697_v36, %v7507_v61  ;;  %v3054_v33 = vor.u32 %v3053_v17, %v3049_v3  ;;  %v4189_v5 = vsel %vm1917_vm7, %v4184_v1, %v4188_v63  ;;  %v6017_v17 = vld [vmem:[#allocation4 + $0x2c] sm:$0xff]  ;;  %v3064_v1 = vshll.u32 %v7668_v25, 16 }
 0x1fc   : > { %v2526_v51 = vpop.f32.mrf.mxu3 }
 0x1fd   : > { %v2178_v11 = vadd.f32 %v2104_v42, %v1771_v18  ;;  %v3059_v53 = vsel %vm1917_vm7, %v3054_v33, %v3058_v52 }
 0x1ff   : > { %v2600_v62 = vadd.f32 %v2526_v51, %v2178_v11  ;;  %v4190_v11 = vshrl.u32 %v6037_v40, 16  ;;  %v3066_v40 = vrot.slane %v3064_v1, 1 }
 0x200   : > { %v2109_v43 = vpop.f32.mrf.mxu2  ;;  %v2831_v61 = vpop.f32.mrf.mxu0 }
 0x201   : > { %3940 = vmatmul.bf16.vlgmr.msra.gmra.mxu3 %v6016_v57  ;;  %v7660_v20 = vadd.f32 %v2828_v21, %v2600_v62  ;;  %v6038_v21 = vld [vmem:[#allocation4 + $0x34] sm:$0xff]  ;;  %v3060_v57 = vshrl.u32 %v7654_v31, 16 }
 0x202   : > { %v1700_v36 = vpop.f32.mrf.mxu1  ;;  %v4194_v41 = vshll.u32 %v6038_v21, 16 }
 0x203   : > { %v1772_v37 = vadd.f32 %v1700_v36, %v7484_v35  ;;  %4346 = vmatmul.bf16.vlgmr.msra.gmra.mxu0 %v4189_v5  ;;  %v3481_v35 = vshrl.u32 %v5999_v28, 16  ;;  %v4192_v36 = vor.u32 %v4190_v11, %v4188_v63 }
 0x204   : > { %v2529_v42 = vpop.f32.mrf.mxu3 }
 0x205   : > { %v2179_v45 = vadd.f32 %v2107_v49, %v1772_v37  ;;  %3216 = vmatmul.bf16.vlgmr.msra.gmra.mxu1 %v3059_v53  ;;  %3643 = vmatmul.bf16.gmra.mxu2 %v3479_v23  ;;  %v3483_v3 = vrot.slane %v3481_v35, 3  ;;  %v4196_v53 = vrot.slane %v4194_v41, 1  ;;  %v6000_v35 = vld [vmem:[#allocation4 + $0x40] sm:$0xff] }
 0x206   : > { %v3493_v11 = vshll.u32 %v6000_v35, 16  ;;  %v6039_v41 = vld [vmem:[#allocation4 + $0x3c] sm:$0xff] }
 0x207   : > { %v2601_v18 = vadd.f32 %v2529_v42, %v2179_v45  ;;  %v3062_v42 = vor.u32 %v3060_v57, %v3058_v52 }
 0x208   : > { %v2112_v62 = vpop.f32.mrf.mxu2  ;;  %v2833_v32 = vpop.f32.mrf.mxu0 }
 0x209   : > { %v7666_v51 = vadd.f32 %v2831_v61, %v2601_v18  ;;  %v3486_v61 = vrot.slane %v3484_v56, 4 }
 0x20a   : > { %v1702_v47 = vpop.f32.mrf.mxu1 }
 0x20b   : > { %v1773_v15 = vadd.f32 %v1702_v47, %v7491_v30  ;;  %v3487_v28 = vor.u32 %v3486_v61, %v3483_v3  ;;  %v3067_v47 = vsel %vm1917_vm7, %v3062_v42, %v3066_v40  ;;  %v4198_v61 = vshrl.u32 %v6038_v21, 16  ;;  %v6018_v42 = vld [vmem:[#allocation4 + $0x34] sm:$0xff] }
 0x20c   : > { %v2531_v33 = vpop.f32.mrf.mxu3 }
 0x20d   : > { %v2180_v49 = vadd.f32 %v2109_v43, %v1773_v15  ;;  %v4197_v43 = vsel %vm1917_vm7, %v4192_v36, %v4196_v53  ;;  %v3488_v63 = vsel %vm1240_vm12, %v3478_v8, %v3487_v28  ;;  %v4202_v36 = vshll.u32 %v6039_v41, 16 }
 0x20f   : > { %v2602_v5 = vadd.f32 %v2531_v33, %v2180_v49  ;;  %v3490_v33 = vshrl.u32 %v6000_v35, 16 }
 0x210   : > { %v2114_v37 = vpop.f32.mrf.mxu2  ;;  %v2836_v30 = vpop.f32.mrf.mxu0 }
 0x211   : > { %3945 = vmatmul.bf16.gmra.mxu3 %v6017_v17  ;;  %v7673_v23 = vadd.f32 %v2833_v32, %v2602_v5  ;;  %v7679_v32 = vld [vmem:[#allocation4 + $0x30] sm:$0xff]  ;;  %v3492_v3 = vrot.slane %v3490_v33, 3 }
 0x212   : > { %v1705_v45 = vpop.f32.mrf.mxu1  ;;  %v3072_v8 = vshll.u32 %v7679_v32, 16 }
 0x213   : > { %v1774_v31 = vadd.f32 %v1705_v45, %v7500_v29  ;;  %4351 = vmatmul.bf16.gmra.mxu0 %v4197_v43  ;;  %v4200_v45 = vor.u32 %v4198_v61, %v4196_v53 }
 0x214   : > { %v2534_v18 = vpop.f32.mrf.mxu3 }
 0x215   : > { %v2181_v56 = vadd.f32 %v2112_v62, %v1774_v31  ;;  %3221 = vmatmul.bf16.gmra.mxu1 %v3067_v47  ;;  %3648 = vmatmul.bf16.gmra.mxu2 %v3488_v63  ;;  %v3495_v62 = vrot.slane %v3493_v11, 4  ;;  %v4204_v63 = vrot.slane %v4202_v36, 1 }
 0x217   : > { %v2603_v52 = vadd.f32 %v2534_v18, %v2181_v56  ;;  %v3074_v18 = vrot.slane %v3072_v8, 1  ;;  %v3496_v47 = vor.u32 %v3495_v62, %v3492_v3  ;;  %v4205_v33 = vsel %vm1917_vm7, %v4200_v45, %v4204_v63  ;;  %v7694_v62 = vld [vmem:[#allocation4 + $0x38] sm:$0xff] }
 0x218   : > { %v2117_v15 = vpop.f32.mrf.mxu2  ;;  %v2838_v29 = vpop.f32.mrf.mxu0  ;;  %v3076_v45 = vshrl.u32 %v7679_v32, 16 }
 0x219   : > { %v7681_v49 = vadd.f32 %v2836_v30, %v2603_v52  ;;  %v3068_v30 = vshrl.u32 %v7668_v25, 16  ;;  %v3497_v11 = vsel %vm1240_vm12, %v3487_v28, %v3496_v47  ;;  %v6001_v25 = vld [vmem:[#allocation4 + $0x48] sm:$0xff] }
 0x21a   : > { %v1707_v57 = vpop.f32.mrf.mxu1  ;;  %v3502_v61 = vshll.u32 %v6001_v25, 16 }
 0x21b   : > { %v1775_v17 = vadd.f32 %v1707_v57, %v7512_v9  ;;  %v3070_v52 = vor.u32 %v3068_v30, %v3066_v40  ;;  %v3080_v30 = vshll.u32 %v7694_v62, 16 }
 0x21c   : > { %v2536_v1 = vpop.f32.mrf.mxu3 }
 0x21d   : > { %v2182_v5 = vadd.f32 %v2114_v37, %v1775_v17  ;;  %v3075_v53 = vsel %vm1917_vm7, %v3070_v52, %v3074_v18 }
 0x21f   : > { %v2604_v43 = vadd.f32 %v2536_v1, %v2182_v5  ;;  %v6040_v1 = vld [vmem:[#allocation4 + $0x44] sm:$0xff] }
 0x220   : > { %v2119_v31 = vpop.f32.mrf.mxu2  ;;  %v2841_v9 = vpop.f32.mrf.mxu0  ;;  %v4210_v28 = vshll.u32 %v6040_v1, 16 }
 0x221   : > { %3950 = vmatmul.bf16.gmra.mxu3 %v6018_v42  ;;  %v7686_v35 = vadd.f32 %v2838_v29, %v2604_v43  ;;  %v4206_v42 = vshrl.u32 %v6039_v41, 16  ;;  %v6019_v43 = vld [vmem:[#allocation4 + $0x3c] sm:$0xff]  ;;  %v3082_v41 = vrot.slane %v3080_v30, 1 }
 0x222   : > { %v1710_v56 = vpop.f32.mrf.mxu1 }
 0x223   : > { %v1776_v21 = vadd.f32 %v1710_v56, %v7473_v16  ;;  %4356 = vmatmul.bf16.gmra.mxu0 %v4205_v33  ;;  %v3499_v16 = vshrl.u32 %v6001_v25, 16  ;;  %v4208_v52 = vor.u32 %v4206_v42, %v4204_v63 }
 0x224   : > { %v2539_v37 = vpop.f32.mrf.mxu3 }
 0x225   : > { %v2183_v57 = vadd.f32 %v2117_v15, %v1776_v21  ;;  %3226 = vmatmul.bf16.gmra.mxu1 %v3075_v53  ;;  %3653 = vmatmul.bf16.gmra.mxu2 %v3497_v11  ;;  %v3501_v56 = vrot.slane %v3499_v16, 3  ;;  %v4212_v53 = vrot.slane %v4210_v28, 1  ;;  %v6002_v16 = vld [vmem:[#allocation4 + $0x50] sm:$0xff] }
 0x226   : > { %v3511_v42 = vshll.u32 %v6002_v16, 16  ;;  %v6041_v28 = vld [vmem:[#allocation4 + $0x4c] sm:$0xff] }
 0x227   : > { %v2605_v17 = vadd.f32 %v2539_v37, %v2183_v57  ;;  %v3078_v37 = vor.u32 %v3076_v45, %v3074_v18 }
 0x228   : > { %v2122_v29 = vpop.f32.mrf.mxu2  ;;  %v2843_v40 = vpop.f32.mrf.mxu0 }
 0x229   : > { %v7692_v8 = vadd.f32 %v2841_v9, %v2605_v17  ;;  %v3504_v9 = vrot.slane %v3502_v61, 4 }
 0x22a   : > { %v1712_v3 = vpop.f32.mrf.mxu1 }
 0x22b   : > { %v1777_v36 = vadd.f32 %v1712_v3, %v7478_v24  ;;  %v3505_v25 = vor.u32 %v3504_v9, %v3501_v56  ;;  %v3083_v3 = vsel %vm1917_vm7, %v3078_v37, %v3082_v41  ;;  %v4214_v9 = vshrl.u32 %v6040_v1, 16  ;;  %v6020_v37 = vld [vmem:[#allocation4 + $0x44] sm:$0xff] }
 0x22c   : > { %v2541_v5 = vpop.f32.mrf.mxu3 }
 0x22d   : > { %v2184_v15 = vadd.f32 %v2119_v31, %v1777_v36  ;;  %v4213_v31 = vsel %vm1917_vm7, %v4208_v52, %v4212_v53  ;;  %v3506_v63 = vsel %vm1240_vm12, %v3496_v47, %v3505_v25  ;;  %v4218_v52 = vshll.u32 %v6041_v28, 16 }
 0x22f   : > { %v2606_v33 = vadd.f32 %v2541_v5, %v2184_v15  ;;  %v3508_v5 = vshrl.u32 %v6002_v16, 16 }
 0x230   : > { %v2124_v21 = vpop.f32.mrf.mxu2  ;;  %v2846_v24 = vpop.f32.mrf.mxu0 }
 0x231   : > { %3955 = vmatmul.bf16.gmra.mxu3 %v6019_v43  ;;  %v7699_v11 = vadd.f32 %v2843_v40, %v2606_v33  ;;  %v7705_v40 = vld [vmem:[#allocation4 + $0x40] sm:$0xff]  ;;  %v3510_v56 = vrot.slane %v3508_v5, 3 }
 0x232   : > { %v1715_v57 = vpop.f32.mrf.mxu1  ;;  %v3088_v47 = vshll.u32 %v7705_v40, 16 }
 0x233   : > { %v1778_v32 = vadd.f32 %v1715_v57, %v7487_v38  ;;  %4361 = vmatmul.bf16.gmra.mxu0 %v4213_v31  ;;  %v4216_v57 = vor.u32 %v4214_v9, %v4212_v53  ;;  %v5982_v9 = vld [vmem:[#allocation4 + $0x48] sm:$0xff] }
 0x234   : > { %v2544_v17 = vpop.f32.mrf.mxu3 }
 0x235   : > { %v2185_v61 = vadd.f32 %v2122_v29, %v1778_v32  ;;  %3231 = vmatmul.bf16.gmra.mxu1 %v3083_v3  ;;  %3658 = vmatmul.bf16.gmra.mxu2 %v3506_v63  ;;  %v3513_v29 = vrot.slane %v3511_v42, 4  ;;  %v4220_v63 = vrot.slane %v4218_v52, 1 }
 0x237   : > { %v2607_v18 = vadd.f32 %v2544_v17, %v2185_v61  ;;  %v3090_v17 = vrot.slane %v3088_v47, 1  ;;  %v3514_v3 = vor.u32 %v3513_v29, %v3510_v56  ;;  %v4221_v5 = vsel %vm1917_vm7, %v4216_v57, %v4220_v63 }
 0x238   : > { %v2127_v36 = vpop.f32.mrf.mxu2  ;;  %v2848_v38 = vpop.f32.mrf.mxu0 }
 0x239   : > { %v7707_v15 = vadd.f32 %v2846_v24, %v2607_v18  ;;  %v3084_v24 = vshrl.u32 %v7694_v62, 16  ;;  %v3515_v42 = vsel %vm1240_vm12, %v3505_v25, %v3514_v3 }
 0x23a   : > { %v1717_v45 = vpop.f32.mrf.mxu1 }
 0x23b   : > { %v1779_v43 = vadd.f32 %v1717_v45, %v7496_v13  ;;  %v3086_v18 = vor.u32 %v3084_v24, %v3082_v41  ;;  %v6003_v45 = vld [vmem:[#allocation4 + $0x58] sm:$0xff]  ;;  %v3092_v24 = vshrl.u32 %v7705_v40, 16 }
 0x23c   : > { %v2546_v30 = vpop.f32.mrf.mxu3  ;;  %v3517_v47 = vshrl.u32 %v6003_v45, 16  ;;  %v3520_v41 = vshll.u32 %v6003_v45, 16 }
 0x23d   : > { %v2186_v33 = vadd.f32 %v2124_v21, %v1779_v43  ;;  %v3091_v53 = vsel %vm1917_vm7, %v3086_v18, %v3090_v17  ;;  %v7718_v43 = vld [vmem:[#allocation4 + $0x54] sm:$0xff]  ;;  %v4222_v18 = vshrl.u32 %v6041_v28, 16 }
 0x23e   : > { %v4226_v52 = vshll.u32 %v7718_v43, 16 }
 0x23f   : > { %v2608_v31 = vadd.f32 %v2546_v30, %v2186_v33 }
 0x240   : > { %v2129_v32 = vpop.f32.mrf.mxu2  ;;  %v2851_v13 = vpop.f32.mrf.mxu0 }
 0x241   : > { %3960 = vmatmul.bf16.gmra.mxu3 %v6020_v37  ;;  %v7712_v16 = vadd.f32 %v2848_v38, %v2608_v31  ;;  %v3519_v37 = vrot.slane %v3517_v47, 3  ;;  %v6021_v31 = vld [vmem:[#allocation4 + $0x4c] sm:$0xff] }
 0x242   : > { %v1720_v61 = vpop.f32.mrf.mxu1 }
 0x243   : > { %v1780_v1 = vadd.f32 %v1720_v61, %v7455_v46  ;;  %4366 = vmatmul.bf16.gmra.mxu0 %v4221_v5  ;;  %v3096_v61 = vshll.u32 %v5982_v9, 16  ;;  %v4228_v5 = vrot.slane %v4226_v52, 1 }
 0x244   : > { %v2549_v21 = vpop.f32.mrf.mxu3 }
 0x245   : > { %v2187_v62 = vadd.f32 %v2127_v36, %v1780_v1  ;;  %3236 = vmatmul.bf16.gmra.mxu1 %v3091_v53  ;;  %3663 = vmatmul.bf16.gmra.mxu2 %v3515_v42  ;;  %v3522_v36 = vrot.slane %v3520_v41, 4  ;;  %v4224_v42 = vor.u32 %v4222_v18, %v4220_v63 }
 0x247   : > { %v2609_v38 = vadd.f32 %v2549_v21, %v2187_v62  ;;  %v3094_v21 = vor.u32 %v3092_v24, %v3090_v17  ;;  %v3523_v53 = vor.u32 %v3522_v36, %v3519_v37  ;;  %v4229_v47 = vsel %vm1917_vm7, %v4224_v42, %v4228_v5  ;;  %v7731_v17 = vld [vmem:[#allocation4 + $0x5c] sm:$0xff] }
 0x248   : > { %v2132_v30 = vpop.f32.mrf.mxu2  ;;  %v2853_v29 = vpop.f32.mrf.mxu0 }
 0x249   : > { %v7720_v56 = vadd.f32 %v2851_v13, %v2609_v38  ;;  %v3098_v38 = vrot.slane %v3096_v61, 1  ;;  %v3524_v28 = vsel %vm1240_vm12, %v3514_v3, %v3523_v53 }
 0x24a   : > { %v1722_v46 = vpop.f32.mrf.mxu1 }
 0x24b   : > { %v1781_v33 = vadd.f32 %v1722_v46, %v7460_v39  ;;  %v3099_v40 = vsel %vm1917_vm7, %v3094_v21, %v3098_v38  ;;  %v6004_v46 = vld [vmem:[#allocation4 + $0x60] sm:$0xff]  ;;  %v3100_v21 = vshrl.u32 %v5982_v9, 16 }
 0x24c   : > { %v2551_v25 = vpop.f32.mrf.mxu3 }
 0x24d   : > { %v2188_v57 = vadd.f32 %v2129_v32, %v1781_v33  ;;  %v3526_v33 = vshrl.u32 %v6004_v46, 16 }
 0x24f   : > { %v2610_v1 = vadd.f32 %v2551_v25, %v2188_v57  ;;  %v3529_v25 = vshll.u32 %v6004_v46, 16  ;;  %v5983_v57 = vld [vmem:[#allocation4 + $0x50] sm:$0xff]  ;;  %v3528_v61 = vrot.slane %v3526_v33, 3 }
 0x250   : > { %v2134_v13 = vpop.f32.mrf.mxu2  ;;  %v2856_v62 = vpop.f32.mrf.mxu0  ;;  %v3104_v42 = vshll.u32 %v5983_v57, 16 }
 0x251   : > { %3965 = vmatmul.bf16.gmra.mxu3 %v6021_v31  ;;  %v7725_v45 = vadd.f32 %v2853_v29, %v2610_v1  ;;  %v4234_v31 = vshll.u32 %v7731_v17, 16  ;;  %v6022_v1 = vld [vmem:[#allocation4 + $0x54] sm:$0xff] }
 0x252   : > { %v1725_v39 = vpop.f32.mrf.mxu1 }
 0x253   : > { %v1782_v32 = vadd.f32 %v1725_v39, %v7465_v60  ;;  %4371 = vmatmul.bf16.gmra.mxu0 %v4229_v47  ;;  %v4230_v39 = vshrl.u32 %v7718_v43, 16  ;;  %v4236_v47 = vrot.slane %v4234_v31, 1 }
 0x254   : > { %v2554_v41 = vpop.f32.mrf.mxu3 }
 0x255   : > { %v2189_v52 = vadd.f32 %v2132_v30, %v1782_v32  ;;  %3241 = vmatmul.bf16.gmra.mxu1 %v3099_v40  ;;  %3668 = vmatmul.bf16.gmra.mxu2 %v3524_v28  ;;  %v3531_v30 = vrot.slane %v3529_v25, 4  ;;  %v4232_v28 = vor.u32 %v4230_v39, %v4228_v5  ;;  %v7744_v5 = vld [vmem:[#allocation4 + $0x64] sm:$0xff] }
 0x257   : > { %v2611_v63 = vadd.f32 %v2554_v41, %v2189_v52  ;;  %v3102_v41 = vor.u32 %v3100_v21, %v3098_v38  ;;  %v3532_v40 = vor.u32 %v3531_v30, %v3528_v61  ;;  %v4237_v33 = vsel %vm1917_vm7, %v4232_v28, %v4236_v47 }
 0x258   : > { %v2137_v29 = vpop.f32.mrf.mxu2  ;;  %v2858_v36 = vpop.f32.mrf.mxu0  ;;  %v4238_v28 = vshrl.u32 %v7731_v17, 16 }
 0x259   : > { %v7733_v37 = vadd.f32 %v2856_v62, %v2611_v63  ;;  %v3106_v63 = vrot.slane %v3104_v42, 1  ;;  %v3533_v25 = vsel %vm1240_vm12, %v3523_v53, %v3532_v40 }
 0x25a   : > { %v1727_v60 = vpop.f32.mrf.mxu1 }
 0x25b   : > { %v1783_v24 = vadd.f32 %v1727_v60, %v7471_v48  ;;  %v3107_v43 = vsel %vm1917_vm7, %v3102_v41, %v3106_v63  ;;  %v6005_v60 = vld [vmem:[#allocation4 + $0x68] sm:$0xff]  ;;  %v6023_v41 = vld [vmem:[#allocation4 + $0x5c] sm:$0xff] }
 0x25c   : > { %v2556_v3 = vpop.f32.mrf.mxu3  ;;  %v3538_v61 = vshll.u32 %v6005_v60, 16 }
 0x25d   : > { %v2190_v18 = vadd.f32 %v2134_v13, %v1783_v24  ;;  %v7746_v24 = vld [vmem:[#allocation4 + $0x58] sm:$0xff] }
 0x25e   : > { %v3540_v39 = vrot.slane %v3538_v61, 4 }
 0x25f   : > { %v2612_v32 = vadd.f32 %v2556_v3, %v2190_v18  ;;  %v3535_v3 = vshrl.u32 %v6005_v60, 16 }
 0x260   : > { %v2139_v62 = vpop.f32.mrf.mxu2  ;;  %v2861_v52 = vpop.f32.mrf.mxu0 }
 0x261   : > { %3970 = vmatmul.bf16.gmra.mxu3 %v6022_v1  ;;  %v7738_v46 = vadd.f32 %v2858_v36, %v2612_v32  ;;  %v4242_v1 = vshll.u32 %v7744_v5, 16  ;;  %v3537_v42 = vrot.slane %v3535_v3, 3 }
 0x262   : > { %v1730_v48 = vpop.f32.mrf.mxu1 }
 0x263   : > { %v1784_v13 = vadd.f32 %v1730_v48, %v7480_v44  ;;  %4376 = vmatmul.bf16.gmra.mxu0 %v4237_v33  ;;  %v4244_v48 = vrot.slane %v4242_v1, 1  ;;  %v6006_v1 = vld [vmem:[#allocation4 + $0x70] sm:$0xff] }
 0x264   : > { %v2559_v9 = vpop.f32.mrf.mxu3 }
 0x265   : > { %v2191_v31 = vadd.f32 %v2137_v29, %v1784_v13  ;;  %3246 = vmatmul.bf16.gmra.mxu1 %v3107_v43  ;;  %3673 = vmatmul.bf16.gmra.mxu2 %v3533_v25  ;;  %v3112_v29 = vshll.u32 %v7746_v24, 16  ;;  %v3108_v13 = vshrl.u32 %v5983_v57, 16  ;;  %v3541_v43 = vor.u32 %v3540_v39, %v3537_v42 }
 0x266   : > { %v4240_v25 = vor.u32 %v4238_v28, %v4236_v47  ;;  %v6045_v47 = vld [vmem:[#allocation4 + $0x6c] sm:$0xff] }
 0x267   : > { %v2613_v38 = vadd.f32 %v2559_v9, %v2191_v31  ;;  %v3114_v9 = vrot.slane %v3112_v29, 1  ;;  %v3547_v29 = vshll.u32 %v6006_v1, 16 }
 0x268   : > { %v2142_v36 = vpop.f32.mrf.mxu2  ;;  %v2863_v44 = vpop.f32.mrf.mxu0  ;;  %v4245_v3 = vsel %vm1917_vm7, %v4240_v25, %v4244_v48  ;;  %v6024_v25 = vld [vmem:[#allocation4 + $0x64] sm:$0xff] }
 0x269   : > { %v7748_v30 = vadd.f32 %v2861_v52, %v2613_v38  ;;  %v3110_v38 = vor.u32 %v3108_v13, %v3106_v63  ;;  %v3544_v63 = vshrl.u32 %v6006_v1, 16 }
 0x26a   : > { %v1732_v18 = vpop.f32.mrf.mxu1 }
 0x26b   : > { %v1785_v53 = vadd.f32 %v1732_v18, %v7493_v19  ;;  %v3115_v17 = vsel %vm1917_vm7, %v3110_v38, %v3114_v9  ;;  %v3542_v18 = vsel %vm1240_vm12, %v3532_v40, %v3541_v43 }
 0x26c   : > { %v2561_v21 = vpop.f32.mrf.mxu3 }
 0x26d   : > { %v2192_v32 = vadd.f32 %v2139_v62, %v1785_v53 }
 0x26f   : > { %v2614_v33 = vadd.f32 %v2561_v21, %v2192_v32  ;;  %v7760_v21 = vld [vmem:[#allocation4 + $0x60] sm:$0xff]  ;;  %v4250_v32 = vshll.u32 %v6045_v47, 16 }
 0x270   : > { %v2144_v52 = vpop.f32.mrf.mxu2  ;;  %v2866_v19 = vpop.f32.mrf.mxu0  ;;  %v3120_v40 = vshll.u32 %v7760_v21, 16 }
 0x271   : > { %3975 = vmatmul.bf16.gmra.mxu3 %v6023_v41  ;;  %v7754_v60 = vadd.f32 %v2863_v44, %v2614_v33  ;;  %v3549_v33 = vrot.slane %v3547_v29, 4  ;;  %v4252_v38 = vrot.slane %v4250_v32, 1 }
 0x272   : > { %v1735_v31 = vpop.f32.mrf.mxu1 }
 0x273   : > { %v1786_v62 = vadd.f32 %v1735_v31, %v7502_v12  ;;  %4381 = vmatmul.bf16.gmra.mxu0 %v4245_v3  ;;  %v4246_v31 = vshrl.u32 %v7744_v5, 16 }
 0x274   : > { %v2564_v61 = vpop.f32.mrf.mxu3 }
 0x275   : > { %v2193_v57 = vadd.f32 %v2142_v36, %v1786_v62  ;;  %3251 = vmatmul.bf16.gmra.mxu1 %v3115_v17  ;;  %3678 = vmatmul.bf16.gmra.mxu2 %v3542_v18  ;;  %v3546_v36 = vrot.slane %v3544_v63, 3  ;;  %v4248_v18 = vor.u32 %v4246_v31, %v4244_v48 }
 0x277   : > { %v2615_v44 = vadd.f32 %v2564_v61, %v2193_v57  ;;  %v3122_v61 = vrot.slane %v3120_v40, 1  ;;  %v3550_v17 = vor.u32 %v3549_v33, %v3546_v36  ;;  %v4253_v63 = vsel %vm1917_vm7, %v4248_v18, %v4252_v38 }
 0x278   : > { %v3639_v53 = vpop.f32.mrf.mxu2  ;;  %v2868_v12 = vpop.f32.mrf.mxu0 }
 0x279   : > { %v7762_v42 = vadd.f32 %v2866_v19, %v2615_v44  ;;  %v3116_v19 = vshrl.u32 %v7746_v24, 16  ;;  %v3551_v29 = vsel %vm1240_vm12, %v3541_v43, %v3550_v17  ;;  %v7774_v24 = vld [vmem:[#allocation4 + $0x68] sm:$0xff] }
 0x27a   : > { %v1737_v39 = vpop.f32.mrf.mxu1  ;;  %v3128_v43 = vshll.u32 %v7774_v24, 16 }
 0x27b   : > { %v1787_v41 = vadd.f32 %v1737_v39, %v7514_v10  ;;  %v3118_v44 = vor.u32 %v3116_v19, %v3114_v9  ;;  %v6007_v39 = vld [vmem:[#allocation4 + $0x78] sm:$0xff] }
 0x27c   : > { %v2566_v28 = vpop.f32.mrf.mxu3 }
 0x27d   : > { %v2194_v13 = vadd.f32 %v2144_v52, %v1787_v41  ;;  %v3123_v5 = vsel %vm1917_vm7, %v3118_v44, %v3122_v61  ;;  %v3556_v41 = vshll.u32 %v6007_v39, 16  ;;  %v6025_v44 = vld [vmem:[#allocation4 + $0x6c] sm:$0xff] }
 0x27f   : > { %v2616_v3 = vadd.f32 %v2566_v28, %v2194_v13  ;;  %v7776_v28 = vld [vmem:[#allocation4 + $0x74] sm:$0xff]  ;;  %v3558_v31 = vrot.slane %v3556_v41, 4 }
 0x280   : > { %v3641_v62 = vpop.f32.mrf.mxu2  ;;  %v4347_v10 = vpop.f32.mrf.mxu0 }
 0x281   : > { %3980 = vmatmul.bf16.gmra.mxu3 %v6024_v25  ;;  %v7768_v1 = vadd.f32 %v2868_v12, %v2616_v3  ;;  %v3553_v12 = vshrl.u32 %v6007_v39, 16  ;;  %v4258_v3 = vshll.u32 %v7776_v28, 16  ;;  %v3130_v39 = vrot.slane %v3128_v43, 1 }
 0x282   : > { %v3217_v57 = vpop.f32.mrf.mxu1 }
 0x283   : > { %4386 = vmatmul.bf16.gmra.mxu0 %v4253_v63  ;;  %v3301_v32 = vadd.f32 %v3217_v57, %v7531_v54  ;;  %v3555_v25 = vrot.slane %v3553_v12, 3  ;;  %v4254_v54 = vshrl.u32 %v6045_v47, 16  ;;  %v3373_v57 = vld [vmem:[#allocation4 + $0x80] sm:$0xf] }
 0x284   : > { %v3941_v52 = vpop.f32.mrf.mxu3 }
 0x285   : > { %3256 = vmatmul.bf16.gmra.mxu1 %v3123_v5  ;;  %3683 = vmatmul.bf16.gmra.mxu2 %v3551_v29  ;;  %v3723_v9 = vadd.f32 %v3639_v53, %v3301_v32  ;;  %v4256_v63 = vor.u32 %v4254_v54, %v4252_v38  ;;  %v3124_v53 = vshrl.u32 %v7760_v21, 16  ;;  %v4260_v32 = vrot.slane %v4258_v3, 1 }
 0x287   : > { %v4025_v19 = vadd.f32 %v3941_v52, %v3723_v9  ;;  %v4261_v9 = vsel %vm1917_vm7, %v4256_v63, %v4260_v32 }
 0x288   : > { %v3644_v48 = vpop.f32.mrf.mxu2  ;;  %v4349_v40 = vpop.f32.mrf.mxu0 }
 0x289   : > { %v7782_v12 = vadd.f32 %v4347_v10, %v4025_v19 }
 0x28a   : > { %v3219_v36 = vpop.f32.mrf.mxu1 }
 0x28b   : > { %v3302_v33 = vadd.f32 %v3219_v36, %v7560_v34  ;;  %v3559_v34 = vor.u32 %v3558_v31, %v3555_v25  ;;  %v3440_v36 = vunpack.c.l.b16 %v3373_v57 }
 0x28c   : > { %v3943_v13 = vpop.f32.mrf.mxu3 }
 0x28d   : > { %v3724_v18 = vadd.f32 %v3641_v62, %v3302_v33  ;;  %v3126_v62 = vor.u32 %v3124_v53, %v3122_v61  ;;  %v3453_v43 = vpack.c.b16 %v3440_v36, %v3440_v36  ;;  %v7793_v61 = vld [vmem:[#allocation4 + $0x70] sm:$0xff] }
 0x28f   : > { %v4026_v5 = vadd.f32 %v3943_v13, %v3724_v18  ;;  %v3131_v33 = vsel %vm1917_vm7, %v3126_v62, %v3130_v39  ;;  %v3560_v13 = vsel %vm1240_vm12, %v3550_v17, %v3559_v34  ;;  %v3562_v31 = vshrl.u32 %v3453_v43, 16 }
 0x290   : > { %v3646_v29 = vpop.f32.mrf.mxu2  ;;  %v4352_v41 = vpop.f32.mrf.mxu0  ;;  %v3565_v54 = vshll.u32 %v3453_v43, 16  ;;  %v3136_v17 = vshll.u32 %v7793_v61, 16  ;;  %v4262_v62 = vshrl.u32 %v7776_v28, 16 }
 0x291   : > { %3985 = vmatmul.bf16.gmra.mxu3 %v6025_v44  ;;  %v7784_v47 = vadd.f32 %v4349_v40, %v4026_v5  ;;  %v6047_v40 = vld [vmem:[#allocation4 + $0x7c] sm:$0xff]  ;;  %v3564_v5 = vrot.slane %v3562_v31, 3 }
 0x292   : > { %v3222_v52 = vpop.f32.mrf.mxu1  ;;  %v4266_v57 = vshll.u32 %v6047_v40, 16  ;;  %v3567_v53 = vrot.slane %v3565_v54, 4  ;;  %v3138_v43 = vrot.slane %v3136_v17, 1 }
 0x293   : > { %v6221_v38 = vpack.c.bf16 %v7784_v47, %v7782_v12  ;;  %4391 = vmatmul.bf16.gmra.mxu0 %v4261_v9  ;;  %v3303_v10 = vadd.f32 %v3222_v52, %v7589_v22  ;;  %v6026_v52 = vld [vmem:[#allocation4 + $0x74] sm:$0xff] }
 0x294   : > { %v3946_v21 = vpop.f32.mrf.mxu3  ;;  %v4268_v9 = vrot.slane %v4266_v57, 1 }
 0x295   : > { %6222 = vst [vmem:[%s6521_s16] sm:$0xff] %v6221_v38   ;;  %3261 = vmatmul.bf16.gmra.mxu1 %v3131_v33  ;;  %3688 = vmatmul.bf16.gmra.mxu2 %v3560_v13  ;;  %v3725_v3 = vadd.f32 %v3644_v48, %v3303_v10  ;;  %v4097_v33 = vld [vmem:[#allocation4 + $0x84] sm:$0x1]  ;;  %v3132_v13 = vshrl.u32 %v7774_v24, 16  ;;  %v3568_v10 = vor.u32 %v3567_v53, %v3564_v5 }
 0x296   : > { %v4164_v57 = vunpack.c.l.b16 %v4097_v33 }
 0x297   : > { %v4027_v22 = vadd.f32 %v3946_v21, %v3725_v3  ;;  %v3134_v3 = vor.u32 %v3132_v13, %v3130_v39  ;;  %v4270_v13 = vshrl.u32 %v6047_v40, 16 }
 0x298   : > { %v3649_v25 = vpop.f32.mrf.mxu2  ;;  %v4354_v19 = vpop.f32.mrf.mxu0  ;;  %v4177_v17 = vpack.c.b16 %v4164_v57, %v4164_v57 }
 0x299   : > { %v3139_v24 = vsel %vm1917_vm7, %v3134_v3, %v3138_v43 }
 0x29a   : > { %v3224_v18 = vpop.f32.mrf.mxu1 }
 0x29b   : > { %v3304_v44 = vadd.f32 %v3224_v18, %v7620_v58  ;;  %v4264_v58 = vor.u32 %v4262_v62, %v4260_v32  ;;  %v7799_v18 = vadd.f32 %v4352_v41, %v4027_v22  ;;  %v3569_v32 = vsel %vm1240_vm12, %v3559_v34, %v3568_v10  ;;  %v6027_v10 = vld [vmem:[#allocation4 + $0x7c] sm:$0xff] }
 0x29c   : > { %v3948_v63 = vpop.f32.mrf.mxu3  ;;  %vm4671_vm12 = vcmask 523264  }
 0x29d   : > { %v3726_v36 = vadd.f32 %v3646_v29, %v3304_v44  ;;  %v2967_v29 = vld [vmem:[#allocation4 + $0x78] sm:$0x1]  ;;  %v4269_v28 = vsel %vm1917_vm7, %v4264_v58, %v4268_v9 }
 0x29e   : > { %v3034_v41 = vunpack.c.l.b16 %v2967_v29  ;;  %v3140_v29 = vshrl.u32 %v7793_v61, 16 }
 0x29f   : > { %v4028_v38 = vadd.f32 %v3948_v63, %v3726_v36 }
 0x2a0   : > { %v3651_v48 = vpop.f32.mrf.mxu2  ;;  %v4357_v21 = vpop.f32.mrf.mxu0  ;;  %v3047_v5 = vpack.c.b16 %v3034_v41, %v3034_v41 }
 0x2a1   : > { %3990 = vmatmul.bf16.gmra.mxu3 %v6026_v52  ;;  %v7801_v31 = vadd.f32 %v4354_v19, %v4028_v38  ;;  %v4274_v52 = vshll.u32 %v4177_v17, 16 }
 0x2a2   : > { %v3227_v54 = vpop.f32.mrf.mxu1  ;;  %v3144_v33 = vshll.u32 %v3047_v5, 16 }
 0x2a3   : > { %v6226_v44 = vpack.c.bf16 %v7801_v31, %v7799_v18  ;;  %4396 = vmatmul.bf16.gmra.mxu0 %v4269_v28  ;;  %v3305_v19 = vadd.f32 %v3227_v54, %v7639_v6  ;;  %v4272_v6 = vor.u32 %v4270_v13, %v4268_v9  ;;  %v4276_v54 = vrot.slane %v4274_v52, 1 }
 0x2a4   : > { %v3951_v63 = vpop.f32.mrf.mxu3  ;;  %v3146_v57 = vrot.slane %v3144_v33, 1 }
 0x2a5   : > { %6312 = vst [vmem:[%s6521_s16 + $0x8] sm:$0xff] %v6226_v44   ;;  %3266 = vmatmul.bf16.gmra.mxu1 %v3139_v24  ;;  %3693 = vmatmul.bf16.gmra.mxu2 %v3569_v32  ;;  %v3727_v53 = vadd.f32 %v3649_v25, %v3305_v19  ;;  %v3142_v25 = vor.u32 %v3140_v29, %v3138_v43 }
 0x2a6   : > { %v4277_v40 = vsel %vm1917_vm7, %v4272_v6, %v4276_v54 }
 0x2a7   : > { %v4029_v58 = vadd.f32 %v3951_v63, %v3727_v53  ;;  %v3147_v9 = vsel %vm1917_vm7, %v3142_v25, %v3146_v57 }
 0x2a8   : > { %v3654_v39 = vpop.f32.mrf.mxu2  ;;  %v4359_v22 = vpop.f32.mrf.mxu0 }
 0x2a9   : > { %v7812_v44 = vadd.f32 %v4357_v21, %v4029_v58 }
 0x2aa   : > { %v3229_v36 = vpop.f32.mrf.mxu1 }
 0x2ab   : > { %v3306_v62 = vadd.f32 %v3229_v36, %v7650_v26 }
 0x2ac   : > { %v3953_v38 = vpop.f32.mrf.mxu3 }
 0x2ad   : > { %v3728_v34 = vadd.f32 %v3651_v48, %v3306_v62 }
 0x2af   : > { %v4030_v3 = vadd.f32 %v3953_v38, %v3728_v34 }
 0x2b0   : > { %v3656_v28 = vpop.f32.mrf.mxu2  ;;  %v4362_v26 = vpop.f32.mrf.mxu0 }
 0x2b1   : > { %3995 = vmatmul.bf16.gmra.mxu3 %v6027_v10  ;;  %v7814_v24 = vadd.f32 %v4359_v22, %v4030_v3 }
 0x2b2   : > { %v3232_v32 = vpop.f32.mrf.mxu1 }
 0x2b3   : > { %v6231_v48 = vpack.c.bf16 %v7814_v24, %v7812_v44  ;;  %4401 = vmatmul.bf16.gmra.mxu0 %v4277_v40  ;;  %v3307_v63 = vadd.f32 %v3232_v32, %v7656_v55 }
 0x2b4   : > { %v3956_v61 = vpop.f32.mrf.mxu3 }
 0x2b5   : > { %6313 = vst [vmem:[%s6521_s16 + $0x10] sm:$0xff] %v6231_v48   ;;  %3271 = vmatmul.bf16.gmra.mxu1 %v3147_v9  ;;  %v3729_v21 = vadd.f32 %v3654_v39, %v3307_v63 }
 0x2b7   : > { %v4031_v53 = vadd.f32 %v3956_v61, %v3729_v21 }
 0x2b8   : > { %v3659_v43 = vpop.f32.mrf.mxu2  ;;  %v4364_v41 = vpop.f32.mrf.mxu0 }
 0x2b9   : > { %v7823_v62 = vadd.f32 %v4362_v26, %v4031_v53 }
 0x2ba   : > { %v3234_v19 = vpop.f32.mrf.mxu1 }
 0x2bb   : > { %v3308_v17 = vadd.f32 %v3234_v19, %v7660_v20 }
 0x2bc   : > { %v3958_v5 = vpop.f32.mrf.mxu3 }
 0x2bd   : > { %v3730_v22 = vadd.f32 %v3656_v28, %v3308_v17 }
 0x2bf   : > { %v4032_v36 = vadd.f32 %v3958_v5, %v3730_v22 }
 0x2c0   : > { %v3661_v52 = vpop.f32.mrf.mxu2  ;;  %v4367_v33 = vpop.f32.mrf.mxu0 }
 0x2c1   : > { %v7825_v38 = vadd.f32 %v4364_v41, %v4032_v36 }
 0x2c2   : > { %v3237_v13 = vpop.f32.mrf.mxu1 }
 0x2c3   : > { %v6236_v55 = vpack.c.bf16 %v7825_v38, %v7823_v62  ;;  %v3309_v39 = vadd.f32 %v3237_v13, %v7666_v51 }
 0x2c4   : > { %v3961_v58 = vpop.f32.mrf.mxu3 }
 0x2c5   : > { %6314 = vst [vmem:[%s6521_s16 + $0x18] sm:$0xff] %v6236_v55   ;;  %v3731_v20 = vadd.f32 %v3659_v43, %v3309_v39 }
 0x2c7   : > { %v4033_v3 = vadd.f32 %v3961_v58, %v3731_v20 }
 0x2c8   : > { %v3664_v34 = vpop.f32.mrf.mxu2  ;;  %v4369_v10 = vpop.f32.mrf.mxu0 }
 0x2c9   : > { %v4439_v26 = vadd.f32 %v4367_v33, %v4033_v3 }
 0x2ca   : > { %v3239_v29 = vpop.f32.mrf.mxu1 }
 0x2cb   : > { %v3310_v6 = vadd.f32 %v3239_v29, %v7673_v23 }
 0x2cc   : > { %v3963_v54 = vpop.f32.mrf.mxu3 }
 0x2cd   : > { %v3732_v28 = vadd.f32 %v3661_v52, %v3310_v6 }
 0x2cf   : > { %v4034_v25 = vadd.f32 %v3963_v54, %v3732_v28 }
 0x2d0   : > { %v3666_v57 = vpop.f32.mrf.mxu2  ;;  %v4372_v40 = vpop.f32.mrf.mxu0 }
 0x2d1   : > { %v7832_v32 = vadd.f32 %v4369_v10, %v4034_v25 }
 0x2d2   : > { %v3242_v48 = vpop.f32.mrf.mxu1 }
 0x2d3   : > { %v6241_v61 = vpack.c.bf16 %v7832_v32, %v4439_v26  ;;  %v3311_v9 = vadd.f32 %v3242_v48, %v7681_v49 }
 0x2d4   : > { %v3966_v51 = vpop.f32.mrf.mxu3 }
 0x2d5   : > { %6315 = vst [vmem:[%s6521_s16 + $0x20] sm:$0xff] %v6241_v61   ;;  %v3733_v43 = vadd.f32 %v3664_v34, %v3311_v9 }
 0x2d7   : > { %v4035_v17 = vadd.f32 %v3966_v51, %v3733_v43 }
 0x2d8   : > { %v3669_v63 = vpop.f32.mrf.mxu2  ;;  %v4374_v23 = vpop.f32.mrf.mxu0 }
 0x2d9   : > { %v7838_v36 = vadd.f32 %v4372_v40, %v4035_v17 }
 0x2da   : > { %v3244_v21 = vpop.f32.mrf.mxu1 }
 0x2db   : > { %v3312_v41 = vadd.f32 %v3244_v21, %v7686_v35 }
 0x2dc   : > { %v3968_v19 = vpop.f32.mrf.mxu3 }
 0x2dd   : > { %v3734_v5 = vadd.f32 %v3666_v57, %v3312_v41 }
 0x2df   : > { %v4036_v53 = vadd.f32 %v3968_v19, %v3734_v5 }
 0x2e0   : > { %v3671_v22 = vpop.f32.mrf.mxu2  ;;  %v4377_v33 = vpop.f32.mrf.mxu0 }
 0x2e1   : > { %v7840_v52 = vadd.f32 %v4374_v23, %v4036_v53  ;;  %v4655_v23 = vmul.f32 %v7420_v59, %v4439_v26 }
 0x2e2   : > { %v3247_v13 = vpop.f32.mrf.mxu1 }
 0x2e3   : > { %v6246_v49 = vpack.c.bf16 %v7840_v52, %v7838_v36  ;;  %v3313_v58 = vadd.f32 %v3247_v13, %v7692_v8  ;;  %v4724_v17 = vmul.f32 %v4655_v23, %v4439_v26 }
 0x2e4   : > { %v3971_v55 = vpop.f32.mrf.mxu3 }
 0x2e5   : > { %6316 = vst [vmem:[%s6521_s16 + $0x28] sm:$0xff] %v6246_v49   ;;  %v3735_v35 = vadd.f32 %v3669_v63, %v3313_v58 }
 0x2e7   : > { %v4037_v6 = vadd.f32 %v3971_v55, %v3735_v35 }
 0x2e8   : > { %v3674_v39 = vpop.f32.mrf.mxu2  ;;  %v4379_v34 = vpop.f32.mrf.mxu0 }
 0x2e9   : > { %v4443_v25 = vadd.f32 %v4377_v33, %v4037_v6 }
 0x2ea   : > { %v3249_v20 = vpop.f32.mrf.mxu1 }
 0x2eb   : > { %v3314_v10 = vadd.f32 %v3249_v20, %v7699_v11  ;;  %v4659_v20 = vmul.f32 %v7358_v4, %v4443_v25  ;;  %v4656_v4 = vmul.f32 %v7393_v2, %v7832_v32 }
 0x2ec   : > { %v3973_v29 = vpop.f32.mrf.mxu3 }
 0x2ed   : > { %v3736_v54 = vadd.f32 %v3671_v22, %v3314_v10 }
 0x2ef   : > { %v4038_v3 = vadd.f32 %v3973_v29, %v3736_v54 }
 0x2f0   : > { %v3676_v28 = vpop.f32.mrf.mxu2  ;;  %v4382_v40 = vpop.f32.mrf.mxu0 }
 0x2f1   : > { %v4444_v57 = vadd.f32 %v4379_v34, %v4038_v3 }
 0x2f2   : > { %v3252_v48 = vpop.f32.mrf.mxu1 }
 0x2f3   : > { %v6251_v61 = vpack.c.bf16 %v4444_v57, %v4443_v25  ;;  %v3315_v51 = vadd.f32 %v3252_v48, %v7707_v15 }
 0x2f4   : > { %v3976_v8 = vpop.f32.mrf.mxu3 }
 0x2f5   : > { %6317 = vst [vmem:[%s6521_s16 + $0x30] sm:$0xff] %v6251_v61   ;;  %v3737_v9 = vadd.f32 %v3674_v39, %v3315_v51  ;;  %v7987_v51 = vld [vmem:[#allocation13_spill] sm:$0xff] }
 0x2f7   : > { %v4039_v21 = vadd.f32 %v3976_v8, %v3737_v9  ;;  %v4654_v8 = vmul.f32 %v7987_v51, %v7825_v38 }
 0x2f8   : > { %v3679_v63 = vpop.f32.mrf.mxu2  ;;  %v4384_v43 = vpop.f32.mrf.mxu0 }
 0x2f9   : > { %v4445_v53 = vadd.f32 %v4382_v40, %v4039_v21  ;;  %v4723_v21 = vmul.f32 %v4654_v8, %v7825_v38 }
 0x2fa   : > { %v3254_v11 = vpop.f32.mrf.mxu1 }
 0x2fb   : > { %v3316_v41 = vadd.f32 %v3254_v11, %v7712_v16  ;;  %v4661_v59 = vmul.f32 %v7405_v27, %v4445_v53  ;;  %v4660_v16 = vmul.f32 %v7401_v14, %v4444_v57  ;;  %v4658_v27 = vmul.f32 %v7415_v7, %v7840_v52 }
 0x2fc   : > { %v3978_v19 = vpop.f32.mrf.mxu3  ;;  %v4728_v14 = vmul.f32 %v4659_v20, %v4443_v25  ;;  %v4725_v25 = vmul.f32 %v4656_v4, %v7832_v32 }
 0x2fd   : > { %v3738_v5 = vadd.f32 %v3676_v28, %v3316_v41  ;;  %v4730_v26 = vmul.f32 %v4661_v59, %v4445_v53  ;;  %v4729_v29 = vmul.f32 %v4660_v16, %v4444_v57  ;;  %v4657_v28 = vmul.f32 %v7411_v0, %v7838_v36  ;;  %v7989_v41 = vld [vmem:[#allocation15_spill] sm:$0xff] }
 0x2fe   : > { %v4727_v7 = vmul.f32 %v4658_v27, %v7840_v52 }
 0x2ff   : > { %v4040_v22 = vadd.f32 %v3978_v19, %v3738_v5  ;;  %v4652_v19 = vmul.f32 %v7989_v41, %v7814_v24 }
 0x300   : > { %v3681_v33 = vpop.f32.mrf.mxu2  ;;  %v4387_v15 = vpop.f32.mrf.mxu0 }
 0x301   : > { %v4446_v13 = vadd.f32 %v4384_v43, %v4040_v22 }
 0x302   : > { %v3257_v49 = vpop.f32.mrf.mxu1 }
 0x303   : > { %v4662_v55 = vmul.f32 %v7315_v50, %v4446_v13  ;;  %v6256_v58 = vpack.c.bf16 %v4446_v13, %v4445_v53  ;;  %v3317_v34 = vadd.f32 %v3257_v49, %v7720_v56 }
 0x304   : > { %v3981_v39 = vpop.f32.mrf.mxu3 }
 0x305   : > { %v4731_v35 = vmul.f32 %v4662_v55, %v4446_v13  ;;  %6318 = vst [vmem:[%s6521_s16 + $0x38] sm:$0xff] %v6256_v58   ;;  %4675 = vmatpush.msrb.mxu1 %v4662_v55  ;;  %v3739_v10 = vadd.f32 %v3679_v63, %v3317_v34  ;;  %v7992_v55 = vld [vmem:[#allocation21_spill] sm:$0xff] }
 0x306   : > { %v4649_v58 = vmul.f32 %v7992_v55, %v7799_v18 }
 0x307   : > { %4676 = vmatpush.msrb.mxu1 %v4661_v59  ;;  %4740 = vmatpush.msrb.mxu3 %v4731_v35  ;;  %v4041_v40 = vadd.f32 %v3981_v39, %v3739_v10  ;;  %v7993_v39 = vld [vmem:[#allocation24_spill] sm:$0xff] }
 0x308   : > { %v4389_v50 = vpop.f32.mrf.mxu0  ;;  %v3684_v6 = vpop.f32.mrf.mxu2  ;;  %v4648_v59 = vmul.f32 %v7993_v39, %v7784_v47  ;;  %v8000_v39 = vld [vmem:[#allocation17_spill] sm:$0xff] }
 0x309   : > { %4677 = vmatpush.msrb.mxu1 %v4660_v16  ;;  %4741 = vmatpush.msrb.mxu3 %v4730_v26  ;;  %v7867_v61 = vadd.f32 %v4387_v15, %v4041_v40 }
 0x30a   : > { %v3259_v54 = vpop.f32.mrf.mxu1 }
 0x30b   : > { %v3318_v56 = vadd.f32 %v3259_v54, %v7725_v45  ;;  %4678 = vmatpush.msrb.mxu1 %v4659_v20  ;;  %4742 = vmatpush.msrb.mxu3 %v4729_v29  ;;  %v4726_v45 = vmul.f32 %v4657_v28, %v7838_v36  ;;  %v7988_v36 = vld [vmem:[#allocation11_spill] sm:$0xff]  ;;  %v4717_v29 = vmul.f32 %v4648_v59, %v7784_v47 }
 0x30c   : > { %v3983_v3 = vpop.f32.mrf.mxu3  ;;  %v4653_v32 = vmul.f32 %v7988_v36, %v7823_v62  ;;  %v6440_v36 = vmov 1.0  }
 0x30d   : > { %v3740_v48 = vadd.f32 %v3681_v33, %v3318_v56  ;;  %4679 = vmatpush.msrb.mxu1 %v4658_v27  ;;  %4743 = vmatpush.msrb.mxu3 %v4728_v14 }
 0x30e   : > { %v4722_v5 = vmul.f32 %v4653_v32, %v7823_v62 }
 0x30f   : > { %v4042_v57 = vadd.f32 %v3983_v3, %v3740_v48  ;;  %4680 = vmatpush.msrb.mxu1 %v4657_v28  ;;  %4744 = vmatpush.msrb.mxu3 %v4727_v7 }
 0x310   : > { %v4392_v2 = vpop.f32.mrf.mxu0  ;;  %v3686_v43 = vpop.f32.mrf.mxu2 }
 0x311   : > { %v7869_v0 = vadd.f32 %v4389_v50, %v4042_v57  ;;  %4681 = vmatpush.msrb.mxu1 %v4656_v4  ;;  %4745 = vmatpush.msrb.mxu3 %v4726_v45 }
 0x312   : > { %v3262_v9 = vpop.f32.mrf.mxu1 }
 0x313   : > { %v6261_v52 = vpack.c.bf16 %v7869_v0, %v7867_v61  ;;  %4682 = vmatpush.msrb.mxu1 %v4655_v23  ;;  %4746 = vmatpush.msrb.mxu3 %v4725_v25  ;;  %v3319_v11 = vadd.f32 %v3262_v9, %v7733_v37  ;;  %v7990_v23 = vld [vmem:[#allocation19_spill] sm:$0xff]  ;;  %v4721_v37 = vmul.f32 %v4652_v19, %v7814_v24 }
 0x314   : > { %v3986_v63 = vpop.f32.mrf.mxu3  ;;  %v4651_v53 = vmul.f32 %v7990_v23, %v7812_v44 }
 0x315   : > { %6319 = vst [vmem:[%s6521_s16 + $0x40] sm:$0xff] %v6261_v52   ;;  %4683 = vmatpush.msrb.mxu1 %v4654_v8  ;;  %4747 = vmatpush.msrb.mxu3 %v4724_v17  ;;  %v3741_v22 = vadd.f32 %v3684_v6, %v3319_v11  ;;  %v7991_v17 = vld [vmem:[#allocation14_spill] sm:$0xff] }
 0x316   : > { %v4650_v13 = vmul.f32 %v7991_v17, %v7801_v31  ;;  %v4720_v62 = vmul.f32 %v4651_v53, %v7812_v44  ;;  %v7994_v44 = vld [vmem:[#allocation20_spill] sm:$0xff] }
 0x317   : > { %4684 = vmatpush.msrb.mxu1 %v4653_v32  ;;  %4748 = vmatpush.msrb.mxu3 %v4723_v21  ;;  %v4043_v35 = vadd.f32 %v3986_v63, %v3741_v22  ;;  %v4647_v20 = vmul.f32 %v7994_v44, %v7782_v12  ;;  %v7997_v17 = vld [vmem:[#allocation12_spill] sm:$0xff] }
 0x318   : > { %v4394_v33 = vpop.f32.mrf.mxu0  ;;  %v4719_v24 = vmul.f32 %v4650_v13, %v7801_v31  ;;  %v3689_v16 = vpop.f32.mrf.mxu2 }
 0x319   : > { %4685 = vmatpush.msrb.mxu1 %v4652_v19  ;;  %4749 = vmatpush.msrb.mxu3 %v4722_v5  ;;  %v7898_v10 = vadd.f32 %v4392_v2, %v4043_v35  ;;  %v7995_v2 = vld [vmem:[#allocation25_spill] sm:$0xff] }
 0x31a   : > { %v3264_v38 = vpop.f32.mrf.mxu1 }
 0x31b   : > { %v3320_v15 = vadd.f32 %v3264_v38, %v7738_v46  ;;  %4686 = vmatpush.msrb.mxu1 %v4651_v53  ;;  %4750 = vmatpush.msrb.mxu3 %v4721_v37  ;;  %v4718_v46 = vmul.f32 %v4649_v58, %v7799_v18  ;;  %v4716_v18 = vmul.f32 %v4647_v20, %v7782_v12 }
 0x31c   : > { %v3988_v49 = vpop.f32.mrf.mxu3  ;;  %v4663_v12 = vmul.f32 %v7995_v2, %v7867_v61 }
 0x31d   : > { %v3742_v34 = vadd.f32 %v3686_v43, %v3320_v15  ;;  %4687 = vmatpush.msrb.mxu1 %v4650_v13  ;;  %4751 = vmatpush.msrb.mxu3 %v4720_v62  ;;  %v7998_v15 = vld [vmem:[#allocation18_spill] sm:$0xff] }
 0x31e   : > { %v4732_v63 = vmul.f32 %v4663_v12, %v7867_v61  ;;  %v7999_v62 = vld [vmem:[#allocation22_spill] sm:$0xff] }
 0x31f   : > { %v4044_v26 = vadd.f32 %v3988_v49, %v3742_v34  ;;  %4688 = vmatpush.msrb.mxu1 %v4649_v58  ;;  %4752 = vmatpush.msrb.mxu3 %v4719_v24  ;;  %v8001_v34 = vld [vmem:[#allocation23_spill] sm:$0xff] }
 0x320   : > { %v4397_v31 = vpop.f32.mrf.mxu0  ;;  %v3691_v3 = vpop.f32.mrf.mxu2  ;;  %v4665_v24 = vmul.f32 %v8001_v34, %v7898_v10 }
 0x321   : > { %v7900_v50 = vadd.f32 %v4394_v33, %v4044_v26  ;;  %4689 = vmatpush.msrb.mxu1 %v4648_v59  ;;  %4753 = vmatpush.msrb.mxu3 %v4718_v46  ;;  %v7996_v33 = vld [vmem:[#allocation16_spill] sm:$0xff]  ;;  %v8002_v26 = vld [vmem:[#allocation26_spill] sm:$0xff] }
 0x322   : > { %v3267_v27 = vpop.f32.mrf.mxu1  ;;  %v4664_v46 = vmul.f32 %v8002_v26, %v7869_v0  ;;  %v4734_v44 = vmul.f32 %v4665_v24, %v7898_v10 }
 0x323   : > { %v6266_v6 = vpack.c.bf16 %v7900_v50, %v7898_v10  ;;  %4690 = vmatpush.msrb.mxu1 %v4647_v20  ;;  %4754 = vmatpush.msrb.mxu3 %v4717_v29  ;;  %v3321_v56 = vadd.f32 %v3267_v27, %v7748_v30  ;;  %v4666_v59 = vmul.f32 %v8000_v39, %v7900_v50 }
 0x324   : > { %v3991_v54 = vpop.f32.mrf.mxu3  ;;  %4691 = vmatmul.f32.vlgmr.msrb.gmra.mxu1 %v6440_v36  ;;  %v4733_v20 = vmul.f32 %v4664_v46, %v7869_v0 }
 0x325   : > { %6320 = vst [vmem:[%s6521_s16 + $0x48] sm:$0xff] %v6266_v6   ;;  %4755 = vmatpush.msrb.mxu3 %v4716_v18  ;;  %v3743_v14 = vadd.f32 %v3689_v16, %v3321_v56  ;;  %v4735_v16 = vmul.f32 %v4666_v59, %v7900_v50 }
 0x326   : > { %4756 = vmatmul.f32.vlgmr.msrb.gmra.mxu3 %v6440_v36 }
 0x327   : > { %v4045_v48 = vadd.f32 %v3991_v54, %v3743_v14 }
 0x328   : > { %v4399_v40 = vpop.f32.mrf.mxu0  ;;  %v3694_v51 = vpop.f32.mrf.mxu2 }
 0x329   : > { %v4451_v45 = vadd.f32 %v4397_v31, %v4045_v48 }
 0x32a   : > { %v3269_v28 = vpop.f32.mrf.mxu1 }
 0x32b   : > { %v3322_v47 = vadd.f32 %v3269_v28, %v7754_v60  ;;  %v4667_v55 = vmul.f32 %v7999_v62, %v4451_v45 }
 0x32c   : > { %v3993_v4 = vpop.f32.mrf.mxu3 }
 0x32d   : > { %v3744_v7 = vadd.f32 %v3691_v3, %v3322_v47  ;;  %v4736_v35 = vmul.f32 %v4667_v55, %v4451_v45 }
 0x32f   : > { %v4046_v57 = vadd.f32 %v3993_v4, %v3744_v7 }
 0x330   : > { %v4402_v60 = vpop.f32.mrf.mxu0  ;;  %v3696_v41 = vpop.f32.mrf.mxu2 }
 0x331   : > { %v4452_v25 = vadd.f32 %v4399_v40, %v4046_v57 }
 0x332   : > { %v3272_v8 = vpop.f32.mrf.mxu1 }
 0x333   : > { %v6271_v30 = vpack.c.bf16 %v4452_v25, %v4451_v45  ;;  %v3323_v9 = vadd.f32 %v3272_v8, %v7762_v42  ;;  %v4668_v49 = vmul.f32 %v7998_v15, %v4452_v25 }
 0x334   : > { %v3996_v52 = vpop.f32.mrf.mxu3 }
 0x335   : > { %6321 = vst [vmem:[%s6521_s16 + $0x50] sm:$0xff] %v6271_v30   ;;  %v3745_v32 = vadd.f32 %v3694_v51, %v3323_v9  ;;  %v4737_v58 = vmul.f32 %v4668_v49, %v4452_v25 }
 0x337   : > { %v4047_v11 = vadd.f32 %v3996_v52, %v3745_v32 }
 0x338   : > { %v4404_v42 = vpop.f32.mrf.mxu0 }
 0x339   : > { %v4453_v23 = vadd.f32 %v4402_v60, %v4047_v11 }
 0x33a   : > { %v3274_v43 = vpop.f32.mrf.mxu1 }
 0x33b   : > { %v3324_v21 = vadd.f32 %v3274_v43, %v7768_v1  ;;  %v4669_v13 = vmul.f32 %v7997_v17, %v4453_v23 }
 0x33c   : > { %v3998_v5 = vpop.f32.mrf.mxu3 }
 0x33d   : > { %v3746_v19 = vadd.f32 %v3696_v41, %v3324_v21  ;;  %v4738_v1 = vmul.f32 %v4669_v13, %v4453_v23 }
 0x33f   : > { %v4048_v53 = vadd.f32 %v3998_v5, %v3746_v19 }
 0x341   : > { %v4454_v22 = vadd.f32 %v4404_v42, %v4048_v53 }
 0x343   : > { %v4670_v61 = vmul.f32 %v7996_v33, %v4454_v22  ;;  %v6276_v37 = vpack.c.bf16 %v4454_v22, %v4453_v23 }
 0x345   : > { %v4739_v38 = vmul.f32 %v4670_v61, %v4454_v22  ;;  %6322 = vst [vmem:[%s6521_s16 + $0x58] sm:$0xff] %v6276_v37   ;;  %4703 = vmatpush.msrb.mxu2 %v4670_v61 }
 0x347   : > { %4704 = vmatpush.msrb.mxu2 %v4669_v13  ;;  %4768 = vmatpush.msra.mxu1 %v4739_v38 }
 0x349   : > { %4705 = vmatpush.msrb.mxu2 %v4668_v49  ;;  %4769 = vmatpush.msra.mxu1 %v4738_v1 }
 0x34b   : > { %4706 = vmatpush.msrb.mxu2 %v4667_v55  ;;  %4770 = vmatpush.msra.mxu1 %v4737_v58 }
 0x34d   : > { %4707 = vmatpush.msrb.mxu2 %v4666_v59  ;;  %4771 = vmatpush.msra.mxu1 %v4736_v35 }
 0x34f   : > { %4708 = vmatpush.msrb.mxu2 %v4665_v24  ;;  %4772 = vmatpush.msra.mxu1 %v4735_v16 }
 0x351   : > { %4709 = vmatpush.msrb.mxu2 %v4664_v46  ;;  %4773 = vmatpush.msra.mxu1 %v4734_v44 }
 0x353   : > { %4710 = vmatpush.msrb.mxu2 %v4663_v12  ;;  %4774 = vmatpush.msra.mxu1 %v4733_v20 }
 0x354   : > { %5866 = vmatmul.msk.f32.vlgmr.msrb.gmra.mxu2 %vm4671_vm12, %v6440_v36 }
 0x355   : > { %4775 = vmatpush.msra.mxu1 %v4732_v63 }
 0x356   : > { %5867 = vmatmul.msk.f32.vlgmr.msra.gmra.mxu1 %vm4671_vm12, %v6440_v36 }
 0x3a1   : > { %v4692_v50 = vpop.f32.mrf.mxu1 }
 0x3a9   : > { %v4757_v29 = vpop.f32.mrf.mxu3 }
 0x3d3   : > { %v4777_v27 = vpop.f32.mrf.mxu1 }
 0x3d4   : > { %v4778_v31 = vadd.f32 %v4777_v27, %v4757_v29 }
 0x3d6   : > { %4780 = vst [vmem:[%s6526_s20 + $0x1] sm:$0x1] %v4778_v31 }
 0x3d7   : > { %v4712_v6 = vpop.f32.mrf.mxu2 }
 0x3d8   : > { %v4713_v54 = vadd.f32 %v4712_v6, %v4692_v50 }
 0x3da   : > { %4715 = vst [vmem:[%s6526_s20] sm:$0x1] %v4713_v54 }
 0x3db PF: > { %s17_s25 = sadd.s32 1, %s6437_s25   ;;  %s8003_s16 = sld [smem:[#allocation9_spill]] }
 0x3dc   : > { %p14_p0 = scmp.ge.s32.totalorder %s17_s25, 6   ;;  %s8004_s28 = sld [smem:[#allocation10_spill]] }
 0x3dd   : > { %s8005_s21 = smov %s6429_s23  ;;  %s8006_s22 = smov %s6433_s24 }
 0x3de   :  { %16 = sbr.rel (!%p14_p0) target bundleno = 3 (0x3), region = 144 }
 0x3e1   : > { %s8007_s23 = smov %s8003_s16 }
 0x3e2   : > { %s8008_s24 = smov %s8004_s28 }
 0x3e3   :  { %4881 = vsyncmov [#allocation3] }
 0x3e6   :  { %s4882_s20 = vpop.sfrf %4881 }
 0x3e7   :  { %p5870_p1 = scmp.ne.s32.totalorder %s4882_s20, 0 }
 0x3e9   :  { %4886 = shalt.err (%p5870_p1)  }
 0x3ea   :  { %4888 = vsyncmov [#allocation3 + $0x1] }
 0x3ed   :  { %s4889_s11 = vpop.sfrf %4888 }
 0x3ee   :  { %p5871_p2 = scmp.ne.s32.totalorder %s4889_s11, 0 }
 0x3f0   :  { %4893 = shalt.err (%p5871_p2)  }

</bundles_post_ra>
